<compile_context>
chip_gen: v5e
topology: v5e:2x2
jax: 0.10.0
libtpu: 0.0.40
codegen_flags: <defaults>
</compile_context>

<pallas_src>
from functools import partial

import jax
import jax.numpy as jnp
from jax.experimental import pallas as pl
from jax.experimental.pallas import tpu as pltpu


# ---------------------------------------------------------------------------
# Fused decoder kernel (one grid step == one batch element).
# ---------------------------------------------------------------------------
def _fused_decoder_kernel(xp0_ref, w1_ref, b1_ref, shift1_ref, w2_ref, b2_ref,
                          w3_ref, b3_ref, mask_ref, out_ref, xp1_ref, xp2_ref,
                          *, H, W, E):
    Wp = W + 2                     # padded row width
    M = H * Wp                     # conv output columns (incl. 2 wrap cols / row)
    col0 = Wp + 1                  # copy-frame column of real pixel (0, 0)
    base = 2 * Wp                  # common read base of the 3 ky-shifted copies
    nout = out_ref.shape[-1]       # lane-dense head width == round_up(M, 128)
    mask = mask_ref[...]           # (1, M) bf16: zeroes the 2 wrap columns / row

    def conv3x3(src_ref, w_ref, n):
        # src_ref: (3*Cin, cols) bf16, ky-stacked shifted copies of the padded image
        # w_ref:   (3, Cout, 3*Cin) bf16, kx-major, ky stacked along K
        # -> 3 MXU matmuls with K = 3*Cin instead of 9 with K = Cin.
        acc = jnp.dot(w_ref[0], src_ref[:, base:base + n],
                      preferred_element_type=jnp.float32)
        for kx in (1, 2):
            acc += jnp.dot(w_ref[kx], src_ref[:, base + kx:base + kx + n],
                           preferred_element_type=jnp.float32)
        return acc

    def write_copies(dst_ref, y):
        # Store the masked bf16 activation as 3 row-shifted copies; zero ONLY the
        # halo columns the next conv reads (its reads span [base, base + 2 + M)).
        for ky in range(3):
            r, s = ky * E, (2 - ky) * Wp
            h0, h1 = max(s, base), s + col0                  # top halo (clipped)
            if h1 > h0:
                dst_ref[r:r + E, h0:h1] = jnp.zeros((E, h1 - h0), dst_ref.dtype)
            dst_ref[r:r + E, s + col0:s + col0 + M] = y      # interior
            t0, t1 = s + col0 + M, base + 2 + M              # bottom halo (clipped)
            if t1 > t0:
                dst_ref[r:r + E, t0:t1] = jnp.zeros((E, t1 - t0), dst_ref.dtype)

    # ---- stage 1: Conv3x3(2E -> E) -> ReLU -> BN shift (scale folded into w2) ---
    y = conv3x3(xp0_ref, w1_ref, M)
    y = jnp.maximum(y + b1_ref[...], 0.0) + shift1_ref[...]
    write_copies(xp1_ref, y.astype(jnp.bfloat16) * mask)

    # ---- stage 2: Conv3x3(E -> E) -> ReLU  (weights carry the folded bn_scale) --
    y = conv3x3(xp1_ref, w2_ref, M)
    y = jnp.maximum(y + b2_ref[...], 0.0)
    write_copies(xp2_ref, y.astype(jnp.bfloat16) * mask)

    # TODO(synk): ACSP / DualGCN_Spatial_fist are undefined in the reference
    # source; treated as identity pass-throughs (f_g = f_diff).

    # ---- head: Conv3x3(E -> NCP), `nout` columns wide -> unmasked lane-dense store
    y = conv3x3(xp2_ref, w3_ref, nout)
    out_ref[...] = (y + b3_ref[...]).astype(out_ref.dtype)


# ---------------------------------------------------------------------------
# Parameters (kernel-ready layout: (3, Cout, 3*Cin) stacked weights, (C,1) biases)
# ---------------------------------------------------------------------------
def init_params(key, embedding_dim, output_nc):
    e = embedding_dim
    ncp = max(8, output_nc)                 # pad tiny head to a full sublane group
    ks = jax.random.split(key, 6)

    def conv_w(k, cin, cout):
        # PyTorch layout (Cout, Cin, 3, 3), f32.
        # (init is normal/sqrt(fan_in), not torch's kaiming-uniform — perf-irrelevant)
        return jax.random.normal(k, (cout, cin, 3, 3), jnp.float32) / jnp.sqrt(cin * 9)

    def stack(w, cout_pad=None):
        # (Cout, Cin, 3, 3) -> (kx=3, Cout, ky*Cin + cin)   (kernel layout)
        cout, cin = w.shape[:2]
        w = jnp.transpose(w, (3, 0, 2, 1)).reshape(3, cout, 3 * cin)
        if cout_pad is not None and cout_pad > cout:
            w = jnp.pad(w, ((0, 0), (0, cout_pad - cout), (0, 0)))
        return w

    def bias(k, c, c_pad=None):
        b = jax.random.normal(k, (c,), jnp.float32) * 0.01
        if c_pad is not None and c_pad > c:
            b = jnp.pad(b, (0, c_pad - c))
        return b.reshape(-1, 1)

    return {
        "w1": stack(conv_w(ks[0], 2 * e, e)).astype(jnp.bfloat16),          # (3, E, 6E)
        "b1": bias(ks[1], e),
        # BatchNorm2d parameters / running stats (PyTorch defaults)
        "bn_gamma": jnp.ones((e,), jnp.float32),
        "bn_beta": jnp.zeros((e,), jnp.float32),
        "bn_mean": jnp.zeros((e,), jnp.float32),
        "bn_var": jnp.ones((e,), jnp.float32),
        "w2": stack(conv_w(ks[2], e, e)),                                   # (3, E, 3E) f32
        "b2": bias(ks[3], e),
        "w3": stack(conv_w(ks[4], e, output_nc), cout_pad=ncp).astype(jnp.bfloat16),
        "b3": bias(ks[5], output_nc, c_pad=ncp),
    }


def _round_up(x, m):
    return ((x + m - 1) // m) * m


# ---------------------------------------------------------------------------
# MAFG_Decoder forward
# ---------------------------------------------------------------------------
def mafg_decoder_forward(inputs1, inputs2, params, *, output_nc=2,
                         output_softmax=False):
    """inputs1/inputs2: (B, E, H, W) float32, NCHW (PyTorch convention)."""
    B, E, H, W = inputs1.shape
    Wp, Hp = W + 2, H + 2
    npix = Hp * Wp                          # flattened padded image size
    M = H * Wp                              # conv output columns
    base = 2 * Wp                           # read base of the 3 ky copies
    NOUT = _round_up(M, 128)                # lane-dense head width
    NCP = params["w3"].shape[1]             # padded head channels (>= output_nc)
    nc = int(output_nc)

    NCIN_COLS = _round_up(max(2 * Wp + npix, base + 2 + M), 128)
    XP1_COLS = _round_up(max(3 * Wp + 1 + M, base + 2 + M), 128)
    XP2_COLS = _round_up(max(3 * Wp + 1 + M, base + 2 + NOUT), 128)
    # guard the read/write extents against future H/W changes
    assert 2 * Wp + npix <= NCIN_COLS and base + 2 + M <= NCIN_COLS
    assert 3 * Wp + 1 + M <= XP1_COLS and base + 2 + M <= XP1_COLS
    assert 3 * Wp + 1 + M <= XP2_COLS and base + 2 + NOUT <= XP2_COLS

    # torch.cat(dim=1) + zero pad(1) + flatten + 3 ky-shifted copies + bf16 cast —
    # one fused XLA op; the kernel DMAs this slab straight into VMEM.
    x = jnp.concatenate([inputs1, inputs2], axis=1)                       # (B, 2E, H, W)
    x = jnp.pad(x, ((0, 0), (0, 0), (1, 1), (1, 1))).reshape(B, 2 * E, npix)
    xp0 = jnp.concatenate(
        [jnp.pad(x, ((0, 0), (0, 0),
                     ((2 - ky) * Wp, NCIN_COLS - (2 - ky) * Wp - npix)))
         for ky in range(3)], axis=1).astype(jnp.bfloat16)                # (B, 6E, NCIN_COLS)

    # Eval-mode BatchNorm: multiplicative scale folded into conv2's input channels;
    # the shift is applied explicitly after stage 1 (pre-divided by the scale so
    # the fold stays exact).  NOTE: assumes bn_scale != 0 (true for default gamma).
    # Folding bn_shift into b2 would be wrong at image borders, so it stays explicit.
    eps = 1e-5
    scale = params["bn_gamma"] / jnp.sqrt(params["bn_var"] + eps)         # (E,)
    shift1 = (params["bn_beta"] / scale - params["bn_mean"]).reshape(E, 1).astype(jnp.float32)
    w2 = (params["w2"] * jnp.tile(scale, 3)[None, None, :]).astype(jnp.bfloat16)

    # Wrap-column mask (bf16): zeroes the 2 junk columns appended to each image row.
    # (Kept as a tiny input; weights/biases/mask could use pl.Buffered(1), ~300 KB.)
    mask = ((jnp.arange(M, dtype=jnp.int32) % Wp) < W).astype(jnp.bfloat16).reshape(1, M)

    def const(shape):
        return pl.BlockSpec(shape, lambda b, _n=len(shape): (0,) * _n)

    kernel = partial(_fused_decoder_kernel, H=H, W=W, E=E)

    out = pl.pallas_call(
        kernel,
        out_shape=jax.ShapeDtypeStruct((B, NCP, NOUT), jnp.float32),
        grid_spec=pltpu.PrefetchScalarGridSpec(
            num_scalar_prefetch=0,
            grid=(B,),
            in_specs=[
                pl.BlockSpec((None, 6 * E, NCIN_COLS), lambda b: (b, 0, 0)),  # xp0
                const((3, E, 6 * E)),        # w1 (ky-stacked K)
                const((E, 1)),               # b1
                const((E, 1)),               # bn shift / bn scale
                const((3, E, 3 * E)),        # w2 (bn_scale folded in)
                const((E, 1)),               # b2
                const((3, NCP, 3 * E)),      # w3 (head, Cout padded)
                const((NCP, 1)),             # b3 (padded)
                const((1, M)),               # wrap-column mask
            ],
            out_specs=pl.BlockSpec((None, NCP, NOUT), lambda b: (b, 0, 0)),
            scratch_shapes=[
                pltpu.VMEM((3 * E, XP1_COLS), jnp.bfloat16),   # stage-1 output (3 copies)
                pltpu.VMEM((3 * E, XP2_COLS), jnp.bfloat16),   # stage-2 output (3 copies)
            ],
        ),
        compiler_params=pltpu.CompilerParams(
            dimension_semantics=("parallel",)),
    )(xp0, params["w1"], params["b1"], shift1, w2, params["b2"],
      params["w3"], params["b3"], mask)

    # (B, NCP, NOUT) -> NCHW (B, nc, H, W): drop padded channels / junk columns.
    f_c = out[:, :nc, :M].reshape(B, nc, H, Wp)[..., :W]

    outputs = [f_c]
    if output_softmax:
        # Matches the reference module: nn.Sigmoid applied to each output.
        outputs = [jax.nn.sigmoid(p) for p in outputs]
    return outputs


# ---------------------------------------------------------------------------
if __name__ == "__main__":
    B, E, H, W = 2, 64, 16, 16          # embedding_dim=64 (module default)
    OUTPUT_NC = 2

    key = jax.random.PRNGKey(0)
    k_in1, k_in2, k_p = jax.random.split(key, 3)
    inputs1 = jax.random.normal(k_in1, (B, E, H, W), jnp.float32)
    inputs2 = jax.random.normal(k_in2, (B, E, H, W), jnp.float32)
    params = init_params(k_p, embedding_dim=E, output_nc=OUTPUT_NC)

    fwd = jax.jit(partial(mafg_decoder_forward, output_nc=OUTPUT_NC))
    outs = fwd(inputs1, inputs2, params)
    jax.block_until_ready(outs[0])
    assert outs[0].shape == (B, OUTPUT_NC, H, W)
    print("KERNEL_OK")
</pallas_src>

<mosaic_0001>
module attributes {stable_mosaic.version = 11 : i64} {
  func.func @_fused_decoder_kernel(%arg0: i32, %arg1: memref<1x384x384xbf16, #tpu.memory_space<vmem>>, %arg2: memref<3x64x384xbf16, #tpu.memory_space<vmem>>, %arg3: memref<64x1xf32, #tpu.memory_space<vmem>>, %arg4: memref<64x1xf32, #tpu.memory_space<vmem>>, %arg5: memref<3x64x192xbf16, #tpu.memory_space<vmem>>, %arg6: memref<64x1xf32, #tpu.memory_space<vmem>>, %arg7: memref<3x8x192xbf16, #tpu.memory_space<vmem>>, %arg8: memref<8x1xf32, #tpu.memory_space<vmem>>, %arg9: memref<1x288xbf16, #tpu.memory_space<vmem>>, %arg10: memref<1x8x384xf32, #tpu.memory_space<vmem>>, %arg11: memref<192x384xbf16, #tpu.memory_space<vmem>>, %arg12: memref<192x512xbf16, #tpu.memory_space<vmem>>) attributes {dimension_semantics = [#tpu.dimension_semantics<parallel>], iteration_bounds = array<i64: 2>, scalar_prefetch = 0 : i64, scratch_operands = 2 : i64, tpu.core_type = #tpu.core_type<tc>, window_params = [{transform_indices = @transform_0, window_bounds = array<i64: 1, 384, 384>}, {pipeline_mode = #tpu.pipeline_mode<synchronous>, transform_indices = @transform_1, window_bounds = array<i64: 3, 64, 384>}, {pipeline_mode = #tpu.pipeline_mode<synchronous>, transform_indices = @transform_2, window_bounds = array<i64: 64, 1>}, {pipeline_mode = #tpu.pipeline_mode<synchronous>, transform_indices = @transform_3, window_bounds = array<i64: 64, 1>}, {pipeline_mode = #tpu.pipeline_mode<synchronous>, transform_indices = @transform_4, window_bounds = array<i64: 3, 64, 192>}, {pipeline_mode = #tpu.pipeline_mode<synchronous>, transform_indices = @transform_5, window_bounds = array<i64: 64, 1>}, {pipeline_mode = #tpu.pipeline_mode<synchronous>, transform_indices = @transform_6, window_bounds = array<i64: 3, 8, 192>}, {pipeline_mode = #tpu.pipeline_mode<synchronous>, transform_indices = @transform_7, window_bounds = array<i64: 8, 1>}, {pipeline_mode = #tpu.pipeline_mode<synchronous>, transform_indices = @transform_8, window_bounds = array<i64: 1, 288>}, {transform_indices = @transform_9, window_bounds = array<i64: 1, 8, 384>}]} {
    %c0 = arith.constant 0 : index
    %c0_0 = arith.constant 0 : index
    %0 = vector.load %arg9[%c0, %c0_0] : memref<1x288xbf16, #tpu.memory_space<vmem>>, vector<1x288xbf16>
    %c0_1 = arith.constant 0 : index
    %c0_2 = arith.constant 0 : index
    %c0_3 = arith.constant 0 : index
    %1 = vector.load %arg2[%c0_1, %c0_2, %c0_3] : memref<3x64x384xbf16, #tpu.memory_space<vmem>>, vector<1x64x384xbf16>
    %2 = vector.shape_cast %1 : vector<1x64x384xbf16> to vector<64x384xbf16>
    %c0_4 = arith.constant 0 : index
    %c0_5 = arith.constant 0 : index
    %c36 = arith.constant 36 : index
    %3 = vector.load %arg1[%c0_4, %c0_5, %c36] : memref<1x384x384xbf16, #tpu.memory_space<vmem>>, vector<1x384x288xbf16>
    %4 = vector.shape_cast %3 : vector<1x384x288xbf16> to vector<384x288xbf16>
    %cst = arith.constant dense<0.000000e+00> : vector<64x288xf32>
    %5 = tpu.matmul %2, %4, %cst {dimension_numbers = #tpu.dot_dimension_numbers<[1], [0], [0], [1], [0, 0, 1, 1], [], []>} : vector<64x384xbf16>, vector<384x288xbf16>, vector<64x288xf32> -> vector<64x288xf32>
    %c1 = arith.constant 1 : index
    %c0_6 = arith.constant 0 : index
    %c0_7 = arith.constant 0 : index
    %6 = vector.load %arg2[%c1, %c0_6, %c0_7] : memref<3x64x384xbf16, #tpu.memory_space<vmem>>, vector<1x64x384xbf16>
    %7 = vector.shape_cast %6 : vector<1x64x384xbf16> to vector<64x384xbf16>
    %c0_8 = arith.constant 0 : index
    %c0_9 = arith.constant 0 : index
    %c37 = arith.constant 37 : index
    %8 = vector.load %arg1[%c0_8, %c0_9, %c37] : memref<1x384x384xbf16, #tpu.memory_space<vmem>>, vector<1x384x288xbf16>
    %9 = vector.shape_cast %8 : vector<1x384x288xbf16> to vector<384x288xbf16>
    %cst_10 = arith.constant dense<0.000000e+00> : vector<64x288xf32>
    %10 = tpu.matmul %7, %9, %cst_10 {dimension_numbers = #tpu.dot_dimension_numbers<[1], [0], [0], [1], [0, 0, 1, 1], [], []>} : vector<64x384xbf16>, vector<384x288xbf16>, vector<64x288xf32> -> vector<64x288xf32>
    %11 = arith.addf %5, %10 : vector<64x288xf32>
    %c2 = arith.constant 2 : index
    %c0_11 = arith.constant 0 : index
    %c0_12 = arith.constant 0 : index
    %12 = vector.load %arg2[%c2, %c0_11, %c0_12] : memref<3x64x384xbf16, #tpu.memory_space<vmem>>, vector<1x64x384xbf16>
    %13 = vector.shape_cast %12 : vector<1x64x384xbf16> to vector<64x384xbf16>
    %c0_13 = arith.constant 0 : index
    %c0_14 = arith.constant 0 : index
    %c38 = arith.constant 38 : index
    %14 = vector.load %arg1[%c0_13, %c0_14, %c38] : memref<1x384x384xbf16, #tpu.memory_space<vmem>>, vector<1x384x288xbf16>
    %15 = vector.shape_cast %14 : vector<1x384x288xbf16> to vector<384x288xbf16>
    %cst_15 = arith.constant dense<0.000000e+00> : vector<64x288xf32>
    %16 = tpu.matmul %13, %15, %cst_15 {dimension_numbers = #tpu.dot_dimension_numbers<[1], [0], [0], [1], [0, 0, 1, 1], [], []>} : vector<64x384xbf16>, vector<384x288xbf16>, vector<64x288xf32> -> vector<64x288xf32>
    %17 = arith.addf %11, %16 : vector<64x288xf32>
    %c0_16 = arith.constant 0 : index
    %c0_17 = arith.constant 0 : index
    %18 = vector.load %arg3[%c0_16, %c0_17] : memref<64x1xf32, #tpu.memory_space<vmem>>, vector<64x1xf32>
    %19 = vector.broadcast %18 : vector<64x1xf32> to vector<64x288xf32>
    %20 = arith.addf %17, %19 : vector<64x288xf32>
    %cst_18 = arith.constant 0.000000e+00 : f32
    %21 = vector.broadcast %cst_18 : f32 to vector<64x288xf32>
    %22 = arith.maximumf %20, %21 : vector<64x288xf32>
    %c0_19 = arith.constant 0 : index
    %c0_20 = arith.constant 0 : index
    %23 = vector.load %arg4[%c0_19, %c0_20] : memref<64x1xf32, #tpu.memory_space<vmem>>, vector<64x1xf32>
    %24 = vector.broadcast %23 : vector<64x1xf32> to vector<64x288xf32>
    %25 = arith.addf %22, %24 : vector<64x288xf32>
    %26 = arith.truncf %25 : vector<64x288xf32> to vector<64x288xbf16>
    %27 = vector.broadcast %0 : vector<1x288xbf16> to vector<64x288xbf16>
    %28 = arith.mulf %26, %27 : vector<64x288xbf16>
    %cst_21 = arith.constant 0.000000e+00 : bf16
    %29 = vector.broadcast %cst_21 : bf16 to vector<64x19xbf16>
    %c0_22 = arith.constant 0 : index
    %c36_23 = arith.constant 36 : index
    %30 = vector.load %arg11[%c0_22, %c36_23] : memref<192x384xbf16, #tpu.memory_space<vmem>>, vector<64x19xbf16>
    tpu.vector_store %arg11[%c0_22, %c36_23], %29 {strides = array<i32>} : memref<192x384xbf16, #tpu.memory_space<vmem>>, vector<64x19xbf16>,
    %c0_24 = arith.constant 0 : index
    %c55 = arith.constant 55 : index
    %31 = vector.load %arg11[%c0_24, %c55] : memref<192x384xbf16, #tpu.memory_space<vmem>>, vector<64x288xbf16>
    tpu.vector_store %arg11[%c0_24, %c55], %28 {strides = array<i32>} : memref<192x384xbf16, #tpu.memory_space<vmem>>, vector<64x288xbf16>,
    %cst_25 = arith.constant 0.000000e+00 : bf16
    %32 = vector.broadcast %cst_25 : bf16 to vector<64x1xbf16>
    %c64 = arith.constant 64 : index
    %c36_26 = arith.constant 36 : index
    %33 = vector.load %arg11[%c64, %c36_26] : memref<192x384xbf16, #tpu.memory_space<vmem>>, vector<64x1xbf16>
    tpu.vector_store %arg11[%c64, %c36_26], %32 {strides = array<i32>} : memref<192x384xbf16, #tpu.memory_space<vmem>>, vector<64x1xbf16>,
    %c64_27 = arith.constant 64 : index
    %c37_28 = arith.constant 37 : index
    %34 = vector.load %arg11[%c64_27, %c37_28] : memref<192x384xbf16, #tpu.memory_space<vmem>>, vector<64x288xbf16>
    tpu.vector_store %arg11[%c64_27, %c37_28], %28 {strides = array<i32>} : memref<192x384xbf16, #tpu.memory_space<vmem>>, vector<64x288xbf16>,
    %cst_29 = arith.constant 0.000000e+00 : bf16
    %35 = vector.broadcast %cst_29 : bf16 to vector<64x1xbf16>
    %c64_30 = arith.constant 64 : index
    %c325 = arith.constant 325 : index
    %36 = vector.load %arg11[%c64_30, %c325] : memref<192x384xbf16, #tpu.memory_space<vmem>>, vector<64x1xbf16>
    tpu.vector_store %arg11[%c64_30, %c325], %35 {strides = array<i32>} : memref<192x384xbf16, #tpu.memory_space<vmem>>, vector<64x1xbf16>,
    %c128 = arith.constant 128 : index
    %c19 = arith.constant 19 : index
    %37 = vector.load %arg11[%c128, %c19] : memref<192x384xbf16, #tpu.memory_space<vmem>>, vector<64x288xbf16>
    tpu.vector_store %arg11[%c128, %c19], %28 {strides = array<i32>} : memref<192x384xbf16, #tpu.memory_space<vmem>>, vector<64x288xbf16>,
    %cst_31 = arith.constant 0.000000e+00 : bf16
    %38 = vector.broadcast %cst_31 : bf16 to vector<64x19xbf16>
    %c128_32 = arith.constant 128 : index
    %c307 = arith.constant 307 : index
    %39 = vector.load %arg11[%c128_32, %c307] : memref<192x384xbf16, #tpu.memory_space<vmem>>, vector<64x19xbf16>
    tpu.vector_store %arg11[%c128_32, %c307], %38 {strides = array<i32>} : memref<192x384xbf16, #tpu.memory_space<vmem>>, vector<64x19xbf16>,
    %c0_33 = arith.constant 0 : index
    %c0_34 = arith.constant 0 : index
    %c0_35 = arith.constant 0 : index
    %40 = vector.load %arg5[%c0_33, %c0_34, %c0_35] : memref<3x64x192xbf16, #tpu.memory_space<vmem>>, vector<1x64x192xbf16>
    %41 = vector.shape_cast %40 : vector<1x64x192xbf16> to vector<64x192xbf16>
    %c0_36 = arith.constant 0 : index
    %c36_37 = arith.constant 36 : index
    %42 = vector.load %arg11[%c0_36, %c36_37] : memref<192x384xbf16, #tpu.memory_space<vmem>>, vector<192x288xbf16>
    %cst_38 = arith.constant dense<0.000000e+00> : vector<64x288xf32>
    %43 = tpu.matmul %41, %42, %cst_38 {dimension_numbers = #tpu.dot_dimension_numbers<[1], [0], [0], [1], [0, 0, 1, 1], [], []>} : vector<64x192xbf16>, vector<192x288xbf16>, vector<64x288xf32> -> vector<64x288xf32>
    %c1_39 = arith.constant 1 : index
    %c0_40 = arith.constant 0 : index
    %c0_41 = arith.constant 0 : index
    %44 = vector.load %arg5[%c1_39, %c0_40, %c0_41] : memref<3x64x192xbf16, #tpu.memory_space<vmem>>, vector<1x64x192xbf16>
    %45 = vector.shape_cast %44 : vector<1x64x192xbf16> to vector<64x192xbf16>
    %c0_42 = arith.constant 0 : index
    %c37_43 = arith.constant 37 : index
    %46 = vector.load %arg11[%c0_42, %c37_43] : memref<192x384xbf16, #tpu.memory_space<vmem>>, vector<192x288xbf16>
    %cst_44 = arith.constant dense<0.000000e+00> : vector<64x288xf32>
    %47 = tpu.matmul %45, %46, %cst_44 {dimension_numbers = #tpu.dot_dimension_numbers<[1], [0], [0], [1], [0, 0, 1, 1], [], []>} : vector<64x192xbf16>, vector<192x288xbf16>, vector<64x288xf32> -> vector<64x288xf32>
    %48 = arith.addf %43, %47 : vector<64x288xf32>
    %c2_45 = arith.constant 2 : index
    %c0_46 = arith.constant 0 : index
    %c0_47 = arith.constant 0 : index
    %49 = vector.load %arg5[%c2_45, %c0_46, %c0_47] : memref<3x64x192xbf16, #tpu.memory_space<vmem>>, vector<1x64x192xbf16>
    %50 = vector.shape_cast %49 : vector<1x64x192xbf16> to vector<64x192xbf16>
    %c0_48 = arith.constant 0 : index
    %c38_49 = arith.constant 38 : index
    %51 = vector.load %arg11[%c0_48, %c38_49] : memref<192x384xbf16, #tpu.memory_space<vmem>>, vector<192x288xbf16>
    %cst_50 = arith.constant dense<0.000000e+00> : vector<64x288xf32>
    %52 = tpu.matmul %50, %51, %cst_50 {dimension_numbers = #tpu.dot_dimension_numbers<[1], [0], [0], [1], [0, 0, 1, 1], [], []>} : vector<64x192xbf16>, vector<192x288xbf16>, vector<64x288xf32> -> vector<64x288xf32>
    %53 = arith.addf %48, %52 : vector<64x288xf32>
    %c0_51 = arith.constant 0 : index
    %c0_52 = arith.constant 0 : index
    %54 = vector.load %arg6[%c0_51, %c0_52] : memref<64x1xf32, #tpu.memory_space<vmem>>, vector<64x1xf32>
    %55 = vector.broadcast %54 : vector<64x1xf32> to vector<64x288xf32>
    %56 = arith.addf %53, %55 : vector<64x288xf32>
    %cst_53 = arith.constant 0.000000e+00 : f32
    %57 = vector.broadcast %cst_53 : f32 to vector<64x288xf32>
    %58 = arith.maximumf %56, %57 : vector<64x288xf32>
    %59 = arith.truncf %58 : vector<64x288xf32> to vector<64x288xbf16>
    %60 = vector.broadcast %0 : vector<1x288xbf16> to vector<64x288xbf16>
    %61 = arith.mulf %59, %60 : vector<64x288xbf16>
    %cst_54 = arith.constant 0.000000e+00 : bf16
    %62 = vector.broadcast %cst_54 : bf16 to vector<64x19xbf16>
    %c0_55 = arith.constant 0 : index
    %c36_56 = arith.constant 36 : index
    %63 = vector.load %arg12[%c0_55, %c36_56] : memref<192x512xbf16, #tpu.memory_space<vmem>>, vector<64x19xbf16>
    tpu.vector_store %arg12[%c0_55, %c36_56], %62 {strides = array<i32>} : memref<192x512xbf16, #tpu.memory_space<vmem>>, vector<64x19xbf16>,
    %c0_57 = arith.constant 0 : index
    %c55_58 = arith.constant 55 : index
    %64 = vector.load %arg12[%c0_57, %c55_58] : memref<192x512xbf16, #tpu.memory_space<vmem>>, vector<64x288xbf16>
    tpu.vector_store %arg12[%c0_57, %c55_58], %61 {strides = array<i32>} : memref<192x512xbf16, #tpu.memory_space<vmem>>, vector<64x288xbf16>,
    %cst_59 = arith.constant 0.000000e+00 : bf16
    %65 = vector.broadcast %cst_59 : bf16 to vector<64x1xbf16>
    %c64_60 = arith.constant 64 : index
    %c36_61 = arith.constant 36 : index
    %66 = vector.load %arg12[%c64_60, %c36_61] : memref<192x512xbf16, #tpu.memory_space<vmem>>, vector<64x1xbf16>
    tpu.vector_store %arg12[%c64_60, %c36_61], %65 {strides = array<i32>} : memref<192x512xbf16, #tpu.memory_space<vmem>>, vector<64x1xbf16>,
    %c64_62 = arith.constant 64 : index
    %c37_63 = arith.constant 37 : index
    %67 = vector.load %arg12[%c64_62, %c37_63] : memref<192x512xbf16, #tpu.memory_space<vmem>>, vector<64x288xbf16>
    tpu.vector_store %arg12[%c64_62, %c37_63], %61 {strides = array<i32>} : memref<192x512xbf16, #tpu.memory_space<vmem>>, vector<64x288xbf16>,
    %cst_64 = arith.constant 0.000000e+00 : bf16
    %68 = vector.broadcast %cst_64 : bf16 to vector<64x1xbf16>
    %c64_65 = arith.constant 64 : index
    %c325_66 = arith.constant 325 : index
    %69 = vector.load %arg12[%c64_65, %c325_66] : memref<192x512xbf16, #tpu.memory_space<vmem>>, vector<64x1xbf16>
    tpu.vector_store %arg12[%c64_65, %c325_66], %68 {strides = array<i32>} : memref<192x512xbf16, #tpu.memory_space<vmem>>, vector<64x1xbf16>,
    %c128_67 = arith.constant 128 : index
    %c19_68 = arith.constant 19 : index
    %70 = vector.load %arg12[%c128_67, %c19_68] : memref<192x512xbf16, #tpu.memory_space<vmem>>, vector<64x288xbf16>
    tpu.vector_store %arg12[%c128_67, %c19_68], %61 {strides = array<i32>} : memref<192x512xbf16, #tpu.memory_space<vmem>>, vector<64x288xbf16>,
    %cst_69 = arith.constant 0.000000e+00 : bf16
    %71 = vector.broadcast %cst_69 : bf16 to vector<64x19xbf16>
    %c128_70 = arith.constant 128 : index
    %c307_71 = arith.constant 307 : index
    %72 = vector.load %arg12[%c128_70, %c307_71] : memref<192x512xbf16, #tpu.memory_space<vmem>>, vector<64x19xbf16>
    tpu.vector_store %arg12[%c128_70, %c307_71], %71 {strides = array<i32>} : memref<192x512xbf16, #tpu.memory_space<vmem>>, vector<64x19xbf16>,
    %c0_72 = arith.constant 0 : index
    %c0_73 = arith.constant 0 : index
    %c0_74 = arith.constant 0 : index
    %73 = vector.load %arg7[%c0_72, %c0_73, %c0_74] : memref<3x8x192xbf16, #tpu.memory_space<vmem>>, vector<1x8x192xbf16>
    %74 = vector.shape_cast %73 : vector<1x8x192xbf16> to vector<8x192xbf16>
    %c0_75 = arith.constant 0 : index
    %c36_76 = arith.constant 36 : index
    %75 = vector.load %arg12[%c0_75, %c36_76] : memref<192x512xbf16, #tpu.memory_space<vmem>>, vector<192x384xbf16>
    %cst_77 = arith.constant dense<0.000000e+00> : vector<8x384xf32>
    %76 = tpu.matmul %74, %75, %cst_77 {dimension_numbers = #tpu.dot_dimension_numbers<[1], [0], [0], [1], [0, 0, 1, 1], [], []>} : vector<8x192xbf16>, vector<192x384xbf16>, vector<8x384xf32> -> vector<8x384xf32>
    %c1_78 = arith.constant 1 : index
    %c0_79 = arith.constant 0 : index
    %c0_80 = arith.constant 0 : index
    %77 = vector.load %arg7[%c1_78, %c0_79, %c0_80] : memref<3x8x192xbf16, #tpu.memory_space<vmem>>, vector<1x8x192xbf16>
    %78 = vector.shape_cast %77 : vector<1x8x192xbf16> to vector<8x192xbf16>
    %c0_81 = arith.constant 0 : index
    %c37_82 = arith.constant 37 : index
    %79 = vector.load %arg12[%c0_81, %c37_82] : memref<192x512xbf16, #tpu.memory_space<vmem>>, vector<192x384xbf16>
    %cst_83 = arith.constant dense<0.000000e+00> : vector<8x384xf32>
    %80 = tpu.matmul %78, %79, %cst_83 {dimension_numbers = #tpu.dot_dimension_numbers<[1], [0], [0], [1], [0, 0, 1, 1], [], []>} : vector<8x192xbf16>, vector<192x384xbf16>, vector<8x384xf32> -> vector<8x384xf32>
    %81 = arith.addf %76, %80 : vector<8x384xf32>
    %c2_84 = arith.constant 2 : index
    %c0_85 = arith.constant 0 : index
    %c0_86 = arith.constant 0 : index
    %82 = vector.load %arg7[%c2_84, %c0_85, %c0_86] : memref<3x8x192xbf16, #tpu.memory_space<vmem>>, vector<1x8x192xbf16>
    %83 = vector.shape_cast %82 : vector<1x8x192xbf16> to vector<8x192xbf16>
    %c0_87 = arith.constant 0 : index
    %c38_88 = arith.constant 38 : index
    %84 = vector.load %arg12[%c0_87, %c38_88] : memref<192x512xbf16, #tpu.memory_space<vmem>>, vector<192x384xbf16>
    %cst_89 = arith.constant dense<0.000000e+00> : vector<8x384xf32>
    %85 = tpu.matmul %83, %84, %cst_89 {dimension_numbers = #tpu.dot_dimension_numbers<[1], [0], [0], [1], [0, 0, 1, 1], [], []>} : vector<8x192xbf16>, vector<192x384xbf16>, vector<8x384xf32> -> vector<8x384xf32>
    %86 = arith.addf %81, %85 : vector<8x384xf32>
    %c0_90 = arith.constant 0 : index
    %c0_91 = arith.constant 0 : index
    %87 = vector.load %arg8[%c0_90, %c0_91] : memref<8x1xf32, #tpu.memory_space<vmem>>, vector<8x1xf32>
    %88 = vector.broadcast %87 : vector<8x1xf32> to vector<8x384xf32>
    %89 = arith.addf %86, %88 : vector<8x384xf32>
    %c0_92 = arith.constant 0 : index
    %c0_93 = arith.constant 0 : index
    %c0_94 = arith.constant 0 : index
    %90 = vector.load %arg10[%c0_92, %c0_93, %c0_94] : memref<1x8x384xf32, #tpu.memory_space<vmem>>, vector<1x8x384xf32>
    %91 = vector.shape_cast %90 : vector<1x8x384xf32> to vector<8x384xf32>
    %92 = vector.shape_cast %89 : vector<8x384xf32> to vector<1x8x384xf32>
    tpu.vector_store %arg10[%c0_92, %c0_93, %c0_94], %92 {strides = array<i32>} : memref<1x8x384xf32, #tpu.memory_space<vmem>>, vector<1x8x384xf32>,
    return
  }
  func.func @transform_0(%arg0: i32) -> (i32, i32, i32) {
    %c0_i32 = arith.constant 0 : i32
    %c0_i32_0 = arith.constant 0 : i32
    %c0_i32_1 = arith.constant 0 : i32
    return %arg0, %c0_i32, %c0_i32_0 : i32, i32, i32
  }
  func.func @transform_1(%arg0: i32) -> (i32, i32, i32) {
    %c0_i32 = arith.constant 0 : i32
    %c0_i32_0 = arith.constant 0 : i32
    %c0_i32_1 = arith.constant 0 : i32
    %c0_i32_2 = arith.constant 0 : i32
    return %c0_i32, %c0_i32_0, %c0_i32_1 : i32, i32, i32
  }
  func.func @transform_2(%arg0: i32) -> (i32, i32) {
    %c0_i32 = arith.constant 0 : i32
    %c0_i32_0 = arith.constant 0 : i32
    %c0_i32_1 = arith.constant 0 : i32
    return %c0_i32, %c0_i32_0 : i32, i32
  }
  func.func @transform_3(%arg0: i32) -> (i32, i32) {
    %c0_i32 = arith.constant 0 : i32
    %c0_i32_0 = arith.constant 0 : i32
    %c0_i32_1 = arith.constant 0 : i32
    return %c0_i32, %c0_i32_0 : i32, i32
  }
  func.func @transform_4(%arg0: i32) -> (i32, i32, i32) {
    %c0_i32 = arith.constant 0 : i32
    %c0_i32_0 = arith.constant 0 : i32
    %c0_i32_1 = arith.constant 0 : i32
    %c0_i32_2 = arith.constant 0 : i32
    return %c0_i32, %c0_i32_0, %c0_i32_1 : i32, i32, i32
  }
  func.func @transform_5(%arg0: i32) -> (i32, i32) {
    %c0_i32 = arith.constant 0 : i32
    %c0_i32_0 = arith.constant 0 : i32
    %c0_i32_1 = arith.constant 0 : i32
    return %c0_i32, %c0_i32_0 : i32, i32
  }
  func.func @transform_6(%arg0: i32) -> (i32, i32, i32) {
    %c0_i32 = arith.constant 0 : i32
    %c0_i32_0 = arith.constant 0 : i32
    %c0_i32_1 = arith.constant 0 : i32
    %c0_i32_2 = arith.constant 0 : i32
    return %c0_i32, %c0_i32_0, %c0_i32_1 : i32, i32, i32
  }
  func.func @transform_7(%arg0: i32) -> (i32, i32) {
    %c0_i32 = arith.constant 0 : i32
    %c0_i32_0 = arith.constant 0 : i32
    %c0_i32_1 = arith.constant 0 : i32
    return %c0_i32, %c0_i32_0 : i32, i32
  }
  func.func @transform_8(%arg0: i32) -> (i32, i32) {
    %c0_i32 = arith.constant 0 : i32
    %c0_i32_0 = arith.constant 0 : i32
    %c0_i32_1 = arith.constant 0 : i32
    return %c0_i32, %c0_i32_0 : i32, i32
  }
  func.func @transform_9(%arg0: i32) -> (i32, i32, i32) {
    %c0_i32 = arith.constant 0 : i32
    %c0_i32_0 = arith.constant 0 : i32
    %c0_i32_1 = arith.constant 0 : i32
    return %arg0, %c0_i32, %c0_i32_0 : i32, i32, i32
  }
}

</mosaic_0001>

<bundles_post_ra>
// kernel: tile.8
= control target key start
LH: loop header
LB: loop body
LE: loop exit
PB: predicated region body
PF: predicated region fallthrough
CT: control target
= control target key end

     0   :  { %s22_s0 = inlined_call_operand.vmem [shape: f32[64], index: 0, kind: input, shape index: {}]   ;;  %s23_s1 = inlined_call_operand.vmem [shape: f32[3,64], index: 1, kind: output, shape index: {}]  }
   0x1   :  { %v4_v0 = vld [vmem:[%s22_s0] ss:$0 sm:$0xff] }
   0x2   :  { %5 = vst [vmem:[%s23_s1] sm:$0xf] %v4_v0 }

// kernel: mul.5
= control target key start
LH: loop header
LB: loop body
LE: loop exit
PB: predicated region body
PF: predicated region fallthrough
CT: control target
= control target key end

     0   :  { %vm8_vm0 = vcmask 523264   ;;  %s23_s8 = smov 64   ;;  %vm14_vm1 = vcmask 1048064   ;;  %s40_s0 = inlined_call_operand.vmem [shape: f32[3,64], index: 0, kind: input, shape index: {}]   ;;  %s41_s1 = inlined_call_operand.vmem [shape: f32[192], index: 1, kind: output, shape index: {}]  }
   0x1   :  { %v4_v0 = vld [vmem:[%s40_s0] sm:$0xf]  ;;  %s6_s0 = smov 3 }
   0x2   :  { %5 = vst [vmem:[#allocation1] sm:$0xf] %v4_v0 }
   0x9   :  { %v11_v1 = vld [vmem:[#allocation1 + $0x1] sm:$0x1]   ;;  %v7_v2 = vld [vmem:[#allocation1] ss:$2 sm:%s6_s0]  }
   0xa   :  { %12 = vrot.lane.b32.xlu0 %v11_v1, %s23_s8  ;;  %9 = vst.msk [vmem:[#allocation0] sm:$0x3] %vm8_vm0, %v7_v2  }
  0x7c   :  { %v13_v3 = vpop.permute.xlu0 %12  }
  0x7d   :  { %15 = vst.msk [vmem:[#allocation0] sm:$0x1] %vm14_vm1, %v13_v3  }
  0x84   :  { %v18_v4 = vld [vmem:[#allocation0] sm:$0x3] }
  0x85   :  { %21 = vst [vmem:[%s41_s1] sm:$0x3] %v18_v4 }

// kernel: mafg_decoder_forward.1
= control target key start
LH: loop header
LB: loop body
LE: loop exit
PB: predicated region body
PF: predicated region fallthrough
CT: control target
= control target key end

     0   :  { %s7335_s30 = smov 0   ;;  %s12594_s0 = inlined_call_operand.vmem [shape: bf16[2,384,384], index: 0, kind: input, shape index: {}]   ;;  %s12595_s1 = inlined_call_operand.vmem [shape: bf16[3,64,384], index: 1, kind: input, shape index: {}]   ;;  %s12596_s2 = inlined_call_operand.vmem [shape: f32[64,1], index: 2, kind: input, shape index: {}]   ;;  %s12597_s3 = inlined_call_operand.vmem [shape: f32[64,1], index: 3, kind: input, shape index: {}]   ;;  %s12598_s4 = inlined_call_operand.vmem [shape: bf16[3,64,192], index: 4, kind: input, shape index: {}]   ;;  %s12599_s5 = inlined_call_operand.vmem [shape: f32[64,1], index: 5, kind: input, shape index: {}]   ;;  %s12600_s6 = inlined_call_operand.vmem [shape: bf16[3,8,192], index: 6, kind: input, shape index: {}]   ;;  %s12601_s7 = inlined_call_operand.vmem [shape: f32[8,1], index: 7, kind: input, shape index: {}]   ;;  %s12602_s8 = inlined_call_operand.vmem [shape: bf16[1,288], index: 8, kind: input, shape index: {}]   ;;  %s12603_s9 = inlined_call_operand.vmem [shape: f32[2,8,384], index: 9, kind: output, shape index: {}]  }
   0x1 LB: > { %s6066_s10 = sadd.s32 4294967295, %s7276_s30   ;;  %p6070_p0 = scmp.ge.s32.totalorder %s7276_s30, 1  ;;  %s7276_s30 = sphi %s7335_s30, %s19_s30  }
   0x2   : > { %p287_p1 = scmp.lt.s32.totalorder %s7276_s30, 3 }
   0x4   : > { %p288_p2 = pnand %p6070_p0, %p287_p1 }
   0x6   : > { %291 = sbr.rel (%p288_p2) target bundleno = 2410 (0x96a), region = 56 }
   0xb   : > { %p323_p3 = scmp.lt.s32.totalorder %s6066_s10, 1  ;;  %s7278_s15 = smov 91   ;;  %vm984_vm0 = vcmask 744448   ;;  %vm1574_vm1 = vcmask 752640   ;;  %vm2181_vm2 = vcmask 736256   ;;  %vm2852_vm3 = vcmask 445728  }
   0xc   : > { %s7279_s16 = smov 92   ;;  %s7280_s12 = smov 90   ;;  %vm2970_vm4 = vcmask 298272   ;;  %vm2950_vm5 = vcmask 1043896   ;;  %vm2951_vm6 = vcmask 1047556   ;;  %vm2917_vm7 = vcmask 449536  }
   0xd   : > { %s13185_s10 = smov (!%p323_p3, %s6066_s10), 1  ;;  %s7282_s17 = smov 19   ;;  %vm9771_vm8 = vmor %vm2951_vm6, %vm2950_vm5  ;;  %vm3052_vm9 = vcmask 1043752   ;;  %vm3019_vm10 = vcmask 302080   ;;  %vm3153_vm12 = vcmask 1043608   ;;  %vm3120_vm13 = vcmask 154624  }
   0xe   : > { %s7250_s11 = smul.u32 576, %s13185_s10  ;;  %s7283_s18 = smov 37   ;;  %vm9797_vm11 = vmor %vm2951_vm6, %vm3052_vm9  ;;  %vm3156_vm15 = vcmask 412672   ;;  %vm3055_vm5 = vcmask 560128   ;;  %vm3570_vm9 = vcmask 523264  }
   0xf   : > { %s7284_s19 = smov 55   ;;  %vm9817_vm14 = vmor %vm2951_vm6, %vm3153_vm12  ;;  %vm3071_vm6 = vcmask 568872  }
  0x10   : > { %s7349_s14 = scalar_lea.vmem %s12594_s0, %s7250_s11  ;;  %s7251_s11 = smul.u32 24, %s13185_s10 }
  0x11   : > { %v7049_v0 = vld [vmem:[%s7349_s14 + $0x1c] sm:$0xf]  ;;  %v6153_v1 = vld [vmem:[%s7349_s14 + $0x24] sm:$0xf0]  ;;  %v7048_v4 = vld [vmem:[%s7349_s14 + $0x10] sm:$0xf0] }
  0x12   : > { %v6147_v2 = vld [vmem:[%s7349_s14 + $0x8] sm:$0xf]  ;;  %v7354_v3 = vor.u32 %v7049_v0, %v6153_v1  ;;  %v6139_v5 = vld [vmem:[%s7349_s14] sm:$0xf]  ;;  %v7047_v6 = vld [vmem:[%s7349_s14 + $0x8] sm:$0xf0]  ;;  %s332_s20 = scalar_lea.vmem %s12603_s9, %s7251_s11 }
  0x13   : > { %v7359_v7 = vor.u32 %v7048_v4, %v6147_v2  ;;  %v7361_v8 = vor.u32 %v7047_v6, %v6139_v5  ;;  %v6159_v9 = vld [vmem:[%s7349_s14 + $0x20] sm:$0xf]  ;;  %v7051_v10 = vld [vmem:[%s7349_s14 + $0x28] sm:$0xf0]  ;;  %v6151_v11 = vld [vmem:[%s7349_s14 + $0x18] sm:$0xf] }
  0x14   : > { %848 = vrot.lane.b32.xlu2 %v7354_v3, %s7278_s15  ;;  %v7050_v12 = vld [vmem:[%s7349_s14 + $0x20] sm:$0xf0]  ;;  %v6141_v14 = vld [vmem:[%s7349_s14 + $0xc] sm:$0xf0]  ;;  %v7375_v15 = vor.u32 %v7051_v10, %v6159_v9  ;;  %v6171_v18 = vld [vmem:[%s7349_s14 + $0x38] sm:$0xf] }
  0x15   : > { %844 = vrot.lane.b32.xlu1 %v7359_v7, %s7278_s15  ;;  %840 = vrot.lane.b32.xlu0 %v7361_v8, %s7278_s15  ;;  %v7046_v13 = vld [vmem:[%s7349_s14 + $0x4] sm:$0xf]  ;;  %v7377_v16 = vor.u32 %v7050_v12, %v6151_v11  ;;  %v7052_v20 = vld [vmem:[%s7349_s14 + $0x34] sm:$0xf] }
  0x16   : > { %v7379_v17 = vor.u32 %v7046_v13, %v6141_v14  ;;  %v7054_v19 = vld [vmem:[%s7349_s14 + $0x40] sm:$0xf0]  ;;  %v6165_v21 = vld [vmem:[%s7349_s14 + $0x3c] sm:$0xf0]  ;;  %v6163_v22 = vld [vmem:[%s7349_s14 + $0x30] sm:$0xf] }
  0x17   : > { %v7053_v23 = vld [vmem:[%s7349_s14 + $0x38] sm:$0xf0]  ;;  %v7393_v24 = vor.u32 %v7054_v19, %v6171_v18  ;;  %v7395_v25 = vor.u32 %v7052_v20, %v6165_v21  ;;  %v6183_v27 = vld [vmem:[%s7349_s14 + $0x50] sm:$0xf]  ;;  %v7055_v29 = vld [vmem:[%s7349_s14 + $0x4c] sm:$0xf] }
  0x18   : > { %v7397_v26 = vor.u32 %v7053_v23, %v6163_v22  ;;  %v7057_v28 = vld [vmem:[%s7349_s14 + $0x58] sm:$0xf0]  ;;  %v6177_v30 = vld [vmem:[%s7349_s14 + $0x54] sm:$0xf0]  ;;  %v6175_v31 = vld [vmem:[%s7349_s14 + $0x48] sm:$0xf] }
  0x19   : > { %v7056_v32 = vld [vmem:[%s7349_s14 + $0x50] sm:$0xf0]  ;;  %v7411_v33 = vor.u32 %v7057_v28, %v6183_v27  ;;  %v7413_v34 = vor.u32 %v7055_v29, %v6177_v30  ;;  %v6195_v36 = vld [vmem:[%s7349_s14 + $0x68] sm:$0xf]  ;;  %v7058_v38 = vld [vmem:[%s7349_s14 + $0x64] sm:$0xf] }
  0x1a   : > { %v7415_v35 = vor.u32 %v7056_v32, %v6175_v31  ;;  %v7060_v37 = vld [vmem:[%s7349_s14 + $0x70] sm:$0xf0]  ;;  %v6189_v39 = vld [vmem:[%s7349_s14 + $0x6c] sm:$0xf0]  ;;  %v6187_v40 = vld [vmem:[%s7349_s14 + $0x60] sm:$0xf] }
  0x1b   : > { %12767 = vst [vmem:[#allocation4_spill] sm:$0xff] %v7411_v33  ;;  %v7059_v41 = vld [vmem:[%s7349_s14 + $0x68] sm:$0xf0]  ;;  %v7429_v42 = vor.u32 %v7060_v37, %v6195_v36  ;;  %v7431_v43 = vor.u32 %v7058_v38, %v6189_v39  ;;  %v6207_v45 = vld [vmem:[%s7349_s14 + $0x80] sm:$0xf] }
  0x1c   : > { %850 = vrot.lane.b32.xlu2 %v7375_v15, %s7278_s15  ;;  %12768 = vst [vmem:[#allocation5_spill] sm:$0xff] %v7413_v34  ;;  %v7433_v44 = vor.u32 %v7059_v41, %v6187_v40  ;;  %v7063_v46 = vld [vmem:[%s7349_s14 + $0x88] sm:$0xf0]  ;;  %v7061_v47 = vld [vmem:[%s7349_s14 + $0x7c] sm:$0xf] }
  0x1d   : > { %846 = vrot.lane.b32.xlu1 %v7377_v16, %s7278_s15  ;;  %842 = vrot.lane.b32.xlu0 %v7379_v17, %s7278_s15  ;;  %12769 = vst [vmem:[#allocation6_spill] sm:$0xff] %v7415_v35  ;;  %v6201_v48 = vld [vmem:[%s7349_s14 + $0x84] sm:$0xf0]  ;;  %v6199_v49 = vld [vmem:[%s7349_s14 + $0x78] sm:$0xf]  ;;  %v7447_v51 = vor.u32 %v7063_v46, %v6207_v45 }
  0x1e   : > { %12770 = vst [vmem:[#allocation7_spill] sm:$0xff] %v7429_v42  ;;  %v7062_v50 = vld [vmem:[%s7349_s14 + $0x80] sm:$0xf0]  ;;  %v7449_v52 = vor.u32 %v7061_v47, %v6201_v48  ;;  %v6219_v54 = vld [vmem:[%s7349_s14 + $0x98] sm:$0xf] }
  0x1f   : > { %12771 = vst [vmem:[#allocation8_spill] sm:$0xff] %v7431_v43  ;;  %v7451_v53 = vor.u32 %v7062_v50, %v6199_v49  ;;  %v7066_v55 = vld [vmem:[%s7349_s14 + $0xa0] sm:$0xf0]  ;;  %v7064_v56 = vld [vmem:[%s7349_s14 + $0x94] sm:$0xf] }
  0x20   : > { %12772 = vst [vmem:[#allocation9_spill] sm:$0xff] %v7433_v44  ;;  %v6213_v57 = vld [vmem:[%s7349_s14 + $0x9c] sm:$0xf0]  ;;  %v6211_v58 = vld [vmem:[%s7349_s14 + $0x90] sm:$0xf]  ;;  %v7465_v60 = vor.u32 %v7066_v55, %v6219_v54 }
  0x21   : > { %v7065_v59 = vld [vmem:[%s7349_s14 + $0x98] sm:$0xf0]  ;;  %v7467_v61 = vor.u32 %v7064_v56, %v6213_v57  ;;  %v6231_v63 = vld [vmem:[%s7349_s14 + $0xb0] sm:$0xf]  ;;  %v7067_v1 = vld [vmem:[%s7349_s14 + $0xac] sm:$0xf] }
  0x22   : > { %v7469_v62 = vor.u32 %v7065_v59, %v6211_v58  ;;  %v7069_v0 = vld [vmem:[%s7349_s14 + $0xb8] sm:$0xf0]  ;;  %v6225_v2 = vld [vmem:[%s7349_s14 + $0xb4] sm:$0xf0]  ;;  %v6223_v4 = vld [vmem:[%s7349_s14 + $0xa8] sm:$0xf] }
  0x23   : > { %v7068_v5 = vld [vmem:[%s7349_s14 + $0xb0] sm:$0xf0]  ;;  %v7483_v6 = vor.u32 %v7069_v0, %v6231_v63  ;;  %v7485_v9 = vor.u32 %v7067_v1, %v6225_v2  ;;  %v6243_v11 = vld [vmem:[%s7349_s14 + $0xc8] sm:$0xf]  ;;  %v7070_v13 = vld [vmem:[%s7349_s14 + $0xc4] sm:$0xf] }
  0x24   : > { %856 = vrot.lane.b32.xlu2 %v7393_v24, %s7278_s15  ;;  %v7487_v10 = vor.u32 %v7068_v5, %v6223_v4  ;;  %v7072_v12 = vld [vmem:[%s7349_s14 + $0xd0] sm:$0xf0]  ;;  %v6237_v14 = vld [vmem:[%s7349_s14 + $0xcc] sm:$0xf0]  ;;  %v6235_v18 = vld [vmem:[%s7349_s14 + $0xc0] sm:$0xf] }
  0x25   : > { %854 = vrot.lane.b32.xlu1 %v7395_v25, %s7278_s15  ;;  %852 = vrot.lane.b32.xlu0 %v7397_v26, %s7278_s15  ;;  %12773 = vst [vmem:[#allocation10_spill] sm:$0xff] %v7485_v9  ;;  %v7071_v19 = vld [vmem:[%s7349_s14 + $0xc8] sm:$0xf0]  ;;  %v7501_v20 = vor.u32 %v7072_v12, %v6243_v11  ;;  %v7503_v21 = vor.u32 %v7070_v13, %v6237_v14  ;;  %v6255_v23 = vld [vmem:[%s7349_s14 + $0xe0] sm:$0xf] }
  0x26   : > { %12774 = vst [vmem:[#allocation11_spill] sm:$0xff] %v7487_v10  ;;  %v7505_v22 = vor.u32 %v7071_v19, %v6235_v18  ;;  %v7075_v27 = vld [vmem:[%s7349_s14 + $0xe8] sm:$0xf0]  ;;  %v7073_v28 = vld [vmem:[%s7349_s14 + $0xdc] sm:$0xf] }
  0x27   : > { %12775 = vst [vmem:[#allocation12_spill] sm:$0xff] %v7501_v20  ;;  %v6249_v29 = vld [vmem:[%s7349_s14 + $0xe4] sm:$0xf0]  ;;  %v6247_v30 = vld [vmem:[%s7349_s14 + $0xd8] sm:$0xf]  ;;  %v7519_v32 = vor.u32 %v7075_v27, %v6255_v23 }
  0x28   : > { %12776 = vst [vmem:[#allocation13_spill] sm:$0xff] %v7503_v21  ;;  %v7074_v31 = vld [vmem:[%s7349_s14 + $0xe0] sm:$0xf0]  ;;  %v7521_v36 = vor.u32 %v7073_v28, %v6249_v29  ;;  %v6267_v38 = vld [vmem:[%s7349_s14 + $0xf8] sm:$0xf] }
  0x29   : > { %12777 = vst [vmem:[#allocation14_spill] sm:$0xff] %v7505_v22  ;;  %v7523_v37 = vor.u32 %v7074_v31, %v6247_v30  ;;  %v7078_v39 = vld [vmem:[%s7349_s14 + $0x100] sm:$0xf0]  ;;  %v7076_v40 = vld [vmem:[%s7349_s14 + $0xf4] sm:$0xf] }
  0x2a   : > { %12778 = vst [vmem:[#allocation15_spill] sm:$0xff] %v7519_v32  ;;  %v6261_v41 = vld [vmem:[%s7349_s14 + $0xfc] sm:$0xf0]  ;;  %v6259_v45 = vld [vmem:[%s7349_s14 + $0xf0] sm:$0xf]  ;;  %v7537_v47 = vor.u32 %v7078_v39, %v6267_v38 }
  0x2b   : > { %12779 = vst [vmem:[#allocation16_spill] sm:$0xff] %v7521_v36  ;;  %v7077_v46 = vld [vmem:[%s7349_s14 + $0xf8] sm:$0xf0]  ;;  %v7539_v48 = vor.u32 %v7076_v40, %v6261_v41  ;;  %v6279_v50 = vld [vmem:[%s7349_s14 + $0x110] sm:$0xf] }
  0x2c   : > { %862 = vrot.lane.b32.xlu2 %v7411_v33, %s7278_s15  ;;  %12780 = vst [vmem:[#allocation17_spill] sm:$0xff] %v7523_v37  ;;  %v7541_v49 = vor.u32 %v7077_v46, %v6259_v45  ;;  %v7081_v54 = vld [vmem:[%s7349_s14 + $0x118] sm:$0xf0]  ;;  %v7079_v55 = vld [vmem:[%s7349_s14 + $0x10c] sm:$0xf] }
  0x2d   : > { %860 = vrot.lane.b32.xlu1 %v7413_v34, %s7278_s15  ;;  %858 = vrot.lane.b32.xlu0 %v7415_v35, %s7278_s15  ;;  %12781 = vst [vmem:[#allocation18_spill] sm:$0xff] %v7537_v47  ;;  %v6273_v56 = vld [vmem:[%s7349_s14 + $0x114] sm:$0xf0]  ;;  %v6271_v57 = vld [vmem:[%s7349_s14 + $0x108] sm:$0xf]  ;;  %v7555_v59 = vor.u32 %v7081_v54, %v6279_v50 }
  0x2e   : > { %12782 = vst [vmem:[#allocation19_spill] sm:$0xff] %v7539_v48  ;;  %v7080_v58 = vld [vmem:[%s7349_s14 + $0x110] sm:$0xf0]  ;;  %v7557_v63 = vor.u32 %v7079_v55, %v6273_v56  ;;  %v6291_v1 = vld [vmem:[%s7349_s14 + $0x128] sm:$0xf] }
  0x2f   : > { %12783 = vst [vmem:[#allocation20_spill] sm:$0xff] %v7541_v49  ;;  %v7559_v0 = vor.u32 %v7080_v58, %v6271_v57  ;;  %v7084_v2 = vld [vmem:[%s7349_s14 + $0x130] sm:$0xf0]  ;;  %v7082_v4 = vld [vmem:[%s7349_s14 + $0x124] sm:$0xf] }
  0x30   : > { %12784 = vst [vmem:[#allocation21_spill] sm:$0xff] %v7555_v59  ;;  %v6285_v11 = vld [vmem:[%s7349_s14 + $0x12c] sm:$0xf0]  ;;  %v6283_v12 = vld [vmem:[%s7349_s14 + $0x120] sm:$0xf]  ;;  %v7575_v14 = vor.u32 %v7084_v2, %v6291_v1 }
  0x31   : > { %12785 = vst [vmem:[#allocation22_spill] sm:$0xff] %v7557_v63  ;;  %v7083_v13 = vld [vmem:[%s7349_s14 + $0x128] sm:$0xf0]  ;;  %v7577_v18 = vor.u32 %v7082_v4, %v6285_v11  ;;  %v6303_v23 = vld [vmem:[%s7349_s14 + $0x140] sm:$0xf] }
  0x32   : > { %12786 = vst [vmem:[#allocation23_spill] sm:$0xff] %v7559_v0  ;;  %v7579_v19 = vor.u32 %v7083_v13, %v6283_v12  ;;  %v7087_v27 = vld [vmem:[%s7349_s14 + $0x148] sm:$0xf0]  ;;  %v7085_v28 = vld [vmem:[%s7349_s14 + $0x13c] sm:$0xf] }
  0x33   : > { %12787 = vst [vmem:[#allocation24_spill] sm:$0xff] %v7575_v14  ;;  %v6297_v30 = vld [vmem:[%s7349_s14 + $0x144] sm:$0xf0]  ;;  %v6295_v31 = vld [vmem:[%s7349_s14 + $0x138] sm:$0xf]  ;;  %v7595_v39 = vor.u32 %v7087_v27, %v6303_v23 }
  0x34   : > { %868 = vrot.lane.b32.xlu2 %v7429_v42, %s7278_s15  ;;  %12788 = vst [vmem:[#allocation25_spill] sm:$0xff] %v7577_v18  ;;  %v7086_v38 = vld [vmem:[%s7349_s14 + $0x140] sm:$0xf0]  ;;  %v7597_v40 = vor.u32 %v7085_v28, %v6297_v30  ;;  %v6315_v45 = vld [vmem:[%s7349_s14 + $0x158] sm:$0xf] }
  0x35   : > { %866 = vrot.lane.b32.xlu1 %v7431_v43, %s7278_s15  ;;  %864 = vrot.lane.b32.xlu0 %v7433_v44, %s7278_s15  ;;  %12789 = vst [vmem:[#allocation26_spill] sm:$0xff] %v7579_v19  ;;  %v7599_v41 = vor.u32 %v7086_v38, %v6295_v31  ;;  %v7090_v46 = vld [vmem:[%s7349_s14 + $0x160] sm:$0xf0]  ;;  %v7088_v50 = vld [vmem:[%s7349_s14 + $0x154] sm:$0xf] }
  0x36   : > { %12790 = vst [vmem:[#allocation27_spill] sm:$0xff] %v7595_v39  ;;  %v6309_v55 = vld [vmem:[%s7349_s14 + $0x15c] sm:$0xf0]  ;;  %v6307_v56 = vld [vmem:[%s7349_s14 + $0x150] sm:$0xf]  ;;  %v7615_v58 = vor.u32 %v7090_v46, %v6315_v45 }
  0x37   : > { %12791 = vst [vmem:[#allocation28_spill] sm:$0xff] %v7597_v40  ;;  %v7089_v57 = vld [vmem:[%s7349_s14 + $0x158] sm:$0xf0]  ;;  %v7617_v1 = vor.u32 %v7088_v50, %v6309_v55  ;;  %v6327_v4 = vld [vmem:[%s7349_s14 + $0x170] sm:$0xf] }
  0x38   : > { %12792 = vst [vmem:[#allocation29_spill] sm:$0xff] %v7599_v41  ;;  %v7619_v2 = vor.u32 %v7089_v57, %v6307_v56  ;;  %v7093_v11 = vld [vmem:[%s7349_s14 + $0x178] sm:$0xf0]  ;;  %v7091_v12 = vld [vmem:[%s7349_s14 + $0x16c] sm:$0xf] }
  0x39   : > { %12793 = vst [vmem:[#allocation30_spill] sm:$0xff] %v7615_v58  ;;  %v6321_v23 = vld [vmem:[%s7349_s14 + $0x174] sm:$0xf0]  ;;  %v6319_v27 = vld [vmem:[%s7349_s14 + $0x168] sm:$0xf]  ;;  %v7639_v38 = vor.u32 %v7093_v11, %v6327_v4 }
  0x3a   : > { %12794 = vst [vmem:[#allocation31_spill] sm:$0xff] %v7617_v1  ;;  %v7092_v28 = vld [vmem:[%s7349_s14 + $0x170] sm:$0xf0]  ;;  %v7641_v45 = vor.u32 %v7091_v12, %v6321_v23  ;;  %v6339_v50 = vld [vmem:[%s7349_s14 + $0x188] sm:$0xf] }
  0x3b   : > { %12795 = vst [vmem:[#allocation32_spill] sm:$0xff] %v7619_v2  ;;  %v7643_v46 = vor.u32 %v7092_v28, %v6319_v27  ;;  %v7096_v55 = vld [vmem:[%s7349_s14 + $0x190] sm:$0xf0]  ;;  %v7094_v56 = vld [vmem:[%s7349_s14 + $0x184] sm:$0xf] }
  0x3c   : > { %874 = vrot.lane.b32.xlu2 %v7447_v51, %s7278_s15  ;;  %12796 = vst [vmem:[#allocation33_spill] sm:$0xff] %v7639_v38  ;;  %v6333_v4 = vld [vmem:[%s7349_s14 + $0x18c] sm:$0xf0]  ;;  %v6331_v11 = vld [vmem:[%s7349_s14 + $0x180] sm:$0xf]  ;;  %v7663_v28 = vor.u32 %v7096_v55, %v6339_v50 }
  0x3d   : > { %872 = vrot.lane.b32.xlu1 %v7449_v52, %s7278_s15  ;;  %870 = vrot.lane.b32.xlu0 %v7451_v53, %s7278_s15  ;;  %12797 = vst [vmem:[#allocation34_spill] sm:$0xff] %v7641_v45  ;;  %v7095_v12 = vld [vmem:[%s7349_s14 + $0x188] sm:$0xf0]  ;;  %v7097_v50 = vld [vmem:[%s7349_s14 + $0x19c] sm:$0xf] }
  0x3e   : > { %12798 = vst [vmem:[#allocation35_spill] sm:$0xff] %v7643_v46 }
  0x3f   : > { %12799 = vst [vmem:[#allocation36_spill] sm:$0xff] %v7663_v28 }
  0x44   : > { %880 = vrot.lane.b32.xlu2 %v7465_v60, %s7278_s15 }
  0x45   : > { %878 = vrot.lane.b32.xlu1 %v7467_v61, %s7278_s15  ;;  %876 = vrot.lane.b32.xlu0 %v7469_v62, %s7278_s15 }
  0x4c   : > { %886 = vrot.lane.b32.xlu2 %v7483_v6, %s7278_s15 }
  0x4d   : > { %884 = vrot.lane.b32.xlu1 %v7485_v9, %s7278_s15  ;;  %882 = vrot.lane.b32.xlu0 %v7487_v10, %s7278_s15 }
  0x54   : > { %892 = vrot.lane.b32.xlu2 %v7501_v20, %s7278_s15 }
  0x55   : > { %890 = vrot.lane.b32.xlu1 %v7503_v21, %s7278_s15  ;;  %888 = vrot.lane.b32.xlu0 %v7505_v22, %s7278_s15 }
  0x5c   : > { %898 = vrot.lane.b32.xlu2 %v7519_v32, %s7278_s15  ;;  %v7112_v32 = vld [vmem:[%s7349_s14 + $0x214] sm:$0xf] }
  0x5d   : > { %896 = vrot.lane.b32.xlu1 %v7521_v36, %s7278_s15  ;;  %894 = vrot.lane.b32.xlu0 %v7523_v37, %s7278_s15  ;;  %v7114_v37 = vld [vmem:[%s7349_s14 + $0x220] sm:$0xf0] }
  0x64   : > { %904 = vrot.lane.b32.xlu2 %v7537_v47, %s7278_s15 }
  0x65   : > { %902 = vrot.lane.b32.xlu1 %v7539_v48, %s7278_s15  ;;  %900 = vrot.lane.b32.xlu0 %v7541_v49, %s7278_s15  ;;  %v7111_v49 = vld [vmem:[%s7349_s14 + $0x208] sm:$0xf0]  ;;  %v7109_v48 = vld [vmem:[%s7349_s14 + $0x1fc] sm:$0xf] }
  0x6c   : > { %910 = vrot.lane.b32.xlu2 %v7555_v59, %s7278_s15 }
  0x6d   : > { %908 = vrot.lane.b32.xlu1 %v7557_v63, %s7278_s15  ;;  %906 = vrot.lane.b32.xlu0 %v7559_v0, %s7278_s15  ;;  %v7108_v0 = vld [vmem:[%s7349_s14 + $0x1f0] sm:$0xf0] }
  0x6e   : > { %v7570_v5 = vpop.permute.xlu2 %848 }
  0x74   : > { %916 = vrot.lane.b32.xlu2 %v7575_v14, %s7278_s15  ;;  %v6387_v14 = vld [vmem:[%s7349_s14 + $0x1e8] sm:$0xf] }
  0x75   : > { %914 = vrot.lane.b32.xlu1 %v7577_v18, %s7278_s15  ;;  %912 = vrot.lane.b32.xlu0 %v7579_v19, %s7278_s15  ;;  %v7105_v19 = vld [vmem:[%s7349_s14 + $0x1d8] sm:$0xf0]  ;;  %v7755_v63 = vor.u32 %v7108_v0, %v6387_v14  ;;  %v6393_v14 = vld [vmem:[%s7349_s14 + $0x204] sm:$0xf0] }
  0x76   : > { %v7590_v29 = vpop.permute.xlu2 %850 }
  0x77   : > { %12811 = vst [vmem:[#allocation48_spill] sm:$0xff] %v7755_v63 }
  0x7c   : > { %922 = vrot.lane.b32.xlu2 %v7595_v39, %s7278_s15  ;;  %v6375_v39 = vld [vmem:[%s7349_s14 + $0x1d0] sm:$0xf] }
  0x7d   : > { %920 = vrot.lane.b32.xlu1 %v7597_v40, %s7278_s15  ;;  %918 = vrot.lane.b32.xlu0 %v7599_v41, %s7278_s15  ;;  %v7102_v41 = vld [vmem:[%s7349_s14 + $0x1c0] sm:$0xf0] }
  0x7e   : > { %v7610_v54 = vpop.permute.xlu2 %856 }
  0x84   : > { %928 = vrot.lane.b32.xlu2 %v7615_v58, %s7278_s15  ;;  %v6363_v58 = vld [vmem:[%s7349_s14 + $0x1b8] sm:$0xf] }
  0x85   : > { %926 = vrot.lane.b32.xlu1 %v7617_v1, %s7278_s15  ;;  %924 = vrot.lane.b32.xlu0 %v7619_v2, %s7278_s15  ;;  %v7099_v2 = vld [vmem:[%s7349_s14 + $0x1a8] sm:$0xf0] }
  0x86   : > { %v7630_v13 = vpop.permute.xlu2 %862 }
  0x87   : > { %v7635_v30 = vpop.permute.xlu1 %844  ;;  %v7637_v31 = vpop.permute.xlu0 %840 }
  0x8c   : > { %934 = vrot.lane.b32.xlu2 %v7639_v38, %s7278_s15  ;;  %v6351_v38 = vld [vmem:[%s7349_s14 + $0x1a0] sm:$0xf] }
  0x8d   : > { %932 = vrot.lane.b32.xlu1 %v7641_v45, %s7278_s15  ;;  %930 = vrot.lane.b32.xlu0 %v7643_v46, %s7278_s15  ;;  %v7665_v45 = vor.u32 %v7094_v56, %v6333_v4  ;;  %v7667_v46 = vor.u32 %v7095_v12, %v6331_v11  ;;  %v6345_v56 = vld [vmem:[%s7349_s14 + $0x1a4] sm:$0xf0]  ;;  %v6343_v4 = vld [vmem:[%s7349_s14 + $0x198] sm:$0xf] }
  0x8e   : > { %v7654_v57 = vpop.permute.xlu2 %868  ;;  %v7098_v11 = vld [vmem:[%s7349_s14 + $0x1a0] sm:$0xf0]  ;;  %v7689_v1 = vor.u32 %v7097_v50, %v6345_v56  ;;  %v6357_v50 = vld [vmem:[%s7349_s14 + $0x1bc] sm:$0xf0]  ;;  %v6355_v56 = vld [vmem:[%s7349_s14 + $0x1b0] sm:$0xf] }
  0x8f   : > { %v7659_v23 = vpop.permute.xlu1 %846  ;;  %v7661_v27 = vpop.permute.xlu0 %842  ;;  %12800 = vst [vmem:[#allocation37_spill] sm:$0xff] %v7665_v45 }
  0x90   : > { %12801 = vst [vmem:[#allocation38_spill] sm:$0xff] %v7667_v46 }
  0x91   : > { %12803 = vst [vmem:[#allocation40_spill] sm:$0xff] %v7689_v1 }
  0x94   : > { %940 = vrot.lane.b32.xlu2 %v7663_v28, %s7278_s15 }
  0x95   : > { %938 = vrot.lane.b32.xlu1 %v7665_v45, %s7278_s15  ;;  %936 = vrot.lane.b32.xlu0 %v7667_v46, %s7278_s15  ;;  %v7687_v45 = vor.u32 %v7099_v2, %v6351_v38  ;;  %v7691_v46 = vor.u32 %v7098_v11, %v6343_v4  ;;  %v7100_v2 = vld [vmem:[%s7349_s14 + $0x1b4] sm:$0xf]  ;;  %v7101_v4 = vld [vmem:[%s7349_s14 + $0x1b8] sm:$0xf0] }
  0x96   : > { %v7678_v55 = vpop.permute.xlu2 %874  ;;  %v7713_v40 = vor.u32 %v7100_v2, %v6357_v50  ;;  %v6369_v2 = vld [vmem:[%s7349_s14 + $0x1d4] sm:$0xf0]  ;;  %v6367_v50 = vld [vmem:[%s7349_s14 + $0x1c8] sm:$0xf] }
  0x97   : > { %v7683_v12 = vpop.permute.xlu1 %854  ;;  %v7685_v28 = vpop.permute.xlu0 %852  ;;  %12802 = vst [vmem:[#allocation39_spill] sm:$0xff] %v7687_v45 }
  0x98   : > { %12804 = vst [vmem:[#allocation41_spill] sm:$0xff] %v7691_v46 }
  0x99   : > { %12806 = vst [vmem:[#allocation43_spill] sm:$0xff] %v7713_v40 }
  0x9c   : > { %946 = vrot.lane.b32.xlu2 %v7687_v45, %s7278_s15 }
  0x9d   : > { %944 = vrot.lane.b32.xlu1 %v7689_v1, %s7278_s15  ;;  %942 = vrot.lane.b32.xlu0 %v7691_v46, %s7278_s15  ;;  %v7711_v1 = vor.u32 %v7102_v41, %v6363_v58  ;;  %v7715_v46 = vor.u32 %v7101_v4, %v6355_v56  ;;  %v7103_v41 = vld [vmem:[%s7349_s14 + $0x1cc] sm:$0xf]  ;;  %v7104_v56 = vld [vmem:[%s7349_s14 + $0x1d0] sm:$0xf0] }
  0x9e   : > { %v7702_v38 = vpop.permute.xlu2 %880  ;;  %v7737_v18 = vor.u32 %v7103_v41, %v6369_v2  ;;  %v6381_v41 = vld [vmem:[%s7349_s14 + $0x1ec] sm:$0xf0]  ;;  %v6379_v2 = vld [vmem:[%s7349_s14 + $0x1e0] sm:$0xf] }
  0x9f   : > { %v7707_v11 = vpop.permute.xlu1 %860  ;;  %v7709_v45 = vpop.permute.xlu0 %858  ;;  %12805 = vst [vmem:[#allocation42_spill] sm:$0xff] %v7711_v1 }
  0xa0   : > { %12807 = vst [vmem:[#allocation44_spill] sm:$0xff] %v7715_v46 }
  0xa1   : > { %12809 = vst [vmem:[#allocation46_spill] sm:$0xff] %v7737_v18 }
  0xa4   : > { %952 = vrot.lane.b32.xlu2 %v7711_v1, %s7278_s15 }
  0xa5   : > { %950 = vrot.lane.b32.xlu1 %v7713_v40, %s7278_s15  ;;  %948 = vrot.lane.b32.xlu0 %v7715_v46, %s7278_s15  ;;  %v7735_v40 = vor.u32 %v7105_v19, %v6375_v39  ;;  %v7739_v46 = vor.u32 %v7104_v56, %v6367_v50  ;;  %v7106_v19 = vld [vmem:[%s7349_s14 + $0x1e4] sm:$0xf]  ;;  %v7107_v50 = vld [vmem:[%s7349_s14 + $0x1e8] sm:$0xf0] }
  0xa6   : > { %v7726_v58 = vpop.permute.xlu2 %886  ;;  %v7759_v59 = vor.u32 %v7107_v50, %v6379_v2 }
  0xa7   : > { %v7731_v4 = vpop.permute.xlu1 %866  ;;  %v7733_v1 = vpop.permute.xlu0 %864  ;;  %12808 = vst [vmem:[#allocation45_spill] sm:$0xff] %v7735_v40 }
  0xa8   : > { %12810 = vst [vmem:[#allocation47_spill] sm:$0xff] %v7739_v46 }
  0xa9   : > { %12813 = vst [vmem:[#allocation50_spill] sm:$0xff] %v7759_v59 }
  0xac   : > { %958 = vrot.lane.b32.xlu2 %v7735_v40, %s7278_s15 }
  0xad   : > { %956 = vrot.lane.b32.xlu1 %v7737_v18, %s7278_s15  ;;  %954 = vrot.lane.b32.xlu0 %v7739_v46, %s7278_s15  ;;  %v7757_v18 = vor.u32 %v7106_v19, %v6381_v41  ;;  %v6399_v46 = vld [vmem:[%s7349_s14 + $0x200] sm:$0xf]  ;;  %v6391_v19 = vld [vmem:[%s7349_s14 + $0x1f8] sm:$0xf] }
  0xae   : > { %v7750_v39 = vpop.permute.xlu2 %892  ;;  %v7110_v41 = vld [vmem:[%s7349_s14 + $0x200] sm:$0xf0] }
  0xaf   : > { %v873_v56 = vpop.permute.xlu1 %872  ;;  %v871_v40 = vpop.permute.xlu0 %870  ;;  %12812 = vst [vmem:[#allocation49_spill] sm:$0xff] %v7757_v18  ;;  %v7779_v47 = vor.u32 %v7110_v41, %v6391_v19  ;;  %v7113_v19 = vld [vmem:[%s7349_s14 + $0x218] sm:$0xf0] }
  0xb1   : > { %12816 = vst [vmem:[#allocation53_spill] sm:$0xff] %v7779_v47 }
  0xb4   : > { %964 = vrot.lane.b32.xlu2 %v7755_v63, %s7278_s15  ;;  %v7775_v63 = vor.u32 %v7111_v49, %v6399_v46  ;;  %v6405_v49 = vld [vmem:[%s7349_s14 + $0x21c] sm:$0xf0] }
  0xb5   : > { %962 = vrot.lane.b32.xlu1 %v7757_v18, %s7278_s15  ;;  %960 = vrot.lane.b32.xlu0 %v7759_v59, %s7278_s15  ;;  %v7777_v18 = vor.u32 %v7109_v48, %v6393_v14  ;;  %v6411_v59 = vld [vmem:[%s7349_s14 + $0x218] sm:$0xf]  ;;  %v6403_v14 = vld [vmem:[%s7349_s14 + $0x210] sm:$0xf] }
  0xb6   : > { %v7770_v0 = vpop.permute.xlu2 %898  ;;  %12814 = vst [vmem:[#allocation51_spill] sm:$0xff] %v7775_v63  ;;  %v7802_v22 = vor.u32 %v7113_v19, %v6403_v14 }
  0xb7   : > { %v879_v2 = vpop.permute.xlu1 %878  ;;  %v877_v50 = vpop.permute.xlu0 %876  ;;  %12815 = vst [vmem:[#allocation52_spill] sm:$0xff] %v7777_v18 }
  0xb8   : > { %12819 = vst [vmem:[#allocation56_spill] sm:$0xff] %v7802_v22 }
  0xbc   : > { %970 = vrot.lane.b32.xlu2 %v7775_v63, %s7278_s15  ;;  %v7800_v63 = vor.u32 %v7112_v32, %v6405_v49  ;;  %v7115_v49 = vld [vmem:[%s7349_s14 + $0x22c] sm:$0xf] }
  0xbd   : > { %968 = vrot.lane.b32.xlu1 %v7777_v18, %s7278_s15  ;;  %966 = vrot.lane.b32.xlu0 %v7779_v47, %s7278_s15  ;;  %v7798_v47 = vor.u32 %v7114_v37, %v6411_v59  ;;  %v997_v37 = vsel %vm984_vm0, %v877_v50, %v879_v2  ;;  %v6423_v59 = vld [vmem:[%s7349_s14 + $0x230] sm:$0xf]  ;;  %v995_v50 = vsel %vm984_vm0, %v871_v40, %v873_v56 }
  0xbe   : > { %v7789_v36 = vpop.permute.xlu2 %904  ;;  %12818 = vst [vmem:[#allocation55_spill] sm:$0xff] %v7800_v63  ;;  %v993_v40 = vsel %vm984_vm0, %v7733_v1, %v7731_v4  ;;  %v990_v1 = vsel %vm984_vm0, %v7683_v12, %v7610_v54 }
  0xbf   : > { %v885_v46 = vpop.permute.xlu1 %884  ;;  %v883_v48 = vpop.permute.xlu0 %882  ;;  %12817 = vst [vmem:[#allocation54_spill] sm:$0xff] %v7798_v47 }
  0xc0   : > { %v999_v41 = vsel %vm984_vm0, %v883_v48, %v885_v46  ;;  %v1000_v18 = vsel %vm984_vm0, %v885_v46, %v7726_v58  ;;  %v998_v48 = vsel %vm984_vm0, %v879_v2, %v7702_v38  ;;  %v6417_v46 = vld [vmem:[%s7349_s14 + $0x234] sm:$0xf0] }
  0xc1   : > { %1105 = vmatpush.bf16.msra.mxu0 %v999_v41  ;;  %1192 = vmatpush.bf16.msra.mxu3 %v1000_v18  ;;  %v7117_v18 = vld [vmem:[%s7349_s14 + $0x238] sm:$0xf0]  ;;  %v6415_v41 = vld [vmem:[%s7349_s14 + $0x228] sm:$0xf] }
  0xc2   : > { %v7827_v2 = vor.u32 %v7117_v18, %v6423_v59  ;;  %v992_v18 = vsel %vm984_vm0, %v7707_v11, %v7630_v13 }
  0xc4   : > { %976 = vrot.lane.b32.xlu2 %v7798_v47, %s7278_s15  ;;  %v7116_v47 = vld [vmem:[%s7349_s14 + $0x230] sm:$0xf0]  ;;  %12820 = vst [vmem:[#allocation57_spill] sm:$0xff] %v7827_v2 }
  0xc5   : > { %974 = vrot.lane.b32.xlu1 %v7800_v63, %s7278_s15  ;;  %1193 = vmatpush.bf16.msra.mxu3 %v998_v48  ;;  %v996_v48 = vsel %vm984_vm0, %v873_v56, %v7678_v55  ;;  %v994_v63 = vsel %vm984_vm0, %v7731_v4, %v7654_v57  ;;  %v989_v4 = vsel %vm984_vm0, %v7685_v28, %v7683_v12  ;;  %v6091_v28 = vld [vmem:[%s12595_s1 + $0x60] sm:$0xf]  ;;  %v7119_v12 = vld [vmem:[%s12595_s1 + $0x68] sm:$0xf0] }
  0xc6   : > { %972 = vrot.lane.b32.xlu0 %v7802_v22, %s7278_s15  ;;  %1106 = vmatpush.bf16.msra.mxu0 %v997_v37  ;;  %v7815_v32 = vpop.permute.xlu2 %910  ;;  %v7830_v22 = vor.u32 %v7115_v49, %v6417_v46  ;;  %v7832_v37 = vor.u32 %v7116_v47, %v6415_v41  ;;  %v988_v46 = vsel %vm984_vm0, %v7570_v5, %v7590_v29 }
  0xc7   : > { %v7819_v14 = vpop.permute.xlu1 %890  ;;  %v7821_v19 = vpop.permute.xlu0 %888  ;;  %v987_v41 = vsel %vm984_vm0, %v7659_v23, %v7570_v5  ;;  %v985_v5 = vsel %vm984_vm0, %v7637_v31, %v7661_v27  ;;  %v7898_v23 = vor.u32 %v7119_v12, %v6091_v28 }
  0xc8   : > { %12821 = vst [vmem:[#allocation58_spill] sm:$0xff] %v7830_v22 }
  0xc9   : > { %1194 = vmatpush.bf16.msra.mxu3 %v996_v48  ;;  %12822 = vst [vmem:[#allocation59_spill] sm:$0xff] %v7832_v37  ;;  %v986_v48 = vsel %vm984_vm0, %v7661_v27, %v7635_v30 }
  0xca   : > { %1107 = vmatpush.bf16.msra.mxu0 %v995_v50 }
  0xcc   : > { %982 = vrot.lane.b32.xlu2 %v7827_v2, %s7278_s15 }
  0xcd   : > { %980 = vrot.lane.b32.xlu1 %v7830_v22, %s7278_s15  ;;  %1195 = vmatpush.bf16.msra.mxu3 %v994_v63  ;;  %v991_v63 = vsel %vm984_vm0, %v7709_v45, %v7707_v11 }
  0xce   : > { %978 = vrot.lane.b32.xlu0 %v7832_v37, %s7278_s15  ;;  %1108 = vmatpush.bf16.msra.mxu0 %v993_v40  ;;  %v7846_v47 = vpop.permute.xlu2 %916 }
  0xcf   : > { %v7848_v56 = vpop.permute.xlu1 %896  ;;  %v7850_v59 = vpop.permute.xlu0 %894 }
  0xd1   : > { %1196 = vmatpush.bf16.msra.mxu3 %v992_v18 }
  0xd2   : > { %1109 = vmatpush.bf16.msra.mxu0 %v991_v63 }
  0xd4   : > { %1434 = vrot.lane.b32.xlu2 %v7359_v7, %s7279_s16 }
  0xd5   : > { %1197 = vmatpush.bf16.msra.mxu3 %v990_v1  ;;  %1432 = vrot.lane.b32.xlu1 %v7379_v17, %s7279_s16  ;;  %v6103_v1 = vld [vmem:[%s12595_s1 + $0x78] sm:$0xf] }
  0xd6   : > { %1430 = vrot.lane.b32.xlu0 %v7361_v8, %s7279_s16  ;;  %1110 = vmatpush.bf16.msra.mxu0 %v989_v4  ;;  %v7870_v45 = vpop.permute.xlu2 %922  ;;  %v7122_v4 = vld [vmem:[%s12595_s1 + $0x80] sm:$0xf0] }
  0xd7   : > { %v7872_v11 = vpop.permute.xlu1 %902  ;;  %v7874_v49 = vpop.permute.xlu0 %900 }
  0xd9   : > { %1198 = vmatpush.bf16.msra.mxu3 %v988_v46  ;;  %v7926_v46 = vor.u32 %v7122_v4, %v6103_v1  ;;  %v6115_v4 = vld [vmem:[%s12595_s1 + $0x90] sm:$0xf] }
  0xda   : > { %1111 = vmatpush.bf16.msra.mxu0 %v987_v41 }
  0xdb   : > { %12823 = vst [vmem:[#allocation60_spill] sm:$0xff] %v7926_v46 }
  0xdc   : > { %1440 = vrot.lane.b32.xlu2 %v7375_v15, %s7279_s16 }
  0xdd   : > { %1438 = vrot.lane.b32.xlu1 %v7354_v3, %s7279_s16  ;;  %1199 = vmatpush.bf16.msra.mxu3 %v986_v48 }
  0xde   : > { %1436 = vrot.lane.b32.xlu0 %v7377_v16, %s7279_s16  ;;  %1112 = vmatpush.bf16.msra.mxu0 %v985_v5  ;;  %v929_v50 = vpop.permute.xlu2 %928 }
  0xdf   : > { %v7902_v40 = vpop.permute.xlu1 %908  ;;  %v7904_v18 = vpop.permute.xlu0 %906 }
  0xe0   : > { %1200 = vmatmul.bf16.vlgmr.msra.gmra.mxu3 %v7898_v23 }
  0xe1   : > { %1113 = vmatmul.bf16.vlgmr.msra.gmra.mxu0 %v7898_v23 }
  0xe4   : > { %1446 = vrot.lane.b32.xlu2 %v7393_v24, %s7279_s16 }
  0xe5   : > { %1444 = vrot.lane.b32.xlu1 %v7395_v25, %s7279_s16 }
  0xe6   : > { %1442 = vrot.lane.b32.xlu0 %v7397_v26, %s7279_s16  ;;  %v935_v31 = vpop.permute.xlu2 %934 }
  0xe7   : > { %v7914_v27 = vpop.permute.xlu1 %914  ;;  %v913_v63 = vpop.permute.xlu0 %912  ;;  %1308 = vmatpush.bf16.msrb.mxu3 %v935_v31 }
  0xeb   : > { %1309 = vmatpush.bf16.msrb.mxu3 %v929_v50 }
  0xec   : > { %1452 = vrot.lane.b32.xlu2 %v7411_v33, %s7279_s16 }
  0xed   : > { %1450 = vrot.lane.b32.xlu1 %v7413_v34, %s7279_s16 }
  0xee   : > { %1448 = vrot.lane.b32.xlu0 %v7415_v35, %s7279_s16  ;;  %v7930_v41 = vpop.permute.xlu2 %940 }
  0xef   : > { %v921_v28 = vpop.permute.xlu1 %920  ;;  %v919_v12 = vpop.permute.xlu0 %918  ;;  %1310 = vmatpush.bf16.msrb.mxu3 %v7870_v45 }
  0xf0   : > { %1205 = vmatmul.bf16.gmra.mxu3 %v7926_v46 }
  0xf1   : > { %1118 = vmatmul.bf16.gmra.mxu0 %v7926_v46 }
  0xf3   : > { %1311 = vmatpush.bf16.msrb.mxu3 %v7846_v47 }
  0xf4   : > { %1458 = vrot.lane.b32.xlu2 %v7429_v42, %s7279_s16  ;;  %v7125_v42 = vld [vmem:[%s12595_s1 + $0x98] sm:$0xf0] }
  0xf5   : > { %1456 = vrot.lane.b32.xlu1 %v7431_v43, %s7279_s16  ;;  %v7960_v43 = vor.u32 %v7125_v42, %v6115_v4  ;;  %v1009_v4 = vsel %vm984_vm0, %v913_v63, %v7914_v27  ;;  %v1007_v63 = vsel %vm984_vm0, %v7904_v18, %v7902_v40  ;;  %v1006_v18 = vsel %vm984_vm0, %v7872_v11, %v7789_v36 }
  0xf6   : > { %1454 = vrot.lane.b32.xlu0 %v7433_v44, %s7279_s16  ;;  %v7942_v48 = vpop.permute.xlu2 %946 }
  0xf7   : > { %v927_v5 = vpop.permute.xlu1 %926  ;;  %v925_v1 = vpop.permute.xlu0 %924  ;;  %1312 = vmatpush.bf16.msrb.mxu3 %v7815_v32 }
  0xf8   : > { %v1013_v42 = vsel %vm984_vm0, %v925_v1, %v927_v5  ;;  %v1012_v1 = vsel %vm984_vm0, %v921_v28, %v7870_v45  ;;  %v1010_v45 = vsel %vm984_vm0, %v7914_v27, %v7846_v47  ;;  %v1008_v47 = vsel %vm984_vm0, %v7902_v40, %v7815_v32  ;;  %v12825_v32 = vld [vmem:[#allocation14_spill] sm:$0xff] }
  0xf9   : > { %v1005_v27 = vsel %vm984_vm0, %v7874_v49, %v7872_v11  ;;  %v1003_v49 = vsel %vm984_vm0, %v7850_v59, %v7848_v56  ;;  %v6093_v11 = vld [vmem:[%s12595_s1 + $0x6c] sm:$0xf0]  ;;  %v1001_v59 = vsel %vm984_vm0, %v7821_v19, %v7819_v14  ;;  %v12829_v19 = vld [vmem:[#allocation18_spill] sm:$0xff] }
  0xfb   : > { %1313 = vmatpush.bf16.msrb.mxu3 %v7789_v36  ;;  %v7118_v36 = vld [vmem:[%s12595_s1 + $0x64] sm:$0xf] }
  0xfc   : > { %1464 = vrot.lane.b32.xlu2 %v7447_v51, %s7279_s16 }
  0xfd   : > { %1462 = vrot.lane.b32.xlu1 %v7449_v52, %s7279_s16 }
  0xfe   : > { %1460 = vrot.lane.b32.xlu0 %v7451_v53, %s7279_s16  ;;  %v7958_v44 = vpop.permute.xlu2 %952 }
  0xff   : > { %v933_v46 = vpop.permute.xlu1 %932  ;;  %v931_v35 = vpop.permute.xlu0 %930  ;;  %1314 = vmatpush.bf16.msrb.mxu3 %v7770_v0 }
 0x100   : > { %v1015_v34 = vsel %vm984_vm0, %v931_v35, %v933_v46  ;;  %v1016_v33 = vsel %vm984_vm0, %v933_v46, %v935_v31  ;;  %1210 = vmatmul.bf16.gmra.mxu3 %v7960_v43  ;;  %v1014_v35 = vsel %vm984_vm0, %v927_v5, %v929_v50  ;;  %v1011_v46 = vsel %vm984_vm0, %v919_v12, %v921_v28  ;;  %v6127_v50 = vld [vmem:[%s12595_s1 + $0xa8] sm:$0xf]  ;;  %v7128_v5 = vld [vmem:[%s12595_s1 + $0xb0] sm:$0xf0] }
 0x101   : > { %1134 = vmatpush.bf16.msra.mxu1 %v1015_v34  ;;  %1221 = vmatpush.bf16.msrb.mxu0 %v1016_v33  ;;  %v8004_v12 = vor.u32 %v7128_v5, %v6127_v50  ;;  %v1004_v50 = vsel %vm984_vm0, %v7848_v56, %v7770_v0  ;;  %v12826_v5 = vld [vmem:[#allocation15_spill] sm:$0xff]  ;;  %v1002_v0 = vsel %vm984_vm0, %v7819_v14, %v7750_v39  ;;  %v12828_v56 = vld [vmem:[#allocation17_spill] sm:$0xff] }
 0x102   : > { %1123 = vmatmul.bf16.gmra.mxu0 %v7960_v43 }
 0x103   : > { %1315 = vmatpush.bf16.msrb.mxu3 %v7750_v39  ;;  %12824 = vst [vmem:[#allocation61_spill] sm:$0xff] %v8004_v12  ;;  %v12831_v39 = vld [vmem:[#allocation20_spill] sm:$0xff] }
 0x104   : > { %1470 = vrot.lane.b32.xlu2 %v7465_v60, %s7279_s16 }
 0x105   : > { %1468 = vrot.lane.b32.xlu1 %v7467_v61, %s7279_s16  ;;  %1135 = vmatpush.bf16.msra.mxu1 %v1013_v42 }
 0x106   : > { %1466 = vrot.lane.b32.xlu0 %v7469_v62, %s7279_s16  ;;  %1222 = vmatpush.bf16.msrb.mxu0 %v1014_v35  ;;  %v7976_v33 = vpop.permute.xlu2 %958 }
 0x107   : > { %v7978_v34 = vpop.permute.xlu1 %938  ;;  %v7980_v31 = vpop.permute.xlu0 %936 }
 0x109   : > { %1136 = vmatpush.bf16.msra.mxu1 %v1011_v46 }
 0x10a   : > { %1223 = vmatpush.bf16.msrb.mxu0 %v1012_v1 }
 0x10c   : > { %1476 = vrot.lane.b32.xlu2 %v7483_v6, %s7279_s16 }
 0x10d   : > { %1474 = vrot.lane.b32.xlu1 %v7485_v9, %s7279_s16  ;;  %1137 = vmatpush.bf16.msra.mxu1 %v1009_v4  ;;  %v6096_v4 = vor.u32 %v7118_v36, %v6093_v11  ;;  %v7121_v36 = vld [vmem:[%s12595_s1 + $0x7c] sm:$0xf]  ;;  %v6105_v11 = vld [vmem:[%s12595_s1 + $0x84] sm:$0xf0] }
 0x10e   : > { %1472 = vrot.lane.b32.xlu0 %v7487_v10, %s7279_s16  ;;  %1224 = vmatpush.bf16.msrb.mxu0 %v1010_v45  ;;  %v8002_v28 = vpop.permute.xlu2 %964  ;;  %v12827_v45 = vld [vmem:[#allocation16_spill] sm:$0xff] }
 0x10f   : > { %v8006_v42 = vpop.permute.xlu1 %944  ;;  %v8008_v35 = vpop.permute.xlu0 %942 }
 0x110   : > { %1215 = vmatmul.bf16.gmra.mxu3 %v8004_v12 }
 0x111   : > { %1138 = vmatpush.bf16.msra.mxu1 %v1007_v63 }
 0x112   : > { %1225 = vmatpush.bf16.msrb.mxu0 %v1008_v47 }
 0x113   : > { %1128 = vmatmul.bf16.gmra.mxu0 %v8004_v12 }
 0x114   : > { %1482 = vrot.lane.b32.xlu2 %v7501_v20, %s7279_s16 }
 0x115   : > { %1480 = vrot.lane.b32.xlu1 %v7503_v21, %s7279_s16  ;;  %1139 = vmatpush.bf16.msra.mxu1 %v1005_v27 }
 0x116   : > { %1478 = vrot.lane.b32.xlu0 %v12825_v32, %s7279_s16  ;;  %1226 = vmatpush.bf16.msrb.mxu0 %v1006_v18  ;;  %v8030_v40 = vpop.permute.xlu2 %970  ;;  %v12830_v18 = vld [vmem:[#allocation19_spill] sm:$0xff]  ;;  %v12840_v32 = vld [vmem:[#allocation29_spill] sm:$0xff] }
 0x117   : > { %v8032_v46 = vpop.permute.xlu1 %950  ;;  %v8034_v1 = vpop.permute.xlu0 %948 }
 0x119   : > { %1140 = vmatpush.bf16.msra.mxu1 %v1003_v49 }
 0x11a   : > { %1227 = vmatpush.bf16.msrb.mxu0 %v1004_v50 }
 0x11c   : > { %1488 = vrot.lane.b32.xlu2 %v12826_v5, %s7279_s16  ;;  %v12839_v5 = vld [vmem:[#allocation28_spill] sm:$0xff] }
 0x11d   : > { %1486 = vrot.lane.b32.xlu1 %v12827_v45, %s7279_s16  ;;  %1141 = vmatpush.bf16.msra.mxu1 %v1001_v59  ;;  %v12832_v59 = vld [vmem:[#allocation21_spill] sm:$0xff] }
 0x11e   : > { %1484 = vrot.lane.b32.xlu0 %v12828_v56, %s7279_s16  ;;  %1228 = vmatpush.bf16.msrb.mxu0 %v1002_v0  ;;  %v977_v63 = vpop.permute.xlu2 %976  ;;  %v12833_v0 = vld [vmem:[#allocation22_spill] sm:$0xff] }
 0x11f   : > { %v8060_v47 = vpop.permute.xlu1 %956  ;;  %v8062_v27 = vpop.permute.xlu0 %954 }
 0x120   : > { %1142 = vmatmul.bf16.vlgmr.msra.gmra.mxu1 %v6096_v4  ;;  %1316 = vmatmul.bf16.vlgmr.msrb.gmra.mxu3 %v6096_v4 }
 0x123   : > { %1229 = vmatmul.bf16.vlgmr.msrb.gmra.mxu0 %v6096_v4  ;;  %v6108_v4 = vor.u32 %v7121_v36, %v6105_v11  ;;  %v12836_v36 = vld [vmem:[#allocation25_spill] sm:$0xff]  ;;  %v12837_v11 = vld [vmem:[#allocation26_spill] sm:$0xff] }
 0x124   : > { %1494 = vrot.lane.b32.xlu2 %v12829_v19, %s7279_s16 }
 0x125   : > { %1492 = vrot.lane.b32.xlu1 %v12830_v18, %s7279_s16 }
 0x126   : > { %1490 = vrot.lane.b32.xlu0 %v12831_v39, %s7279_s16  ;;  %v983_v14 = vpop.permute.xlu2 %982  ;;  %v12834_v39 = vld [vmem:[#allocation23_spill] sm:$0xff] }
 0x127   : > { %v8070_v49 = vpop.permute.xlu1 %962  ;;  %v8072_v50 = vpop.permute.xlu0 %960  ;;  %1337 = vmatpush.bf16.msra.mxu0 %v983_v14 }
 0x12b   : > { %1338 = vmatpush.bf16.msra.mxu0 %v977_v63 }
 0x12c   : > { %1500 = vrot.lane.b32.xlu2 %v12832_v59, %s7279_s16  ;;  %v12835_v59 = vld [vmem:[#allocation24_spill] sm:$0xff] }
 0x12d   : > { %1498 = vrot.lane.b32.xlu1 %v12833_v0, %s7279_s16 }
 0x12e   : > { %1496 = vrot.lane.b32.xlu0 %v12834_v39, %s7279_s16  ;;  %v8086_v18 = vpop.permute.xlu2 %1434 }
 0x12f   : > { %v969_v19 = vpop.permute.xlu1 %968  ;;  %v967_v56 = vpop.permute.xlu0 %966  ;;  %1339 = vmatpush.bf16.msra.mxu0 %v8030_v40 }
 0x130   : > { %1147 = vmatmul.bf16.gmra.mxu1 %v6108_v4  ;;  %1321 = vmatmul.bf16.gmra.mxu3 %v6108_v4 }
 0x133   : > { %1234 = vmatmul.bf16.gmra.mxu0 %v6108_v4  ;;  %v7124_v4 = vld [vmem:[%s12595_s1 + $0x94] sm:$0xf] }
 0x134   : > { %1340 = vmatpush.bf16.msra.mxu0 %v8002_v28  ;;  %1506 = vrot.lane.b32.xlu2 %v12835_v59, %s7279_s16  ;;  %v6117_v59 = vld [vmem:[%s12595_s1 + $0x9c] sm:$0xf0] }
 0x135   : > { %1504 = vrot.lane.b32.xlu1 %v12836_v36, %s7279_s16  ;;  %v12838_v36 = vld [vmem:[#allocation27_spill] sm:$0xff] }
 0x136   : > { %1502 = vrot.lane.b32.xlu0 %v12837_v11, %s7279_s16  ;;  %v8096_v39 = vpop.permute.xlu2 %1440  ;;  %v6120_v11 = vor.u32 %v7124_v4, %v6117_v59  ;;  %v12841_v59 = vld [vmem:[#allocation30_spill] sm:$0xff] }
 0x137   : > { %v975_v0 = vpop.permute.xlu1 %974 }
 0x138   : > { %v973_v45 = vpop.permute.xlu0 %972  ;;  %1341 = vmatpush.bf16.msra.mxu0 %v7976_v33  ;;  %v1030_v4 = vsel %vm984_vm0, %v975_v0, %v977_v63  ;;  %v1027_v63 = vsel %vm984_vm0, %v967_v56, %v969_v19  ;;  %v12845_v56 = vld [vmem:[#allocation34_spill] sm:$0xff] }
 0x13c   : > { %1342 = vmatpush.bf16.msra.mxu0 %v7958_v44  ;;  %1512 = vrot.lane.b32.xlu2 %v12838_v36, %s7279_s16 }
 0x13d   : > { %1510 = vrot.lane.b32.xlu1 %v12839_v5, %s7279_s16  ;;  %v1029_v5 = vsel %vm984_vm0, %v973_v45, %v975_v0  ;;  %v7127_v45 = vld [vmem:[%s12595_s1 + $0xac] sm:$0xf]  ;;  %v12844_v0 = vld [vmem:[#allocation33_spill] sm:$0xff] }
 0x13e   : > { %1508 = vrot.lane.b32.xlu0 %v12840_v32, %s7279_s16  ;;  %v8112_v21 = vpop.permute.xlu2 %1446  ;;  %v12842_v32 = vld [vmem:[#allocation31_spill] sm:$0xff] }
 0x13f   : > { %v981_v20 = vpop.permute.xlu1 %980 }
 0x140   : > { %v979_v12 = vpop.permute.xlu0 %978  ;;  %1152 = vmatmul.bf16.gmra.mxu1 %v6120_v11  ;;  %1343 = vmatpush.bf16.msra.mxu0 %v7942_v48  ;;  %v1032_v10 = vsel %vm984_vm0, %v981_v20, %v983_v14  ;;  %v12843_v14 = vld [vmem:[#allocation32_spill] sm:$0xff] }
 0x141   : > { %v1031_v9 = vsel %vm984_vm0, %v979_v12, %v981_v20  ;;  %1250 = vmatpush.bf16.msrb.mxu1 %v1032_v10  ;;  %1326 = vmatmul.bf16.gmra.mxu3 %v6120_v11  ;;  %v1028_v12 = vsel %vm984_vm0, %v969_v19, %v8030_v40  ;;  %v1025_v19 = vsel %vm984_vm0, %v8072_v50, %v8070_v49  ;;  %v12847_v50 = vld [vmem:[#allocation36_spill] sm:$0xff] }
 0x142   : > { %1163 = vmatpush.bf16.msra.mxu2 %v1031_v9 }
 0x143   : > { %1239 = vmatmul.bf16.gmra.mxu0 %v6120_v11  ;;  %v1026_v11 = vsel %vm984_vm0, %v8070_v49, %v8002_v28  ;;  %v1024_v28 = vsel %vm984_vm0, %v8060_v47, %v7976_v33  ;;  %v1023_v49 = vsel %vm984_vm0, %v8062_v27, %v8060_v47  ;;  %v1021_v33 = vsel %vm984_vm0, %v8034_v1, %v8032_v46  ;;  %v12849_v47 = vld [vmem:[#allocation38_spill] sm:$0xff]  ;;  %v7120_v1 = vld [vmem:[%s12595_s1 + $0x70] sm:$0xf0] }
 0x144   : > { %1344 = vmatpush.bf16.msra.mxu0 %v7930_v41  ;;  %1518 = vrot.lane.b32.xlu2 %v12841_v59, %s7279_s16 }
 0x145   : > { %1516 = vrot.lane.b32.xlu1 %v12842_v32, %s7279_s16  ;;  %1251 = vmatpush.bf16.msrb.mxu1 %v1030_v4  ;;  %v12846_v4 = vld [vmem:[#allocation35_spill] sm:$0xff] }
 0x146   : > { %1514 = vrot.lane.b32.xlu0 %v12843_v14, %s7279_s16  ;;  %1164 = vmatpush.bf16.msra.mxu2 %v1029_v5  ;;  %v8126_v10 = vpop.permute.xlu2 %1452  ;;  %v6129_v5 = vld [vmem:[%s12595_s1 + $0xb4] sm:$0xf0] }
 0x147   : > { %v8128_v9 = vpop.permute.xlu1 %1432  ;;  %v6132_v40 = vor.u32 %v7127_v45, %v6129_v5  ;;  %v1022_v45 = vsel %vm984_vm0, %v8032_v46, %v7958_v44  ;;  %v12848_v5 = vld [vmem:[#allocation37_spill] sm:$0xff]  ;;  %v1020_v44 = vsel %vm984_vm0, %v8006_v42, %v7942_v48  ;;  %v6099_v46 = vld [vmem:[%s12595_s1 + $0x68] sm:$0xf]  ;;  %v1018_v48 = vsel %vm984_vm0, %v7978_v34, %v7930_v41 }
 0x148   : > { %v8130_v20 = vpop.permute.xlu0 %1430 }
 0x149   : > { %1252 = vmatpush.bf16.msrb.mxu1 %v1028_v12 }
 0x14a   : > { %1165 = vmatpush.bf16.msra.mxu2 %v1027_v63 }
 0x14c   : > { %1524 = vrot.lane.b32.xlu2 %v12844_v0, %s7279_s16 }
 0x14d   : > { %1522 = vrot.lane.b32.xlu1 %v12845_v56, %s7279_s16  ;;  %1253 = vmatpush.bf16.msrb.mxu1 %v1026_v11 }
 0x14e   : > { %1520 = vrot.lane.b32.xlu0 %v12846_v4, %s7279_s16  ;;  %1166 = vmatpush.bf16.msra.mxu2 %v1025_v19  ;;  %v8153_v12 = vpop.permute.xlu2 %1458  ;;  %v1019_v19 = vsel %vm984_vm0, %v8008_v35, %v8006_v42  ;;  %v12851_v42 = vld [vmem:[#allocation40_spill] sm:$0xff]  ;;  %v1017_v35 = vsel %vm984_vm0, %v7980_v31, %v7978_v34  ;;  %v12853_v34 = vld [vmem:[#allocation42_spill] sm:$0xff]  ;;  %v12854_v31 = vld [vmem:[#allocation43_spill] sm:$0xff] }
 0x14f   : > { %v8155_v63 = vpop.permute.xlu1 %1438 }
 0x150   : > { %v8157_v0 = vpop.permute.xlu0 %1436  ;;  %1157 = vmatmul.bf16.gmra.mxu1 %v6132_v40 }
 0x151   : > { %1254 = vmatpush.bf16.msrb.mxu1 %v1024_v28  ;;  %1331 = vmatmul.bf16.gmra.mxu3 %v6132_v40  ;;  %v12850_v28 = vld [vmem:[#allocation39_spill] sm:$0xff] }
 0x152   : > { %1167 = vmatpush.bf16.msra.mxu2 %v1023_v49  ;;  %v6100_v49 = vor.u32 %v7120_v1, %v6099_v46  ;;  %v12855_v46 = vld [vmem:[#allocation44_spill] sm:$0xff] }
 0x153   : > { %1244 = vmatmul.bf16.gmra.mxu0 %v6132_v40 }
 0x154   : > { %1530 = vrot.lane.b32.xlu2 %v12847_v50, %s7279_s16 }
 0x155   : > { %1528 = vrot.lane.b32.xlu1 %v12848_v5, %s7279_s16  ;;  %1255 = vmatpush.bf16.msrb.mxu1 %v1022_v45  ;;  %v12852_v45 = vld [vmem:[#allocation41_spill] sm:$0xff] }
 0x156   : > { %1526 = vrot.lane.b32.xlu0 %v12849_v47, %s7279_s16  ;;  %1168 = vmatpush.bf16.msra.mxu2 %v1021_v33  ;;  %v8177_v27 = vpop.permute.xlu2 %1464 }
 0x157   : > { %v8179_v11 = vpop.permute.xlu1 %1444 }
 0x158   : > { %v8181_v40 = vpop.permute.xlu0 %1442 }
 0x159   : > { %1256 = vmatpush.bf16.msrb.mxu1 %v1020_v44 }
 0x15a   : > { %1169 = vmatpush.bf16.msra.mxu2 %v1019_v19 }
 0x15c   : > { %1536 = vrot.lane.b32.xlu2 %v12850_v28, %s7279_s16 }
 0x15d   : > { %1534 = vrot.lane.b32.xlu1 %v12851_v42, %s7279_s16  ;;  %1257 = vmatpush.bf16.msrb.mxu1 %v1018_v48 }
 0x15e   : > { %1532 = vrot.lane.b32.xlu0 %v12852_v45, %s7279_s16  ;;  %1170 = vmatpush.bf16.msra.mxu2 %v1017_v35  ;;  %v8207_v33 = vpop.permute.xlu2 %1470  ;;  %v8209_v44 = vpop.f32.mrf.mxu0 }
 0x15f   : > { %v8212_v41 = vpop.permute.xlu1 %1450 }
 0x160   : > { %v8214_v19 = vpop.permute.xlu0 %1448  ;;  %1258 = vmatmul.bf16.vlgmr.msrb.gmra.mxu1 %v6100_v49 }
 0x161   : > { %1171 = vmatmul.bf16.vlgmr.msra.gmra.mxu2 %v6100_v49 }
 0x162   : > { %1279 = vmatpush.bf16.msrb.mxu2 %v7726_v58 }
 0x163   : > { %1345 = vmatmul.bf16.vlgmr.msra.gmra.mxu0 %v6100_v49  ;;  %v7123_v49 = vld [vmem:[%s12595_s1 + $0x88] sm:$0xf0] }
 0x164   : > { %1542 = vrot.lane.b32.xlu2 %v12853_v34, %s7279_s16  ;;  %v12859_v34 = vld [vmem:[#allocation47_spill] sm:$0xff] }
 0x165   : > { %1540 = vrot.lane.b32.xlu1 %v12854_v31, %s7279_s16 }
 0x166   : > { %1280 = vmatpush.bf16.msrb.mxu2 %v7702_v38  ;;  %1538 = vrot.lane.b32.xlu0 %v12855_v46, %s7279_s16  ;;  %v8223_v1 = vpop.permute.xlu2 %1476  ;;  %v8225_v58 = vpop.f32.mrf.mxu0  ;;  %v6111_v38 = vld [vmem:[%s12595_s1 + $0x80] sm:$0xf]  ;;  %v12857_v46 = vld [vmem:[#allocation45_spill] sm:$0xff] }
 0x167   : > { %12856 = vst [vmem:[#allocation27_spill] sm:$0xff] %v8223_v1  ;;  %v8228_v48 = vpop.permute.xlu1 %1456  ;;  %v6112_v31 = vor.u32 %v7123_v49, %v6111_v38  ;;  %v12861_v38 = vld [vmem:[#allocation49_spill] sm:$0xff]  ;;  %v12862_v49 = vld [vmem:[#allocation50_spill] sm:$0xff] }
 0x168   : > { %v8230_v35 = vpop.permute.xlu0 %1454 }
 0x16a   : > { %1281 = vmatpush.bf16.msrb.mxu2 %v7678_v55  ;;  %v12858_v55 = vld [vmem:[#allocation46_spill] sm:$0xff] }
 0x16c   : > { %1548 = vrot.lane.b32.xlu2 %v12857_v46, %s7279_s16 }
 0x16d   : > { %1546 = vrot.lane.b32.xlu1 %v12858_v55, %s7279_s16 }
 0x16e   : > { %1282 = vmatpush.bf16.msrb.mxu2 %v7654_v57  ;;  %1544 = vrot.lane.b32.xlu0 %v12859_v34, %s7279_s16  ;;  %v8245_v45 = vpop.permute.xlu2 %1482  ;;  %v8247_v42 = vpop.f32.mrf.mxu0  ;;  %v12860_v57 = vld [vmem:[#allocation48_spill] sm:$0xff] }
 0x16f   : > { %v1463_v28 = vpop.permute.xlu1 %1462 }
 0x170   : > { %v1461_v47 = vpop.permute.xlu0 %1460  ;;  %1263 = vmatmul.bf16.gmra.mxu1 %v6112_v31 }
 0x171   : > { %1176 = vmatmul.bf16.gmra.mxu2 %v6112_v31 }
 0x172   : > { %1283 = vmatpush.bf16.msrb.mxu2 %v7630_v13 }
 0x173   : > { %1350 = vmatmul.bf16.gmra.mxu0 %v6112_v31  ;;  %v7126_v31 = vld [vmem:[%s12595_s1 + $0xa0] sm:$0xf0] }
 0x174   : > { %1554 = vrot.lane.b32.xlu2 %v12860_v57, %s7279_s16  ;;  %v12864_v57 = vld [vmem:[#allocation52_spill] sm:$0xff] }
 0x175   : > { %1552 = vrot.lane.b32.xlu1 %v12861_v38, %s7279_s16 }
 0x176   : > { %1284 = vmatpush.bf16.msrb.mxu2 %v7610_v54  ;;  %1550 = vrot.lane.b32.xlu0 %v12862_v49, %s7279_s16  ;;  %v8257_v34 = vpop.permute.xlu2 %1488  ;;  %v8259_v55 = vpop.f32.mrf.mxu0  ;;  %v6123_v54 = vld [vmem:[%s12595_s1 + $0x98] sm:$0xf]  ;;  %v12863_v49 = vld [vmem:[#allocation51_spill] sm:$0xff] }
 0x177   : > { %v1469_v13 = vpop.permute.xlu1 %1468  ;;  %v6124_v38 = vor.u32 %v7126_v31, %v6123_v54  ;;  %v12866_v54 = vld [vmem:[#allocation54_spill] sm:$0xff] }
 0x178   : > { %v1467_v46 = vpop.permute.xlu0 %1466  ;;  %v1588_v31 = vsel %vm1574_vm1, %v1469_v13, %v8207_v33 }
 0x17a   : > { %1285 = vmatpush.bf16.msrb.mxu2 %v7590_v29  ;;  %v12865_v29 = vld [vmem:[#allocation53_spill] sm:$0xff] }
 0x17c   : > { %1560 = vrot.lane.b32.xlu2 %v12863_v49, %s7279_s16 }
 0x17d   : > { %1558 = vrot.lane.b32.xlu1 %v12864_v57, %s7279_s16  ;;  %v1587_v57 = vsel %vm1574_vm1, %v1467_v46, %v1469_v13  ;;  %v6135_v46 = vld [vmem:[%s12595_s1 + $0xb0] sm:$0xf]  ;;  %v1584_v13 = vsel %vm1574_vm1, %v8228_v48, %v8153_v12 }
 0x17e   : > { %1286 = vmatpush.bf16.msrb.mxu2 %v7635_v30  ;;  %1556 = vrot.lane.b32.xlu0 %v12865_v29, %s7279_s16  ;;  %v8275_v5 = vpop.permute.xlu2 %1494  ;;  %v12867_v29 = vld [vmem:[#allocation55_spill] sm:$0xff] }
 0x17f   : > { %v1475_v50 = vpop.permute.xlu1 %1474  ;;  %v8277_v4 = vpop.f32.mrf.mxu0 }
 0x180   : > { %v1473_v56 = vpop.permute.xlu0 %1472  ;;  %1268 = vmatmul.bf16.gmra.mxu1 %v6124_v38  ;;  %v1590_v30 = vsel %vm1574_vm1, %v1475_v50, %v8223_v1  ;;  %v12868_v1 = vld [vmem:[#allocation56_spill] sm:$0xff] }
 0x181   : > { %v1589_v49 = vsel %vm1574_vm1, %v1473_v56, %v1475_v50  ;;  %1181 = vmatmul.bf16.gmra.mxu2 %v6124_v38  ;;  %1782 = vmatpush.bf16.msrb.mxu0 %v1590_v30  ;;  %v1586_v30 = vsel %vm1574_vm1, %v1463_v28, %v8177_v27 }
 0x182   : > { %1695 = vmatpush.bf16.msra.mxu1 %v1589_v49 }
 0x183   : > { %1355 = vmatmul.bf16.gmra.mxu0 %v6124_v38 }
 0x184   : > { %1566 = vrot.lane.b32.xlu2 %v12866_v54, %s7279_s16 }
 0x185   : > { %1564 = vrot.lane.b32.xlu1 %v12867_v29, %s7279_s16  ;;  %1783 = vmatpush.bf16.msrb.mxu0 %v1588_v31  ;;  %v1585_v29 = vsel %vm1574_vm1, %v1461_v47, %v1463_v28  ;;  %v1583_v47 = vsel %vm1574_vm1, %v8230_v35, %v8228_v48  ;;  %v1581_v48 = vsel %vm1574_vm1, %v8214_v19, %v8212_v41 }
 0x186   : > { %1562 = vrot.lane.b32.xlu0 %v12868_v1, %s7279_s16  ;;  %1696 = vmatpush.bf16.msra.mxu1 %v1587_v57  ;;  %v8291_v56 = vpop.permute.xlu2 %1500  ;;  %v7129_v57 = vld [vmem:[%s12595_s1 + $0xb8] sm:$0xf0]  ;;  %v1580_v35 = vsel %vm1574_vm1, %v8179_v11, %v8112_v21 }
 0x187   : > { %v8293_v50 = vpop.permute.xlu1 %1480  ;;  %v8295_v38 = vpop.f32.mrf.mxu0  ;;  %v6136_v31 = vor.u32 %v7129_v57, %v6135_v46  ;;  %v1582_v46 = vsel %vm1574_vm1, %v8212_v41, %v8126_v10  ;;  %v1579_v57 = vsel %vm1574_vm1, %v8181_v40, %v8179_v11  ;;  %v1577_v11 = vsel %vm1574_vm1, %v8157_v0, %v8155_v63  ;;  %v7035_v40 = vld [vmem:[%s12595_s1 + $0x8] sm:$0xf0] }
 0x188   : > { %v8297_v49 = vpop.permute.xlu0 %1478 }
 0x189   : > { %1784 = vmatpush.bf16.msrb.mxu0 %v1586_v30 }
 0x18a   : > { %1697 = vmatpush.bf16.msra.mxu1 %v1585_v29 }
 0x18c   : > { %1572 = vrot.lane.b32.xlu2 %v7827_v2, %s7279_s16 }
 0x18d   : > { %1570 = vrot.lane.b32.xlu1 %v7830_v22, %s7279_s16  ;;  %1785 = vmatpush.bf16.msrb.mxu0 %v1584_v13 }
 0x18e   : > { %1568 = vrot.lane.b32.xlu0 %v7832_v37, %s7279_s16  ;;  %1698 = vmatpush.bf16.msra.mxu1 %v1583_v47  ;;  %v8320_v28 = vpop.permute.xlu2 %1506 }
 0x18f   : > { %v8322_v29 = vpop.permute.xlu1 %1486 }
 0x190   : > { %v8324_v30 = vpop.f32.mrf.mxu0  ;;  %v8326_v2 = vpop.permute.xlu0 %1484  ;;  %1273 = vmatmul.bf16.gmra.mxu1 %v6136_v31 }
 0x191   : > { %1186 = vmatmul.bf16.gmra.mxu2 %v6136_v31  ;;  %1786 = vmatpush.bf16.msrb.mxu0 %v1582_v46 }
 0x192   : > { %1699 = vmatpush.bf16.msra.mxu1 %v1581_v48 }
 0x193   : > { %1360 = vmatmul.bf16.gmra.mxu0 %v6136_v31  ;;  %v1576_v31 = vsel %vm1574_vm1, %v8128_v9, %v8086_v18 }
 0x194   : > { %2041 = vrot.lane.b32.xlu2 %v7359_v7, %s7280_s12 }
 0x195   : > { %2039 = vrot.lane.b32.xlu1 %v7379_v17, %s7280_s12  ;;  %1787 = vmatpush.bf16.msrb.mxu0 %v1580_v35  ;;  %v1578_v17 = vsel %vm1574_vm1, %v8155_v63, %v8096_v39  ;;  %v1575_v63 = vsel %vm1574_vm1, %v8130_v20, %v8128_v9 }
 0x196   : > { %2037 = vrot.lane.b32.xlu0 %v7361_v8, %s7280_s12  ;;  %1700 = vmatpush.bf16.msra.mxu1 %v1579_v57  ;;  %v8346_v41 = vpop.permute.xlu2 %1512  ;;  %v6427_v8 = vld [vmem:[%s12595_s1] sm:$0xf] }
 0x197   : > { %v8348_v19 = vpop.permute.xlu1 %1492  ;;  %v8376_v47 = vor.u32 %v7035_v40, %v6427_v8  ;;  %v12874_v8 = vld [vmem:[#allocation6_spill] sm:$0xff] }
 0x198   : > { %v8350_v7 = vpop.f32.mrf.mxu0  ;;  %v8352_v13 = vpop.permute.xlu0 %1490 }
 0x199   : > { %1788 = vmatpush.bf16.msrb.mxu0 %v1578_v17  ;;  %12869 = vst [vmem:[#allocation30_spill] sm:$0xff] %v8376_v47 }
 0x19a   : > { %1701 = vmatpush.bf16.msra.mxu1 %v1577_v11 }
 0x19c   : > { %2047 = vrot.lane.b32.xlu2 %v7375_v15, %s7280_s12 }
 0x19d   : > { %2045 = vrot.lane.b32.xlu1 %v7354_v3, %s7280_s12  ;;  %v1143_v0 = vpop.f32.mrf.mxu1  ;;  %1789 = vmatpush.bf16.msrb.mxu0 %v1576_v31 }
 0x19e   : > { %2043 = vrot.lane.b32.xlu0 %v7377_v16, %s7280_s12  ;;  %v8381_v15 = vadd.f32 %v1143_v0, %v8209_v44  ;;  %1702 = vmatpush.bf16.msra.mxu1 %v1575_v63  ;;  %v8383_v46 = vpop.permute.xlu2 %1518 }
 0x19f   : > { %v8385_v48 = vpop.permute.xlu1 %1498 }
 0x1a0   : > { %v8387_v3 = vpop.f32.mrf.mxu0  ;;  %v8389_v35 = vpop.permute.xlu0 %1496 }
 0x1a1   : > { %1287 = vmatmul.bf16.vlgmr.msrb.gmra.mxu2 %v7898_v23  ;;  %1703 = vmatmul.bf16.vlgmr.msra.gmra.mxu1 %v8376_v47 }
 0x1a3   : > { %1790 = vmatmul.bf16.vlgmr.msrb.gmra.mxu0 %v8376_v47 }
 0x1a4   : > { %2053 = vrot.lane.b32.xlu2 %v7393_v24, %s7280_s12  ;;  %v6439_v24 = vld [vmem:[%s12595_s1 + $0x18] sm:$0xf] }
 0x1a5   : > { %2051 = vrot.lane.b32.xlu1 %v7395_v25, %s7280_s12  ;;  %v1145_v16 = vpop.f32.mrf.mxu1  ;;  %v7038_v25 = vld [vmem:[%s12595_s1 + $0x20] sm:$0xf0] }
 0x1a6   : > { %2049 = vrot.lane.b32.xlu0 %v7397_v26, %s7280_s12  ;;  %v8401_v9 = vadd.f32 %v1145_v16, %v8225_v58  ;;  %v1525_v20 = vpop.permute.xlu2 %1524  ;;  %v12871_v26 = vld [vmem:[#allocation4_spill] sm:$0xff]  ;;  %v12872_v58 = vld [vmem:[#allocation5_spill] sm:$0xff]  ;;  %v8420_v11 = vor.u32 %v7038_v25, %v6439_v24  ;;  %v12876_v24 = vld [vmem:[#allocation7_spill] sm:$0xff] }
 0x1a7   : > { %v8403_v44 = vpop.permute.xlu1 %1504  ;;  %1898 = vmatpush.bf16.msra.mxu0 %v1525_v20 }
 0x1a8   : > { %v8405_v23 = vpop.f32.mrf.mxu0  ;;  %v8407_v57 = vpop.permute.xlu0 %1502  ;;  %12873 = vst [vmem:[#allocation32_spill] sm:$0xff] %v8420_v11 }
 0x1a9   : > { %12870 = vst [vmem:[#allocation31_spill] sm:$0xff] %v8405_v23 }
 0x1ab   : > { %1899 = vmatpush.bf16.msra.mxu0 %v8383_v46 }
 0x1ac   : > { %2059 = vrot.lane.b32.xlu2 %v12871_v26, %s7280_s12  ;;  %v12875_v26 = vld [vmem:[#allocation60_spill] sm:$0xff] }
 0x1ad   : > { %2057 = vrot.lane.b32.xlu1 %v12872_v58, %s7280_s12  ;;  %v1148_v17 = vpop.f32.mrf.mxu1  ;;  %v12878_v58 = vld [vmem:[#allocation9_spill] sm:$0xff] }
 0x1ae   : > { %2055 = vrot.lane.b32.xlu0 %v12874_v8, %s7280_s12  ;;  %v8425_v40 = vadd.f32 %v1148_v17, %v8247_v42  ;;  %v8427_v31 = vpop.permute.xlu2 %1530  ;;  %v12877_v42 = vld [vmem:[#allocation8_spill] sm:$0xff] }
 0x1af   : > { %v1511_v0 = vpop.permute.xlu1 %1510  ;;  %1900 = vmatpush.bf16.msra.mxu0 %v8346_v41 }
 0x1b0   : > { %v8430_v63 = vpop.f32.mrf.mxu0  ;;  %v1509_v16 = vpop.permute.xlu0 %1508 }
 0x1b1   : > { %1292 = vmatmul.bf16.gmra.mxu2 %v12875_v26  ;;  %1708 = vmatmul.bf16.gmra.mxu1 %v8420_v11 }
 0x1b3   : > { %1795 = vmatmul.bf16.gmra.mxu0 %v8420_v11 }
 0x1b4   : > { %1901 = vmatpush.bf16.msra.mxu0 %v8320_v28  ;;  %2065 = vrot.lane.b32.xlu2 %v12876_v24, %s7280_s12  ;;  %v6451_v24 = vld [vmem:[%s12595_s1 + $0x30] sm:$0xf] }
 0x1b5   : > { %2063 = vrot.lane.b32.xlu1 %v12877_v42, %s7280_s12  ;;  %v1150_v25 = vpop.f32.mrf.mxu1  ;;  %v7041_v42 = vld [vmem:[%s12595_s1 + $0x38] sm:$0xf0] }
 0x1b6   : > { %2061 = vrot.lane.b32.xlu0 %v12878_v58, %s7280_s12  ;;  %v8443_v17 = vadd.f32 %v1150_v25, %v8259_v55  ;;  %v8445_v8 = vpop.permute.xlu2 %1536  ;;  %v8461_v25 = vor.u32 %v7041_v42, %v6451_v24  ;;  %v12882_v24 = vld [vmem:[#allocation11_spill] sm:$0xff] }
 0x1b7   : > { %v1517_v26 = vpop.permute.xlu1 %1516 }
 0x1b8   : > { %v8447_v23 = vpop.f32.mrf.mxu0  ;;  %v1515_v11 = vpop.permute.xlu0 %1514  ;;  %1902 = vmatpush.bf16.msra.mxu0 %v8291_v56 }
 0x1b9   : > { %12879 = vst [vmem:[#allocation54_spill] sm:$0xff] %v8447_v23 }
 0x1bc   : > { %1903 = vmatpush.bf16.msra.mxu0 %v8275_v5  ;;  %2071 = vrot.lane.b32.xlu2 %v7447_v51, %s7280_s12 }
 0x1bd   : > { %2069 = vrot.lane.b32.xlu1 %v7449_v52, %s7280_s12  ;;  %v1153_v55 = vpop.f32.mrf.mxu1 }
 0x1be   : > { %2067 = vrot.lane.b32.xlu0 %v7451_v53, %s7280_s12  ;;  %v8466_v58 = vadd.f32 %v1153_v55, %v8277_v4  ;;  %v8468_v23 = vpop.permute.xlu2 %1542  ;;  %v1603_v4 = vsel %vm1574_vm1, %v1515_v11, %v1517_v26  ;;  %v1601_v11 = vsel %vm1574_vm1, %v1509_v16, %v1511_v0 }
 0x1bf   : > { %v1523_v47 = vpop.permute.xlu1 %1522 }
 0x1c0   : > { %v8470_v37 = vpop.f32.mrf.mxu0  ;;  %v1521_v22 = vpop.permute.xlu0 %1520  ;;  %1904 = vmatpush.bf16.msra.mxu0 %v8257_v34  ;;  %v1606_v51 = vsel %vm1574_vm1, %v1523_v47, %v1525_v20 }
 0x1c1   : > { %v1605_v52 = vsel %vm1574_vm1, %v1521_v22, %v1523_v47  ;;  %1297 = vmatmul.bf16.gmra.mxu2 %v7960_v43  ;;  %1713 = vmatmul.bf16.gmra.mxu1 %v8461_v25  ;;  %v1604_v22 = vsel %vm1574_vm1, %v1517_v26, %v8383_v46  ;;  %v7044_v46 = vld [vmem:[%s12595_s1 + $0x50] sm:$0xf0]  ;;  %v12881_v26 = vld [vmem:[#allocation10_spill] sm:$0xff] }
 0x1c2   : > { %1724 = vmatpush.bf16.msra.mxu2 %v1605_v52  ;;  %1811 = vmatpush.bf16.msrb.mxu1 %v1606_v51 }
 0x1c3   : > { %1800 = vmatmul.bf16.gmra.mxu0 %v8461_v25 }
 0x1c4   : > { %1905 = vmatpush.bf16.msra.mxu0 %v8245_v45  ;;  %2077 = vrot.lane.b32.xlu2 %v7465_v60, %s7280_s12 }
 0x1c5   : > { %2075 = vrot.lane.b32.xlu1 %v7467_v61, %s7280_s12  ;;  %v1155_v53 = vpop.f32.mrf.mxu1 }
 0x1c6   : > { %2073 = vrot.lane.b32.xlu0 %v7469_v62, %s7280_s12  ;;  %v8487_v43 = vadd.f32 %v1155_v53, %v8295_v38  ;;  %1725 = vmatpush.bf16.msra.mxu2 %v1603_v4  ;;  %v8491_v47 = vpop.permute.xlu2 %1548  ;;  %v1602_v62 = vsel %vm1574_vm1, %v1511_v0, %v8346_v41  ;;  %v6463_v38 = vld [vmem:[%s12595_s1 + $0x48] sm:$0xf]  ;;  %v1599_v41 = vsel %vm1574_vm1, %v8407_v57, %v8403_v44  ;;  %v12883_v53 = vld [vmem:[#allocation61_spill] sm:$0xff] }
 0x1c7   : > { %1812 = vmatpush.bf16.msrb.mxu1 %v1604_v22  ;;  %v8493_v60 = vpop.permute.xlu1 %1528  ;;  %v8515_v0 = vor.u32 %v7044_v46, %v6463_v38  ;;  %v12885_v4 = vld [vmem:[#allocation13_spill] sm:$0xff] }
 0x1c8   : > { %v8495_v20 = vpop.f32.mrf.mxu0  ;;  %v8497_v61 = vpop.permute.xlu0 %1526 }
 0x1c9   : > { %12880 = vst [vmem:[#allocation56_spill] sm:$0xff] %v8495_v20  ;;  %v12907_v20 = vld [vmem:[#allocation28_spill] sm:$0xff] }
 0x1ca   : > { %1726 = vmatpush.bf16.msra.mxu2 %v1601_v11  ;;  %v1595_v11 = vsel %vm1574_vm1, %v8352_v13, %v8348_v19  ;;  %v1593_v13 = vsel %vm1574_vm1, %v8326_v2, %v8322_v29 }
 0x1cb   : > { %1813 = vmatpush.bf16.msrb.mxu1 %v1602_v62 }
 0x1cc   : > { %2083 = vrot.lane.b32.xlu2 %v7483_v6, %s7280_s12  ;;  %v1600_v6 = vsel %vm1574_vm1, %v8403_v44, %v8320_v28  ;;  %v1598_v28 = vsel %vm1574_vm1, %v8385_v48, %v8291_v56  ;;  %v12884_v44 = vld [vmem:[#allocation12_spill] sm:$0xff]  ;;  %v1596_v56 = vsel %vm1574_vm1, %v8348_v19, %v8275_v5  ;;  %v7034_v5 = vld [vmem:[%s12595_s1 + $0x4] sm:$0xf]  ;;  %v6429_v19 = vld [vmem:[%s12595_s1 + $0xc] sm:$0xf0] }
 0x1cd   : > { %2081 = vrot.lane.b32.xlu1 %v12881_v26, %s7280_s12  ;;  %v1158_v16 = vpop.f32.mrf.mxu1 }
 0x1ce   : > { %2079 = vrot.lane.b32.xlu0 %v12882_v24, %s7280_s12  ;;  %v8520_v42 = vadd.f32 %v1158_v16, %v8324_v30  ;;  %1727 = vmatpush.bf16.msra.mxu2 %v1599_v41  ;;  %v8525_v55 = vpop.permute.xlu2 %1554  ;;  %v1597_v30 = vsel %vm1574_vm1, %v8389_v35, %v8385_v48  ;;  %v12886_v35 = vld [vmem:[#allocation14_spill] sm:$0xff]  ;;  %v12888_v16 = vld [vmem:[#allocation15_spill] sm:$0xff]  ;;  %v12889_v41 = vld [vmem:[#allocation16_spill] sm:$0xff] }
 0x1cf   : > { %1814 = vmatpush.bf16.msrb.mxu1 %v1600_v6  ;;  %v8527_v51 = vpop.permute.xlu1 %1534  ;;  %v12890_v24 = vld [vmem:[#allocation17_spill] sm:$0xff]  ;;  %v1592_v6 = vsel %vm1574_vm1, %v8293_v50, %v8245_v45  ;;  %v12893_v45 = vld [vmem:[#allocation19_spill] sm:$0xff] }
 0x1d0   : > { %v8529_v52 = vpop.f32.mrf.mxu0  ;;  %v8531_v57 = vpop.permute.xlu0 %1532 }
 0x1d1   : > { %1302 = vmatmul.bf16.gmra.mxu2 %v12883_v53  ;;  %1718 = vmatmul.bf16.gmra.mxu1 %v8515_v0 }
 0x1d2   : > { %1728 = vmatpush.bf16.msra.mxu2 %v1597_v30 }
 0x1d3   : > { %1815 = vmatpush.bf16.msrb.mxu1 %v1598_v28  ;;  %1805 = vmatmul.bf16.gmra.mxu0 %v8515_v0 }
 0x1d4   : > { %2089 = vrot.lane.b32.xlu2 %v12884_v44, %s7280_s12 }
 0x1d5   : > { %2087 = vrot.lane.b32.xlu1 %v12885_v4, %s7280_s12  ;;  %v1160_v22 = vpop.f32.mrf.mxu1  ;;  %v12892_v4 = vld [vmem:[#allocation18_spill] sm:$0xff] }
 0x1d6   : > { %2085 = vrot.lane.b32.xlu0 %v12886_v35, %s7280_s12  ;;  %v8552_v62 = vadd.f32 %v1160_v22, %v8350_v7  ;;  %1729 = vmatpush.bf16.msra.mxu2 %v1595_v11  ;;  %v8557_v48 = vpop.permute.xlu2 %1560  ;;  %v1594_v7 = vsel %vm1574_vm1, %v8322_v29, %v8257_v34  ;;  %v1591_v34 = vsel %vm1574_vm1, %v8297_v49, %v8293_v50  ;;  %v12895_v11 = vld [vmem:[#allocation20_spill] sm:$0xff] }
 0x1d7   : > { %1816 = vmatpush.bf16.msrb.mxu1 %v1596_v56  ;;  %v8559_v38 = vpop.permute.xlu1 %1540  ;;  %v6432_v29 = vor.u32 %v7034_v5, %v6429_v19  ;;  %v6441_v5 = vld [vmem:[%s12595_s1 + $0x24] sm:$0xf0] }
 0x1d8   : > { %v8561_v46 = vpop.f32.mrf.mxu0  ;;  %v8563_v26 = vpop.permute.xlu0 %1538 }
 0x1d9   : > { %12887 = vst [vmem:[#allocation4_spill] sm:$0xff] %v8561_v46 }
 0x1da   : > { %1730 = vmatpush.bf16.msra.mxu2 %v1593_v13 }
 0x1db   : > { %1817 = vmatpush.bf16.msrb.mxu1 %v1594_v7 }
 0x1dc   : > { %2095 = vrot.lane.b32.xlu2 %v12888_v16, %s7280_s12  ;;  %v12897_v16 = vld [vmem:[#allocation21_spill] sm:$0xff] }
 0x1dd   : > { %2093 = vrot.lane.b32.xlu1 %v12889_v41, %s7280_s12  ;;  %v8581_v2 = vpop.f32.mrf.mxu1 }
 0x1de   : > { %2091 = vrot.lane.b32.xlu0 %v12890_v24, %s7280_s12  ;;  %1731 = vmatpush.bf16.msra.mxu2 %v1591_v34  ;;  %v8591_v53 = vpop.permute.xlu2 %1566  ;;  %v12899_v34 = vld [vmem:[#allocation22_spill] sm:$0xff] }
 0x1df   : > { %1818 = vmatpush.bf16.msrb.mxu1 %v1592_v6  ;;  %v8593_v30 = vpop.permute.xlu1 %1546  ;;  %v12900_v6 = vld [vmem:[#allocation23_spill] sm:$0xff] }
 0x1e0   : > { %v8595_v28 = vpop.f32.mrf.mxu0  ;;  %v8597_v44 = vpop.permute.xlu0 %1544 }
 0x1e1   : > { %12891 = vst [vmem:[#allocation5_spill] sm:$0xff] %v8595_v28  ;;  %1732 = vmatmul.bf16.vlgmr.msra.gmra.mxu2 %v6432_v29 }
 0x1e2   : > { %1819 = vmatmul.bf16.vlgmr.msrb.gmra.mxu1 %v6432_v29 }
 0x1e3   : > { %1906 = vmatmul.bf16.vlgmr.msra.gmra.mxu0 %v6432_v29 }
 0x1e4   : > { %v1172_v49 = vpop.f32.mrf.mxu2  ;;  %2101 = vrot.lane.b32.xlu2 %v12892_v4, %s7280_s12 }
 0x1e5   : > { %v8602_v22 = vadd.f32 %v1172_v49, %v8381_v15  ;;  %2099 = vrot.lane.b32.xlu1 %v12893_v45, %s7280_s12  ;;  %v8606_v50 = vpop.f32.mrf.mxu1  ;;  %v7037_v15 = vld [vmem:[%s12595_s1 + $0x1c] sm:$0xf] }
 0x1e6   : > { %12894 = vst [vmem:[#allocation6_spill] sm:$0xff] %v8606_v50  ;;  %2097 = vrot.lane.b32.xlu0 %v12895_v11, %s7280_s12  ;;  %v1573_v35 = vpop.permute.xlu2 %1572  ;;  %v6444_v24 = vor.u32 %v7037_v15, %v6441_v5  ;;  %v12902_v15 = vld [vmem:[#allocation24_spill] sm:$0xff] }
 0x1e7   : > { %v8610_v56 = vpop.permute.xlu1 %1552  ;;  %1927 = vmatpush.bf16.msra.mxu1 %v1573_v35 }
 0x1e8   : > { %v8612_v13 = vpop.f32.mrf.mxu0  ;;  %v8614_v7 = vpop.permute.xlu0 %1550 }
 0x1e9   : > { %12896 = vst [vmem:[#allocation60_spill] sm:$0xff] %v8612_v13 }
 0x1eb   : > { %1928 = vmatpush.bf16.msra.mxu1 %v8591_v53 }
 0x1ec   : > { %v1174_v19 = vpop.f32.mrf.mxu2  ;;  %2107 = vrot.lane.b32.xlu2 %v12897_v16, %s7280_s12 }
 0x1ed   : > { %v8626_v41 = vadd.f32 %v1174_v19, %v8401_v9  ;;  %2105 = vrot.lane.b32.xlu1 %v12899_v34, %s7280_s12  ;;  %v8630_v29 = vpop.f32.mrf.mxu1  ;;  %v12903_v19 = vld [vmem:[#allocation25_spill] sm:$0xff]  ;;  %v12905_v34 = vld [vmem:[#allocation26_spill] sm:$0xff] }
 0x1ee   : > { %2103 = vrot.lane.b32.xlu0 %v12900_v6, %s7280_s12  ;;  %v8634_v49 = vpop.permute.xlu2 %2041 }
 0x1ef   : > { %12898 = vst [vmem:[#allocation7_spill] sm:$0xff] %v8626_v41  ;;  %v8636_v4 = vpop.permute.xlu1 %1558  ;;  %1929 = vmatpush.bf16.msra.mxu1 %v8557_v48 }
 0x1f0   : > { %v8639_v45 = vpop.f32.mrf.mxu0  ;;  %v1557_v11 = vpop.permute.xlu0 %1556 }
 0x1f1   : > { %12901 = vst [vmem:[#allocation8_spill] sm:$0xff] %v8639_v45  ;;  %1737 = vmatmul.bf16.gmra.mxu2 %v6444_v24  ;;  %v12908_v45 = vld [vmem:[#allocation29_spill] sm:$0xff] }
 0x1f2   : > { %1824 = vmatmul.bf16.gmra.mxu1 %v6444_v24 }
 0x1f3   : > { %1930 = vmatpush.bf16.msra.mxu1 %v8525_v55  ;;  %1911 = vmatmul.bf16.gmra.mxu0 %v6444_v24 }
 0x1f4   : > { %v1177_v9 = vpop.f32.mrf.mxu2  ;;  %2113 = vrot.lane.b32.xlu2 %v12902_v15, %s7280_s12  ;;  %v1201_v15 = vpop.f32.mrf.mxu3 }
 0x1f5   : > { %v8645_v5 = vadd.f32 %v1177_v9, %v8425_v40  ;;  %2111 = vrot.lane.b32.xlu1 %v12903_v19, %s7280_s12  ;;  %v8649_v16 = vpop.f32.mrf.mxu1  ;;  %v7040_v40 = vld [vmem:[%s12595_s1 + $0x34] sm:$0xf]  ;;  %v6453_v9 = vld [vmem:[%s12595_s1 + $0x3c] sm:$0xf0]  ;;  %v1231_v19 = vadd.f32 %v8387_v3, %v1201_v15 }
 0x1f6   : > { %12904 = vst [vmem:[#allocation9_spill] sm:$0xff] %v8649_v16  ;;  %2109 = vrot.lane.b32.xlu0 %v12905_v34, %s7280_s12  ;;  %v8653_v6 = vpop.permute.xlu2 %2047  ;;  %v6456_v50 = vor.u32 %v7040_v40, %v6453_v9 }
 0x1f7   : > { %v1565_v13 = vpop.permute.xlu1 %1564  ;;  %1931 = vmatpush.bf16.msra.mxu1 %v8491_v47  ;;  %v8681_v3 = vadd.f32 %v8581_v2, %v1231_v19 }
 0x1f8   : > { %v8656_v24 = vpop.f32.mrf.mxu0  ;;  %v1563_v46 = vpop.permute.xlu0 %1562  ;;  %v1620_v9 = vsel %vm1574_vm1, %v1565_v13, %v8591_v53  ;;  %v6465_v53 = vld [vmem:[%s12595_s1 + $0x54] sm:$0xf0] }
 0x1f9   : > { %12906 = vst [vmem:[#allocation10_spill] sm:$0xff] %v8656_v24 }
 0x1fb   : > { %1932 = vmatpush.bf16.msra.mxu1 %v8468_v23 }
 0x1fc   : > { %v1179_v34 = vpop.f32.mrf.mxu2  ;;  %2119 = vrot.lane.b32.xlu2 %v12838_v36, %s7280_s12  ;;  %v8687_v40 = vpop.f32.mrf.mxu3 }
 0x1fd   : > { %v8669_v24 = vadd.f32 %v1179_v34, %v8443_v17  ;;  %2117 = vrot.lane.b32.xlu1 %v12907_v20, %s7280_s12  ;;  %v8673_v16 = vpop.f32.mrf.mxu1  ;;  %12910 = vst [vmem:[#allocation61_spill] sm:$0xff] %v8687_v40 }
 0x1fe   : > { %2115 = vrot.lane.b32.xlu0 %v12908_v45, %s7280_s12  ;;  %v8677_v28 = vpop.permute.xlu2 %2053 }
 0x1ff   : > { %v1571_v41 = vpop.permute.xlu1 %1570  ;;  %1933 = vmatpush.bf16.msra.mxu1 %v8445_v8 }
 0x200   : > { %v8683_v36 = vpop.f32.mrf.mxu0  ;;  %v1569_v17 = vpop.permute.xlu0 %1568  ;;  %v1622_v15 = vsel %vm1574_vm1, %v1571_v41, %v1573_v35 }
 0x201   : > { %12909 = vst [vmem:[#allocation11_spill] sm:$0xff] %v8683_v36  ;;  %v1621_v20 = vsel %vm1574_vm1, %v1569_v17, %v1571_v41  ;;  %1742 = vmatmul.bf16.gmra.mxu2 %v6456_v50  ;;  %v1619_v41 = vsel %vm1574_vm1, %v1563_v46, %v1565_v13  ;;  %v7043_v46 = vld [vmem:[%s12595_s1 + $0x4c] sm:$0xf] }
 0x202   : > { %1829 = vmatmul.bf16.gmra.mxu1 %v6456_v50  ;;  %1753 = vmatpush.bf16.msra.mxu3 %v1621_v20  ;;  %v1615_v20 = vsel %vm1574_vm1, %v8614_v7, %v8610_v56 }
 0x203   : > { %1840 = vmatpush.bf16.msrb.mxu2 %v1622_v15  ;;  %1934 = vmatpush.bf16.msra.mxu1 %v8427_v31 }
 0x204   : > { %v1182_v45 = vpop.f32.mrf.mxu2  ;;  %2125 = vrot.lane.b32.xlu2 %v12841_v59, %s7280_s12  ;;  %1916 = vmatmul.bf16.gmra.mxu0 %v6456_v50  ;;  %v1206_v13 = vpop.f32.mrf.mxu3 }
 0x205   : > { %v8693_v2 = vadd.f32 %v1182_v45, %v8466_v58  ;;  %2123 = vrot.lane.b32.xlu1 %v12842_v32, %s7280_s12  ;;  %v8697_v35 = vpop.f32.mrf.mxu1  ;;  %v1617_v32 = vsel %vm1574_vm1, %v1557_v11, %v8636_v4  ;;  %v1236_v34 = vadd.f32 %v8430_v63, %v1206_v13  ;;  %v12913_v11 = vld [vmem:[#allocation33_spill] sm:$0xff]  ;;  %v6468_v45 = vor.u32 %v7043_v46, %v6465_v53  ;;  %v12918_v53 = vld [vmem:[#allocation36_spill] sm:$0xff] }
 0x206   : > { %12911 = vst [vmem:[#allocation12_spill] sm:$0xff] %v8697_v35  ;;  %2121 = vrot.lane.b32.xlu0 %v12843_v14, %s7280_s12  ;;  %1754 = vmatpush.bf16.msra.mxu3 %v1619_v41  ;;  %v8704_v19 = vpop.permute.xlu2 %2059  ;;  %v1618_v14 = vsel %vm1574_vm1, %v8636_v4, %v8557_v48  ;;  %v12914_v48 = vld [vmem:[#allocation34_spill] sm:$0xff]  ;;  %v12915_v41 = vld [vmem:[#allocation35_spill] sm:$0xff]  ;;  %v1616_v63 = vsel %vm1574_vm1, %v8610_v56, %v8525_v55  ;;  %v12958_v35 = vld [vmem:[#allocation32_spill] sm:$0xff] }
 0x207   : > { %1841 = vmatpush.bf16.msrb.mxu2 %v1620_v9  ;;  %v8706_v59 = vpop.permute.xlu1 %2039  ;;  %v1613_v46 = vsel %vm1574_vm1, %v8597_v44, %v8593_v30  ;;  %v1614_v55 = vsel %vm1574_vm1, %v8593_v30, %v8491_v47  ;;  %v1611_v47 = vsel %vm1574_vm1, %v8563_v26, %v8559_v38  ;;  %v12921_v30 = vld [vmem:[#allocation38_spill] sm:$0xff]  ;;  %v1609_v26 = vsel %vm1574_vm1, %v8531_v57, %v8527_v51  ;;  %v12923_v57 = vld [vmem:[#allocation39_spill] sm:$0xff] }
 0x208   : > { %v8708_v58 = vpop.f32.mrf.mxu0  ;;  %v8710_v50 = vpop.permute.xlu0 %2037 }
 0x209   : > { %12912 = vst [vmem:[#allocation13_spill] sm:$0xff] %v8708_v58  ;;  %v12944_v58 = vld [vmem:[#allocation53_spill] sm:$0xff] }
 0x20a   : > { %1755 = vmatpush.bf16.msra.mxu3 %v1617_v32  ;;  %v8746_v32 = vadd.f32 %v8630_v29, %v1236_v34  ;;  %v12919_v34 = vld [vmem:[#allocation37_spill] sm:$0xff] }
 0x20b   : > { %1842 = vmatpush.bf16.msrb.mxu2 %v1618_v14 }
 0x20c   : > { %v1184_v17 = vpop.f32.mrf.mxu2  ;;  %2131 = vrot.lane.b32.xlu2 %v12913_v11, %s7280_s12  ;;  %v8758_v56 = vpop.f32.mrf.mxu3 }
 0x20d   : > { %v8727_v15 = vadd.f32 %v1184_v17, %v8487_v43  ;;  %2129 = vrot.lane.b32.xlu1 %v12914_v48, %s7280_s12  ;;  %v8731_v4 = vpop.f32.mrf.mxu1  ;;  %12917 = vst [vmem:[#allocation15_spill] sm:$0xff] %v8758_v56  ;;  %v1612_v17 = vsel %vm1574_vm1, %v8559_v38, %v8468_v23  ;;  %v6435_v23 = vld [vmem:[%s12595_s1 + $0x8] sm:$0xf]  ;;  %v7036_v38 = vld [vmem:[%s12595_s1 + $0x10] sm:$0xf0] }
 0x20e   : > { %2127 = vrot.lane.b32.xlu0 %v12915_v41, %s7280_s12  ;;  %1756 = vmatpush.bf16.msra.mxu3 %v1615_v20  ;;  %v8741_v43 = vpop.permute.xlu2 %2065 }
 0x20f   : > { %1843 = vmatpush.bf16.msrb.mxu2 %v1616_v63  ;;  %v8743_v9 = vpop.permute.xlu1 %2045 }
 0x210   : > { %v8748_v14 = vpop.f32.mrf.mxu0  ;;  %v8750_v7 = vpop.permute.xlu0 %2043 }
 0x211   : > { %12916 = vst [vmem:[#allocation14_spill] sm:$0xff] %v8748_v14  ;;  %1747 = vmatmul.bf16.gmra.mxu2 %v6468_v45 }
 0x212   : > { %1834 = vmatmul.bf16.gmra.mxu1 %v6468_v45  ;;  %1757 = vmatpush.bf16.msra.mxu3 %v1613_v46 }
 0x213   : > { %1844 = vmatpush.bf16.msrb.mxu2 %v1614_v55 }
 0x214   : > { %v1187_v29 = vpop.f32.mrf.mxu2  ;;  %2137 = vrot.lane.b32.xlu2 %v12918_v53, %s7280_s12  ;;  %1921 = vmatmul.bf16.gmra.mxu0 %v6468_v45  ;;  %v1610_v45 = vsel %vm1574_vm1, %v8527_v51, %v8445_v8  ;;  %v1211_v41 = vpop.f32.mrf.mxu3  ;;  %v12924_v8 = vld [vmem:[#allocation40_spill] sm:$0xff]  ;;  %v1607_v51 = vsel %vm1574_vm1, %v8497_v61, %v8493_v60  ;;  %v12925_v53 = vld [vmem:[#allocation41_spill] sm:$0xff] }
 0x215   : > { %v8763_v13 = vadd.f32 %v1187_v29, %v8520_v42  ;;  %2135 = vrot.lane.b32.xlu1 %v12919_v34, %s7280_s12  ;;  %v8767_v44 = vpop.f32.mrf.mxu1  ;;  %v1241_v63 = vadd.f32 %v8470_v37, %v1211_v41  ;;  %v6436_v29 = vor.u32 %v7036_v38, %v6435_v23  ;;  %v1608_v37 = vsel %vm1574_vm1, %v8493_v60, %v8427_v31  ;;  %v12930_v38 = vld [vmem:[#allocation44_spill] sm:$0xff] }
 0x216   : > { %12920 = vst [vmem:[#allocation16_spill] sm:$0xff] %v8767_v44  ;;  %2133 = vrot.lane.b32.xlu0 %v12921_v30, %s7280_s12  ;;  %1758 = vmatpush.bf16.msra.mxu3 %v1611_v47  ;;  %v8777_v11 = vpop.permute.xlu2 %2071  ;;  %v12926_v30 = vld [vmem:[#allocation27_spill] sm:$0xff] }
 0x217   : > { %1845 = vmatpush.bf16.msrb.mxu2 %v1612_v17  ;;  %v8779_v42 = vpop.permute.xlu1 %2051  ;;  %v8822_v61 = vadd.f32 %v8673_v16, %v1241_v63  ;;  %v12929_v16 = vld [vmem:[#allocation43_spill] sm:$0xff] }
 0x218   : > { %v8781_v48 = vpop.f32.mrf.mxu0  ;;  %v8783_v20 = vpop.permute.xlu0 %2049 }
 0x219   : > { %12922 = vst [vmem:[#allocation17_spill] sm:$0xff] %v8781_v48 }
 0x21a   : > { %1759 = vmatpush.bf16.msra.mxu3 %v1609_v26 }
 0x21b   : > { %1846 = vmatpush.bf16.msrb.mxu2 %v1610_v45 }
 0x21c   : > { %v1189_v46 = vpop.f32.mrf.mxu2  ;;  %2143 = vrot.lane.b32.xlu2 %v12923_v57, %s7280_s12  ;;  %v8829_v31 = vpop.f32.mrf.mxu3  ;;  %v6447_v57 = vld [vmem:[%s12595_s1 + $0x20] sm:$0xf] }
 0x21d   : > { %v8801_v55 = vadd.f32 %v1189_v46, %v8552_v62  ;;  %2141 = vrot.lane.b32.xlu1 %v12924_v8, %s7280_s12  ;;  %12927 = vst [vmem:[#allocation18_spill] sm:$0xff] %v8829_v31  ;;  %v7039_v8 = vld [vmem:[%s12595_s1 + $0x28] sm:$0xf0] }
 0x21e   : > { %2139 = vrot.lane.b32.xlu0 %v12925_v53, %s7280_s12  ;;  %v1704_v34 = vpop.f32.mrf.mxu1  ;;  %1760 = vmatpush.bf16.msra.mxu3 %v1607_v51  ;;  %v8813_v47 = vpop.permute.xlu2 %2077  ;;  %v12933_v53 = vld [vmem:[#allocation45_spill] sm:$0xff] }
 0x21f   : > { %v8816_v62 = vadd.f32 %v1704_v34, %v8602_v22  ;;  %1847 = vmatpush.bf16.msrb.mxu2 %v1608_v37  ;;  %v8819_v17 = vpop.permute.xlu1 %2057  ;;  %v12928_v22 = vld [vmem:[#allocation42_spill] sm:$0xff]  ;;  %v6448_v37 = vor.u32 %v7039_v8, %v6447_v57  ;;  %v12937_v8 = vld [vmem:[#allocation48_spill] sm:$0xff] }
 0x220   : > { %v1791_v26 = vpop.f32.mrf.mxu0  ;;  %v8824_v45 = vpop.permute.xlu0 %2055  ;;  %v12934_v34 = vld [vmem:[#allocation46_spill] sm:$0xff] }
 0x221   : > { %v8827_v23 = vadd.f32 %v1791_v26, %v8681_v3  ;;  %1761 = vmatmul.bf16.vlgmr.msra.gmra.mxu3 %v6436_v29 }
 0x222   : > { %1869 = vmatpush.bf16.msrb.mxu3 %v12926_v30  ;;  %1848 = vmatmul.bf16.vlgmr.msrb.gmra.mxu2 %v6436_v29  ;;  %v12935_v30 = vld [vmem:[#allocation47_spill] sm:$0xff] }
 0x223   : > { %1935 = vmatmul.bf16.vlgmr.msra.gmra.mxu1 %v6436_v29 }
 0x224   : > { %v1288_v60 = vpop.f32.mrf.mxu2  ;;  %2149 = vrot.lane.b32.xlu2 %v12928_v22, %s7280_s12  ;;  %v1216_v51 = vpop.f32.mrf.mxu3 }
 0x225   : > { %2147 = vrot.lane.b32.xlu1 %v12929_v16, %s7280_s12  ;;  %v1246_v29 = vadd.f32 %v8529_v52, %v1216_v51 }
 0x226   : > { %1870 = vmatpush.bf16.msrb.mxu3 %v8207_v33  ;;  %2145 = vrot.lane.b32.xlu0 %v12930_v38, %s7280_s12  ;;  %v8838_v41 = vpop.f32.mrf.mxu1  ;;  %v8840_v3 = vpop.permute.xlu2 %2083 }
 0x227   : > { %v8843_v63 = vpop.permute.xlu1 %2063  ;;  %v8872_v52 = vadd.f32 %v8731_v4, %v1246_v29  ;;  %v12939_v4 = vld [vmem:[#allocation50_spill] sm:$0xff] }
 0x228   : > { %v8845_v46 = vpop.f32.mrf.mxu0  ;;  %v8847_v33 = vpop.permute.xlu0 %2061 }
 0x229   : > { %12931 = vst [vmem:[#allocation19_spill] sm:$0xff] %v8845_v46 }
 0x22a   : > { %1871 = vmatpush.bf16.msrb.mxu3 %v8177_v27 }
 0x22c   : > { %v8857_v27 = vpop.f32.mrf.mxu2  ;;  %2155 = vrot.lane.b32.xlu2 %v12933_v53, %s7280_s12  ;;  %v8877_v57 = vpop.f32.mrf.mxu3 }
 0x22d   : > { %12932 = vst [vmem:[#allocation20_spill] sm:$0xff] %v8857_v27  ;;  %2153 = vrot.lane.b32.xlu1 %v12934_v34, %s7280_s12 }
 0x22e   : > { %1872 = vmatpush.bf16.msrb.mxu3 %v8153_v12  ;;  %2151 = vrot.lane.b32.xlu0 %v12935_v30, %s7280_s12  ;;  %v1709_v26 = vpop.f32.mrf.mxu1  ;;  %v8865_v22 = vpop.permute.xlu2 %2089  ;;  %12936 = vst [vmem:[#allocation21_spill] sm:$0xff] %v8877_v57  ;;  %v6459_v30 = vld [vmem:[%s12595_s1 + $0x38] sm:$0xf] }
 0x22f   : > { %v8868_v16 = vadd.f32 %v1709_v26, %v8645_v5  ;;  %v2070_v12 = vpop.permute.xlu1 %2069  ;;  %v7042_v26 = vld [vmem:[%s12595_s1 + $0x40] sm:$0xf0] }
 0x230   : > { %v1796_v38 = vpop.f32.mrf.mxu0  ;;  %v2068_v51 = vpop.permute.xlu0 %2067  ;;  %v6460_v48 = vor.u32 %v7042_v26, %v6459_v30  ;;  %v12946_v26 = vld [vmem:[#allocation55_spill] sm:$0xff] }
 0x231   : > { %v8875_v53 = vadd.f32 %v1796_v38, %v8746_v32  ;;  %1766 = vmatmul.bf16.gmra.mxu3 %v6448_v37 }
 0x232   : > { %1873 = vmatpush.bf16.msrb.mxu3 %v8126_v10  ;;  %1853 = vmatmul.bf16.gmra.mxu2 %v6448_v37  ;;  %v12938_v10 = vld [vmem:[#allocation49_spill] sm:$0xff] }
 0x233   : > { %1940 = vmatmul.bf16.gmra.mxu1 %v6448_v37 }
 0x234   : > { %v1293_v5 = vpop.f32.mrf.mxu2  ;;  %2161 = vrot.lane.b32.xlu2 %v12937_v8, %s7280_s12  ;;  %v1317_v38 = vpop.f32.mrf.mxu3 }
 0x235   : > { %2159 = vrot.lane.b32.xlu1 %v12938_v10, %s7280_s12  ;;  %v8900_v8 = vadd.f32 %v1317_v38, %v1288_v60 }
 0x236   : > { %1874 = vmatpush.bf16.msrb.mxu3 %v8112_v21  ;;  %2157 = vrot.lane.b32.xlu0 %v12939_v4, %s7280_s12  ;;  %v8886_v29 = vpop.f32.mrf.mxu1  ;;  %v8888_v32 = vpop.permute.xlu2 %2095  ;;  %v12943_v4 = vld [vmem:[#allocation52_spill] sm:$0xff] }
 0x237   : > { %v2076_v34 = vpop.permute.xlu1 %2075 }
 0x238   : > { %v8891_v37 = vpop.f32.mrf.mxu0  ;;  %v2074_v21 = vpop.permute.xlu0 %2073 }
 0x239   : > { %12940 = vst [vmem:[#allocation22_spill] sm:$0xff] %v8891_v37  ;;  %v7131_v37 = vld [vmem:[%s12595_s1 + $0xc8] sm:$0xf0] }
 0x23a   : > { %1875 = vmatpush.bf16.msrb.mxu3 %v8096_v39  ;;  %v12942_v39 = vld [vmem:[#allocation51_spill] sm:$0xff] }
 0x23c   : > { %v8902_v10 = vpop.f32.mrf.mxu2  ;;  %2167 = vrot.lane.b32.xlu2 %v12942_v39, %s7280_s12 }
 0x23d   : > { %12941 = vst [vmem:[#allocation23_spill] sm:$0xff] %v8902_v10  ;;  %2165 = vrot.lane.b32.xlu1 %v12943_v4, %s7280_s12  ;;  %v2194_v4 = vsel %vm2181_vm2, %v2074_v21, %v2076_v34 }
 0x23e   : > { %1876 = vmatpush.bf16.msrb.mxu3 %v8086_v18  ;;  %2163 = vrot.lane.b32.xlu0 %v12944_v58, %s7280_s12  ;;  %v1714_v27 = vpop.f32.mrf.mxu1  ;;  %v8910_v44 = vpop.permute.xlu2 %2101 }
 0x23f   : > { %v8913_v57 = vadd.f32 %v1714_v27, %v8693_v2  ;;  %v2082_v18 = vpop.permute.xlu1 %2081  ;;  %v8921_v58 = vpop.f32.mrf.mxu3  ;;  %v2195_v27 = vsel %vm2181_vm2, %v2076_v34, %v8813_v47  ;;  %v7045_v34 = vld [vmem:[%s12595_s1 + $0x58] sm:$0xf0] }
 0x240   : > { %v1801_v60 = vpop.f32.mrf.mxu0  ;;  %v2080_v38 = vpop.permute.xlu0 %2079  ;;  %v2197_v39 = vsel %vm2181_vm2, %v2082_v18, %v8840_v3  ;;  %12945 = vst [vmem:[#allocation24_spill] sm:$0xff] %v8921_v58 }
 0x241   : > { %v8918_v10 = vadd.f32 %v1801_v60, %v8822_v61  ;;  %v2196_v30 = vsel %vm2181_vm2, %v2080_v38, %v2082_v18  ;;  %1771 = vmatmul.bf16.gmra.mxu3 %v6460_v48  ;;  %2389 = vmatpush.bf16.msrb.mxu1 %v2197_v39  ;;  %v2193_v38 = vsel %vm2181_vm2, %v2070_v12, %v8777_v11 }
 0x242   : > { %1858 = vmatmul.bf16.gmra.mxu2 %v6460_v48  ;;  %v2192_v39 = vsel %vm2181_vm2, %v2068_v51, %v2070_v12  ;;  %v2191_v12 = vsel %vm2181_vm2, %v8843_v63, %v8741_v43  ;;  %v12950_v51 = vld [vmem:[#allocation58_spill] sm:$0xff] }
 0x243   : > { %1945 = vmatmul.bf16.gmra.mxu1 %v6460_v48  ;;  %2302 = vmatpush.bf16.msra.mxu2 %v2196_v30 }
 0x244   : > { %v1298_v2 = vpop.f32.mrf.mxu2  ;;  %2173 = vrot.lane.b32.xlu2 %v12866_v54, %s7280_s12 }
 0x245   : > { %2171 = vrot.lane.b32.xlu1 %v12946_v26, %s7280_s12  ;;  %2390 = vmatpush.bf16.msrb.mxu1 %v2195_v27  ;;  %v12949_v26 = vld [vmem:[#allocation57_spill] sm:$0xff] }
 0x246   : > { %2169 = vrot.lane.b32.xlu0 %v12868_v1, %s7280_s12  ;;  %v8931_v61 = vpop.f32.mrf.mxu1  ;;  %v8934_v48 = vpop.permute.xlu2 %2107  ;;  %v6471_v1 = vld [vmem:[%s12595_s1 + $0x50] sm:$0xf] }
 0x247   : > { %2303 = vmatpush.bf16.msra.mxu2 %v2194_v4  ;;  %v8936_v18 = vpop.permute.xlu1 %2087  ;;  %v1322_v21 = vpop.f32.mrf.mxu3  ;;  %v6472_v4 = vor.u32 %v7045_v34, %v6471_v1  ;;  %v2189_v1 = vsel %vm2181_vm2, %v8819_v17, %v8704_v19 }
 0x248   : > { %v8938_v54 = vpop.f32.mrf.mxu0  ;;  %v8940_v60 = vpop.permute.xlu0 %2085  ;;  %v8951_v30 = vadd.f32 %v1322_v21, %v1293_v5  ;;  %v2190_v5 = vsel %vm2181_vm2, %v8847_v33, %v8843_v63 }
 0x249   : > { %12947 = vst [vmem:[#allocation25_spill] sm:$0xff] %v8938_v54  ;;  %2391 = vmatpush.bf16.msrb.mxu1 %v2193_v38  ;;  %v12951_v38 = vld [vmem:[#allocation59_spill] sm:$0xff] }
 0x24b   : > { %2304 = vmatpush.bf16.msra.mxu2 %v2192_v39 }
 0x24c   : > { %v8953_v27 = vpop.f32.mrf.mxu2  ;;  %2179 = vrot.lane.b32.xlu2 %v12949_v26, %s7280_s12 }
 0x24d   : > { %12948 = vst [vmem:[#allocation26_spill] sm:$0xff] %v8953_v27  ;;  %2177 = vrot.lane.b32.xlu1 %v12950_v51, %s7280_s12  ;;  %2392 = vmatpush.bf16.msrb.mxu1 %v2191_v12  ;;  %v2187_v12 = vsel %vm2181_vm2, %v8779_v42, %v8677_v28 }
 0x24e   : > { %2175 = vrot.lane.b32.xlu0 %v12951_v38, %s7280_s12  ;;  %v1719_v39 = vpop.f32.mrf.mxu1  ;;  %v8967_v21 = vpop.permute.xlu2 %2113 }
 0x24f   : > { %v8970_v26 = vadd.f32 %v1719_v39, %v8763_v13  ;;  %2305 = vmatpush.bf16.msra.mxu2 %v2190_v5  ;;  %v8972_v27 = vpop.permute.xlu1 %2093  ;;  %v2188_v13 = vsel %vm2181_vm2, %v8824_v45, %v8819_v17  ;;  %v8985_v63 = vpop.f32.mrf.mxu3  ;;  %v2184_v39 = vsel %vm2181_vm2, %v8750_v7, %v8743_v9 }
 0x250   : > { %v1806_v58 = vpop.f32.mrf.mxu0  ;;  %v8974_v51 = vpop.permute.xlu0 %2091  ;;  %12952 = vst [vmem:[#allocation28_spill] sm:$0xff] %v8985_v63 }
 0x251   : > { %v8980_v34 = vadd.f32 %v1806_v58, %v8872_v52  ;;  %1776 = vmatmul.bf16.gmra.mxu3 %v6472_v4  ;;  %2393 = vmatpush.bf16.msrb.mxu1 %v2189_v1  ;;  %v2186_v52 = vsel %vm2181_vm2, %v8783_v20, %v8779_v42  ;;  %v2183_v20 = vsel %vm2181_vm2, %v8706_v59, %v8634_v49 }
 0x252   : > { %1863 = vmatmul.bf16.gmra.mxu2 %v6472_v4 }
 0x253   : > { %1950 = vmatmul.bf16.gmra.mxu1 %v6472_v4  ;;  %2306 = vmatpush.bf16.msra.mxu2 %v2188_v13  ;;  %v2185_v4 = vsel %vm2181_vm2, %v8743_v9, %v8653_v6  ;;  %v2182_v13 = vsel %vm2181_vm2, %v8710_v50, %v8706_v59 }
 0x254   : > { %v1303_v33 = vpop.f32.mrf.mxu2 }
 0x255   : > { %2394 = vmatpush.bf16.msrb.mxu1 %v2187_v12 }
 0x256   : > { %v8990_v38 = vpop.f32.mrf.mxu1  ;;  %v8995_v58 = vpop.permute.xlu2 %2119 }
 0x257   : > { %2307 = vmatpush.bf16.msra.mxu2 %v2186_v52  ;;  %v8997_v17 = vpop.permute.xlu1 %2099  ;;  %v1327_v5 = vpop.f32.mrf.mxu3 }
 0x258   : > { %v8999_v45 = vpop.permute.xlu0 %2097  ;;  %v9007_v1 = vadd.f32 %v1327_v5, %v1298_v2  ;;  %v12954_v2 = vld [vmem:[#allocation30_spill] sm:$0xff] }
 0x259   : > { %2395 = vmatpush.bf16.msrb.mxu1 %v2185_v4 }
 0x25b   : > { %2308 = vmatpush.bf16.msra.mxu2 %v2184_v39 }
 0x25c   : > { %v9009_v42 = vpop.f32.mrf.mxu2 }
 0x25d   : > { %12953 = vst [vmem:[#allocation29_spill] sm:$0xff] %v9009_v42  ;;  %2396 = vmatpush.bf16.msrb.mxu1 %v2183_v20 }
 0x25e   : > { %v2126_v12 = vpop.permute.xlu2 %2125 }
 0x25f   : > { %v1820_v52 = vpop.f32.mrf.mxu1  ;;  %2309 = vmatpush.bf16.msra.mxu2 %v2182_v13  ;;  %v9017_v4 = vpop.permute.xlu1 %2105 }
 0x260   : > { %v9020_v9 = vadd.f32 %v1820_v52, %v8827_v23  ;;  %v9022_v7 = vpop.permute.xlu0 %2103  ;;  %v9025_v39 = vpop.f32.mrf.mxu3 }
 0x261   : > { %1877 = vmatmul.bf16.vlgmr.msrb.gmra.mxu3 %v12954_v2  ;;  %12955 = vst [vmem:[#allocation33_spill] sm:$0xff] %v9025_v39 }
 0x264   : > { %v1733_v5 = vpop.f32.mrf.mxu2 }
 0x265   : > { %v9028_v20 = vadd.f32 %v1733_v5, %v8816_v62 }
 0x266   : > { %v2132_v42 = vpop.permute.xlu2 %2131 }
 0x267   : > { %v9030_v59 = vpop.f32.mrf.mxu1  ;;  %v9032_v50 = vpop.permute.xlu1 %2111  ;;  %2505 = vmatpush.bf16.msra.mxu1 %v2132_v42 }
 0x268   : > { %12956 = vst [vmem:[#allocation34_spill] sm:$0xff] %v9030_v59  ;;  %v2110_v13 = vpop.permute.xlu0 %2109  ;;  %v1332_v63 = vpop.f32.mrf.mxu3 }
 0x269   : > { %v9034_v23 = vadd.f32 %v1332_v63, %v1303_v33  ;;  %v6491_v33 = vld [vmem:[%s12595_s1 + $0xc0] sm:$0xf] }
 0x26b   : > { %2506 = vmatpush.bf16.msra.mxu1 %v2126_v12  ;;  %12957 = vst [vmem:[#allocation35_spill] sm:$0xff] %v9034_v23 }
 0x26c   : > { %v9036_v52 = vpop.f32.mrf.mxu2 }
 0x26e   : > { %v9038_v2 = vpop.permute.xlu2 %2137 }
 0x26f   : > { %v1825_v39 = vpop.f32.mrf.mxu1  ;;  %v2118_v54 = vpop.permute.xlu1 %2117  ;;  %2507 = vmatpush.bf16.msra.mxu1 %v8995_v58 }
 0x270   : > { %v9042_v62 = vadd.f32 %v1825_v39, %v8875_v53  ;;  %v2116_v5 = vpop.permute.xlu0 %2115  ;;  %v9057_v53 = vor.u32 %v7131_v37, %v6491_v33 }
 0x271   : > { %1882 = vmatmul.bf16.gmra.mxu3 %v12958_v35 }
 0x272   : > { %12959 = vst [vmem:[#allocation36_spill] sm:$0xff] %v9057_v53  ;;  %2310 = vmatmul.bf16.vlgmr.msra.gmra.mxu2 %v9057_v53  ;;  %2397 = vmatmul.bf16.vlgmr.msrb.gmra.mxu1 %v9057_v53 }
 0x273   : > { %2508 = vmatpush.bf16.msra.mxu1 %v8967_v21 }
 0x274   : > { %v1738_v31 = vpop.f32.mrf.mxu2 }
 0x275   : > { %v9047_v63 = vadd.f32 %v1738_v31, %v8868_v16 }
 0x276   : > { %v9055_v56 = vpop.permute.xlu2 %2143 }
 0x277   : > { %v9059_v39 = vpop.f32.mrf.mxu1  ;;  %v2124_v35 = vpop.permute.xlu1 %2123  ;;  %2509 = vmatpush.bf16.msra.mxu1 %v8934_v48 }
 0x278   : > { %12960 = vst [vmem:[#allocation37_spill] sm:$0xff] %v9059_v39  ;;  %v2122_v59 = vpop.permute.xlu0 %2121  ;;  %v2211_v23 = vsel %vm2181_vm2, %v2124_v35, %v2126_v12 }
 0x27b   : > { %2510 = vmatpush.bf16.msra.mxu1 %v8910_v44 }
 0x27c   : > { %v9065_v31 = vpop.f32.mrf.mxu2 }
 0x27e   : > { %v9067_v16 = vpop.permute.xlu2 %2149 }
 0x27f   : > { %v1830_v46 = vpop.f32.mrf.mxu1  ;;  %v2130_v40 = vpop.permute.xlu1 %2129  ;;  %2511 = vmatpush.bf16.msra.mxu1 %v8888_v32 }
 0x280   : > { %v9071_v37 = vadd.f32 %v1830_v46, %v8918_v10  ;;  %v2128_v33 = vpop.permute.xlu0 %2127  ;;  %v2213_v39 = vsel %vm2181_vm2, %v2130_v40, %v2132_v42  ;;  %v2210_v46 = vsel %vm2181_vm2, %v2122_v59, %v2124_v35  ;;  %v6503_v10 = vld [vmem:[%s12595_s1 + $0xd8] sm:$0xf]  ;;  %v2209_v59 = vsel %vm2181_vm2, %v2118_v54, %v8995_v58 }
 0x281   : > { %v2212_v14 = vsel %vm2181_vm2, %v2128_v33, %v2130_v40  ;;  %1887 = vmatmul.bf16.gmra.mxu3 %v8461_v25  ;;  %2418 = vmatpush.bf16.msrb.mxu2 %v2213_v39  ;;  %v7134_v25 = vld [vmem:[%s12595_s1 + $0xe0] sm:$0xf0]  ;;  %v2207_v39 = vsel %vm2181_vm2, %v9032_v50, %v8967_v21  ;;  %v2206_v35 = vsel %vm2181_vm2, %v2110_v13, %v9032_v50 }
 0x282   : > { %2331 = vmatpush.bf16.msra.mxu3 %v2212_v14  ;;  %v9090_v14 = vor.u32 %v7134_v25, %v6503_v10  ;;  %v2205_v10 = vsel %vm2181_vm2, %v9017_v4, %v8934_v48  ;;  %v2204_v21 = vsel %vm2181_vm2, %v9022_v7, %v9017_v4  ;;  %v2202_v48 = vsel %vm2181_vm2, %v8999_v45, %v8997_v17  ;;  %v7137_v4 = vld [vmem:[%s12595_s1 + $0xf8] sm:$0xf0] }
 0x283   : > { %2512 = vmatpush.bf16.msra.mxu1 %v8865_v22  ;;  %v2200_v45 = vsel %vm2181_vm2, %v8974_v51, %v8972_v27 }
 0x284   : > { %v1743_v53 = vpop.f32.mrf.mxu2  ;;  %2315 = vmatmul.bf16.gmra.mxu2 %v9090_v14  ;;  %2402 = vmatmul.bf16.gmra.mxu1 %v9090_v14 }
 0x285   : > { %v9079_v36 = vadd.f32 %v1743_v53, %v8913_v57  ;;  %2419 = vmatpush.bf16.msrb.mxu2 %v2211_v23  ;;  %v2208_v23 = vsel %vm2181_vm2, %v2116_v5, %v2118_v54 }
 0x286   : > { %2332 = vmatpush.bf16.msra.mxu3 %v2210_v46  ;;  %v9088_v40 = vpop.permute.xlu2 %2155 }
 0x287   : > { %v9092_v42 = vpop.f32.mrf.mxu1  ;;  %v9094_v57 = vpop.permute.xlu1 %2135 }
 0x288   : > { %12961 = vst [vmem:[#allocation38_spill] sm:$0xff] %v9092_v42  ;;  %v9096_v12 = vpop.permute.xlu0 %2133 }
 0x289   : > { %2420 = vmatpush.bf16.msrb.mxu2 %v2209_v59  ;;  %v7130_v59 = vld [vmem:[%s12595_s1 + $0xc4] sm:$0xf] }
 0x28a   : > { %2333 = vmatpush.bf16.msra.mxu3 %v2208_v23  ;;  %v6493_v23 = vld [vmem:[%s12595_s1 + $0xcc] sm:$0xf0] }
 0x28b   : > { %v6496_v51 = vor.u32 %v7130_v59, %v6493_v23 }
 0x28c   : > { %v9103_v53 = vpop.f32.mrf.mxu2 }
 0x28d   : > { %2421 = vmatpush.bf16.msrb.mxu2 %v2207_v39  ;;  %v9163_v39 = vpop.f32.mrf.mxu3 }
 0x28e   : > { %2334 = vmatpush.bf16.msra.mxu3 %v2206_v35  ;;  %v9110_v58 = vpop.permute.xlu2 %2161  ;;  %12962 = vst [vmem:[#allocation39_spill] sm:$0xff] %v9163_v39  ;;  %v2199_v35 = vsel %vm2181_vm2, %v8936_v18, %v8865_v22  ;;  %v2593_v39 = vld [vmem:[%s12596_s2 + $0x30] sm:$0xff] }
 0x28f   : > { %v1835_v33 = vpop.f32.mrf.mxu1  ;;  %v9112_v46 = vpop.permute.xlu1 %2141 }
 0x290   : > { %v9115_v54 = vadd.f32 %v1835_v33, %v8980_v34  ;;  %v9117_v5 = vpop.permute.xlu0 %2139  ;;  %v2203_v34 = vsel %vm2181_vm2, %v8997_v17, %v8910_v44  ;;  %v2201_v17 = vsel %vm2181_vm2, %v8972_v27, %v8888_v32  ;;  %v2198_v27 = vsel %vm2181_vm2, %v8940_v60, %v8936_v18 }
 0x291   : > { %1892 = vmatmul.bf16.gmra.mxu3 %v8515_v0  ;;  %2422 = vmatpush.bf16.msrb.mxu2 %v2205_v10  ;;  %v6515_v0 = vld [vmem:[%s12595_s1 + $0xf0] sm:$0xf] }
 0x292   : > { %2335 = vmatpush.bf16.msra.mxu3 %v2204_v21  ;;  %v9143_v44 = vor.u32 %v7137_v4, %v6515_v0  ;;  %v7140_v0 = vld [vmem:[%s12595_s1 + $0x110] sm:$0xf0] }
 0x294   : > { %v1748_v50 = vpop.f32.mrf.mxu2  ;;  %2320 = vmatmul.bf16.gmra.mxu2 %v9143_v44  ;;  %2407 = vmatmul.bf16.gmra.mxu1 %v9143_v44 }
 0x295   : > { %v9130_v13 = vadd.f32 %v1748_v50, %v8970_v26  ;;  %2423 = vmatpush.bf16.msrb.mxu2 %v2203_v34  ;;  %v2588_v50 = vld [vmem:[%s12596_s2 + $0x8] sm:$0xff]  ;;  %v12709_v34 = vmov 0  }
 0x296   : > { %2336 = vmatpush.bf16.msra.mxu3 %v2202_v48  ;;  %v9141_v7 = vpop.permute.xlu2 %2167  ;;  %7268 = vset.pattern.permute.xlu1 %v12709_v34  ;;  %v6527_v48 = vld [vmem:[%s12595_s1 + $0x108] sm:$0xf] }
 0x297   : > { %v9145_v26 = vpop.permute.xlu1 %2147  ;;  %7267 = vset.pattern.permute.xlu0 %v12709_v34  ;;  %2602 = vperm.xlu1 %7268, %v2588_v50   ;;  %v7133_v50 = vld [vmem:[%s12595_s1 + $0xdc] sm:$0xf] }
 0x298   : > { %v9147_v25 = vpop.permute.xlu0 %2145  ;;  %7269 = vset.pattern.permute.xlu2 %v12709_v34 }
 0x299   : > { %2424 = vmatpush.bf16.msrb.mxu2 %v2201_v17 }
 0x29a   : > { %2337 = vmatpush.bf16.msra.mxu3 %v2200_v45  ;;  %v9197_v45 = vor.u32 %v7140_v0, %v6527_v48 }
 0x29c   : > { %v9165_v32 = vpop.f32.mrf.mxu2 }
 0x29d   : > { %2425 = vmatpush.bf16.msrb.mxu2 %v2199_v35  ;;  %v12963_v35 = vld [vmem:[#allocation7_spill] sm:$0xff] }
 0x29e   : > { %2338 = vmatpush.bf16.msra.mxu3 %v2198_v27  ;;  %v9173_v33 = vpop.permute.xlu2 %2173  ;;  %v1707_v27 = vadd.f32 %v8838_v41, %v12963_v35 }
 0x29f   : > { %v9175_v10 = vpop.permute.xlu1 %2153 }
 0x2a0   : > { %v9177_v21 = vpop.permute.xlu0 %2151 }
 0x2a1   : > { %2339 = vmatmul.bf16.vlgmr.msra.gmra.mxu3 %v6496_v51 }
 0x2a4   : > { %v1762_v22 = vpop.f32.mrf.mxu3  ;;  %2325 = vmatmul.bf16.gmra.mxu2 %v9197_v45  ;;  %2412 = vmatmul.bf16.gmra.mxu1 %v9197_v45 }
 0x2a5   : > { %v9186_v18 = vadd.f32 %v1762_v22, %v9028_v20  ;;  %v1849_v60 = vpop.f32.mrf.mxu2  ;;  %v2587_v20 = vld [vmem:[%s12596_s2] sm:$0xff]  ;;  %v6505_v22 = vld [vmem:[%s12595_s1 + $0xe4] sm:$0xf0] }
 0x2a6   : > { %v9195_v4 = vadd.f32 %v1849_v60, %v9020_v9  ;;  %v2180_v17 = vpop.permute.xlu2 %2179  ;;  %2597 = vperm.xlu0 %7267, %v2587_v20   ;;  %v2590_v9 = vld [vmem:[%s12596_s2 + $0x18] sm:$0xff]  ;;  %v1736_v60 = vadd.f32 %v9036_v52, %v1707_v27  ;;  %v6508_v34 = vor.u32 %v7133_v50, %v6505_v22  ;;  %v2592_v52 = vld [vmem:[%s12596_s2 + $0x28] sm:$0xff] }
 0x2a7   : > { %v9202_v59 = vpop.permute.xlu1 %2159  ;;  %2534 = vmatpush.bf16.msra.mxu2 %v2180_v17  ;;  %2612 = vperm.xlu1 %7268, %v2590_v9  }
 0x2a8   : > { %v9204_v23 = vpop.permute.xlu0 %2157 }
 0x2ab   : > { %2535 = vmatpush.bf16.msra.mxu2 %v9173_v33 }
 0x2ac   : > { %v1764_v48 = vpop.f32.mrf.mxu3 }
 0x2ad   : > { %v9221_v0 = vadd.f32 %v1764_v48, %v1736_v60  ;;  %v9223_v20 = vpop.f32.mrf.mxu2  ;;  %v2683_v48 = vld [vmem:[%s12597_s3] sm:$0xff] }
 0x2ae   : > { %12964 = vst [vmem:[#allocation40_spill] sm:$0xff] %v9223_v20  ;;  %2622 = vperm.xlu0 %7267, %v2592_v52   ;;  %v6517_v52 = vld [vmem:[%s12595_s1 + $0xfc] sm:$0xf0] }
 0x2af   : > { %v2166_v41 = vpop.permute.xlu1 %2165  ;;  %2536 = vmatpush.bf16.msra.mxu2 %v9141_v7  ;;  %2627 = vperm.xlu1 %7268, %v2593_v39   ;;  %v2684_v39 = vld [vmem:[%s12597_s3 + $0x8] sm:$0xff] }
 0x2b0   : > { %v2164_v35 = vpop.permute.xlu0 %2163 }
 0x2b1   : > { %2344 = vmatmul.bf16.gmra.mxu3 %v6508_v34 }
 0x2b3   : > { %2537 = vmatpush.bf16.msra.mxu2 %v9110_v58 }
 0x2b4   : > { %v1767_v9 = vpop.f32.mrf.mxu3  ;;  %2426 = vmatmul.bf16.vlgmr.msrb.gmra.mxu2 %v6496_v51  ;;  %2513 = vmatmul.bf16.vlgmr.msra.gmra.mxu1 %v6496_v51 }
 0x2b5   : > { %v9234_v27 = vadd.f32 %v1767_v9, %v9047_v63  ;;  %v1854_v50 = vpop.f32.mrf.mxu2  ;;  %v1712_v63 = vadd.f32 %v8886_v29, %v8669_v24 }
 0x2b6   : > { %v9237_v22 = vadd.f32 %v1854_v50, %v9042_v62  ;;  %v7136_v62 = vld [vmem:[%s12595_s1 + $0xf4] sm:$0xf]  ;;  %2693 = vperm.xlu0 %7267, %v2683_v48  }
 0x2b7   : > { %12965 = vst [vmem:[#allocation41_spill] sm:$0xff] %v9234_v27  ;;  %v2172_v60 = vpop.permute.xlu1 %2171  ;;  %2538 = vmatpush.bf16.msra.mxu2 %v9088_v40  ;;  %v1741_v9 = vadd.f32 %v9065_v31, %v1712_v63  ;;  %2698 = vperm.xlu1 %7268, %v2684_v39   ;;  %v9260_v24 = vor.u32 %v7136_v62, %v6517_v52  ;;  %v2687_v31 = vld [vmem:[%s12597_s3 + $0x20] sm:$0xff]  ;;  %v2686_v39 = vld [vmem:[%s12597_s3 + $0x18] sm:$0xff] }
 0x2b8   : > { %12966 = vst [vmem:[#allocation27_spill] sm:$0xff] %v9237_v22  ;;  %v2170_v42 = vpop.permute.xlu0 %2169  ;;  %v2227_v52 = vsel %vm2181_vm2, %v2172_v60, %v9173_v33  ;;  %v2689_v33 = vld [vmem:[%s12597_s3 + $0x30] sm:$0xff] }
 0x2b9   : > { %v2226_v62 = vsel %vm2181_vm2, %v2170_v42, %v2172_v60  ;;  %v2589_v42 = vld [vmem:[%s12596_s2 + $0x10] sm:$0xff]  ;;  %v2222_v60 = vsel %vm2181_vm2, %v9204_v23, %v9202_v59  ;;  %v2591_v23 = vld [vmem:[%s12596_s2 + $0x20] sm:$0xff] }
 0x2ba   : > { %2607 = vperm.xlu2 %7269, %v2589_v42  }
 0x2bb   : > { %2539 = vmatpush.bf16.msra.mxu2 %v9067_v16 }
 0x2bc   : > { %v1769_v50 = vpop.f32.mrf.mxu3 }
 0x2bd   : > { %v9256_v22 = vadd.f32 %v1769_v50, %v1741_v9  ;;  %v9258_v51 = vpop.f32.mrf.mxu2  ;;  %v2224_v50 = vsel %vm2181_vm2, %v2164_v35, %v2166_v41 }
 0x2be   : > { %2708 = vperm.xlu0 %7267, %v2686_v39   ;;  %v2221_v39 = vsel %vm2181_vm2, %v9175_v10, %v9088_v40  ;;  %v2219_v40 = vsel %vm2181_vm2, %v9145_v26, %v9067_v16  ;;  %v2217_v16 = vsel %vm2181_vm2, %v9112_v46, %v9055_v56 }
 0x2bf   : > { %v2178_v29 = vpop.permute.xlu1 %2177  ;;  %2540 = vmatpush.bf16.msra.mxu2 %v9055_v56  ;;  %2713 = vperm.xlu1 %7268, %v2687_v31   ;;  %v2220_v31 = vsel %vm2181_vm2, %v9177_v21, %v9175_v10  ;;  %v2218_v21 = vsel %vm2181_vm2, %v9147_v25, %v9145_v26  ;;  %v2216_v25 = vsel %vm2181_vm2, %v9117_v5, %v9112_v46  ;;  %v6499_v26 = vld [vmem:[%s12595_s1 + $0xc8] sm:$0xf] }
 0x2c0   : > { %v2176_v27 = vpop.permute.xlu0 %2175  ;;  %v2229_v20 = vsel %vm2181_vm2, %v2178_v29, %v2180_v17  ;;  %v2214_v46 = vsel %vm2181_vm2, %v9096_v12, %v9094_v57  ;;  %v12967_v12 = vld [vmem:[#allocation5_spill] sm:$0xff] }
 0x2c1   : > { %v2228_v48 = vsel %vm2181_vm2, %v2176_v27, %v2178_v29  ;;  %2349 = vmatmul.bf16.gmra.mxu3 %v9260_v24  ;;  %v2223_v29 = vsel %vm2181_vm2, %v9202_v59, %v9110_v58 }
 0x2c2   : > { %2360 = vmatpush.bf16.msrb.mxu0 %v2228_v48  ;;  %2447 = vmatpush.bf16.msrb.mxu3 %v2229_v20  ;;  %v1717_v20 = vadd.f32 %v8931_v61, %v8727_v15  ;;  %v7139_v15 = vld [vmem:[%s12595_s1 + $0x10c] sm:$0xf]  ;;  %v6529_v61 = vld [vmem:[%s12595_s1 + $0x114] sm:$0xf0] }
 0x2c3   : > { %2541 = vmatpush.bf16.msra.mxu2 %v9038_v2  ;;  %v6532_v48 = vor.u32 %v7139_v15, %v6529_v61  ;;  %2617 = vperm.xlu2 %7269, %v2591_v23  }
 0x2c4   : > { %v1772_v63 = vpop.f32.mrf.mxu3  ;;  %2431 = vmatmul.bf16.gmra.mxu2 %v6508_v34  ;;  %2518 = vmatmul.bf16.gmra.mxu1 %v6508_v34 }
 0x2c5   : > { %v9274_v17 = vadd.f32 %v1772_v63, %v9079_v36  ;;  %v1859_v27 = vpop.f32.mrf.mxu2  ;;  %v2225_v36 = vsel %vm2181_vm2, %v2166_v41, %v9141_v7  ;;  %v1746_v7 = vadd.f32 %v9103_v53, %v1717_v20  ;;  %v9313_v53 = vpop.f32.mrf.mxu0 }
 0x2c6   : > { %v9280_v9 = vadd.f32 %v1859_v27, %v9071_v37  ;;  %2361 = vmatpush.bf16.msrb.mxu0 %v2226_v62  ;;  %2448 = vmatpush.bf16.msrb.mxu3 %v2227_v52  ;;  %v2690_v37 = vld [vmem:[%s12597_s3 + $0x38] sm:$0xff]  ;;  %v9324_v63 = vpop.f32.mrf.mxu1  ;;  %v2215_v52 = vsel %vm2181_vm2, %v9094_v57, %v9038_v2 }
 0x2c7   : > { %2728 = vperm.xlu1 %7268, %v2690_v37   ;;  %2723 = vperm.xlu0 %7267, %v2689_v33   ;;  %v2688_v33 = vld [vmem:[%s12597_s3 + $0x28] sm:$0xff] }
 0x2ca   : > { %2362 = vmatpush.bf16.msrb.mxu0 %v2224_v50  ;;  %2449 = vmatpush.bf16.msrb.mxu3 %v2225_v36  ;;  %v1347_v36 = vadd.f32 %v12967_v12, %v8900_v8  ;;  %v7135_v8 = vld [vmem:[%s12595_s1 + $0xe8] sm:$0xf0] }
 0x2cc   : > { %v1774_v34 = vpop.f32.mrf.mxu3 }
 0x2cd   : > { %v9303_v41 = vadd.f32 %v1774_v34, %v1746_v7  ;;  %v9305_v35 = vpop.f32.mrf.mxu2  ;;  %v1907_v62 = vpop.f32.mrf.mxu0 }
 0x2ce   : > { %2363 = vmatpush.bf16.msrb.mxu0 %v2222_v60  ;;  %2450 = vmatpush.bf16.msrb.mxu3 %v2223_v29  ;;  %v12969_v60 = vld [vmem:[#allocation8_spill] sm:$0xff] }
 0x2cf   : > { %v1352_v29 = vadd.f32 %v12969_v60, %v8951_v30 }
 0x2d1   : > { %2354 = vmatmul.bf16.gmra.mxu3 %v6532_v48 }
 0x2d2   : > { %2364 = vmatpush.bf16.msrb.mxu0 %v2220_v31  ;;  %2451 = vmatpush.bf16.msrb.mxu3 %v2221_v39 }
 0x2d4   : > { %v1777_v58 = vpop.f32.mrf.mxu3  ;;  %2436 = vmatmul.bf16.gmra.mxu2 %v9260_v24  ;;  %2523 = vmatmul.bf16.gmra.mxu1 %v9260_v24 }
 0x2d5   : > { %v9327_v59 = vadd.f32 %v1777_v58, %v9130_v13  ;;  %v1864_v27 = vpop.f32.mrf.mxu2  ;;  %v1722_v13 = vadd.f32 %v8990_v38, %v8801_v55  ;;  %v7132_v55 = vld [vmem:[%s12595_s1 + $0xd0] sm:$0xf0]  ;;  %v1936_v38 = vpop.f32.mrf.mxu1  ;;  %v6523_v58 = vld [vmem:[%s12595_s1 + $0xf8] sm:$0xf] }
 0x2d6   : > { %v9336_v10 = vadd.f32 %v1864_v27, %v9115_v54  ;;  %2365 = vmatpush.bf16.msrb.mxu0 %v2218_v21  ;;  %2452 = vmatpush.bf16.msrb.mxu3 %v2219_v40  ;;  %v2594_v54 = vld [vmem:[%s12596_s2 + $0x38] sm:$0xff]  ;;  %v6500_v20 = vor.u32 %v7132_v55, %v6499_v26  ;;  %v9370_v50 = vpop.f32.mrf.mxu0 }
 0x2d7   : > { %v1751_v5 = vadd.f32 %v9165_v32, %v1722_v13  ;;  %2632 = vperm.xlu2 %7269, %v2594_v54   ;;  %v2685_v32 = vld [vmem:[%s12597_s3 + $0x10] sm:$0xff] }
 0x2da   : > { %2366 = vmatpush.bf16.msrb.mxu0 %v2216_v25  ;;  %2453 = vmatpush.bf16.msrb.mxu3 %v2217_v16 }
 0x2dc   : > { %v1779_v24 = vpop.f32.mrf.mxu3 }
 0x2dd   : > { %v9358_v56 = vadd.f32 %v1779_v24, %v1751_v5  ;;  %v9375_v57 = vpop.f32.mrf.mxu1  ;;  %v9393_v34 = vpop.f32.mrf.mxu2  ;;  %v7141_v5 = vld [vmem:[%s12595_s1 + $0x118] sm:$0xf0] }
 0x2de   : > { %2367 = vmatpush.bf16.msrb.mxu0 %v2214_v46  ;;  %2454 = vmatpush.bf16.msrb.mxu3 %v2215_v52  ;;  %12968 = vst [vmem:[#allocation42_spill] sm:$0xff] %v9375_v57  ;;  %v1912_v15 = vpop.f32.mrf.mxu0 }
 0x2df   : > { %2703 = vperm.xlu2 %7269, %v2685_v32   ;;  %v12980_v32 = vld [vmem:[#allocation14_spill] sm:$0xff] }
 0x2e1   : > { %2368 = vmatmul.bf16.vlgmr.msrb.gmra.mxu0 %v6500_v20  ;;  %2455 = vmatmul.bf16.vlgmr.msrb.gmra.mxu3 %v6500_v20 }
 0x2e2   : > { %2476 = vmatpush.bf16.msra.mxu0 %v8840_v3 }
 0x2e4   : > { %v1878_v2 = vpop.f32.mrf.mxu3  ;;  %2441 = vmatmul.bf16.gmra.mxu2 %v6532_v48  ;;  %2528 = vmatmul.bf16.gmra.mxu1 %v6532_v48 }
 0x2e5   : > { %v1879_v42 = vadd.f32 %v1878_v2, %v1347_v36  ;;  %v1941_v7 = vpop.f32.mrf.mxu1 }
 0x2e6   : > { %2477 = vmatpush.bf16.msra.mxu0 %v8813_v47  ;;  %v6511_v47 = vld [vmem:[%s12595_s1 + $0xe0] sm:$0xf] }
 0x2e7   : > { %v1908_v37 = vadd.f32 %v1907_v62, %v1879_v42  ;;  %2718 = vperm.xlu2 %7269, %v2688_v33   ;;  %v6512_v61 = vor.u32 %v7135_v8, %v6511_v47  ;;  %v12974_v62 = vld [vmem:[#allocation11_spill] sm:$0xff] }
 0x2e8   : > { %v1357_v13 = vadd.f32 %v12974_v62, %v9007_v1 }
 0x2e9   : > { %v9378_v3 = vadd.f32 %v1936_v38, %v1908_v37  ;;  %v6535_v38 = vld [vmem:[%s12595_s1 + $0x110] sm:$0xf] }
 0x2ea   : > { %2478 = vmatpush.bf16.msra.mxu0 %v8777_v11  ;;  %v6536_v52 = vor.u32 %v7141_v5, %v6535_v38 }
 0x2ec   : > { %v9390_v11 = vpop.f32.mrf.mxu3 }
 0x2ed   : > { %v9401_v23 = vpop.f32.mrf.mxu1 }
 0x2ee   : > { %2479 = vmatpush.bf16.msra.mxu0 %v8741_v43  ;;  %v9398_v43 = vpop.f32.mrf.mxu0  ;;  %12971 = vst [vmem:[#allocation44_spill] sm:$0xff] %v9401_v23 }
 0x2ef   : > { %12970 = vst [vmem:[#allocation43_spill] sm:$0xff] %v9398_v43 }
 0x2f1   : > { %2373 = vmatmul.bf16.gmra.mxu0 %v6512_v61  ;;  %2460 = vmatmul.bf16.gmra.mxu3 %v6512_v61 }
 0x2f2   : > { %2480 = vmatpush.bf16.msra.mxu0 %v8704_v19 }
 0x2f4   : > { %v1883_v48 = vpop.f32.mrf.mxu3  ;;  %2542 = vmatmul.bf16.vlgmr.msra.gmra.mxu2 %v6500_v20  ;;  %v12979_v20 = vld [vmem:[#allocation35_spill] sm:$0xff] }
 0x2f5   : > { %v1884_v31 = vadd.f32 %v1883_v48, %v1352_v29  ;;  %v2311_v30 = vpop.f32.mrf.mxu2  ;;  %v1946_v40 = vpop.f32.mrf.mxu1  ;;  %v1362_v12 = vadd.f32 %v12980_v32, %v12979_v20 }
 0x2f6   : > { %2481 = vmatpush.bf16.msra.mxu0 %v8677_v28  ;;  %v7138_v28 = vld [vmem:[%s12595_s1 + $0x100] sm:$0xf0] }
 0x2f7   : > { %v1913_v39 = vadd.f32 %v1912_v15, %v1884_v31  ;;  %v6524_v21 = vor.u32 %v7138_v28, %v6523_v58 }
 0x2f9   : > { %v9403_v19 = vadd.f32 %v1941_v7, %v1913_v39  ;;  %v12983_v7 = vld [vmem:[#allocation36_spill] sm:$0xff] }
 0x2fa   : > { %2482 = vmatpush.bf16.msra.mxu0 %v8653_v6  ;;  %v1917_v6 = vpop.f32.mrf.mxu0 }
 0x2fb   : > { %12972 = vst [vmem:[#allocation45_spill] sm:$0xff] %v9403_v19 }
 0x2fc   : > { %v9412_v27 = vpop.f32.mrf.mxu3 }
 0x2fd   : > { %12973 = vst [vmem:[#allocation46_spill] sm:$0xff] %v9412_v27  ;;  %v9416_v25 = vpop.f32.mrf.mxu2  ;;  %v9432_v46 = vpop.f32.mrf.mxu1 }
 0x2fe   : > { %2483 = vmatpush.bf16.msra.mxu0 %v8634_v49  ;;  %12978 = vst [vmem:[#allocation50_spill] sm:$0xff] %v9432_v46 }
 0x301   : > { %2378 = vmatmul.bf16.gmra.mxu0 %v6524_v21  ;;  %2465 = vmatmul.bf16.gmra.mxu3 %v6524_v21 }
 0x302   : > { %v9420_v49 = vpop.f32.mrf.mxu0 }
 0x303   : > { %12976 = vst [vmem:[#allocation48_spill] sm:$0xff] %v9420_v49 }
 0x304   : > { %v1888_v16 = vpop.f32.mrf.mxu3  ;;  %2547 = vmatmul.bf16.gmra.mxu2 %v6512_v61 }
 0x305   : > { %v1889_v54 = vadd.f32 %v1888_v16, %v1357_v13  ;;  %v1951_v33 = vpop.f32.mrf.mxu1  ;;  %v334_v13 = vld [vmem:[%s12602_s8] sm:$0x7] }
 0x306   : > { %2772 = vst [vmem:[#allocation1] ss:$9 sm:$0xff] %v334_v13 }
 0x307   : > { %v1918_v26 = vadd.f32 %v1917_v6, %v1889_v54  ;;  %v9428_v24 = vpop.f32.mrf.mxu2 }
 0x309   : > { %v9418_v55 = vadd.f32 %v1946_v40, %v1918_v26 }
 0x30a   : > { %v1922_v42 = vpop.f32.mrf.mxu0 }
 0x30b   : > { %12975 = vst [vmem:[#allocation47_spill] sm:$0xff] %v9418_v55 }
 0x30c   : > { %v9430_v1 = vpop.f32.mrf.mxu3 }
 0x30d   : > { %12977 = vst [vmem:[#allocation49_spill] sm:$0xff] %v9430_v1  ;;  %v9450_v58 = vpop.f32.mrf.mxu1  ;;  %v2773_v46 = vld [vmem:[#allocation1] sm:$0xff]  ;;  %v2774_v55 = vld [vmem:[#allocation1 + $0x9] sm:$0xff] }
 0x30e   : > { %12984 = vst [vmem:[#allocation53_spill] sm:$0xff] %v9450_v58 }
 0x30f   : > { %v9436_v36 = vpop.f32.mrf.mxu2 }
 0x311   : > { %2383 = vmatmul.bf16.gmra.mxu0 %v6536_v52  ;;  %2470 = vmatmul.bf16.gmra.mxu3 %v6536_v52 }
 0x312   : > { %v9467_v5 = vpop.f32.mrf.mxu0 }
 0x313   : > { %12985 = vst [vmem:[#allocation55_spill] sm:$0xff] %v9467_v5 }
 0x314   : > { %v1893_v2 = vpop.f32.mrf.mxu3  ;;  %2552 = vmatmul.bf16.gmra.mxu2 %v6524_v21 }
 0x315   : > { %v1894_v37 = vadd.f32 %v1893_v2, %v1362_v12  ;;  %v2398_v6 = vpop.f32.mrf.mxu1  ;;  %v9475_v2 = vpop.permute.xlu2 %2607 }
 0x317   : > { %v1923_v47 = vadd.f32 %v1922_v42, %v1894_v37  ;;  %v9442_v61 = vpop.f32.mrf.mxu2 }
 0x319   : > { %v9438_v8 = vadd.f32 %v1951_v33, %v1923_v47  ;;  %v12988_v47 = vld [vmem:[#allocation31_spill] sm:$0xff] }
 0x31b   : > { %12981 = vst [vmem:[#allocation51_spill] sm:$0xff] %v9438_v8 }
 0x31c   : > { %v9440_v15 = vpop.f32.mrf.mxu3 }
 0x31d   : > { %12982 = vst [vmem:[#allocation52_spill] sm:$0xff] %v9440_v15  ;;  %v2400_v16 = vpop.f32.mrf.mxu1  ;;  %v9491_v23 = vpop.permute.xlu2 %2617 }
 0x31f   : > { %v9445_v29 = vpop.f32.mrf.mxu2 }
 0x321   : > { %2484 = vmatmul.bf16.vlgmr.msra.gmra.mxu0 %v12983_v7 }
 0x324   : > { %v2340_v60 = vpop.f32.mrf.mxu3  ;;  %2557 = vmatmul.bf16.gmra.mxu2 %v6536_v52  ;;  %v9471_v52 = vpop.permute.xlu0 %2597 }
 0x325   : > { %v2403_v38 = vpop.f32.mrf.mxu1  ;;  %12986 = vst [vmem:[#allocation57_spill] sm:$0xff] %v9471_v52  ;;  %v2341_v12 = vadd.f32 %v2340_v60, %v2311_v30  ;;  %v12989_v30 = vld [vmem:[#allocation6_spill] sm:$0xff] }
 0x327   : > { %v9447_v31 = vpop.f32.mrf.mxu2 }
 0x32c   : > { %v2342_v48 = vpop.f32.mrf.mxu3  ;;  %v9483_v58 = vpop.permute.xlu0 %2622 }
 0x32d   : > { %v9477_v37 = vpop.f32.mrf.mxu1  ;;  %v2343_v1 = vadd.f32 %v2342_v48, %v9416_v25  ;;  %v12991_v48 = vld [vmem:[#allocation34_spill] sm:$0xff] }
 0x32f   : > { %v9452_v28 = vpop.f32.mrf.mxu2 }
 0x331   : > { %2489 = vmatmul.bf16.gmra.mxu0 %v9090_v14 }
 0x334   : > { %v2345_v39 = vpop.f32.mrf.mxu3 }
 0x335   : > { %v9495_v19 = vpop.f32.mrf.mxu1 }
 0x337   : > { %v2427_v62 = vpop.f32.mrf.mxu2 }
 0x338   : > { %v2428_v5 = vadd.f32 %v2427_v62, %v2398_v6 }
 0x33c   : > { %v9454_v21 = vpop.f32.mrf.mxu3 }
 0x33f   : > { %v2429_v54 = vpop.f32.mrf.mxu2 }
 0x340   : > { %v2430_v27 = vadd.f32 %v2429_v54, %v2400_v16 }
 0x341   : > { %2494 = vmatmul.bf16.gmra.mxu0 %v9143_v44  ;;  %v9469_v44 = vpop.permute.xlu1 %2602 }
 0x344   : > { %v9457_v40 = vpop.f32.mrf.mxu3 }
 0x347   : > { %v2432_v20 = vpop.f32.mrf.mxu2 }
 0x348   : > { %v2433_v57 = vadd.f32 %v2432_v20, %v2403_v38  ;;  %v2348_v38 = vadd.f32 %v9454_v21, %v9436_v36  ;;  %v13000_v36 = vld [vmem:[#allocation22_spill] sm:$0xff] }
 0x349   : > { %v9481_v13 = vpop.permute.xlu1 %2612 }
 0x34c   : > { %v9462_v14 = vpop.f32.mrf.mxu3 }
 0x34f   : > { %v9486_v15 = vpop.f32.mrf.mxu2 }
 0x351   : > { %2499 = vmatmul.bf16.gmra.mxu0 %v9197_v45  ;;  %v12987_v45 = vld [vmem:[#allocation61_spill] sm:$0xff] }
 0x352   : > { %v1233_v7 = vadd.f32 %v12988_v47, %v12987_v45  ;;  %v2776_v47 = vpack.i.b16 %v2773_v46, %v2773_v46 }
 0x354   : > { %v9465_v26 = vpop.f32.mrf.mxu3  ;;  %v1262_v60 = vadd.f32 %v12989_v30, %v1233_v7  ;;  %v2778_v46 = vperm.slane %v2776_v47, 0 }
 0x35c   : > { %v9473_v32 = vpop.f32.mrf.mxu3 }
 0x35e   : > { %v2369_v42 = vpop.f32.mrf.mxu0 }
 0x35f   : > { %v2370_v33 = vadd.f32 %v2369_v42, %v2341_v12 }
 0x361   : > { %v2563_v8 = vadd.f32 %v2370_v33, %v9186_v18  ;;  %v2779_v18 = vpack.i.b16 %v2774_v55, %v2774_v55  ;;  %v12990_v33 = vld [vmem:[#allocation19_spill] sm:$0xff]  ;;  %v12992_v55 = vld [vmem:[#allocation40_spill] sm:$0xff] }
 0x362   : > { %v1794_v43 = vadd.f32 %v12990_v33, %v1262_v60  ;;  %v9511_v33 = vunpack.c.l.bf16 %v2778_v46  ;;  %v9521_v46 = vpop.f32.mrf.mxu1 }
 0x363   : > { %v2635_v12 = vadd.f32 %v9471_v52, %v2563_v8 }
 0x364   : > { %v2456_v49 = vpop.f32.mrf.mxu3  ;;  %v1823_v8 = vadd.f32 %v12991_v48, %v1794_v43  ;;  %12993 = vst [vmem:[#allocation58_spill] sm:$0xff] %v9511_v33  ;;  %v12995_v48 = vld [vmem:[#allocation15_spill] sm:$0xff] }
 0x365   : > { %v2457_v42 = vadd.f32 %v2456_v49, %v2428_v5  ;;  %v2659_v7 = vmax.f32 %v2635_v12, 0.0  ;;  %v9500_v49 = vpop.permute.xlu1 %2627  ;;  %v9502_v5 = vpop.permute.xlu0 %2693 }
 0x366   : > { %v2371_v45 = vpop.f32.mrf.mxu0  ;;  %v9506_v12 = vpop.f32.mrf.mxu2 }
 0x367   : > { %v2564_v6 = vadd.f32 %v2457_v42, %v9195_v4  ;;  %v2372_v62 = vadd.f32 %v2371_v45, %v2343_v1  ;;  %v2781_v1 = vperm.slane %v2779_v18, 0  ;;  %v1852_v42 = vadd.f32 %v12992_v55, %v1823_v8 }
 0x369   : > { %v2636_v30 = vadd.f32 %v9471_v52, %v2564_v6  ;;  %v2566_v25 = vadd.f32 %v2372_v62, %v9221_v0  ;;  %v2346_v6 = vadd.f32 %v2345_v39, %v9428_v24  ;;  %v2731_v0 = vadd.f32 %v9502_v5, %v2659_v7  ;;  %v9517_v52 = vpop.permute.xlu2 %2632 }
 0x36b   : > { %v2660_v4 = vmax.f32 %v2636_v30, 0.0  ;;  %v2638_v60 = vadd.f32 %v9469_v44, %v2566_v25  ;;  %v9513_v30 = vunpack.c.l.bf16 %v2781_v1  ;;  %v12996_v25 = vld [vmem:[#allocation54_spill] sm:$0xff] }
 0x36c   : > { %v2458_v45 = vpop.f32.mrf.mxu3  ;;  %v1238_v8 = vadd.f32 %v12996_v25, %v12995_v48 }
 0x36d   : > { %v2732_v43 = vadd.f32 %v9502_v5, %v2660_v4  ;;  %v2459_v62 = vadd.f32 %v2458_v45, %v2430_v27  ;;  %12994 = vst [vmem:[#allocation59_spill] sm:$0xff] %v9513_v30  ;;  %v2662_v55 = vmax.f32 %v2638_v60, 0.0  ;;  %v12997_v27 = vld [vmem:[#allocation41_spill] sm:$0xff]  ;;  %v9528_v20 = vpop.permute.xlu1 %2698 }
 0x36e   : > { %v2374_v47 = vpop.f32.mrf.mxu0  ;;  %v9533_v48 = vpop.f32.mrf.mxu2 }
 0x36f   : > { %v2755_v16 = vpack.c.bf16 %v2732_v43, %v2731_v0  ;;  %v2567_v54 = vadd.f32 %v2459_v62, %v1852_v42  ;;  %v2375_v18 = vadd.f32 %v2374_v47, %v2346_v6  ;;  %v12998_v6 = vld [vmem:[#allocation9_spill] sm:$0xff]  ;;  %v2734_v62 = vadd.f32 %v9528_v20, %v2662_v55 }
 0x370   : > { %v1267_v0 = vadd.f32 %v12998_v6, %v1238_v8  ;;  %v2435_v6 = vadd.f32 %v9486_v15, %v9477_v37 }
 0x371   : > { %v2785_v24 = vunpack.c.l.bf16 %v2755_v16  ;;  %v2786_v39 = vunpack.c.h.bf16 %v2755_v16  ;;  %v2639_v7 = vadd.f32 %v9469_v44, %v2567_v54  ;;  %v2569_v4 = vadd.f32 %v2375_v18, %v12997_v27 }
 0x372   : > { %v1799_v21 = vadd.f32 %v13000_v36, %v1267_v0  ;;  %v13003_v36 = vld [vmem:[#allocation56_spill] sm:$0xff] }
 0x373   : > { %v2663_v45 = vmax.f32 %v2639_v7, 0.0  ;;  %v2812_v42 = vmul.f32 %v9511_v33, %v2785_v24  ;;  %v2813_v1 = vmul.f32 %v9513_v30, %v2786_v39  ;;  %v2641_v60 = vadd.f32 %v9475_v2, %v2569_v4  ;;  %v12999_v24 = vld [vmem:[#allocation27_spill] sm:$0xff] }
 0x374   : > { %v2461_v43 = vpop.f32.mrf.mxu3 }
 0x375   : > { %v2735_v47 = vadd.f32 %v9528_v20, %v2663_v45  ;;  %v2462_v16 = vadd.f32 %v2461_v43, %v2433_v57  ;;  %v2836_v54 = vpack.c.bf16 %v2813_v1, %v2812_v42  ;;  %v2665_v7 = vmax.f32 %v2641_v60, 0.0  ;;  %v13001_v45 = vld [vmem:[#allocation37_spill] sm:$0xff]  ;;  %v9543_v1 = vpop.permute.xlu2 %2703 }
 0x376   : > { %v2376_v18 = vpop.f32.mrf.mxu0  ;;  %v1828_v42 = vadd.f32 %v13001_v45, %v1799_v21  ;;  %v2438_v21 = vadd.f32 %v9506_v12, %v9495_v19  ;;  %v2353_v19 = vadd.f32 %v9462_v14, %v9445_v29  ;;  %v9571_v12 = vpop.permute.xlu0 %2708  ;;  %v13005_v29 = vld [vmem:[#allocation25_spill] sm:$0xff] }
 0x377   : > { %v2757_v25 = vpack.c.bf16 %v2735_v47, %v2734_v62  ;;  %v2570_v8 = vadd.f32 %v2462_v16, %v12999_v24  ;;  %v2377_v39 = vadd.f32 %v2376_v18, %v2348_v38  ;;  %3080 = vrot.lane.b32.xlu1 %v2836_v54, %s7282_s17  ;;  %2979 = vrot.lane.b32.xlu0 %v2836_v54, %s7283_s18  ;;  %v9553_v16 = vpop.f32.mrf.mxu1 }
 0x378   : > { %2877 = vrot.lane.b32.xlu2 %v2836_v54, %s7284_s19  ;;  %v1857_v43 = vadd.f32 %v9258_v51, %v1828_v42  ;;  %v2351_v62 = vadd.f32 %v9457_v40, %v9442_v61  ;;  %v2737_v54 = vadd.f32 %v9543_v1, %v2665_v7  ;;  %v13002_v51 = vld [vmem:[#allocation18_spill] sm:$0xff]  ;;  %v2442_v7 = vpop.f32.mrf.mxu2 }
 0x379   : > { %v2642_v57 = vadd.f32 %v9475_v2, %v2570_v8  ;;  %v2572_v55 = vadd.f32 %v2377_v39, %v9256_v22  ;;  %v2788_v27 = vunpack.c.l.bf16 %v2757_v25  ;;  %v2789_v4 = vunpack.c.h.bf16 %v2757_v25 }
 0x37a   : > { %v1243_v61 = vadd.f32 %v13003_v36, %v13002_v51 }
 0x37b   : > { %v2666_v0 = vmax.f32 %v2642_v57, 0.0  ;;  %v2815_v38 = vmul.f32 %v9511_v33, %v2788_v27  ;;  %v2816_v60 = vmul.f32 %v9513_v30, %v2789_v4  ;;  %v2644_v22 = vadd.f32 %v9481_v13, %v2572_v55 }
 0x37c   : > { %v2463_v47 = vpop.f32.mrf.mxu3 }
 0x37d   : > { %v2738_v18 = vadd.f32 %v9543_v1, %v2666_v0  ;;  %v2464_v15 = vadd.f32 %v2463_v47, %v2435_v6  ;;  %v2838_v37 = vpack.c.bf16 %v2816_v60, %v2815_v38  ;;  %v2668_v40 = vmax.f32 %v2644_v22, 0.0  ;;  %v13004_v0 = vld [vmem:[#allocation12_spill] sm:$0xff] }
 0x37e   : > { %v2379_v25 = vpop.f32.mrf.mxu0  ;;  %v1272_v38 = vadd.f32 %v13004_v0, %v1243_v61  ;;  %v13006_v61 = vld [vmem:[#allocation38_spill] sm:$0xff] }
 0x37f   : > { %v2759_v24 = vpack.c.bf16 %v2738_v18, %v2737_v54  ;;  %v2573_v8 = vadd.f32 %v2464_v15, %v1857_v43  ;;  %v2380_v39 = vadd.f32 %v2379_v25, %v2351_v62  ;;  %2881 = vrot.lane.b32.xlu1 %v2838_v37, %s7284_s19  ;;  %3084 = vrot.lane.b32.xlu0 %v2838_v37, %s7282_s17  ;;  %v9576_v18 = vpop.f32.mrf.mxu1 }
 0x380   : > { %2983 = vrot.lane.b32.xlu2 %v2838_v37, %s7283_s18  ;;  %v2740_v62 = vadd.f32 %v9571_v12, %v2668_v40  ;;  %v1804_v14 = vadd.f32 %v13005_v29, %v1272_v38 }
 0x381   : > { %v2791_v57 = vunpack.c.l.bf16 %v2759_v24  ;;  %v2792_v55 = vunpack.c.h.bf16 %v2759_v24  ;;  %v2645_v27 = vadd.f32 %v9481_v13, %v2573_v8  ;;  %v2575_v4 = vadd.f32 %v2380_v39, %v9274_v17 }
 0x382   : > { %v1833_v40 = vadd.f32 %v13006_v61, %v1804_v14 }
 0x383   : > { %v2669_v45 = vmax.f32 %v2645_v27, 0.0  ;;  %v2818_v42 = vmul.f32 %v9511_v33, %v2791_v57  ;;  %v2819_v6 = vmul.f32 %v9513_v30, %v2792_v55  ;;  %v2647_v60 = vadd.f32 %v9491_v23, %v2575_v4 }
 0x384   : > { %v2466_v43 = vpop.f32.mrf.mxu3  ;;  %v1862_v4 = vadd.f32 %v9305_v35, %v1833_v40  ;;  %v13007_v35 = vld [vmem:[#allocation21_spill] sm:$0xff] }
 0x385   : > { %v2741_v22 = vadd.f32 %v9571_v12, %v2669_v45  ;;  %v2467_v17 = vadd.f32 %v2466_v43, %v2438_v21  ;;  %v2840_v47 = vpack.c.bf16 %v2819_v6, %v2818_v42  ;;  %v2671_v24 = vmax.f32 %v2647_v60, 0.0  ;;  %v2444_v21 = vpop.f32.mrf.mxu2  ;;  %v9591_v45 = vpop.permute.xlu1 %2713 }
 0x386   : > { %v2381_v54 = vpop.f32.mrf.mxu0 }
 0x387   : > { %v2761_v15 = vpack.c.bf16 %v2741_v22, %v2740_v62  ;;  %v2576_v37 = vadd.f32 %v2467_v17, %v9280_v9  ;;  %v2382_v25 = vadd.f32 %v2381_v54, %v2353_v19  ;;  %2987 = vrot.lane.b32.xlu1 %v2840_v47, %s7283_s18  ;;  %2885 = vrot.lane.b32.xlu0 %v2840_v47, %s7284_s19  ;;  %v13008_v22 = vld [vmem:[#allocation4_spill] sm:$0xff] }
 0x388   : > { %3088 = vrot.lane.b32.xlu2 %v2840_v47, %s7282_s17  ;;  %v2440_v9 = vadd.f32 %v9533_v48, %v9521_v46  ;;  %v2743_v0 = vadd.f32 %v9591_v45, %v2671_v24  ;;  %v1248_v17 = vadd.f32 %v13008_v22, %v13007_v35 }
 0x389   : > { %v2648_v8 = vadd.f32 %v9491_v23, %v2576_v37  ;;  %v2578_v39 = vadd.f32 %v2382_v25, %v9303_v41  ;;  %v2794_v51 = vunpack.c.l.bf16 %v2761_v15  ;;  %v2795_v36 = vunpack.c.h.bf16 %v2761_v15 }
 0x38a   : > { %v2356_v41 = vadd.f32 %v9465_v26, %v9447_v31  ;;  %v2443_v31 = vadd.f32 %v2442_v7, %v9553_v16  ;;  %v2514_v26 = vpop.f32.mrf.mxu1  ;;  %v2358_v16 = vadd.f32 %v9473_v32, %v9452_v28  ;;  %v9611_v7 = vpop.permute.xlu2 %2718 }
 0x38b   : > { %v2672_v57 = vmax.f32 %v2648_v8, 0.0  ;;  %v2821_v55 = vmul.f32 %v9511_v33, %v2794_v51  ;;  %v2822_v27 = vmul.f32 %v9513_v30, %v2795_v36  ;;  %v2650_v42 = vadd.f32 %v9483_v58, %v2578_v39  ;;  %v13009_v39 = vld [vmem:[#allocation16_spill] sm:$0xff] }
 0x38c   : > { %v2468_v6 = vpop.f32.mrf.mxu3  ;;  %v1277_v51 = vadd.f32 %v13009_v39, %v1248_v17 }
 0x38d   : > { %v2744_v38 = vadd.f32 %v9591_v45, %v2672_v57  ;;  %v2469_v46 = vadd.f32 %v2468_v6, %v2440_v9  ;;  %v2842_v48 = vpack.c.bf16 %v2822_v27, %v2821_v55  ;;  %v2674_v47 = vmax.f32 %v2650_v42, 0.0  ;;  %v2543_v29 = vpop.f32.mrf.mxu2 }
 0x38e   : > { %v2384_v19 = vpop.f32.mrf.mxu0  ;;  %v1809_v28 = vadd.f32 %v9313_v53, %v1277_v51  ;;  %v2445_v53 = vadd.f32 %v2444_v21, %v9576_v18 }
 0x38f   : > { %v2763_v60 = vpack.c.bf16 %v2744_v38, %v2743_v0  ;;  %v2579_v43 = vadd.f32 %v2469_v46, %v1862_v4  ;;  %v2385_v62 = vadd.f32 %v2384_v19, %v2356_v41  ;;  %3092 = vrot.lane.b32.xlu1 %v2842_v48, %s7282_s17  ;;  %2991 = vrot.lane.b32.xlu0 %v2842_v48, %s7283_s18  ;;  %v13010_v46 = vld [vmem:[#allocation20_spill] sm:$0xff] }
 0x390   : > { %2889 = vrot.lane.b32.xlu2 %v2842_v48, %s7284_s19  ;;  %v2746_v40 = vadd.f32 %v9611_v7, %v2674_v47  ;;  %v13011_v48 = vld [vmem:[#allocation24_spill] sm:$0xff] }
 0x391   : > { %v2797_v54 = vunpack.c.l.bf16 %v2763_v60  ;;  %v2798_v15 = vunpack.c.h.bf16 %v2763_v60  ;;  %v2651_v37 = vadd.f32 %v9483_v58, %v2579_v43  ;;  %v2581_v25 = vadd.f32 %v2385_v62, %v9327_v59  ;;  %v9626_v43 = vpop.permute.xlu0 %2723 }
 0x392   : > { %v1320_v19 = vadd.f32 %v13011_v48, %v13010_v46  ;;  %v2516_v60 = vpop.f32.mrf.mxu1  ;;  %v13014_v48 = vld [vmem:[#allocation42_spill] sm:$0xff] }
 0x393   : > { %v2675_v14 = vmax.f32 %v2651_v37, 0.0  ;;  %v2824_v24 = vmul.f32 %v9511_v33, %v2797_v54  ;;  %v2825_v8 = vmul.f32 %v9513_v30, %v2798_v15  ;;  %v2653_v36 = vadd.f32 %v9500_v49, %v2581_v25  ;;  %v13012_v25 = vld [vmem:[#allocation60_spill] sm:$0xff] }
 0x394   : > { %v2471_v61 = vpop.f32.mrf.mxu3 }
 0x395   : > { %v2747_v59 = vadd.f32 %v9611_v7, %v2675_v14  ;;  %v2472_v9 = vadd.f32 %v2471_v61, %v2443_v31  ;;  %v2844_v57 = vpack.c.bf16 %v2825_v8, %v2824_v24  ;;  %v2677_v32 = vmax.f32 %v2653_v36, 0.0  ;;  %v2545_v31 = vpop.f32.mrf.mxu2 }
 0x396   : > { %v2386_v55 = vpop.f32.mrf.mxu0  ;;  %v1349_v14 = vadd.f32 %v13012_v25, %v1320_v19 }
 0x397   : > { %v2765_v27 = vpack.c.bf16 %v2747_v59, %v2746_v40  ;;  %v2582_v4 = vadd.f32 %v2472_v9, %v9336_v10  ;;  %v2387_v41 = vadd.f32 %v2386_v55, %v2358_v16  ;;  %2893 = vrot.lane.b32.xlu1 %v2844_v57, %s7284_s19  ;;  %3096 = vrot.lane.b32.xlu0 %v2844_v57, %s7282_s17  ;;  %v2775_v40 = vld [vmem:[#allocation1 + $0x12] sm:$0xff] }
 0x398   : > { %2995 = vrot.lane.b32.xlu2 %v2844_v57, %s7283_s18  ;;  %v1838_v10 = vadd.f32 %v9324_v63, %v1809_v28  ;;  %v2749_v54 = vadd.f32 %v9626_v43, %v2677_v32 }
 0x399   : > { %v2654_v42 = vadd.f32 %v9500_v49, %v2582_v4  ;;  %v2584_v6 = vadd.f32 %v2387_v41, %v9358_v56  ;;  %v2800_v0 = vunpack.c.l.bf16 %v2765_v27  ;;  %v2801_v38 = vunpack.c.h.bf16 %v2765_v27  ;;  %v9645_v27 = vpop.permute.xlu1 %2728 }
 0x39a   : > { %v1867_v17 = vadd.f32 %v9393_v34, %v1838_v10  ;;  %v1881_v34 = vadd.f32 %v9390_v11, %v1349_v14  ;;  %v2519_v59 = vpop.f32.mrf.mxu1  ;;  %v2782_v41 = vpack.i.b16 %v2775_v40, %v2775_v40 }
 0x39b   : > { %v2678_v62 = vmax.f32 %v2654_v42, 0.0  ;;  %v2827_v35 = vmul.f32 %v9511_v33, %v2800_v0  ;;  %v2828_v22 = vmul.f32 %v9513_v30, %v2801_v38  ;;  %v2656_v56 = vadd.f32 %v9517_v52, %v2584_v6 }
 0x39c   : > { %v2473_v47 = vpop.f32.mrf.mxu3  ;;  %v1910_v11 = vadd.f32 %v9370_v50, %v1881_v34  ;;  %v2784_v50 = vperm.slane %v2782_v41, 0  ;;  %v13022_v41 = vmov 0  }
 0x39d   : > { %v2750_v63 = vadd.f32 %v9626_v43, %v2678_v62  ;;  %v2474_v15 = vadd.f32 %v2473_v47, %v2445_v53  ;;  %v2846_v37 = vpack.c.bf16 %v2828_v22, %v2827_v35  ;;  %v2680_v39 = vmax.f32 %v2656_v56, 0.0  ;;  %v2548_v4 = vpop.f32.mrf.mxu2  ;;  %v13015_v22 = vld [vmem:[#allocation23_spill] sm:$0xff]  ;;  %2853 = vst.msk [vmem:[#allocation2] sm:$0xf] %vm2852_vm3, %v13022_v41 }
 0x39e   : > { %v2485_v18 = vpop.f32.mrf.mxu0  ;;  %v1939_v19 = vadd.f32 %v13014_v48, %v1910_v11  ;;  %2854 = vst.msk [vmem:[#allocation2 + $0xc] sm:$0xf] %vm2852_vm3, %v13022_v41 }
 0x39f   : > { %v2767_v21 = vpack.c.bf16 %v2750_v63, %v2749_v54  ;;  %v2585_v24 = vadd.f32 %v2474_v15, %v1867_v17  ;;  %v2515_v8 = vadd.f32 %v2514_v26, %v2485_v18  ;;  %2999 = vrot.lane.b32.xlu1 %v2846_v37, %s7283_s18  ;;  %2897 = vrot.lane.b32.xlu0 %v2846_v37, %s7284_s19  ;;  %v13016_v17 = vld [vmem:[#allocation28_spill] sm:$0xff]  ;;  %v9660_v18 = vunpack.c.l.bf16 %v2784_v50 }
 0x3a0   : > { %3100 = vrot.lane.b32.xlu2 %v2846_v37, %s7282_s17  ;;  %v2752_v28 = vadd.f32 %v9645_v27, %v2680_v39  ;;  %v1325_v56 = vadd.f32 %v13016_v17, %v13015_v22  ;;  %v13019_v39 = vld [vmem:[#allocation46_spill] sm:$0xff]  ;;  %2855 = vst.msk [vmem:[#allocation2 + $0x18] sm:$0xf] %vm2852_vm3, %v13022_v41 }
 0x3a1   : > { %v2803_v51 = vunpack.c.l.bf16 %v2767_v21  ;;  %v2804_v16 = vunpack.c.h.bf16 %v2767_v21  ;;  %v2657_v36 = vadd.f32 %v9517_v52, %v2585_v24  ;;  %v2544_v61 = vadd.f32 %v2543_v29, %v2515_v8  ;;  %v13013_v29 = vld [vmem:[#allocation57_spill] sm:$0xff]  ;;  %13017 = vst [vmem:[#allocation30_spill] sm:$0xff] %v9660_v18  ;;  %v13018_v21 = vld [vmem:[#allocation10_spill] sm:$0xff] }
 0x3a2   : > { %v2521_v15 = vpop.f32.mrf.mxu1  ;;  %v1354_v24 = vadd.f32 %v13018_v21, %v1325_v56  ;;  %2856 = vst.msk [vmem:[#allocation2 + $0x24] sm:$0xf] %vm2852_vm3, %v13022_v41 }
 0x3a3   : > { %v2681_v9 = vmax.f32 %v2657_v36, 0.0  ;;  %v2565_v57 = vadd.f32 %v2544_v61, %v9378_v3  ;;  %v2830_v26 = vmul.f32 %v9511_v33, %v2803_v51  ;;  %v2831_v55 = vmul.f32 %v9513_v30, %v2804_v16  ;;  %v13020_v61 = vld [vmem:[#allocation45_spill] sm:$0xff]  ;;  %2857 = vst.msk [vmem:[#allocation2 + $0x30] sm:$0xf] %vm2852_vm3, %v13022_v41 }
 0x3a4   : > { %v1886_v51 = vadd.f32 %v13019_v39, %v1354_v24  ;;  %2858 = vst.msk [vmem:[#allocation2 + $0x3c] sm:$0xf] %vm2852_vm3, %v13022_v41 }
 0x3a5   : > { %v2753_v32 = vadd.f32 %v9645_v27, %v2681_v9  ;;  %v2637_v42 = vadd.f32 %v13013_v29, %v2565_v57  ;;  %v2848_v6 = vpack.c.bf16 %v2831_v55, %v2830_v26  ;;  %v13021_v57 = vld [vmem:[#allocation43_spill] sm:$0xff]  ;;  %v13023_v29 = vld [vmem:[#allocation44_spill] sm:$0xff]  ;;  %2859 = vst.msk [vmem:[#allocation2 + $0x48] sm:$0xf] %vm2852_vm3, %v13022_v41 }
 0x3a6   : > { %v2487_v0 = vpop.f32.mrf.mxu0  ;;  %v1915_v26 = vadd.f32 %v13021_v57, %v1886_v51  ;;  %2860 = vst.msk [vmem:[#allocation2 + $0x54] sm:$0xf] %vm2852_vm3, %v13022_v41 }
 0x3a7   : > { %v2769_v38 = vpack.c.bf16 %v2753_v32, %v2752_v28  ;;  %v2661_v3 = vmax.f32 %v2637_v42, 0.0  ;;  %v2517_v46 = vadd.f32 %v2516_v60, %v2487_v0  ;;  %3104 = vrot.lane.b32.xlu1 %v2848_v6, %s7282_s17  ;;  %3003 = vrot.lane.b32.xlu0 %v2848_v6, %s7283_s18  ;;  %4674 = vst.msk [vmem:[#allocation3] sm:$0xf] %vm2852_vm3, %v13022_v41 }
 0x3a8   : > { %2901 = vrot.lane.b32.xlu2 %v2848_v6, %s7284_s19  ;;  %v1944_v42 = vadd.f32 %v13023_v29, %v1915_v26  ;;  %4675 = vst.msk [vmem:[#allocation3 + $0x10] sm:$0xf] %vm2852_vm3, %v13022_v41 }
 0x3a9   : > { %v2733_v10 = vadd.f32 %v9502_v5, %v2661_v3  ;;  %v2546_v53 = vadd.f32 %v2545_v31, %v2517_v46  ;;  %v2806_v62 = vunpack.c.l.bf16 %v2769_v38  ;;  %v2807_v35 = vunpack.c.h.bf16 %v2769_v38  ;;  %v2550_v31 = vpop.f32.mrf.mxu2  ;;  %v13024_v3 = vld [vmem:[#allocation26_spill] sm:$0xff]  ;;  %v13025_v46 = vld [vmem:[#allocation33_spill] sm:$0xff]  ;;  %4676 = vst.msk [vmem:[#allocation3 + $0x20] sm:$0xf] %vm2852_vm3, %v13022_v41 }
 0x3aa   : > { %v2524_v32 = vpop.f32.mrf.mxu1  ;;  %v1330_v48 = vadd.f32 %v13025_v46, %v13024_v3  ;;  %4677 = vst.msk [vmem:[#allocation3 + $0x30] sm:$0xf] %vm2852_vm3, %v13022_v41 }
 0x3ab   : > { %v2756_v47 = vpack.c.bf16 %v2733_v10, %v2733_v10  ;;  %v2568_v54 = vadd.f32 %v2546_v53, %v1939_v19  ;;  %v2833_v60 = vmul.f32 %v9511_v33, %v2806_v62  ;;  %v2834_v63 = vmul.f32 %v9513_v30, %v2807_v35  ;;  %v13026_v35 = vld [vmem:[#allocation13_spill] sm:$0xff]  ;;  %4678 = vst.msk [vmem:[#allocation3 + $0x40] sm:$0xf] %vm2852_vm3, %v13022_v41 }
 0x3ac   : > { %v1359_v22 = vadd.f32 %v13026_v35, %v1330_v48  ;;  %4679 = vst.msk [vmem:[#allocation3 + $0x50] sm:$0xf] %vm2852_vm3, %v13022_v41  ;;  %v7188_v30 = vld [vmem:[%s12598_s4 + $0x54] sm:$0xf] }
 0x3ad   : > { %v2640_v37 = vadd.f32 %v9469_v44, %v2568_v54  ;;  %v2850_v25 = vpack.c.bf16 %v2834_v63, %v2833_v60  ;;  %v2787_v14 = vunpack.c.l.bf16 %v2756_v47  ;;  %v13027_v47 = vld [vmem:[#allocation49_spill] sm:$0xff]  ;;  %4680 = vst.msk [vmem:[#allocation3 + $0x60] sm:$0xf] %vm2852_vm3, %v13022_v41 }
 0x3ae   : > { %v2490_v5 = vpop.f32.mrf.mxu0  ;;  %v1891_v54 = vadd.f32 %v13027_v47, %v1359_v22  ;;  %4681 = vst.msk [vmem:[#allocation3 + $0x70] sm:$0xf] %vm2852_vm3, %v13022_v41  ;;  %vm3172_vm3 = vcmask 568728  }
 0x3af   : > { %v2664_v8 = vmax.f32 %v2640_v37, 0.0  ;;  %v2520_v34 = vadd.f32 %v2519_v59, %v2490_v5  ;;  %2905 = vrot.lane.b32.xlu1 %v2850_v25, %s7284_s19  ;;  %3108 = vrot.lane.b32.xlu0 %v2850_v25, %s7282_s17  ;;  %v2814_v36 = vmul.f32 %v9660_v18, %v2787_v14  ;;  %v13028_v14 = vld [vmem:[#allocation47_spill] sm:$0xff]  ;;  %2972 = vst.msk [vmem:[#allocation2 + $0x6c] sm:$0xf] %vm2970_vm4, %v13022_v41 }
 0x3b0   : > { %3007 = vrot.lane.b32.xlu2 %v2850_v25, %s7283_s18  ;;  %2971 = vst.msk [vmem:[#allocation2 + $0x60] sm:$0xf] %vm2970_vm4, %v13022_v41 }
 0x3b1   : > { %v2736_v44 = vadd.f32 %v9528_v20, %v2664_v8  ;;  %v2549_v16 = vadd.f32 %v2548_v4, %v2520_v34  ;;  %v2837_v55 = vpack.c.bf16 %v2814_v36, %v2814_v36  ;;  %2973 = vst.msk [vmem:[#allocation2 + $0x78] sm:$0xf] %vm2970_vm4, %v13022_v41 }
 0x3b2   : > { %2974 = vst.msk [vmem:[#allocation2 + $0x84] sm:$0xf] %vm2970_vm4, %v13022_v41 }
 0x3b3   : > { %v2571_v40 = vadd.f32 %v2549_v16, %v13020_v61  ;;  %v2758_v9 = vpack.c.bf16 %v2736_v44, %v2736_v44  ;;  %2975 = vst.msk [vmem:[#allocation2 + $0x90] sm:$0xf] %vm2970_vm4, %v13022_v41 }
 0x3b4   : > { %2976 = vst.msk [vmem:[#allocation2 + $0x9c] sm:$0xf] %vm2970_vm4, %v13022_v41 }
 0x3b5   : > { %v2643_v59 = vadd.f32 %v9475_v2, %v2571_v40  ;;  %v2790_v11 = vunpack.c.l.bf16 %v2758_v9  ;;  %v2553_v2 = vpop.f32.mrf.mxu2  ;;  %v13031_v40 = vld [vmem:[#allocation29_spill] sm:$0xff]  ;;  %v13032_v9 = vld [vmem:[#allocation39_spill] sm:$0xff]  ;;  %2977 = vst.msk [vmem:[#allocation2 + $0xa8] sm:$0xf] %vm2970_vm4, %v13022_v41 }
 0x3b6   : > { %v2492_v28 = vpop.f32.mrf.mxu0  ;;  %v1335_v57 = vadd.f32 %v13032_v9, %v13031_v40  ;;  %2978 = vst.msk [vmem:[#allocation2 + $0xb4] sm:$0xf] %vm2970_vm4, %v13022_v41 }
 0x3b7   : > { %v2667_v20 = vmax.f32 %v2643_v59, 0.0  ;;  %v2522_v4 = vadd.f32 %v2521_v15, %v2492_v28  ;;  %2981 = vrot.lane.b32.xlu1 %v2837_v55, %s7283_s18  ;;  %2879 = vrot.lane.b32.xlu0 %v2837_v55, %s7284_s19  ;;  %v2817_v38 = vmul.f32 %v9660_v18, %v2790_v11  ;;  %4786 = vst.msk [vmem:[#allocation3 + $0x80] sm:$0xf] %vm2970_vm4, %v13022_v41 }
 0x3b8   : > { %3082 = vrot.lane.b32.xlu2 %v2837_v55, %s7282_s17  ;;  %4787 = vst.msk [vmem:[#allocation3 + $0x90] sm:$0xf] %vm2970_vm4, %v13022_v41 }
 0x3b9   : > { %v2739_v6 = vadd.f32 %v9543_v1, %v2667_v20  ;;  %v2551_v0 = vadd.f32 %v2550_v31, %v2522_v4  ;;  %v2839_v53 = vpack.c.bf16 %v2817_v38, %v2817_v38  ;;  %v13033_v20 = vld [vmem:[#allocation17_spill] sm:$0xff]  ;;  %4788 = vst.msk [vmem:[#allocation3 + $0xa0] sm:$0xf] %vm2970_vm4, %v13022_v41 }
 0x3ba   : > { %v1364_v4 = vadd.f32 %v13033_v20, %v1335_v57  ;;  %4789 = vst.msk [vmem:[#allocation3 + $0xb0] sm:$0xf] %vm2970_vm4, %v13022_v41 }
 0x3bb   : > { %v2760_v19 = vpack.c.bf16 %v2739_v6, %v2739_v6  ;;  %v2574_v50 = vadd.f32 %v2551_v0, %v1944_v42  ;;  %v13034_v6 = vld [vmem:[#allocation52_spill] sm:$0xff]  ;;  %4790 = vst.msk [vmem:[#allocation3 + $0xc0] sm:$0xf] %vm2970_vm4, %v13022_v41 }
 0x3bc   : > { %v1896_v0 = vadd.f32 %v13034_v6, %v1364_v4  ;;  %4791 = vst.msk [vmem:[#allocation3 + $0xd0] sm:$0xf] %vm2970_vm4, %v13022_v41 }
 0x3bd   : > { %v2793_v1 = vunpack.c.l.bf16 %v2760_v19  ;;  %v2646_v10 = vadd.f32 %v9481_v13, %v2574_v50  ;;  %v2526_v13 = vpop.f32.mrf.mxu1  ;;  %v2555_v37 = vpop.f32.mrf.mxu2  ;;  %v13035_v19 = vld [vmem:[#allocation51_spill] sm:$0xff]  ;;  %4792 = vst.msk [vmem:[#allocation3 + $0xe0] sm:$0xf] %vm2970_vm4, %v13022_v41 }
 0x3be   : > { %v2495_v62 = vpop.f32.mrf.mxu0  ;;  %4793 = vst.msk [vmem:[#allocation3 + $0xf0] sm:$0xf] %vm2970_vm4, %v13022_v41  ;;  %vm2954_vm4 = vcmask 707584  }
 0x3bf   : > { %v2670_v17 = vmax.f32 %v2646_v10, 0.0  ;;  %v2525_v56 = vadd.f32 %v2524_v32, %v2495_v62  ;;  %3086 = vrot.lane.b32.xlu1 %v2839_v53, %s7282_s17  ;;  %2985 = vrot.lane.b32.xlu0 %v2839_v53, %s7283_s18  ;;  %v2820_v15 = vmul.f32 %v9660_v18, %v2793_v1  ;;  %v13036_v1 = vmov 0  ;;  %v13039_v10 = vld [vmem:[#allocation55_spill] sm:$0xff] }
 0x3c0   : > { %2883 = vrot.lane.b32.xlu2 %v2839_v53, %s7284_s19  ;;  %v13037_v1 = vsel %vm9771_vm8, 4294967295, %v13036_v1  ;;  %v1925_v53 = vadd.f32 %v13039_v10, %v1896_v0 }
 0x3c1   : > { %v2742_v60 = vadd.f32 %v9571_v12, %v2670_v17  ;;  %v2554_v63 = vadd.f32 %v2553_v2, %v2525_v56  ;;  %v13029_v12 = vld [vmem:[#allocation48_spill] sm:$0xff]  ;;  %v2841_v8 = vpack.c.bf16 %v2820_v15, %v2820_v15  ;;  %13038 = vst [vmem:[#allocation32_spill] sm:$0xff] %v13037_v1 }
 0x3c2   : > { %v1920_v31 = vadd.f32 %v13029_v12, %v1891_v54 }
 0x3c3   : > { %v2762_v25 = vpack.c.bf16 %v2742_v60, %v2742_v60  ;;  %v2577_v5 = vadd.f32 %v2554_v63, %v13028_v14 }
 0x3c5   : > { %v2796_v21 = vunpack.c.l.bf16 %v2762_v25  ;;  %v2649_v24 = vadd.f32 %v9491_v23, %v2577_v5  ;;  %v13030_v23 = vld [vmem:[#allocation50_spill] sm:$0xff]  ;;  %v2529_v26 = vpop.f32.mrf.mxu1  ;;  %v2558_v11 = vpop.f32.mrf.mxu2 }
 0x3c6   : > { %v2497_v34 = vpop.f32.mrf.mxu0  ;;  %v1949_v44 = vadd.f32 %v13030_v23, %v1920_v31  ;;  %v13041_v31 = vmov 0 }
 0x3c7   : > { %v2673_v39 = vmax.f32 %v2649_v24, 0.0  ;;  %v2527_v51 = vadd.f32 %v2526_v13, %v2497_v34  ;;  %2887 = vrot.lane.b32.xlu1 %v2841_v8, %s7284_s19  ;;  %3090 = vrot.lane.b32.xlu0 %v2841_v8, %s7282_s17  ;;  %v2823_v61 = vmul.f32 %v9660_v18, %v2796_v21  ;;  %v13042_v31 = vsel %vm9797_vm11, 4294967295, %v13041_v31 }
 0x3c8   : > { %2989 = vrot.lane.b32.xlu2 %v2841_v8, %s7283_s18  ;;  %13043 = vst [vmem:[#allocation7_spill] sm:$0xff] %v13042_v31 }
 0x3c9   : > { %v2745_v16 = vadd.f32 %v9591_v45, %v2673_v39  ;;  %v2556_v36 = vadd.f32 %v2555_v37, %v2527_v51  ;;  %v2843_v32 = vpack.c.bf16 %v2823_v61, %v2823_v61 }
 0x3cb   : > { %v2764_v59 = vpack.c.bf16 %v2745_v16, %v2745_v16  ;;  %v2580_v55 = vadd.f32 %v2556_v36, %v1949_v44  ;;  %v13044_v16 = vmov 0 }
 0x3cc   : > { %v13045_v16 = vsel %vm9817_vm14, 4294967295, %v13044_v16 }
 0x3cd   : > { %v2799_v45 = vunpack.c.l.bf16 %v2764_v59  ;;  %v2652_v28 = vadd.f32 %v9483_v58, %v2580_v55  ;;  %v2531_v62 = vpop.f32.mrf.mxu1  ;;  %v2560_v47 = vpop.f32.mrf.mxu2  ;;  %13046 = vst [vmem:[#allocation5_spill] sm:$0xff] %v13045_v16 }
 0x3ce   : > { %v2500_v2 = vpop.f32.mrf.mxu0 }
 0x3cf   : > { %v2676_v29 = vmax.f32 %v2652_v28, 0.0  ;;  %v2530_v42 = vadd.f32 %v2529_v26, %v2500_v2  ;;  %2993 = vrot.lane.b32.xlu1 %v2843_v32, %s7283_s18  ;;  %2891 = vrot.lane.b32.xlu0 %v2843_v32, %s7284_s19  ;;  %v2826_v3 = vmul.f32 %v9660_v18, %v2799_v45 }
 0x3d0   : > { %3094 = vrot.lane.b32.xlu2 %v2843_v32, %s7282_s17 }
 0x3d1   : > { %v2748_v58 = vadd.f32 %v9611_v7, %v2676_v29  ;;  %v2559_v38 = vadd.f32 %v2558_v11, %v2530_v42  ;;  %v2845_v56 = vpack.c.bf16 %v2826_v3, %v2826_v3 }
 0x3d2   : > { %v9765_v46 = vpop.permute.xlu2 %2877 }
 0x3d3   : > { %v2766_v48 = vpack.c.bf16 %v2748_v58, %v2748_v58  ;;  %v2583_v50 = vadd.f32 %v2559_v38, %v13035_v19  ;;  %v2909_v7 = vrot.slane %v9765_v46, 4 }
 0x3d5   : > { %v2802_v35 = vunpack.c.l.bf16 %v2766_v48  ;;  %v2655_v22 = vadd.f32 %v9500_v49, %v2583_v50  ;;  %v2918_v17 = vsel %vm2917_vm7, %v2909_v7, %v9765_v46  ;;  %v13040_v49 = vld [vmem:[#allocation53_spill] sm:$0xff] }
 0x3d6   : > { %2953 = vst.msk [vmem:[#allocation2] sm:$0xff] %vm9771_vm8, %v2918_v17  ;;  %v2502_v13 = vpop.f32.mrf.mxu0  ;;  %v1954_v63 = vadd.f32 %v13040_v49, %v1925_v53 }
 0x3d7   : > { %v2679_v54 = vmax.f32 %v2655_v22, 0.0  ;;  %v2532_v60 = vadd.f32 %v2531_v62, %v2502_v13  ;;  %3098 = vrot.lane.b32.xlu1 %v2845_v56, %s7282_s17  ;;  %2997 = vrot.lane.b32.xlu0 %v2845_v56, %s7283_s18  ;;  %v2829_v25 = vmul.f32 %v9660_v18, %v2802_v35 }
 0x3d8   : > { %2895 = vrot.lane.b32.xlu2 %v2845_v56, %s7284_s19 }
 0x3d9   : > { %v2751_v15 = vadd.f32 %v9626_v43, %v2679_v54  ;;  %v2561_v37 = vadd.f32 %v2560_v47, %v2532_v60  ;;  %v2847_v34 = vpack.c.bf16 %v2829_v25, %v2829_v25 }
 0x3da   : > { %v9794_v14 = vpop.permute.xlu2 %2983 }
 0x3db   : > { %v2768_v5 = vpack.c.bf16 %v2751_v15, %v2751_v15  ;;  %v2586_v12 = vadd.f32 %v2561_v37, %v1954_v63  ;;  %v3012_v21 = vrot.slane %v9794_v14, 4 }
 0x3dd   : > { %v2805_v24 = vunpack.c.l.bf16 %v2768_v5  ;;  %v2658_v8 = vadd.f32 %v9517_v52, %v2586_v12  ;;  %v3022_v43 = vsel %vm3019_vm10, %v3012_v21, %v9794_v14  ;;  %v7150_v22 = vld [vmem:[#allocation2 + $0x4] sm:$0xf]  ;;  %v6579_v13 = vld [vmem:[#allocation2] sm:$0xf] }
 0x3de   : > { %3057 = vst.msk [vmem:[#allocation2 + $0x6c] sm:$0xff] %vm9797_vm11, %v3022_v43 }
 0x3df   : > { %v2682_v39 = vmax.f32 %v2658_v8, 0.0  ;;  %2899 = vrot.lane.b32.xlu1 %v2847_v34, %s7284_s19  ;;  %3102 = vrot.lane.b32.xlu0 %v2847_v34, %s7282_s17  ;;  %v2832_v52 = vmul.f32 %v9660_v18, %v2805_v24 }
 0x3e0   : > { %3001 = vrot.lane.b32.xlu2 %v2847_v34, %s7283_s18 }
 0x3e1   : > { %v2754_v51 = vadd.f32 %v9645_v27, %v2682_v39  ;;  %v2849_v27 = vpack.c.bf16 %v2832_v52, %v2832_v52 }
 0x3e2   : > { %v9814_v23 = vpop.permute.xlu2 %3088 }
 0x3e3   : > { %v2770_v44 = vpack.c.bf16 %v2754_v51, %v2754_v51  ;;  %v3114_v36 = vrot.slane %v9814_v23, 4 }
 0x3e5   : > { %v2808_v61 = vunpack.c.l.bf16 %v2770_v44  ;;  %v3125_v40 = vsel %vm3120_vm13, %v3114_v36, %v9814_v23  ;;  %v7163_v39 = vld [vmem:[#allocation2 + $0x68] sm:$0xf0]  ;;  %v6629_v51 = vld [vmem:[#allocation2 + $0x6c] sm:$0xf0] }
 0x3e6   : > { %3160 = vst.msk [vmem:[#allocation2 + $0xd8] sm:$0xff] %vm9817_vm14, %v3125_v40 }
 0x3e7   : > { %3005 = vrot.lane.b32.xlu1 %v2849_v27, %s7283_s18  ;;  %2903 = vrot.lane.b32.xlu0 %v2849_v27, %s7284_s19  ;;  %v2835_v57 = vmul.f32 %v9660_v18, %v2808_v61 }
 0x3e8   : > { %3106 = vrot.lane.b32.xlu2 %v2849_v27, %s7282_s17 }
 0x3e9   : > { %v9831_v9 = vpop.permute.xlu1 %3080  ;;  %v9837_v55 = vpop.permute.xlu0 %2979  ;;  %v2851_v4 = vpack.c.bf16 %v2835_v57, %v2835_v57 }
 0x3ea   : > { %v3112_v26 = vrot.slane %v9831_v9, 4  ;;  %v9835_v59 = vpop.permute.xlu2 %2889  ;;  %v3011_v45 = vrot.slane %v9837_v55, 4 }
 0x3eb   : > { %v2912_v11 = vrot.slane %v9835_v59, 4 }
 0x3ec   : > { %v3121_v28 = vsel %vm3120_vm13, %v3112_v26, %v9831_v9  ;;  %v3020_v20 = vsel %vm3019_vm10, %v3011_v45, %v9837_v55 }
 0x3ed   : > { %3155 = vst.msk [vmem:[#allocation2 + $0xc0] sm:$0xff] %vm9817_vm14, %v3121_v28  ;;  %v2924_v32 = vsel %vm2917_vm7, %v2912_v11, %v9835_v59 }
 0x3ee   : > { %2960 = vst.msk [vmem:[#allocation2 + $0x24] sm:$0xff] %vm9771_vm8, %v2924_v32 }
 0x3ef   : > { %3054 = vst.msk [vmem:[#allocation2 + $0x60] sm:$0xff] %vm9797_vm11, %v3020_v20  ;;  %3110 = vrot.lane.b32.xlu1 %v2851_v4, %s7282_s17  ;;  %3009 = vrot.lane.b32.xlu0 %v2851_v4, %s7283_s18 }
 0x3f0   : > { %2907 = vrot.lane.b32.xlu2 %v2851_v4, %s7284_s19 }
 0x3f1   : > { %v9862_v2 = vpop.permute.xlu1 %2881  ;;  %v9867_v6 = vpop.permute.xlu0 %3084 }
 0x3f2   : > { %v2910_v29 = vrot.slane %v9862_v2, 4  ;;  %v9865_v42 = vpop.permute.xlu2 %2995  ;;  %v3113_v58 = vrot.slane %v9867_v6, 4 }
 0x3f3   : > { %v3015_v0 = vrot.slane %v9865_v42, 4 }
 0x3f4   : > { %v2920_v38 = vsel %vm2917_vm7, %v2910_v29, %v9862_v2  ;;  %v3123_v48 = vsel %vm3120_vm13, %v3113_v58, %v9867_v6 }
 0x3f5   : > { %2956 = vst.msk [vmem:[#allocation2 + $0xc] sm:$0xff] %vm9771_vm8, %v2920_v38  ;;  %v3028_v3 = vsel %vm3019_vm10, %v3015_v0, %v9865_v42 }
 0x3f6   : > { %3063 = vst.msk [vmem:[#allocation2 + $0x90] sm:$0xff] %vm9797_vm11, %v3028_v3  ;;  %v6627_v12 = vld [vmem:[#allocation2 + $0x60] sm:$0xf]  ;;  %v7162_v24 = vld [vmem:[#allocation2 + $0x64] sm:$0xf] }
 0x3f7   : > { %3158 = vst.msk [vmem:[#allocation2 + $0xcc] sm:$0xff] %vm9817_vm14, %v3123_v48  ;;  %v9947_v61 = vor.u32 %v7163_v39, %v6627_v12  ;;  %v9949_v40 = vor.u32 %v7162_v24, %v6629_v51 }
 0x3f9   : > { %v9889_v19 = vpop.permute.xlu1 %2987  ;;  %v9894_v53 = vpop.permute.xlu0 %2885 }
 0x3fa   : > { %v3013_v50 = vrot.slane %v9889_v19, 4  ;;  %v9892_v10 = vpop.permute.xlu2 %3100  ;;  %v2911_v35 = vrot.slane %v9894_v53, 4 }
 0x3fb   : > { %v12716_v62 = vrot.slane %v9892_v10, 4 }
 0x3fc   : > { %v3024_v17 = vsel %vm3019_vm10, %v3013_v50, %v9889_v19  ;;  %v6581_v56 = vld [vmem:[#allocation2 + $0xc] sm:$0xf0]  ;;  %v7151_v47 = vld [vmem:[#allocation2 + $0x8] sm:$0xf0]  ;;  %v2922_v60 = vsel %vm2917_vm7, %v2911_v35, %v9894_v53 }
 0x3fd   : > { %3059 = vst.msk [vmem:[#allocation2 + $0x78] sm:$0xff] %vm9797_vm11, %v3024_v17  ;;  %v3131_v54 = vsel %vm3120_vm13, %v12716_v62, %v9892_v10  ;;  %v9912_v49 = vor.u32 %v7150_v22, %v6581_v56  ;;  %v9914_v63 = vor.u32 %v7151_v47, %v6579_v13  ;;  %v6675_v22 = vld [vmem:[#allocation2 + $0xc0] sm:$0xf]  ;;  %v6593_v17 = vld [vmem:[#allocation2 + $0x24] sm:$0xf0] }
 0x3fe   : > { %3166 = vst.msk [vmem:[#allocation2 + $0xfc] sm:$0xff] %vm9817_vm14, %v3131_v54  ;;  %v7175_v20 = vld [vmem:[#allocation2 + $0xc8] sm:$0xf0] }
 0x3ff   : > { %2958 = vst.msk [vmem:[#allocation2 + $0x18] sm:$0xff] %vm9771_vm8, %v2922_v60  ;;  %3440 = vrot.lane.b32.xlu0 %v9912_v49, %s7278_s15  ;;  %3438 = vrot.lane.b32.xlu2 %v9914_v63, %s7278_s15  ;;  %v9982_v47 = vor.u32 %v7175_v20, %v6675_v22 }
 0x401   : > { %v9924_v15 = vpop.permute.xlu1 %3092  ;;  %v9929_v5 = vpop.permute.xlu0 %2991 }
 0x402   : > { %v3115_v37 = vrot.slane %v9924_v15, 4  ;;  %v9927_v25 = vpop.permute.xlu2 %2901  ;;  %v3014_v43 = vrot.slane %v9929_v5, 4 }
 0x403   : > { %v12713_v8 = vrot.slane %v9927_v25, 4 }
 0x404   : > { %v3127_v34 = vsel %vm3120_vm13, %v3115_v37, %v9924_v15  ;;  %v3026_v44 = vsel %vm3019_vm10, %v3014_v43, %v9929_v5 }
 0x405   : > { %3162 = vst.msk [vmem:[#allocation2 + $0xe4] sm:$0xff] %vm9817_vm14, %v3127_v34  ;;  %v2930_v52 = vsel %vm2917_vm7, %v12713_v8, %v9927_v25 }
 0x406   : > { %2966 = vst.msk [vmem:[#allocation2 + $0x48] sm:$0xff] %vm9771_vm8, %v2930_v52  ;;  %v7153_v4 = vld [vmem:[#allocation2 + $0x1c] sm:$0xf]  ;;  %v6591_v39 = vld [vmem:[#allocation2 + $0x18] sm:$0xf] }
 0x407   : > { %3061 = vst.msk [vmem:[#allocation2 + $0x84] sm:$0xff] %vm9797_vm11, %v3026_v44  ;;  %3462 = vrot.lane.b32.xlu2 %v9947_v61, %s7278_s15  ;;  %3464 = vrot.lane.b32.xlu0 %v9949_v40, %s7278_s15  ;;  %v9984_v54 = vor.u32 %v7153_v4, %v6593_v17  ;;  %v7154_v4 = vld [vmem:[#allocation2 + $0x20] sm:$0xf0] }
 0x409   : > { %v9959_v27 = vpop.permute.xlu1 %2893  ;;  %v9964_v32 = vpop.permute.xlu0 %3096 }
 0x40a   : > { %v2913_v57 = vrot.slane %v9959_v27, 4  ;;  %v9962_v28 = vpop.permute.xlu2 %3007  ;;  %v3116_v3 = vrot.slane %v9964_v32, 4 }
 0x40b   : > { %v12712_v38 = vrot.slane %v9962_v28, 4 }
 0x40c   : > { %v2926_v48 = vsel %vm2917_vm7, %v2913_v57, %v9959_v27  ;;  %v3129_v13 = vsel %vm3120_vm13, %v3116_v3, %v9964_v32  ;;  %v7181_v32 = vld [vmem:[#allocation2 + $0xf8] sm:$0xf0] }
 0x40d   : > { %2962 = vst.msk [vmem:[#allocation2 + $0x30] sm:$0xff] %vm9771_vm8, %v2926_v48  ;;  %v3034_v56 = vsel %vm3019_vm10, %v12712_v38, %v9962_v28  ;;  %v7165_v48 = vld [vmem:[#allocation2 + $0x7c] sm:$0xf]  ;;  %v7159_v55 = vld [vmem:[#allocation2 + $0x4c] sm:$0xf] }
 0x40e   : > { %3069 = vst.msk [vmem:[#allocation2 + $0xb4] sm:$0xff] %vm9797_vm11, %v3034_v56  ;;  %v6641_v51 = vld [vmem:[#allocation2 + $0x84] sm:$0xf0] }
 0x40f   : > { %3164 = vst.msk [vmem:[#allocation2 + $0xf0] sm:$0xff] %vm9817_vm14, %v3129_v13  ;;  %3486 = vrot.lane.b32.xlu2 %v9982_v47, %s7278_s15  ;;  %3446 = vrot.lane.b32.xlu0 %v9984_v54, %s7278_s15  ;;  %v10016_v22 = vor.u32 %v7165_v48, %v6641_v51 }
 0x411   : > { %v9994_v60 = vpop.permute.xlu1 %2999  ;;  %v9997_v34 = vpop.permute.xlu0 %2897 }
 0x412   : > { %v3016_v12 = vrot.slane %v9994_v60, 4  ;;  %v3083_v24 = vpop.permute.xlu2 %3082  ;;  %v12717_v44 = vrot.slane %v9997_v34, 4 }
 0x413   : > { %v3122_v52 = vsel %vm3120_vm13, %v3112_v26, %v3083_v24  ;;  %v10014_v26 = vor.u32 %v7154_v4, %v6591_v39  ;;  %v7166_v39 = vld [vmem:[#allocation2 + $0x80] sm:$0xf0]  ;;  %v6639_v4 = vld [vmem:[#allocation2 + $0x78] sm:$0xf] }
 0x414   : > { %v3030_v20 = vsel %vm3019_vm10, %v3016_v12, %v9994_v60  ;;  %3157 = vst.msk [vmem:[#allocation2 + $0xc8] sm:$0xf] %vm3156_vm15, %v3122_v52  ;;  %v2928_v9 = vsel %vm2917_vm7, %v12717_v44, %v9997_v34  ;;  %v10046_v48 = vor.u32 %v7166_v39, %v6639_v4  ;;  %v6651_v44 = vld [vmem:[#allocation2 + $0x90] sm:$0xf] }
 0x415   : > { %3065 = vst.msk [vmem:[#allocation2 + $0x9c] sm:$0xff] %vm9797_vm11, %v3030_v20 }
 0x416   : > { %3173 = vst.msk [vmem:[#allocation2 + $0xc8] sm:$0xf] %vm3172_vm3, %v13022_v41 }
 0x417   : > { %2964 = vst.msk [vmem:[#allocation2 + $0x3c] sm:$0xff] %vm9771_vm8, %v2928_v9  ;;  %3444 = vrot.lane.b32.xlu2 %v10014_v26, %s7278_s15  ;;  %3470 = vrot.lane.b32.xlu0 %v10016_v22, %s7278_s15 }
 0x419   : > { %v10026_v17 = vpop.permute.xlu1 %3104  ;;  %v10029_v24 = vpop.permute.xlu0 %3003 }
 0x41a   : > { %v3118_v56 = vrot.slane %v10026_v17, 4  ;;  %v2884_v13 = vpop.permute.xlu2 %2883  ;;  %v12714_v52 = vrot.slane %v10029_v24, 4 }
 0x41b   : > { %v2921_v51 = vsel %vm2917_vm7, %v2910_v29, %v2884_v13  ;;  %v7156_v29 = vld [vmem:[#allocation2 + $0x34] sm:$0xf] }
 0x41c   : > { %v3133_v20 = vsel %vm3120_vm13, %v3118_v56, %v10026_v17  ;;  %2957 = vst.msk [vmem:[#allocation2 + $0x14] sm:$0xf] %vm2954_vm4, %v2921_v51  ;;  %v3032_v2 = vsel %vm3019_vm10, %v12714_v52, %v10029_v24  ;;  %v6653_v52 = vld [vmem:[#allocation2 + $0x9c] sm:$0xf0]  ;;  %v7169_v62 = vld [vmem:[#allocation2 + $0x98] sm:$0xf0] }
 0x41d   : > { %3168 = vst.msk [vmem:[#allocation2 + $0x108] sm:$0xff] %vm9817_vm14, %v3133_v20  ;;  %v7177_v17 = vld [vmem:[#allocation2 + $0xdc] sm:$0xf] }
 0x41e   : > { %3067 = vst.msk [vmem:[#allocation2 + $0xa8] sm:$0xff] %vm9797_vm11, %v3032_v2  ;;  %v6605_v9 = vld [vmem:[#allocation2 + $0x3c] sm:$0xf0]  ;;  %v7157_v38 = vld [vmem:[#allocation2 + $0x38] sm:$0xf0] }
 0x41f   : > { %3468 = vrot.lane.b32.xlu2 %v10046_v48, %s7278_s15  ;;  %v10052_v13 = vor.u32 %v7156_v29, %v6605_v9  ;;  %v6603_v9 = vld [vmem:[#allocation2 + $0x30] sm:$0xf] }
 0x421   : > { %3452 = vrot.lane.b32.xlu0 %v10052_v13, %s7278_s15  ;;  %v10056_v51 = vpop.permute.xlu1 %2905  ;;  %v10059_v4 = vpop.permute.xlu0 %3108 }
 0x422   : > { %v2916_v20 = vrot.slane %v10056_v51, 4  ;;  %v2990_v39 = vpop.permute.xlu2 %2989  ;;  %v12715_v8 = vrot.slane %v10059_v4, 4 }
 0x423   : > { %v3025_v2 = vsel %vm3019_vm10, %v3013_v50, %v2990_v39  ;;  %v10076_v50 = vor.u32 %v7157_v38, %v6603_v9  ;;  %v7168_v39 = vld [vmem:[#allocation2 + $0x94] sm:$0xf] }
 0x424   : > { %v2932_v29 = vsel %vm2917_vm7, %v2916_v20, %v10056_v51  ;;  %3060 = vst.msk [vmem:[#allocation2 + $0x80] sm:$0xf] %vm3055_vm5, %v3025_v2  ;;  %v3135_v19 = vsel %vm3120_vm13, %v12715_v8, %v10059_v4  ;;  %v10084_v2 = vor.u32 %v7168_v39, %v6653_v52  ;;  %v7152_v27 = vld [vmem:[#allocation2 + $0x10] sm:$0xf0]  ;;  %v6701_v51 = vld [vmem:[#allocation2 + $0xfc] sm:$0xf0] }
 0x425   : > { %2968 = vst.msk [vmem:[#allocation2 + $0x54] sm:$0xff] %vm9771_vm8, %v2932_v29  ;;  %v7171_v6 = vld [vmem:[#allocation2 + $0xac] sm:$0xf] }
 0x426   : > { %3074 = vst.msk [vmem:[#allocation2 + $0x80] sm:$0xf] %vm3071_vm6, %v13022_v41 }
 0x427   : > { %3170 = vst.msk [vmem:[#allocation2 + $0x114] sm:$0xff] %vm9817_vm14, %v3135_v19  ;;  %3450 = vrot.lane.b32.xlu2 %v10076_v50, %s7278_s15 }
 0x429   : > { %3476 = vrot.lane.b32.xlu0 %v10084_v2, %s7278_s15  ;;  %v2982_v29 = vpop.permute.xlu1 %2981  ;;  %v2880_v8 = vpop.permute.xlu0 %2879 }
 0x42a   : > { %v3021_v38 = vsel %vm3019_vm10, %v3011_v45, %v2982_v29  ;;  %v3095_v9 = vpop.permute.xlu2 %3094  ;;  %v2919_v52 = vsel %vm2917_vm7, %v2909_v7, %v2880_v8  ;;  %v10101_v45 = vor.u32 %v7169_v62, %v6651_v44 }
 0x42b   : > { %3056 = vst.msk [vmem:[#allocation2 + $0x68] sm:$0xf] %vm3055_vm5, %v3021_v38  ;;  %v3128_v19 = vsel %vm3120_vm13, %v3115_v37, %v3095_v9  ;;  %v6615_v38 = vld [vmem:[#allocation2 + $0x48] sm:$0xf]  ;;  %v6665_v9 = vld [vmem:[#allocation2 + $0xb4] sm:$0xf0] }
 0x42c   : > { %3072 = vst.msk [vmem:[#allocation2 + $0x68] sm:$0xf] %vm3071_vm6, %v13022_v41  ;;  %v6617_v39 = vld [vmem:[#allocation2 + $0x54] sm:$0xf0]  ;;  %v7160_v37 = vld [vmem:[#allocation2 + $0x50] sm:$0xf0] }
 0x42d   : > { %3163 = vst.msk [vmem:[#allocation2 + $0xec] sm:$0xf] %vm3156_vm15, %v3128_v19  ;;  %v10103_v29 = vor.u32 %v7159_v55, %v6617_v39 }
 0x42e   : > { %3176 = vst.msk [vmem:[#allocation2 + $0xec] sm:$0xf] %vm3172_vm3, %v13022_v41 }
 0x42f   : > { %2955 = vst.msk [vmem:[#allocation2 + $0x8] sm:$0xf] %vm2954_vm4, %v2919_v52  ;;  %3474 = vrot.lane.b32.xlu2 %v10101_v45, %s7278_s15 }
 0x431   : > { %3458 = vrot.lane.b32.xlu0 %v10103_v29, %s7278_s15  ;;  %v3087_v46 = vpop.permute.xlu1 %3086  ;;  %v2986_v15 = vpop.permute.xlu0 %2985 }
 0x432   : > { %v3124_v7 = vsel %vm3120_vm13, %v3113_v58, %v3087_v46  ;;  %v2896_v62 = vpop.permute.xlu2 %2895  ;;  %v3023_v44 = vsel %vm3019_vm10, %v3012_v21, %v2986_v15  ;;  %v10125_v58 = vor.u32 %v7160_v37, %v6615_v38  ;;  %v10134_v21 = vor.u32 %v7171_v6, %v6665_v9  ;;  %v6663_v46 = vld [vmem:[#allocation2 + $0xa8] sm:$0xf]  ;;  %v7172_v15 = vld [vmem:[#allocation2 + $0xb0] sm:$0xf0]  ;;  %v6677_v37 = vld [vmem:[#allocation2 + $0xcc] sm:$0xf0] }
 0x433   : > { %3159 = vst.msk [vmem:[#allocation2 + $0xd4] sm:$0xf] %vm3156_vm15, %v3124_v7  ;;  %v2927_v8 = vsel %vm2917_vm7, %v2913_v57, %v2896_v62  ;;  %v10153_v53 = vor.u32 %v7172_v15, %v6663_v46  ;;  %v7178_v6 = vld [vmem:[#allocation2 + $0xe0] sm:$0xf0] }
 0x434   : > { %3174 = vst.msk [vmem:[#allocation2 + $0xd4] sm:$0xf] %vm3172_vm3, %v13022_v41 }
 0x435   : > { %2963 = vst.msk [vmem:[#allocation2 + $0x38] sm:$0xf] %vm2954_vm4, %v2927_v8 }
 0x436   : > { %3058 = vst.msk [vmem:[#allocation2 + $0x74] sm:$0xf] %vm3055_vm5, %v3023_v44  ;;  %v6587_v19 = vld [vmem:[#allocation2 + $0x8] sm:$0xf] }
 0x437   : > { %3073 = vst.msk [vmem:[#allocation2 + $0x74] sm:$0xf] %vm3071_vm6, %v13022_v41  ;;  %v10130_v14 = vor.u32 %v7152_v27, %v6587_v19  ;;  %3456 = vrot.lane.b32.xlu2 %v10125_v58, %s7278_s15  ;;  %v6635_v44 = vld [vmem:[#allocation2 + $0x68] sm:$0xf]  ;;  %v6687_v19 = vld [vmem:[#allocation2 + $0xd8] sm:$0xf] }
 0x439   : > { %3442 = vrot.lane.b32.xlu1 %v10130_v14, %s7278_s15  ;;  %3482 = vrot.lane.b32.xlu0 %v10134_v21, %s7278_s15  ;;  %v2888_v57 = vpop.permute.xlu1 %2887  ;;  %v3091_v39 = vpop.permute.xlu0 %3090 }
 0x43a   : > { %v2923_v52 = vsel %vm2917_vm7, %v2911_v35, %v2888_v57  ;;  %v3002_v55 = vpop.permute.xlu2 %3001  ;;  %v3126_v62 = vsel %vm3120_vm13, %v3114_v36, %v3091_v39  ;;  %v7174_v35 = vld [vmem:[#allocation2 + $0xc4] sm:$0xf]  ;;  %v10181_v57 = vor.u32 %v7178_v6, %v6687_v19  ;;  %v6683_v39 = vld [vmem:[#allocation2 + $0xc8] sm:$0xf]  ;;  %v7183_v19 = vld [vmem:[#allocation2 + $0x10c] sm:$0xf] }
 0x43b   : > { %2959 = vst.msk [vmem:[#allocation2 + $0x20] sm:$0xf] %vm2954_vm4, %v2923_v52  ;;  %v3031_v7 = vsel %vm3019_vm10, %v3016_v12, %v3002_v55  ;;  %v10160_v23 = vor.u32 %v7174_v35, %v6677_v37  ;;  %v7176_v46 = vld [vmem:[#allocation2 + $0xd0] sm:$0xf0] }
 0x43c   : > { %3066 = vst.msk [vmem:[#allocation2 + $0xa4] sm:$0xf] %vm3055_vm5, %v3031_v7  ;;  %v6699_v7 = vld [vmem:[#allocation2 + $0xf0] sm:$0xf]  ;;  %v10207_v37 = vor.u32 %v7176_v46, %v6683_v39  ;;  %v13050_v39 = vrot.slane %v9927_v25, 4  ;;  %v13051_v25 = vrot.slane %v10059_v4, 4 }
 0x43d   : > { %3077 = vst.msk [vmem:[#allocation2 + $0xa4] sm:$0xf] %vm3071_vm6, %v13022_v41  ;;  %v10209_v35 = vor.u32 %v7181_v32, %v6699_v7  ;;  %v6647_v32 = vld [vmem:[#allocation2 + $0x80] sm:$0xf] }
 0x43e   : > { %3161 = vst.msk [vmem:[#allocation2 + $0xe0] sm:$0xf] %vm3156_vm15, %v3126_v62  ;;  %v7164_v38 = vld [vmem:[#allocation2 + $0x70] sm:$0xf0] }
 0x43f   : > { %3175 = vst.msk [vmem:[#allocation2 + $0xe0] sm:$0xf] %vm3172_vm3, %v13022_v41  ;;  %3480 = vrot.lane.b32.xlu2 %v10153_v53, %s7278_s15  ;;  %v10179_v27 = vor.u32 %v7164_v38, %v6635_v44  ;;  %v6711_v38 = vld [vmem:[#allocation2 + $0x108] sm:$0xf] }
 0x441   : > { %3797 = vrot.lane.b32.xlu1 %v10130_v14, %s7279_s16  ;;  %3488 = vrot.lane.b32.xlu0 %v10160_v23, %s7278_s15  ;;  %v2994_v36 = vpop.permute.xlu1 %2993  ;;  %v2892_v8 = vpop.permute.xlu0 %2891 }
 0x442   : > { %v3027_v60 = vsel %vm3019_vm10, %v3014_v43, %v2994_v36  ;;  %v3107_v12 = vpop.permute.xlu2 %3106  ;;  %v2925_v5 = vsel %vm2917_vm7, %v2912_v11, %v2892_v8  ;;  %v6689_v43 = vld [vmem:[#allocation2 + $0xe4] sm:$0xf0]  ;;  %v13048_v8 = vrot.slane %v9892_v10, 4 }
 0x443   : > { %3062 = vst.msk [vmem:[#allocation2 + $0x8c] sm:$0xf] %vm3055_vm5, %v3027_v60  ;;  %v3134_v9 = vsel %vm3120_vm13, %v3118_v56, %v3107_v12  ;;  %v10188_v59 = vor.u32 %v7177_v17, %v6689_v43  ;;  %v7184_v12 = vld [vmem:[#allocation2 + $0x110] sm:$0xf0] }
 0x444   : > { %3075 = vst.msk [vmem:[#allocation2 + $0x8c] sm:$0xf] %vm3071_vm6, %v13022_v41 }
 0x445   : > { %3169 = vst.msk [vmem:[#allocation2 + $0x110] sm:$0xf] %vm3156_vm15, %v3134_v9  ;;  %v6713_v9 = vld [vmem:[#allocation2 + $0x114] sm:$0xf0] }
 0x446   : > { %3179 = vst.msk [vmem:[#allocation2 + $0x110] sm:$0xf] %vm3172_vm3, %v13022_v41  ;;  %v10238_v10 = vor.u32 %v7183_v19, %v6713_v9  ;;  %v6695_v4 = vld [vmem:[#allocation2 + $0xe0] sm:$0xf] }
 0x447   : > { %2961 = vst.msk [vmem:[#allocation2 + $0x2c] sm:$0xf] %vm2954_vm4, %v2925_v5  ;;  %3492 = vrot.lane.b32.xlu2 %v10181_v57, %s7278_s15  ;;  %v10232_v5 = vor.u32 %v7184_v12, %v6711_v38  ;;  %v6611_v38 = vld [vmem:[#allocation2 + $0x38] sm:$0xf] }
 0x449   : > { %3466 = vrot.lane.b32.xlu1 %v10179_v27, %s7278_s15  ;;  %3494 = vrot.lane.b32.xlu0 %v10188_v59, %s7278_s15  ;;  %v3099_v11 = vpop.permute.xlu1 %3098  ;;  %v2998_v55 = vpop.permute.xlu0 %2997 }
 0x44a   : > { %v3130_v56 = vsel %vm3120_vm13, %v3116_v3, %v3099_v11  ;;  %v2908_v52 = vpop.permute.xlu2 %2907  ;;  %v3029_v15 = vsel %vm3019_vm10, %v3015_v0, %v2998_v55  ;;  %v7180_v3 = vld [vmem:[#allocation2 + $0xf4] sm:$0xf] }
 0x44b   : > { %3165 = vst.msk [vmem:[#allocation2 + $0xf8] sm:$0xf] %vm3156_vm15, %v3130_v56  ;;  %v2933_v62 = vsel %vm2917_vm7, %v2916_v20, %v2908_v52  ;;  %v10216_v42 = vor.u32 %v7180_v3, %v6701_v51  ;;  %v13047_v20 = vrot.slane %v9997_v34, 4  ;;  %v6599_v34 = vld [vmem:[#allocation2 + $0x20] sm:$0xf]  ;;  %v13049_v56 = vrot.slane %v10029_v24, 4 }
 0x44c   : > { %3177 = vst.msk [vmem:[#allocation2 + $0xf8] sm:$0xf] %vm3172_vm3, %v13022_v41  ;;  %v7167_v3 = vld [vmem:[#allocation2 + $0x88] sm:$0xf0]  ;;  %v13052_v51 = vrot.slane %v9962_v28, 4 }
 0x44d   : > { %2969 = vst.msk [vmem:[#allocation2 + $0x5c] sm:$0xf] %vm2954_vm4, %v2933_v62 }
 0x44e   : > { %3064 = vst.msk [vmem:[#allocation2 + $0x98] sm:$0xf] %vm3055_vm5, %v3029_v15  ;;  %v7155_v6 = vld [vmem:[#allocation2 + $0x28] sm:$0xf0] }
 0x44f   : > { %3076 = vst.msk [vmem:[#allocation2 + $0x98] sm:$0xf] %vm3071_vm6, %v13022_v41  ;;  %3498 = vrot.lane.b32.xlu2 %v10209_v35, %s7278_s15  ;;  %v10234_v43 = vor.u32 %v7155_v6, %v6599_v34 }
 0x451   : > { %3490 = vrot.lane.b32.xlu1 %v10207_v37, %s7278_s15  ;;  %3500 = vrot.lane.b32.xlu0 %v10216_v42, %s7278_s15  ;;  %v2900_v0 = vpop.permute.xlu1 %2899  ;;  %v3103_v60 = vpop.permute.xlu0 %3102 }
 0x452   : > { %v2929_v36 = vsel %vm2917_vm7, %v13047_v20, %v2900_v0  ;;  %v3132_v44 = vsel %vm3120_vm13, %v13048_v8, %v3103_v60  ;;  %v10274_v20 = vor.u32 %v7167_v3, %v6647_v32 }
 0x453   : > { %2965 = vst.msk [vmem:[#allocation2 + $0x44] sm:$0xf] %vm2954_vm4, %v2929_v36  ;;  %v7179_v36 = vld [vmem:[#allocation2 + $0xe8] sm:$0xf0] }
 0x454   : > { %3167 = vst.msk [vmem:[#allocation2 + $0x104] sm:$0xf] %vm3156_vm15, %v3132_v44  ;;  %v10286_v60 = vor.u32 %v7179_v36, %v6695_v4 }
 0x455   : > { %3178 = vst.msk [vmem:[#allocation2 + $0x104] sm:$0xf] %vm3172_vm3, %v13022_v41 }
 0x457   : > { %3504 = vrot.lane.b32.xlu2 %v10232_v5, %s7278_s15 }
 0x459   : > { %3448 = vrot.lane.b32.xlu1 %v10234_v43, %s7278_s15  ;;  %3506 = vrot.lane.b32.xlu0 %v10238_v10, %s7278_s15  ;;  %v3006_v17 = vpop.permute.xlu1 %3005  ;;  %v10244_v11 = vpop.permute.xlu2 %3438 }
 0x45a   : > { %v3033_v52 = vsel %vm3019_vm10, %v13049_v56, %v3006_v17  ;;  %v2904_v55 = vpop.permute.xlu0 %2903  ;;  %v7158_v44 = vld [vmem:[#allocation2 + $0x40] sm:$0xf0]  ;;  %v6659_v56 = vld [vmem:[#allocation2 + $0x98] sm:$0xf] }
 0x45b   : > { %3068 = vst.msk [vmem:[#allocation2 + $0xb0] sm:$0xf] %vm3055_vm5, %v3033_v52  ;;  %v2931_v46 = vsel %vm2917_vm7, %v13050_v39, %v2904_v55  ;;  %v10298_v6 = vor.u32 %v7158_v44, %v6611_v38  ;;  %v7170_v52 = vld [vmem:[#allocation2 + $0xa0] sm:$0xf0] }
 0x45c   : > { %3078 = vst.msk [vmem:[#allocation2 + $0xb0] sm:$0xf] %vm3071_vm6, %v13022_v41  ;;  %v10318_v55 = vor.u32 %v7170_v52, %v6659_v56 }
 0x45d   : > { %2967 = vst.msk [vmem:[#allocation2 + $0x50] sm:$0xf] %vm2954_vm4, %v2931_v46 }
 0x45f   : > { %3793 = vrot.lane.b32.xlu2 %v9914_v63, %s7279_s16 }
 0x461   : > { %3803 = vrot.lane.b32.xlu1 %v10234_v43, %s7279_s16  ;;  %3795 = vrot.lane.b32.xlu0 %v9912_v49, %s7279_s16  ;;  %v3111_v24 = vpop.permute.xlu1 %3110  ;;  %v10262_v7 = vpop.permute.xlu2 %3462 }
 0x462   : > { %v3136_v62 = vsel %vm3120_vm13, %v13051_v25, %v3111_v24  ;;  %v3010_v15 = vpop.permute.xlu0 %3009  ;;  %v6707_v24 = vld [vmem:[#allocation2 + $0xf8] sm:$0xf]  ;;  %v7182_v25 = vld [vmem:[#allocation2 + $0x100] sm:$0xf0] }
 0x463   : > { %3171 = vst.msk [vmem:[#allocation2 + $0x11c] sm:$0xf] %vm3156_vm15, %v3136_v62  ;;  %v3035_v0 = vsel %vm3019_vm10, %v13052_v51, %v3010_v15  ;;  %v10328_v62 = vor.u32 %v7182_v25, %v6707_v24  ;;  %v7161_v51 = vld [vmem:[#allocation2 + $0x58] sm:$0xf0]  ;;  %v6671_v38 = vld [vmem:[#allocation2 + $0xb0] sm:$0xf] }
 0x464   : > { %3180 = vst.msk [vmem:[#allocation2 + $0x11c] sm:$0xf] %vm3172_vm3, %v13022_v41  ;;  %v6623_v3 = vld [vmem:[#allocation2 + $0x50] sm:$0xf] }
 0x465   : > { %3070 = vst.msk [vmem:[#allocation2 + $0xbc] sm:$0xf] %vm3055_vm5, %v3035_v0  ;;  %v10338_v0 = vor.u32 %v7161_v51, %v6623_v3  ;;  %v6719_v3 = vld [vmem:[#allocation2 + $0x110] sm:$0xf] }
 0x466   : > { %3079 = vst.msk [vmem:[#allocation2 + $0xbc] sm:$0xf] %vm3071_vm6, %v13022_v41 }
 0x467   : > { %3799 = vrot.lane.b32.xlu2 %v10014_v26, %s7279_s16 }
 0x469   : > { %3472 = vrot.lane.b32.xlu1 %v10274_v20, %s7278_s15  ;;  %3801 = vrot.lane.b32.xlu0 %v9984_v54, %s7279_s16  ;;  %v10284_v28 = vpop.permute.xlu2 %3486 }
 0x46b   : > { %v7185_v51 = vld [vmem:[#allocation2 + $0x118] sm:$0xf0] }
 0x46d   : > { %v7173_v56 = vld [vmem:[#allocation2 + $0xb8] sm:$0xf0] }
 0x46e   : > { %v10358_v24 = vor.u32 %v7173_v56, %v6671_v38  ;;  %v10372_v56 = vor.u32 %v7185_v51, %v6719_v3 }
 0x46f   : > { %3805 = vrot.lane.b32.xlu2 %v10076_v50, %s7279_s16 }
 0x471   : > { %3496 = vrot.lane.b32.xlu1 %v10286_v60, %s7278_s15  ;;  %3807 = vrot.lane.b32.xlu0 %v10052_v13, %s7279_s16  ;;  %v10294_v12 = vpop.permute.xlu2 %3444  ;;  %v10296_v8 = vpop.permute.xlu0 %3440 }
 0x477   : > { %3811 = vrot.lane.b32.xlu2 %v10125_v58, %s7279_s16 }
 0x479   : > { %3454 = vrot.lane.b32.xlu1 %v10298_v6, %s7278_s15  ;;  %3813 = vrot.lane.b32.xlu0 %v10103_v29, %s7279_s16  ;;  %v3469_v9 = vpop.permute.xlu2 %3468  ;;  %v10306_v34 = vpop.permute.xlu0 %3464 }
 0x47f   : > { %3817 = vrot.lane.b32.xlu2 %v9947_v61, %s7279_s16 }
 0x481   : > { %3809 = vrot.lane.b32.xlu1 %v10298_v6, %s7279_s16  ;;  %3819 = vrot.lane.b32.xlu0 %v9949_v40, %s7279_s16  ;;  %v10314_v19 = vpop.permute.xlu2 %3450  ;;  %v10316_v17 = vpop.permute.xlu0 %3446 }
 0x487   : > { %3823 = vrot.lane.b32.xlu2 %v10046_v48, %s7279_s16 }
 0x489   : > { %3478 = vrot.lane.b32.xlu1 %v10318_v55, %s7278_s15  ;;  %3825 = vrot.lane.b32.xlu0 %v10016_v22, %s7279_s16  ;;  %v3475_v39 = vpop.permute.xlu2 %3474  ;;  %v10326_v46 = vpop.permute.xlu0 %3470 }
 0x48a   : > { %v3520_v3 = vsel %vm984_vm0, %v3469_v9, %v10326_v46 }
 0x48f   : > { %3829 = vrot.lane.b32.xlu2 %v10101_v45, %s7279_s16 }
 0x491   : > { %3502 = vrot.lane.b32.xlu1 %v10328_v62, %s7278_s15  ;;  %3831 = vrot.lane.b32.xlu0 %v10084_v2, %s7279_s16  ;;  %v3457_v15 = vpop.permute.xlu2 %3456 }
 0x493   : > { %v10336_v32 = vpop.permute.xlu0 %3452 }
 0x497   : > { %3835 = vrot.lane.b32.xlu2 %v10153_v53, %s7279_s16 }
 0x499   : > { %3460 = vrot.lane.b32.xlu1 %v10338_v0, %s7278_s15  ;;  %3837 = vrot.lane.b32.xlu0 %v10134_v21, %s7279_s16  ;;  %v3481_v4 = vpop.permute.xlu2 %3480 }
 0x49b   : > { %v10346_v36 = vpop.permute.xlu0 %3476 }
 0x49c   : > { %v3522_v16 = vsel %vm984_vm0, %v3475_v39, %v10346_v36 }
 0x49f   : > { %3841 = vrot.lane.b32.xlu2 %v9982_v47, %s7279_s16 }
 0x4a1   : > { %3815 = vrot.lane.b32.xlu1 %v10338_v0, %s7279_s16  ;;  %3843 = vrot.lane.b32.xlu0 %v10160_v23, %s7279_s16  ;;  %v10354_v44 = vpop.permute.xlu2 %3492 }
 0x4a3   : > { %v10356_v52 = vpop.permute.xlu0 %3458 }
 0x4a7   : > { %3847 = vrot.lane.b32.xlu2 %v10181_v57, %s7279_s16 }
 0x4a9   : > { %3484 = vrot.lane.b32.xlu1 %v10358_v24, %s7278_s15  ;;  %3849 = vrot.lane.b32.xlu0 %v10188_v59, %s7279_s16  ;;  %v3499_v25 = vpop.permute.xlu2 %3498 }
 0x4ab   : > { %v10366_v41 = vpop.permute.xlu1 %3442  ;;  %v10368_v1 = vpop.permute.xlu0 %3482 }
 0x4ac   : > { %v3524_v38 = vsel %vm984_vm0, %v3481_v4, %v10368_v1 }
 0x4ad   : > { %3583 = vmatpush.bf16.msra.mxu3 %v3524_v38  ;;  %v3516_v38 = vsel %vm984_vm0, %v3457_v15, %v10356_v52 }
 0x4af   : > { %3853 = vrot.lane.b32.xlu2 %v10209_v35, %s7279_s16 }
 0x4b1   : > { %3508 = vrot.lane.b32.xlu1 %v10372_v56, %s7278_s15  ;;  %3855 = vrot.lane.b32.xlu0 %v10216_v42, %s7279_s16  ;;  %v3505_v31 = vpop.permute.xlu2 %3504 }
 0x4b2   : > { %3584 = vmatpush.bf16.msra.mxu3 %v3522_v16  ;;  %v3518_v16 = vsel %vm984_vm0, %v10262_v7, %v10306_v34  ;;  %v3514_v7 = vsel %vm984_vm0, %v10314_v19, %v10336_v32 }
 0x4b3   : > { %v10382_v18 = vpop.permute.xlu1 %3797  ;;  %v10384_v4 = vpop.permute.xlu0 %3488 }
 0x4b4   : > { %13053 = vst [vmem:[#allocation8_spill] sm:$0xff] %v10382_v18  ;;  %v6563_v18 = vld [vmem:[%s12598_s4 + $0x60] sm:$0xf] }
 0x4b6   : > { %3585 = vmatpush.bf16.msra.mxu3 %v3520_v3 }
 0x4b7   : > { %3859 = vrot.lane.b32.xlu2 %v10232_v5, %s7279_s16 }
 0x4b9   : > { %3821 = vrot.lane.b32.xlu1 %v10179_v27, %s7279_s16  ;;  %3861 = vrot.lane.b32.xlu0 %v10238_v10, %s7279_s16  ;;  %v10397_v39 = vpop.permute.xlu2 %3793 }
 0x4ba   : > { %3586 = vmatpush.bf16.msra.mxu3 %v3518_v16 }
 0x4bb   : > { %v10399_v51 = vpop.permute.xlu1 %3466  ;;  %v10401_v9 = vpop.permute.xlu0 %3494 }
 0x4be   : > { %3587 = vmatpush.bf16.msra.mxu3 %v3516_v38 }
 0x4bf   : > { %4156 = vrot.lane.b32.xlu2 %v9914_v63, %s7280_s12  ;;  %v3512_v63 = vsel %vm984_vm0, %v10294_v12, %v10316_v17 }
 0x4c1   : > { %3827 = vrot.lane.b32.xlu1 %v10274_v20, %s7279_s16  ;;  %4158 = vrot.lane.b32.xlu0 %v9912_v49, %s7280_s12  ;;  %v10414_v3 = vpop.permute.xlu2 %3799  ;;  %v3510_v49 = vsel %vm984_vm0, %v10244_v11, %v10296_v8 }
 0x4c2   : > { %3588 = vmatpush.bf16.msra.mxu3 %v3514_v7 }
 0x4c3   : > { %v10416_v16 = vpop.permute.xlu1 %3490  ;;  %v10418_v15 = vpop.permute.xlu0 %3500 }
 0x4c6   : > { %3589 = vmatpush.bf16.msra.mxu3 %v3512_v63 }
 0x4c7   : > { %4162 = vrot.lane.b32.xlu2 %v10014_v26, %s7280_s12 }
 0x4c9   : > { %3833 = vrot.lane.b32.xlu1 %v10318_v55, %s7279_s16  ;;  %4164 = vrot.lane.b32.xlu0 %v9984_v54, %s7280_s12  ;;  %v10432_v19 = vpop.permute.xlu2 %3805  ;;  %v3530_v54 = vsel %vm984_vm0, %v3499_v25, %v10418_v15 }
 0x4ca   : > { %3590 = vmatpush.bf16.msra.mxu3 %v3510_v49 }
 0x4cb   : > { %v10434_v38 = vpop.permute.xlu1 %3448  ;;  %v10436_v12 = vpop.permute.xlu0 %3506 }
 0x4cc   : > { %v3532_v26 = vsel %vm984_vm0, %v3505_v31, %v10436_v12  ;;  %v3528_v31 = vsel %vm984_vm0, %v10354_v44, %v10401_v9  ;;  %v3526_v44 = vsel %vm984_vm0, %v10284_v28, %v10384_v4  ;;  %v6549_v28 = vld [vmem:[%s12598_s4 + $0x48] sm:$0xf0] }
 0x4cd   : > { %3616 = vmatpush.bf16.msrb.mxu0 %v3532_v26 }
 0x4cf   : > { %4168 = vrot.lane.b32.xlu2 %v10076_v50, %s7280_s12  ;;  %v7187_v50 = vld [vmem:[%s12598_s4 + $0x44] sm:$0xf0] }
 0x4d1   : > { %3839 = vrot.lane.b32.xlu1 %v10358_v24, %s7279_s16  ;;  %4170 = vrot.lane.b32.xlu0 %v10052_v13, %s7280_s12  ;;  %v10448_v11 = vpop.permute.xlu2 %3811  ;;  %v6547_v13 = vld [vmem:[%s12598_s4 + $0x40] sm:$0xf] }
 0x4d2   : > { %3617 = vmatpush.bf16.msrb.mxu0 %v3530_v54 }
 0x4d3   : > { %v10450_v7 = vpop.permute.xlu1 %3803  ;;  %v10452_v63 = vpop.permute.xlu0 %3795 }
 0x4d4   : > { %13054 = vst [vmem:[#allocation11_spill] sm:$0xff] %v10450_v7 }
 0x4d6   : > { %3618 = vmatpush.bf16.msrb.mxu0 %v3528_v31 }
 0x4d7   : > { %4174 = vrot.lane.b32.xlu2 %v10125_v58, %s7280_s12  ;;  %v10474_v58 = vor.u32 %v7187_v50, %v6547_v13  ;;  %v6555_v50 = vld [vmem:[%s12598_s4 + $0x50] sm:$0xf] }
 0x4d9   : > { %3845 = vrot.lane.b32.xlu1 %v10207_v37, %s7279_s16  ;;  %4176 = vrot.lane.b32.xlu0 %v10103_v29, %s7280_s12  ;;  %v10472_v25 = vpop.permute.xlu2 %3817  ;;  %v7186_v29 = vld [vmem:[%s12598_s4 + $0x44] sm:$0xf] }
 0x4da   : > { %3619 = vmatpush.bf16.msrb.mxu0 %v3526_v44  ;;  %3591 = vmatmul.bf16.vlgmr.msra.gmra.mxu3 %v10474_v58  ;;  %v10495_v31 = vor.u32 %v7186_v29, %v6549_v28 }
 0x4db   : > { %v10476_v49 = vpop.permute.xlu1 %3472  ;;  %v10478_v26 = vpop.permute.xlu0 %3801 }
 0x4dd   : > { %6721 = vmatmul.msk.bf16.vlgmr.msrb.gmra.mxu0 %vm3570_vm9, %v10495_v31 }
 0x4df   : > { %4180 = vrot.lane.b32.xlu2 %v9947_v61, %s7280_s12 }
 0x4e1   : > { %3851 = vrot.lane.b32.xlu1 %v10286_v60, %s7279_s16  ;;  %4182 = vrot.lane.b32.xlu0 %v9949_v40, %s7280_s12  ;;  %v10493_v54 = vpop.permute.xlu2 %3823  ;;  %v7189_v40 = vld [vmem:[%s12598_s4 + $0x54] sm:$0xf0] }
 0x4e2   : > { %v10517_v29 = vor.u32 %v7189_v40, %v6555_v50 }
 0x4e3   : > { %v10497_v61 = vpop.permute.xlu1 %3496  ;;  %v10499_v13 = vpop.permute.xlu0 %3807 }
 0x4e7   : > { %4186 = vrot.lane.b32.xlu2 %v10046_v48, %s7280_s12 }
 0x4e9   : > { %3857 = vrot.lane.b32.xlu1 %v10328_v62, %s7279_s16  ;;  %4188 = vrot.lane.b32.xlu0 %v10016_v22, %s7280_s12  ;;  %v10515_v44 = vpop.permute.xlu2 %3829  ;;  %v6557_v22 = vld [vmem:[%s12598_s4 + $0x58] sm:$0xf0] }
 0x4ea   : > { %3596 = vmatmul.bf16.gmra.mxu3 %v10517_v29  ;;  %v10538_v40 = vor.u32 %v7188_v30, %v6557_v22 }
 0x4eb   : > { %v10519_v28 = vpop.permute.xlu1 %3454  ;;  %v10521_v48 = vpop.permute.xlu0 %3813 }
 0x4ed   : > { %6722 = vmatmul.msk.bf16.gmra.mxu0 %vm3570_vm9, %v10538_v40 }
 0x4ef   : > { %4192 = vrot.lane.b32.xlu2 %v10101_v45, %s7280_s12 }
 0x4f1   : > { %3863 = vrot.lane.b32.xlu1 %v10372_v56, %s7279_s16  ;;  %4194 = vrot.lane.b32.xlu0 %v10084_v2, %s7280_s12  ;;  %v10536_v50 = vpop.permute.xlu2 %3835  ;;  %v7191_v2 = vld [vmem:[%s12598_s4 + $0x64] sm:$0xf0] }
 0x4f2   : > { %v10560_v22 = vor.u32 %v7191_v2, %v6563_v18 }
 0x4f3   : > { %v10540_v33 = vpop.permute.xlu1 %3809  ;;  %v10542_v45 = vpop.permute.xlu0 %3819 }
 0x4f4   : > { %13055 = vst [vmem:[#allocation35_spill] sm:$0xff] %v10540_v33  ;;  %v7190_v33 = vld [vmem:[%s12598_s4 + $0x64] sm:$0xf] }
 0x4f5   : > { %13056 = vst [vmem:[#allocation14_spill] sm:$0xff] %v10560_v22 }
 0x4f7   : > { %4200 = vrot.lane.b32.xlu2 %v10134_v21, %s7280_s12 }
 0x4f9   : > { %4160 = vrot.lane.b32.xlu1 %v10130_v14, %s7280_s12  ;;  %4196 = vrot.lane.b32.xlu0 %v10318_v55, %s7280_s12  ;;  %v10558_v30 = vpop.permute.xlu2 %3841  ;;  %v6565_v14 = vld [vmem:[%s12598_s4 + $0x68] sm:$0xf0] }
 0x4fa   : > { %3601 = vmatmul.bf16.gmra.mxu3 %v10560_v22  ;;  %v10577_v18 = vor.u32 %v7190_v33, %v6565_v14  ;;  %v6571_v33 = vld [vmem:[%s12598_s4 + $0x70] sm:$0xf] }
 0x4fb   : > { %v3479_v7 = vpop.permute.xlu1 %3478  ;;  %v10562_v21 = vpop.permute.xlu0 %3825 }
 0x4fd   : > { %6723 = vmatmul.msk.bf16.gmra.mxu0 %vm3570_vm9, %v10577_v18 }
 0x4ff   : > { %4204 = vrot.lane.b32.xlu2 %v9982_v47, %s7280_s12 }
 0x501   : > { %4166 = vrot.lane.b32.xlu1 %v10234_v43, %s7280_s12  ;;  %4206 = vrot.lane.b32.xlu0 %v10160_v23, %s7280_s12  ;;  %v10579_v55 = vpop.permute.xlu2 %3847  ;;  %v7193_v23 = vld [vmem:[%s12598_s4 + $0x74] sm:$0xf0] }
 0x502   : > { %v10597_v43 = vor.u32 %v7193_v23, %v6571_v33 }
 0x503   : > { %v3503_v2 = vpop.permute.xlu1 %3502  ;;  %v10581_v47 = vpop.permute.xlu0 %3831 }
 0x504   : > { %13057 = vst [vmem:[#allocation36_spill] sm:$0xff] %v10597_v43 }
 0x507   : > { %4222 = vrot.lane.b32.xlu2 %v10232_v5, %s7280_s12 }
 0x509   : > { %4172 = vrot.lane.b32.xlu1 %v10298_v6, %s7280_s12  ;;  %4224 = vrot.lane.b32.xlu0 %v10238_v10, %s7280_s12  ;;  %v10601_v5 = vpop.permute.xlu2 %3853  ;;  %v7192_v10 = vld [vmem:[%s12598_s4 + $0x74] sm:$0xf]  ;;  %v6573_v6 = vld [vmem:[%s12598_s4 + $0x78] sm:$0xf0] }
 0x50a   : > { %3606 = vmatmul.bf16.gmra.mxu3 %v10597_v43  ;;  %v10616_v33 = vor.u32 %v7192_v10, %v6573_v6  ;;  %v4498_v6 = vld [vmem:[%s12599_s5] sm:$0xff] }
 0x50b   : > { %v3461_v14 = vpop.permute.xlu1 %3460  ;;  %v10599_v22 = vpop.permute.xlu0 %3837 }
 0x50d   : > { %6724 = vmatmul.msk.bf16.gmra.mxu0 %vm3570_vm9, %v10616_v33 }
 0x50f   : > { %4218 = vrot.lane.b32.xlu2 %v10216_v42, %s7280_s12 }
 0x511   : > { %4178 = vrot.lane.b32.xlu1 %v10338_v0, %s7280_s12  ;;  %4210 = vrot.lane.b32.xlu0 %v10181_v57, %s7280_s12  ;;  %v3860_v42 = vpop.permute.xlu2 %3859 }
 0x513   : > { %v10618_v23 = vpop.permute.xlu1 %3815  ;;  %v10620_v43 = vpop.permute.xlu0 %3843 }
 0x517   : > { %4214 = vrot.lane.b32.xlu2 %v10286_v60, %s7280_s12 }
 0x519   : > { %4184 = vrot.lane.b32.xlu1 %v10179_v27, %s7280_s12  ;;  %4220 = vrot.lane.b32.xlu0 %v10328_v62, %s7280_s12  ;;  %v4499_v27 = vld [vmem:[%s12599_s5 + $0x8] sm:$0xff]  ;;  %v10640_v60 = vpop.permute.xlu2 %4156  ;;  %v3523_v62 = vsel %vm984_vm0, %v10346_v36, %v3479_v7  ;;  %v4501_v36 = vld [vmem:[%s12599_s5 + $0x18] sm:$0xff] }
 0x51b   : > { %v3485_v57 = vpop.permute.xlu1 %3484  ;;  %v10630_v0 = vpop.permute.xlu0 %3849 }
 0x51c   : > { %3699 = vmatpush.bf16.msrb.mxu3 %v3485_v57  ;;  %v3525_v10 = vsel %vm984_vm0, %v10368_v1, %v3485_v57 }
 0x51d   : > { %3641 = vmatpush.bf16.msrb.mxu1 %v3525_v10  ;;  %v3521_v10 = vsel %vm984_vm0, %v10326_v46, %v10476_v49  ;;  %v3519_v46 = vsel %vm984_vm0, %v10306_v34, %v10399_v51  ;;  %v3517_v34 = vsel %vm984_vm0, %v10356_v52, %v3461_v14  ;;  %v3515_v52 = vsel %vm984_vm0, %v10336_v32, %v10519_v28 }
 0x51f   : > { %4508 = vperm.xlu2 %7269, %v4498_v6  }
 0x520   : > { %3700 = vmatpush.bf16.msrb.mxu3 %v3479_v7 }
 0x521   : > { %4190 = vrot.lane.b32.xlu1 %v10274_v20, %s7280_s12  ;;  %3642 = vmatpush.bf16.msrb.mxu1 %v3523_v62  ;;  %v4502_v20 = vld [vmem:[%s12599_s5 + $0x20] sm:$0xff]  ;;  %v10668_v7 = vpop.permute.xlu2 %4162 }
 0x522   : > { %4513 = vperm.xlu0 %7267, %v4499_v27  }
 0x523   : > { %v3509_v1 = vpop.permute.xlu1 %3508  ;;  %v10646_v57 = vpop.permute.xlu0 %3855 }
 0x524   : > { %3701 = vmatpush.bf16.msrb.mxu3 %v10476_v49  ;;  %3732 = vmatpush.bf16.msra.mxu0 %v3509_v1  ;;  %v3533_v6 = vsel %vm984_vm0, %v10436_v12, %v3509_v1  ;;  %v3531_v12 = vsel %vm984_vm0, %v10418_v15, %v3503_v2  ;;  %v4505_v15 = vld [vmem:[%s12599_s5 + $0x38] sm:$0xff] }
 0x525   : > { %3643 = vmatpush.bf16.msrb.mxu1 %v3521_v10  ;;  %3674 = vmatpush.bf16.msrb.mxu2 %v3533_v6  ;;  %v13059_v1 = vld [vmem:[#allocation14_spill] sm:$0xff] }
 0x527   : > { %4523 = vperm.xlu2 %7269, %v4501_v36  }
 0x528   : > { %3702 = vmatpush.bf16.msrb.mxu3 %v10399_v51  ;;  %3733 = vmatpush.bf16.msra.mxu0 %v3503_v2  ;;  %v3529_v51 = vsel %vm984_vm0, %v10401_v9, %v10497_v61  ;;  %v3527_v9 = vsel %vm984_vm0, %v10384_v4, %v10416_v16  ;;  %v3885_v4 = vsel %vm1574_vm1, %v10601_v5, %v10646_v57 }
 0x529   : > { %4198 = vrot.lane.b32.xlu1 %v10153_v53, %s7280_s12  ;;  %3644 = vmatpush.bf16.msrb.mxu1 %v3519_v46  ;;  %v4504_v53 = vld [vmem:[%s12599_s5 + $0x30] sm:$0xff]  ;;  %v10704_v32 = vpop.permute.xlu2 %4168 }
 0x52a   : > { %3675 = vmatpush.bf16.msrb.mxu2 %v3531_v12  ;;  %4528 = vperm.xlu0 %7267, %v4502_v20   ;;  %v13061_v20 = vld [vmem:[#allocation8_spill] sm:$0xff] }
 0x52b   : > { %v10670_v49 = vpop.permute.xlu1 %3821  ;;  %v10672_v27 = vpop.permute.xlu0 %3861  ;;  %v3866_v46 = vsel %vm1574_vm1, %v10452_v63, %v13061_v20 }
 0x52c   : > { %3703 = vmatpush.bf16.msrb.mxu3 %v3461_v14  ;;  %3734 = vmatpush.bf16.msra.mxu0 %v10497_v61  ;;  %v3887_v61 = vsel %vm1574_vm1, %v3860_v42, %v10672_v27 }
 0x52d   : > { %3645 = vmatpush.bf16.msrb.mxu1 %v3517_v34 }
 0x52e   : > { %3676 = vmatpush.bf16.msrb.mxu2 %v3529_v51 }
 0x52f   : > { %4538 = vperm.xlu2 %7269, %v4504_v53  }
 0x530   : > { %3704 = vmatpush.bf16.msrb.mxu3 %v10519_v28  ;;  %3735 = vmatpush.bf16.msra.mxu0 %v10416_v16  ;;  %v3511_v16 = vsel %vm984_vm0, %v10296_v8, %v10366_v41  ;;  %v3881_v8 = vsel %vm1574_vm1, %v10558_v30, %v10620_v43 }
 0x531   : > { %4202 = vrot.lane.b32.xlu1 %v10358_v24, %s7280_s12  ;;  %3646 = vmatpush.bf16.msrb.mxu1 %v3515_v52  ;;  %v3513_v24 = vsel %vm984_vm0, %v10316_v17, %v10434_v38  ;;  %v3879_v17 = vsel %vm1574_vm1, %v10536_v50, %v10599_v22  ;;  %v3875_v50 = vsel %vm1574_vm1, %v10493_v54, %v10562_v21 }
 0x532   : > { %3677 = vmatpush.bf16.msrb.mxu2 %v3527_v9  ;;  %4543 = vperm.xlu0 %7267, %v4505_v15  }
 0x533   : > { %v10698_v2 = vpop.permute.xlu1 %3827  ;;  %v10700_v14 = vpop.permute.xlu0 %4158  ;;  %6729 = vmatmul.msk.bf16.vlgmr.msra.gmra.mxu0 %vm3570_vm9, %v10495_v31 }
 0x534   : > { %3705 = vmatpush.bf16.msrb.mxu3 %v10434_v38  ;;  %v3883_v38 = vsel %vm1574_vm1, %v10579_v55, %v10630_v0 }
 0x535   : > { %3647 = vmatpush.bf16.msrb.mxu1 %v3513_v24  ;;  %6725 = vmatmul.msk.bf16.vlgmr.msrb.gmra.mxu2 %vm3570_vm9, %v10495_v31 }
 0x536   : > { %3970 = vmatpush.bf16.msra.mxu2 %v3887_v61  ;;  %v6737_v61 = vld [vmem:[%s12598_s4 + $0x8] sm:$0xf0] }
 0x538   : > { %3706 = vmatpush.bf16.msrb.mxu3 %v10366_v41  ;;  %v3877_v41 = vsel %vm1574_vm1, %v10515_v44, %v10581_v47 }
 0x539   : > { %4208 = vrot.lane.b32.xlu1 %v10207_v37, %s7280_s12  ;;  %3648 = vmatpush.bf16.msrb.mxu1 %v3511_v16  ;;  %v10734_v37 = vpop.permute.xlu2 %4174 }
 0x53a   : > { %3971 = vmatpush.bf16.msra.mxu2 %v3885_v4 }
 0x53b   : > { %v3834_v31 = vpop.permute.xlu1 %3833  ;;  %3707 = vmatmul.bf16.vlgmr.msrb.gmra.mxu3 %v10474_v58  ;;  %v10728_v28 = vpop.permute.xlu0 %4164 }
 0x53c   : > { %3649 = vmatmul.bf16.vlgmr.msrb.gmra.mxu1 %v10474_v58  ;;  %v3878_v30 = vsel %vm1574_vm1, %v10581_v47, %v3834_v31  ;;  %v3876_v47 = vsel %vm1574_vm1, %v10562_v21, %v10698_v2 }
 0x53d   : > { %3937 = vmatpush.bf16.msra.mxu1 %v3879_v17 }
 0x53e   : > { %3972 = vmatpush.bf16.msra.mxu2 %v3883_v38 }
 0x541   : > { %3938 = vmatpush.bf16.msra.mxu1 %v3877_v41  ;;  %4216 = vrot.lane.b32.xlu1 %v10209_v35, %s7280_s12  ;;  %v3873_v35 = vsel %vm1574_vm1, %v10472_v25, %v10542_v45  ;;  %v10755_v54 = vpop.permute.xlu2 %4180  ;;  %v6735_v41 = vld [vmem:[%s12598_s4] sm:$0xf] }
 0x542   : > { %3973 = vmatpush.bf16.msra.mxu2 %v3881_v8 }
 0x543   : > { %v3840_v58 = vpop.permute.xlu1 %3839  ;;  %v10744_v55 = vpop.permute.xlu0 %4170  ;;  %6730 = vmatmul.msk.bf16.gmra.mxu0 %vm3570_vm9, %v10538_v40 }
 0x544   : > { %v3880_v44 = vsel %vm1574_vm1, %v10599_v22, %v3840_v58  ;;  %v3871_v22 = vsel %vm1574_vm1, %v10448_v11, %v10521_v48  ;;  %v3874_v11 = vsel %vm1574_vm1, %v10542_v45, %v10670_v49  ;;  %v13058_v45 = vld [vmem:[#allocation35_spill] sm:$0xff] }
 0x545   : > { %3939 = vmatpush.bf16.msra.mxu1 %v3875_v50  ;;  %3995 = vmatpush.bf16.msra.mxu3 %v3880_v44  ;;  %v3870_v62 = vsel %vm1574_vm1, %v10499_v13, %v13058_v45 }
 0x546   : > { %6726 = vmatmul.msk.bf16.gmra.mxu2 %vm3570_vm9, %v10538_v40 }
 0x549   : > { %3940 = vmatpush.bf16.msra.mxu1 %v3873_v35  ;;  %4212 = vrot.lane.b32.xlu1 %v10188_v59, %s7280_s12  ;;  %v3869_v59 = vsel %vm1574_vm1, %v10432_v19, %v10499_v13  ;;  %v10784_v5 = vpop.permute.xlu2 %4186  ;;  %v3872_v19 = vsel %vm1574_vm1, %v10521_v48, %v10618_v23  ;;  %v4503_v13 = vld [vmem:[%s12599_s5 + $0x28] sm:$0xff] }
 0x54a   : > { %3996 = vmatpush.bf16.msra.mxu3 %v3878_v30 }
 0x54b   : > { %v10764_v40 = vpop.permute.xlu1 %3845  ;;  %3712 = vmatmul.bf16.gmra.mxu3 %v10517_v29  ;;  %v10767_v25 = vpop.permute.xlu0 %4176 }
 0x54c   : > { %3654 = vmatmul.bf16.gmra.mxu1 %v10517_v29  ;;  %v3867_v29 = vsel %vm1574_vm1, %v10414_v3, %v10478_v26  ;;  %v4500_v3 = vld [vmem:[%s12599_s5 + $0x10] sm:$0xff] }
 0x54d   : > { %3941 = vmatpush.bf16.msra.mxu1 %v3871_v22 }
 0x54e   : > { %3997 = vmatpush.bf16.msra.mxu3 %v3876_v47  ;;  %v6745_v47 = vld [vmem:[%s12598_s4 + $0x18] sm:$0xf0] }
 0x551   : > { %3942 = vmatpush.bf16.msra.mxu1 %v3869_v59  ;;  %4226 = vrot.lane.b32.xlu1 %v10372_v56, %s7280_s12  ;;  %v3865_v56 = vsel %vm1574_vm1, %v10397_v39, %v10452_v63  ;;  %v10807_v10 = vpop.permute.xlu2 %4192  ;;  %v13060_v39 = vld [vmem:[#allocation11_spill] sm:$0xff] }
 0x552   : > { %3998 = vmatpush.bf16.msra.mxu3 %v3874_v11  ;;  %v3868_v6 = vsel %vm1574_vm1, %v10478_v26, %v13060_v39 }
 0x553   : > { %v3852_v21 = vpop.permute.xlu1 %3851  ;;  %v10786_v42 = vpop.permute.xlu0 %4182  ;;  %6731 = vmatmul.msk.bf16.gmra.mxu0 %vm3570_vm9, %v10577_v18 }
 0x555   : > { %3943 = vmatpush.bf16.msra.mxu1 %v3867_v29 }
 0x556   : > { %3999 = vmatpush.bf16.msra.mxu3 %v3872_v19  ;;  %6727 = vmatmul.msk.bf16.gmra.mxu2 %vm3570_vm9, %v10577_v18 }
 0x559   : > { %3944 = vmatpush.bf16.msra.mxu1 %v3865_v56  ;;  %4518 = vperm.xlu1 %7268, %v4500_v3   ;;  %v10831_v63 = vpop.permute.xlu2 %4200  ;;  %v6743_v56 = vld [vmem:[%s12598_s4 + $0x10] sm:$0xf]  ;;  %v7145_v3 = vld [vmem:[%s12598_s4 + $0x14] sm:$0xf0] }
 0x55a   : > { %4000 = vmatpush.bf16.msra.mxu3 %v3870_v62  ;;  %v3621_v12 = vpop.f32.mrf.mxu0 }
 0x55b   : > { %v3858_v48 = vpop.permute.xlu1 %3857  ;;  %3717 = vmatmul.bf16.gmra.mxu3 %v13059_v1  ;;  %v10805_v18 = vpop.permute.xlu0 %4188 }
 0x55c   : > { %3659 = vmatmul.bf16.gmra.mxu1 %v13059_v1 }
 0x55d   : > { %4053 = vmatpush.bf16.msrb.mxu1 %v3840_v58  ;;  %v3592_v36 = vpop.f32.mrf.mxu3 }
 0x55e   : > { %4001 = vmatpush.bf16.msra.mxu3 %v3868_v6  ;;  %v10820_v34 = vadd.f32 %v3621_v12, %v3592_v36  ;;  %v6753_v6 = vld [vmem:[%s12598_s4 + $0x28] sm:$0xf0] }
 0x561   : > { %4054 = vmatpush.bf16.msrb.mxu1 %v3834_v31  ;;  %4533 = vperm.xlu1 %7268, %v4503_v13   ;;  %v10856_v24 = vpop.permute.xlu2 %4204 }
 0x562   : > { %4002 = vmatpush.bf16.msra.mxu3 %v3866_v46  ;;  %v10838_v52 = vpop.f32.mrf.mxu0 }
 0x563   : > { %v3864_v53 = vpop.permute.xlu1 %3863  ;;  %v10823_v26 = vpop.permute.xlu0 %4194  ;;  %6732 = vmatmul.msk.bf16.gmra.mxu0 %vm3570_vm9, %v10616_v33 }
 0x564   : > { %4086 = vmatpush.bf16.msrb.mxu2 %v3864_v53  ;;  %v3888_v51 = vsel %vm1574_vm1, %v10672_v27, %v3864_v53  ;;  %v13062_v27 = vld [vmem:[#allocation36_spill] sm:$0xff]  ;;  %v6751_v53 = vld [vmem:[%s12598_s4 + $0x20] sm:$0xf] }
 0x565   : > { %4055 = vmatpush.bf16.msrb.mxu1 %v10698_v2  ;;  %4028 = vmatpush.bf16.msrb.mxu0 %v3888_v51  ;;  %v10833_v15 = vpop.f32.mrf.mxu3  ;;  %v7147_v51 = vld [vmem:[%s12598_s4 + $0x24] sm:$0xf0] }
 0x566   : > { %6728 = vmatmul.msk.bf16.gmra.mxu2 %vm3570_vm9, %v10616_v33 }
 0x568   : > { %4087 = vmatpush.bf16.msrb.mxu2 %v3858_v48 }
 0x569   : > { %4056 = vmatpush.bf16.msrb.mxu1 %v10670_v49  ;;  %v3886_v49 = vsel %vm1574_vm1, %v10646_v57, %v3858_v48  ;;  %v7142_v57 = vld [vmem:[%s12598_s4 + $0x4] sm:$0xf]  ;;  %v4223_v44 = vpop.permute.xlu2 %4222 }
 0x56a   : > { %4029 = vmatpush.bf16.msrb.mxu0 %v3886_v49  ;;  %v3626_v4 = vpop.f32.mrf.mxu0  ;;  %v10862_v16 = vor.u32 %v7142_v57, %v6737_v61  ;;  %v10949_v49 = vor.u32 %v7147_v51, %v6751_v53  ;;  %v7148_v57 = vld [vmem:[%s12598_s4 + $0x34] sm:$0xf]  ;;  %v6761_v61 = vld [vmem:[%s12598_s4 + $0x38] sm:$0xf0] }
 0x56b   : > { %v10840_v9 = vpop.permute.xlu1 %4160  ;;  %3722 = vmatmul.bf16.gmra.mxu3 %v13062_v27  ;;  %v10844_v33 = vpop.permute.xlu0 %4196 }
 0x56c   : > { %3664 = vmatmul.bf16.gmra.mxu1 %v13062_v27  ;;  %4088 = vmatpush.bf16.msrb.mxu2 %v3852_v21 }
 0x56d   : > { %4057 = vmatpush.bf16.msrb.mxu1 %v10618_v23  ;;  %v3884_v23 = vsel %vm1574_vm1, %v10630_v0, %v3852_v21  ;;  %v3597_v2 = vpop.f32.mrf.mxu3  ;;  %v3882_v0 = vsel %vm1574_vm1, %v10620_v43, %v10764_v40  ;;  %v7143_v43 = vld [vmem:[%s12598_s4 + $0x4] sm:$0xf0] }
 0x56e   : > { %4030 = vmatpush.bf16.msrb.mxu0 %v3884_v23  ;;  %v10864_v17 = vadd.f32 %v3626_v4, %v3597_v2  ;;  %v10883_v50 = vor.u32 %v7143_v43, %v6735_v41  ;;  %v4240_v2 = vsel %vm2181_vm2, %v10807_v10, %v10823_v26  ;;  %v4238_v41 = vsel %vm2181_vm2, %v10784_v5, %v10805_v18 }
 0x570   : > { %4089 = vmatpush.bf16.msrb.mxu2 %v10764_v40  ;;  %v7144_v40 = vld [vmem:[%s12598_s4 + $0x14] sm:$0xf] }
 0x571   : > { %4058 = vmatpush.bf16.msrb.mxu1 %v13058_v45  ;;  %v10901_v29 = vor.u32 %v7144_v40, %v6745_v47  ;;  %v10917_v45 = vor.u32 %v7145_v3, %v6743_v56  ;;  %v4241_v40 = vsel %vm2181_vm2, %v10823_v26, %v10844_v33  ;;  %v4232_v26 = vsel %vm2181_vm2, %v10704_v32, %v10744_v55  ;;  %v4219_v3 = vpop.permute.xlu2 %4218 }
 0x572   : > { %4031 = vmatpush.bf16.msrb.mxu0 %v3882_v0  ;;  %v10885_v58 = vpop.f32.mrf.mxu0  ;;  %v10964_v0 = vor.u32 %v7148_v57, %v6761_v61 }
 0x573   : > { %v10866_v38 = vpop.permute.xlu1 %4166  ;;  %v10869_v31 = vpop.permute.xlu0 %4206 }
 0x574   : > { %v4231_v61 = vsel %vm2181_vm2, %v10728_v28, %v10866_v38 }
 0x575   : > { %4059 = vmatpush.bf16.msrb.mxu1 %v13060_v39  ;;  %6769 = vmatmul.msk.bf16.vlgmr.msrb.gmra.mxu0 %vm3570_vm9, %v10862_v16  ;;  %v10881_v8 = vpop.f32.mrf.mxu3  ;;  %v7146_v39 = vld [vmem:[%s12598_s4 + $0x24] sm:$0xf] }
 0x576   : > { %6765 = vmatmul.msk.bf16.vlgmr.msra.gmra.mxu2 %vm3570_vm9, %v10862_v16  ;;  %v10933_v13 = vor.u32 %v7146_v39, %v6753_v6 }
 0x579   : > { %4060 = vmatpush.bf16.msrb.mxu1 %v13061_v20 }
 0x57a   : > { %v3631_v11 = vpop.f32.mrf.mxu0 }
 0x57b   : > { %v10887_v35 = vpop.permute.xlu1 %4172  ;;  %4003 = vmatmul.bf16.vlgmr.msra.gmra.mxu3 %v10883_v50  ;;  %v10890_v30 = vpop.permute.xlu0 %4224 }
 0x57c   : > { %3945 = vmatmul.bf16.vlgmr.msra.gmra.mxu1 %v10883_v50  ;;  %v4250_v22 = vsel %vm2181_vm2, %v4223_v44, %v10890_v30  ;;  %v6759_v44 = vld [vmem:[%s12598_s4 + $0x30] sm:$0xf] }
 0x57d   : > { %4333 = vmatpush.bf16.msra.mxu0 %v4250_v22  ;;  %v3602_v59 = vpop.f32.mrf.mxu3  ;;  %v7149_v22 = vld [vmem:[%s12598_s4 + $0x34] sm:$0xf0] }
 0x57e   : > { %v10903_v21 = vadd.f32 %v3631_v11, %v3602_v59  ;;  %v10983_v10 = vor.u32 %v7149_v22, %v6759_v44  ;;  %v4234_v59 = vsel %vm2181_vm2, %v10734_v37, %v10767_v25  ;;  %v4230_v37 = vsel %vm2181_vm2, %v10668_v7, %v10728_v28 }
 0x582   : > { %v10921_v48 = vpop.f32.mrf.mxu0 }
 0x583   : > { %v10905_v19 = vpop.permute.xlu1 %4178 }
 0x584   : > { %v4235_v32 = vsel %vm2181_vm2, %v10767_v25, %v10905_v19 }
 0x585   : > { %6770 = vmatmul.msk.bf16.gmra.mxu0 %vm3570_vm9, %v10901_v29  ;;  %v10919_v62 = vpop.f32.mrf.mxu3 }
 0x586   : > { %6766 = vmatmul.msk.bf16.gmra.mxu2 %vm3570_vm9, %v10901_v29 }
 0x58a   : > { %v3636_v20 = vpop.f32.mrf.mxu0 }
 0x58b   : > { %v10923_v1 = vpop.permute.xlu1 %4184  ;;  %4008 = vmatmul.bf16.gmra.mxu3 %v10917_v45 }
 0x58c   : > { %3950 = vmatmul.bf16.gmra.mxu1 %v10917_v45  ;;  %v4237_v11 = vsel %vm2181_vm2, %v10786_v42, %v10923_v1 }
 0x58d   : > { %v3607_v36 = vpop.f32.mrf.mxu3 }
 0x58e   : > { %v10935_v46 = vadd.f32 %v3636_v20, %v3607_v36  ;;  %v7195_v36 = vld [vmem:[%s12598_s4 + $0x84] sm:$0xf0]  ;;  %v4228_v20 = vsel %vm2181_vm2, %v10640_v60, %v10700_v14 }
 0x592   : > { %v10981_v5 = vpop.f32.mrf.mxu0 }
 0x593   : > { %v10937_v12 = vpop.permute.xlu1 %4190  ;;  %13063 = vst [vmem:[#allocation61_spill] sm:$0xff] %v10981_v5  ;;  %v6986_v5 = vld [vmem:[#allocation3 + $0x138] sm:$0xf0] }
 0x595   : > { %6771 = vmatmul.msk.bf16.gmra.mxu0 %vm3570_vm9, %v10933_v13  ;;  %v11011_v6 = vpop.f32.mrf.mxu3 }
 0x596   : > { %6767 = vmatmul.msk.bf16.gmra.mxu2 %vm3570_vm9, %v10933_v13  ;;  %13064 = vst [vmem:[#allocation31_spill] sm:$0xff] %v11011_v6 }
 0x59b   : > { %v4199_v27 = vpop.permute.xlu1 %4198  ;;  %4013 = vmatmul.bf16.gmra.mxu3 %v10949_v49 }
 0x59c   : > { %v4242_v23 = vsel %vm2181_vm2, %v4199_v27, %v10831_v63  ;;  %3955 = vmatmul.bf16.gmra.mxu1 %v10949_v49  ;;  %v4233_v27 = vsel %vm2181_vm2, %v10744_v55, %v10887_v35  ;;  %v7194_v55 = vld [vmem:[%s12598_s4 + $0x84] sm:$0xf] }
 0x59d   : > { %4300 = vmatpush.bf16.msrb.mxu3 %v4242_v23 }
 0x5a1   : > { %4301 = vmatpush.bf16.msrb.mxu3 %v4240_v2  ;;  %v6789_v2 = vld [vmem:[%s12598_s4 + $0x88] sm:$0xf0] }
 0x5a2   : > { %v11054_v28 = vor.u32 %v7194_v55, %v6789_v2 }
 0x5a3   : > { %v4203_v4 = vpop.permute.xlu1 %4202 }
 0x5a4   : > { %v4243_v43 = vsel %vm2181_vm2, %v10831_v63, %v4203_v4  ;;  %v4236_v63 = vsel %vm2181_vm2, %v10755_v54, %v10786_v42  ;;  %v4239_v54 = vsel %vm2181_vm2, %v10805_v18, %v10937_v12  ;;  %v6787_v42 = vld [vmem:[%s12598_s4 + $0x80] sm:$0xf] }
 0x5a5   : > { %6772 = vmatmul.msk.bf16.gmra.mxu0 %vm3570_vm9, %v10964_v0  ;;  %4302 = vmatpush.bf16.msrb.mxu3 %v4238_v41  ;;  %v11027_v53 = vor.u32 %v7195_v36, %v6787_v42 }
 0x5a6   : > { %4358 = vmatpush.bf16.msra.mxu1 %v4243_v43  ;;  %6768 = vmatmul.msk.bf16.gmra.mxu2 %vm3570_vm9, %v10964_v0  ;;  %v4244_v43 = vsel %vm2181_vm2, %v10856_v24, %v10869_v31 }
 0x5a9   : > { %4303 = vmatpush.bf16.msrb.mxu3 %v4236_v63  ;;  %v4229_v63 = vsel %vm2181_vm2, %v10700_v14, %v10840_v9  ;;  %v7197_v14 = vld [vmem:[%s12598_s4 + $0x94] sm:$0xf0] }
 0x5aa   : > { %4359 = vmatpush.bf16.msra.mxu1 %v4241_v40 }
 0x5ab   : > { %v10991_v47 = vpop.permute.xlu1 %4208  ;;  %4018 = vmatmul.bf16.gmra.mxu3 %v10983_v10 }
 0x5ac   : > { %3960 = vmatmul.bf16.gmra.mxu1 %v10983_v10  ;;  %v4245_v42 = vsel %vm2181_vm2, %v10869_v31, %v10991_v47  ;;  %v7199_v31 = vld [vmem:[%s12598_s4 + $0xa4] sm:$0xf0] }
 0x5ad   : > { %4304 = vmatpush.bf16.msrb.mxu3 %v4234_v59 }
 0x5ae   : > { %4360 = vmatpush.bf16.msra.mxu1 %v4239_v54  ;;  %v6795_v54 = vld [vmem:[%s12598_s4 + $0x90] sm:$0xf] }
 0x5b0   : > { %v3737_v56 = vpop.f32.mrf.mxu0 }
 0x5b1   : > { %4305 = vmatpush.bf16.msrb.mxu3 %v4232_v26 }
 0x5b2   : > { %4361 = vmatpush.bf16.msra.mxu1 %v4237_v11  ;;  %v11078_v11 = vor.u32 %v7197_v14, %v6795_v54 }
 0x5b3   : > { %v4217_v39 = vpop.permute.xlu1 %4216 }
 0x5b4   : > { %v4248_v18 = vsel %vm2181_vm2, %v4217_v39, %v4219_v3 }
 0x5b5   : > { %4306 = vmatpush.bf16.msrb.mxu3 %v4230_v37  ;;  %4334 = vmatpush.bf16.msra.mxu0 %v4248_v18  ;;  %v4215_v18 = vpop.permute.xlu2 %4214 }
 0x5b6   : > { %4362 = vmatpush.bf16.msra.mxu1 %v4235_v32  ;;  %6773 = vmatmul.msk.bf16.vlgmr.msrb.gmra.mxu2 %vm3570_vm9, %v10862_v16  ;;  %v4211_v16 = vpop.permute.xlu0 %4210 }
 0x5b8   : > { %v3679_v7 = vpop.f32.mrf.mxu2  ;;  %v11029_v25 = vpop.f32.mrf.mxu0 }
 0x5b9   : > { %v3650_v51 = vpop.f32.mrf.mxu1  ;;  %4307 = vmatpush.bf16.msrb.mxu3 %v4228_v20 }
 0x5ba   : > { %v11034_v23 = vadd.f32 %v3679_v7, %v3650_v51  ;;  %4363 = vmatpush.bf16.msra.mxu1 %v4233_v27 }
 0x5bb   : > { %v4213_v57 = vpop.permute.xlu1 %4212 }
 0x5bc   : > { %4061 = vmatmul.bf16.vlgmr.msrb.gmra.mxu1 %v10883_v50  ;;  %v4246_v60 = vsel %vm2181_vm2, %v4211_v16, %v4213_v57  ;;  %4308 = vmatmul.bf16.vlgmr.msrb.gmra.mxu3 %v11027_v53 }
 0x5bd   : > { %4416 = vmatpush.bf16.msra.mxu3 %v4203_v4  ;;  %4335 = vmatpush.bf16.msra.mxu0 %v4246_v60 }
 0x5be   : > { %4364 = vmatpush.bf16.msra.mxu1 %v4231_v61  ;;  %v3708_v4 = vpop.f32.mrf.mxu3  ;;  %v4221_v59 = vpop.permute.xlu0 %4220  ;;  %v7198_v61 = vld [vmem:[%s12598_s4 + $0xa4] sm:$0xf] }
 0x5bf   : > { %v11049_v50 = vadd.f32 %v3737_v56, %v3708_v4 }
 0x5c0   : > { %v3681_v41 = vpop.f32.mrf.mxu2  ;;  %v3742_v44 = vpop.f32.mrf.mxu0 }
 0x5c1   : > { %4417 = vmatpush.bf16.msra.mxu3 %v10844_v33  ;;  %v3652_v22 = vpop.f32.mrf.mxu1  ;;  %4336 = vmatpush.bf16.msra.mxu0 %v4244_v43 }
 0x5c2   : > { %v11059_v40 = vadd.f32 %v3681_v41, %v3652_v22  ;;  %4365 = vmatpush.bf16.msra.mxu1 %v4229_v63  ;;  %v7201_v22 = vld [vmem:[%s12598_s4 + $0xb4] sm:$0xf0] }
 0x5c3   : > { %v4227_v33 = vpop.permute.xlu1 %4226 }
 0x5c4   : > { %6817 = vmatmul.msk.bf16.vlgmr.msra.gmra.mxu0 %vm3570_vm9, %v11054_v28  ;;  %v4251_v24 = vsel %vm2181_vm2, %v10890_v30, %v4227_v33  ;;  %v4249_v30 = vsel %vm2181_vm2, %v4219_v3, %v4221_v59  ;;  %v6797_v3 = vld [vmem:[%s12598_s4 + $0x98] sm:$0xf0] }
 0x5c5   : > { %4418 = vmatpush.bf16.msra.mxu3 %v10937_v12  ;;  %4449 = vmatpush.bf16.msrb.mxu0 %v4227_v33 }
 0x5c6   : > { %4391 = vmatpush.bf16.msra.mxu2 %v4251_v24  ;;  %v11072_v26 = vpop.f32.mrf.mxu3 }
 0x5c7   : > { %6774 = vmatmul.msk.bf16.gmra.mxu2 %vm3570_vm9, %v10901_v29  ;;  %v4247_v29 = vsel %vm2181_vm2, %v4213_v57, %v4215_v18 }
 0x5c8   : > { %v11080_v56 = vpop.f32.mrf.mxu0 }
 0x5c9   : > { %4419 = vmatpush.bf16.msra.mxu3 %v10923_v1  ;;  %v3684_v12 = vpop.f32.mrf.mxu2  ;;  %4450 = vmatpush.bf16.msrb.mxu0 %v4221_v59  ;;  %v3655_v39 = vpop.f32.mrf.mxu1  ;;  %v7196_v1 = vld [vmem:[%s12598_s4 + $0x94] sm:$0xf] }
 0x5ca   : > { %4392 = vmatpush.bf16.msra.mxu2 %v4249_v30  ;;  %v11082_v37 = vadd.f32 %v3684_v12, %v3655_v39  ;;  %v11100_v36 = vor.u32 %v7196_v1, %v6797_v3  ;;  %v7200_v12 = vld [vmem:[%s12598_s4 + $0xb4] sm:$0xf] }
 0x5cc   : > { %4066 = vmatmul.bf16.gmra.mxu1 %v10917_v45  ;;  %4313 = vmatmul.bf16.gmra.mxu3 %v11078_v11 }
 0x5cd   : > { %4420 = vmatpush.bf16.msra.mxu3 %v10905_v19  ;;  %4451 = vmatpush.bf16.msrb.mxu0 %v4215_v18 }
 0x5ce   : > { %4393 = vmatpush.bf16.msra.mxu2 %v4247_v29  ;;  %v3713_v32 = vpop.f32.mrf.mxu3 }
 0x5cf   : > { %v11095_v19 = vadd.f32 %v3742_v44, %v3713_v32 }
 0x5d0   : > { %v3747_v7 = vpop.f32.mrf.mxu0 }
 0x5d1   : > { %4421 = vmatpush.bf16.msra.mxu3 %v10887_v35  ;;  %v3686_v45 = vpop.f32.mrf.mxu2  ;;  %4452 = vmatpush.bf16.msrb.mxu0 %v10991_v47  ;;  %v3657_v20 = vpop.f32.mrf.mxu1  ;;  %v6803_v35 = vld [vmem:[%s12598_s4 + $0xa0] sm:$0xf] }
 0x5d2   : > { %4394 = vmatpush.bf16.msra.mxu2 %v4245_v42  ;;  %v11103_v51 = vadd.f32 %v3686_v45, %v3657_v20 }
 0x5d4   : > { %6818 = vmatmul.msk.bf16.gmra.mxu0 %vm3570_vm9, %v11100_v36 }
 0x5d5   : > { %4422 = vmatpush.bf16.msra.mxu3 %v10866_v38  ;;  %v11119_v38 = vor.u32 %v7199_v31, %v6803_v35 }
 0x5d6   : > { %v11114_v27 = vpop.f32.mrf.mxu3 }
 0x5d7   : > { %6775 = vmatmul.msk.bf16.gmra.mxu2 %vm3570_vm9, %v10933_v13 }
 0x5d8   : > { %v11121_v16 = vpop.f32.mrf.mxu0 }
 0x5d9   : > { %4423 = vmatpush.bf16.msra.mxu3 %v10840_v9  ;;  %v3689_v47 = vpop.f32.mrf.mxu2  ;;  %v3660_v57 = vpop.f32.mrf.mxu1  ;;  %v6805_v9 = vld [vmem:[%s12598_s4 + $0xa8] sm:$0xf0] }
 0x5da   : > { %v11123_v60 = vadd.f32 %v3689_v47, %v3660_v57  ;;  %v11135_v4 = vor.u32 %v7198_v61, %v6805_v9 }
 0x5dc   : > { %4071 = vmatmul.bf16.gmra.mxu1 %v10949_v49  ;;  %4318 = vmatmul.bf16.gmra.mxu3 %v11119_v38  ;;  %v6811_v49 = vld [vmem:[%s12598_s4 + $0xb0] sm:$0xf] }
 0x5dd   : > { %v11151_v24 = vor.u32 %v7201_v22, %v6811_v49 }
 0x5de   : > { %v3718_v13 = vpop.f32.mrf.mxu3 }
 0x5df   : > { %v11133_v55 = vadd.f32 %v3747_v7, %v3718_v13 }
 0x5e0   : > { %v3752_v41 = vpop.f32.mrf.mxu0 }
 0x5e1   : > { %v3691_v2 = vpop.f32.mrf.mxu2  ;;  %v3662_v43 = vpop.f32.mrf.mxu1 }
 0x5e2   : > { %v11137_v44 = vadd.f32 %v3691_v2, %v3662_v43 }
 0x5e4   : > { %6819 = vmatmul.msk.bf16.gmra.mxu0 %vm3570_vm9, %v11135_v4 }
 0x5e6   : > { %v11147_v63 = vpop.f32.mrf.mxu3 }
 0x5e7   : > { %6776 = vmatmul.msk.bf16.gmra.mxu2 %vm3570_vm9, %v10964_v0  ;;  %v6813_v0 = vld [vmem:[%s12598_s4 + $0xb8] sm:$0xf0] }
 0x5e8   : > { %v11153_v59 = vpop.f32.mrf.mxu0  ;;  %v11167_v29 = vor.u32 %v7200_v12, %v6813_v0 }
 0x5e9   : > { %v3694_v33 = vpop.f32.mrf.mxu2  ;;  %v3665_v54 = vpop.f32.mrf.mxu1 }
 0x5ea   : > { %v11155_v14 = vadd.f32 %v3694_v33, %v3665_v54 }
 0x5ec   : > { %4076 = vmatmul.bf16.gmra.mxu1 %v10983_v10  ;;  %4323 = vmatmul.bf16.gmra.mxu3 %v11151_v24 }
 0x5ee   : > { %v3723_v30 = vpop.f32.mrf.mxu3 }
 0x5ef   : > { %v11165_v39 = vadd.f32 %v3752_v41, %v3723_v30 }
 0x5f1   : > { %v3696_v18 = vpop.f32.mrf.mxu2  ;;  %v3667_v1 = vpop.f32.mrf.mxu1 }
 0x5f2   : > { %v4033_v3 = vpop.f32.mrf.mxu0  ;;  %v11169_v32 = vadd.f32 %v3696_v18, %v3667_v1 }
 0x5f4   : > { %6820 = vmatmul.msk.bf16.gmra.mxu0 %vm3570_vm9, %v11167_v29 }
 0x5f6   : > { %v11173_v10 = vpop.f32.mrf.mxu3 }
 0x5f7   : > { %6821 = vmatmul.msk.bf16.vlgmr.msra.gmra.mxu2 %vm3570_vm9, %v11054_v28 }
 0x5f9   : > { %v3975_v45 = vpop.f32.mrf.mxu2  ;;  %v3946_v42 = vpop.f32.mrf.mxu1 }
 0x5fa   : > { %v3947_v7 = vadd.f32 %v3946_v42, %v10820_v34  ;;  %v11178_v20 = vpop.f32.mrf.mxu0 }
 0x5fc   : > { %v11180_v35 = vadd.f32 %v3975_v45, %v3947_v7  ;;  %4366 = vmatmul.bf16.vlgmr.msra.gmra.mxu1 %v11027_v53  ;;  %4424 = vmatmul.bf16.vlgmr.msra.gmra.mxu3 %v11027_v53 }
 0x5fe   : > { %v4004_v31 = vpop.f32.mrf.mxu3 }
 0x5ff   : > { %v4005_v47 = vadd.f32 %v4004_v31, %v11034_v23 }
 0x601   : > { %v11185_v57 = vpop.f32.mrf.mxu2  ;;  %v11187_v61 = vadd.f32 %v4033_v3, %v4005_v47  ;;  %v11189_v9 = vpop.f32.mrf.mxu1  ;;  %v7211_v47 = vld [vmem:[#allocation3 + $0x4c] sm:$0xf] }
 0x602   : > { %v4038_v34 = vpop.f32.mrf.mxu0 }
 0x604   : > { %6825 = vmatmul.msk.bf16.vlgmr.msrb.gmra.mxu0 %vm3570_vm9, %v11054_v28 }
 0x606   : > { %v11193_v13 = vpop.f32.mrf.mxu3 }
 0x607   : > { %6822 = vmatmul.msk.bf16.gmra.mxu2 %vm3570_vm9, %v11100_v36 }
 0x609   : > { %v3980_v2 = vpop.f32.mrf.mxu2  ;;  %v3951_v53 = vpop.f32.mrf.mxu1 }
 0x60a   : > { %v3952_v41 = vadd.f32 %v3951_v53, %v10864_v17  ;;  %v11202_v49 = vpop.f32.mrf.mxu0 }
 0x60c   : > { %v11198_v23 = vadd.f32 %v3980_v2, %v3952_v41  ;;  %4371 = vmatmul.bf16.gmra.mxu1 %v11078_v11  ;;  %4429 = vmatmul.bf16.gmra.mxu3 %v11078_v11 }
 0x60e   : > { %v4009_v43 = vpop.f32.mrf.mxu3 }
 0x60f   : > { %v4010_v28 = vadd.f32 %v4009_v43, %v11082_v37 }
 0x611   : > { %v11205_v22 = vpop.f32.mrf.mxu2  ;;  %v11207_v33 = vadd.f32 %v4038_v34, %v4010_v28  ;;  %v11209_v54 = vpop.f32.mrf.mxu1  ;;  %v6874_v34 = vld [vmem:[#allocation3 + $0x58] sm:$0xf0] }
 0x612   : > { %v4043_v12 = vpop.f32.mrf.mxu0  ;;  %v11237_v53 = vor.u32 %v7211_v47, %v6874_v34 }
 0x614   : > { %6826 = vmatmul.msk.bf16.gmra.mxu0 %vm3570_vm9, %v11100_v36  ;;  %13065 = vst [vmem:[#allocation6_spill] sm:$0xff] %v11237_v53  ;;  %5257 = vrot.lane.b32.xlu0 %v11237_v53, %s7278_s15 }
 0x616   : > { %v11213_v17 = vpop.f32.mrf.mxu3 }
 0x617   : > { %6823 = vmatmul.msk.bf16.gmra.mxu2 %vm3570_vm9, %v11135_v4 }
 0x619   : > { %v3985_v11 = vpop.f32.mrf.mxu2  ;;  %v3956_v0 = vpop.f32.mrf.mxu1 }
 0x61a   : > { %v3957_v30 = vadd.f32 %v3956_v0, %v10903_v21  ;;  %v4045_v42 = vpop.f32.mrf.mxu0  ;;  %v6922_v0 = vld [vmem:[#allocation3 + $0xb8] sm:$0xf0] }
 0x61c   : > { %v11218_v37 = vadd.f32 %v3985_v11, %v3957_v30  ;;  %4376 = vmatmul.bf16.gmra.mxu1 %v11119_v38  ;;  %4434 = vmatmul.bf16.gmra.mxu3 %v11119_v38 }
 0x61e   : > { %v4014_v18 = vpop.f32.mrf.mxu3 }
 0x61f   : > { %v4015_v1 = vadd.f32 %v4014_v18, %v11123_v60 }
 0x621   : > { %v11223_v36 = vpop.f32.mrf.mxu2  ;;  %v11225_v3 = vadd.f32 %v4043_v12, %v4015_v1  ;;  %v11227_v45 = vpop.f32.mrf.mxu1  ;;  %v7223_v12 = vld [vmem:[#allocation3 + $0xac] sm:$0xf] }
 0x622   : > { %v11252_v30 = vor.u32 %v7223_v12, %v6922_v0 }
 0x624   : > { %6827 = vmatmul.msk.bf16.gmra.mxu0 %vm3570_vm9, %v11135_v4  ;;  %v4048_v4 = vpop.f32.mrf.mxu0  ;;  %13069 = vst [vmem:[#allocation15_spill] sm:$0xff] %v11252_v30  ;;  %5281 = vrot.lane.b32.xlu0 %v11252_v30, %s7278_s15 }
 0x626   : > { %v4016_v21 = vpop.f32.mrf.mxu3 }
 0x627   : > { %6824 = vmatmul.msk.bf16.gmra.mxu2 %vm3570_vm9, %v11167_v29  ;;  %v4017_v7 = vadd.f32 %v4016_v21, %v11137_v44 }
 0x629   : > { %v11234_v38 = vadd.f32 %v4045_v42, %v4017_v7  ;;  %v3961_v31 = vpop.f32.mrf.mxu1  ;;  %v3990_v60 = vpop.f32.mrf.mxu2  ;;  %v7207_v7 = vld [vmem:[#allocation3 + $0x2c] sm:$0xf] }
 0x62a   : > { %v3962_v2 = vadd.f32 %v3961_v31, %v10935_v46  ;;  %v6858_v31 = vld [vmem:[#allocation3 + $0x38] sm:$0xf0] }
 0x62b   : > { %v11262_v34 = vor.u32 %v7207_v7, %v6858_v31  ;;  %v7018_v7 = vld [vmem:[#allocation3 + $0x178] sm:$0xf0]  ;;  %v7215_v31 = vld [vmem:[#allocation3 + $0x6c] sm:$0xf] }
 0x62c   : > { %v11239_v41 = vadd.f32 %v3990_v60, %v3962_v2  ;;  %4381 = vmatmul.bf16.gmra.mxu1 %v11151_v24  ;;  %4439 = vmatmul.bf16.gmra.mxu3 %v11151_v24  ;;  %v4050_v18 = vpop.f32.mrf.mxu0  ;;  %v7235_v60 = vld [vmem:[#allocation3 + $0x10c] sm:$0xf]  ;;  %v6970_v2 = vld [vmem:[#allocation3 + $0x118] sm:$0xf0] }
 0x62d   : > { %13071 = vst [vmem:[#allocation41_spill] sm:$0xff] %v11262_v34  ;;  %5249 = vrot.lane.b32.xlu2 %v11262_v34, %s7278_s15 }
 0x62e   : > { %v4019_v44 = vpop.f32.mrf.mxu3 }
 0x62f   : > { %v4020_v43 = vadd.f32 %v4019_v44, %v11155_v14  ;;  %v11264_v44 = vor.u32 %v7235_v60, %v6970_v2  ;;  %v6890_v60 = vld [vmem:[#allocation3 + $0x78] sm:$0xf0] }
 0x630   : > { %v11288_v2 = vor.u32 %v7215_v31, %v6890_v60  ;;  %v7227_v60 = vld [vmem:[#allocation3 + $0xcc] sm:$0xf] }
 0x631   : > { %v11246_v28 = vadd.f32 %v4048_v4, %v4020_v43  ;;  %v11248_v11 = vpop.f32.mrf.mxu1  ;;  %v11250_v46 = vpop.f32.mrf.mxu2  ;;  %v6842_v4 = vld [vmem:[#allocation3 + $0x18] sm:$0xf0]  ;;  %13072 = vst [vmem:[#allocation9_spill] sm:$0xff] %v11264_v44  ;;  %5305 = vrot.lane.b32.xlu0 %v11264_v44, %s7278_s15 }
 0x632   : > { %13067 = vst [vmem:[#allocation34_spill] sm:$0xff] %v11248_v11  ;;  %v6954_v44 = vld [vmem:[#allocation3 + $0xf8] sm:$0xf0]  ;;  %v7239_v11 = vld [vmem:[#allocation3 + $0x12c] sm:$0xf] }
 0x633   : > { %13066 = vst [vmem:[#allocation19_spill] sm:$0xff] %v11246_v28 }
 0x634   : > { %13068 = vst [vmem:[#allocation40_spill] sm:$0xff] %v11250_v46  ;;  %6828 = vmatmul.msk.bf16.gmra.mxu0 %vm3570_vm9, %v11167_v29  ;;  %v7203_v29 = vld [vmem:[#allocation3 + $0xc] sm:$0xf] }
 0x635   : > { %v11266_v43 = vor.u32 %v7203_v29, %v6842_v4  ;;  %13076 = vst [vmem:[#allocation18_spill] sm:$0xff] %v11288_v2 }
 0x636   : > { %v4021_v24 = vpop.f32.mrf.mxu3 }
 0x637   : > { %v4022_v14 = vadd.f32 %v4021_v24, %v11169_v32  ;;  %13073 = vst [vmem:[#allocation27_spill] sm:$0xff] %v11266_v43  ;;  %5241 = vrot.lane.b32.xlu1 %v11266_v43, %s7278_s15  ;;  %v7219_v24 = vld [vmem:[#allocation3 + $0x8c] sm:$0xf] }
 0x639   : > { %v11259_v1 = vadd.f32 %v4050_v18, %v4022_v14  ;;  %v4062_v42 = vpop.f32.mrf.mxu1  ;;  %v4091_v21 = vpop.f32.mrf.mxu2  ;;  %v6906_v18 = vld [vmem:[#allocation3 + $0x98] sm:$0xf0]  ;;  %v7247_v14 = vld [vmem:[#allocation3 + $0x16c] sm:$0xf] }
 0x63a   : > { %v4063_v47 = vadd.f32 %v4062_v42, %v11049_v50 }
 0x63b   : > { %13070 = vst [vmem:[#allocation54_spill] sm:$0xff] %v11259_v1  ;;  %v6938_v1 = vld [vmem:[#allocation3 + $0xd8] sm:$0xf0] }
 0x63c   : > { %v11268_v12 = vadd.f32 %v4091_v21, %v4063_v47  ;;  %v11284_v21 = vor.u32 %v7219_v24, %v6906_v18  ;;  %v11286_v47 = vor.u32 %v7247_v14, %v7018_v7  ;;  %v7231_v18 = vld [vmem:[#allocation3 + $0xec] sm:$0xf]  ;;  %v11303_v46 = vor.u32 %v7227_v60, %v6938_v1  ;;  %v7002_v60 = vld [vmem:[#allocation3 + $0x158] sm:$0xf0] }
 0x63d   : > { %v11301_v31 = vor.u32 %v7231_v18, %v6954_v44  ;;  %v3745_v44 = vadd.f32 %v11080_v56, %v11114_v27  ;;  %v7243_v1 = vld [vmem:[#allocation3 + $0x14c] sm:$0xf] }
 0x63e   : > { %13074 = vst [vmem:[#allocation22_spill] sm:$0xff] %v11284_v21  ;;  %5273 = vrot.lane.b32.xlu2 %v11284_v21, %s7278_s15  ;;  %5329 = vrot.lane.b32.xlu0 %v11286_v47, %s7278_s15  ;;  %v11319_v28 = vor.u32 %v7243_v1, %v7002_v60 }
 0x63f   : > { %v11276_v50 = vpop.f32.mrf.mxu3  ;;  %13075 = vst [vmem:[#allocation37_spill] sm:$0xff] %v11286_v47  ;;  %5265 = vrot.lane.b32.xlu1 %v11288_v2, %s7278_s15 }
 0x640   : > { %13077 = vst [vmem:[#allocation56_spill] sm:$0xff] %v11303_v46 }
 0x641   : > { %v11278_v32 = vpop.f32.mrf.mxu1  ;;  %v11280_v0 = vpop.f32.mrf.mxu2 }
 0x642   : > { %v11282_v42 = vpop.f32.mrf.mxu0 }
 0x646   : > { %5297 = vrot.lane.b32.xlu2 %v11301_v31, %s7278_s15  ;;  %5512 = vrot.lane.b32.xlu0 %v11237_v53, %s7279_s16  ;;  %v11321_v53 = vor.u32 %v7239_v11, %v6986_v5 }
 0x647   : > { %v11296_v29 = vpop.f32.mrf.mxu3  ;;  %5289 = vrot.lane.b32.xlu1 %v11303_v46, %s7278_s15 }
 0x648   : > { %13078 = vst [vmem:[#allocation12_spill] sm:$0xff] %v11321_v53 }
 0x649   : > { %v4067_v4 = vpop.f32.mrf.mxu1 }
 0x64a   : > { %v4096_v24 = vpop.f32.mrf.mxu2  ;;  %v4068_v14 = vadd.f32 %v4067_v4, %v11095_v19  ;;  %v11299_v7 = vpop.f32.mrf.mxu0 }
 0x64c   : > { %v11305_v47 = vadd.f32 %v4096_v24, %v4068_v14 }
 0x64e   : > { %5321 = vrot.lane.b32.xlu2 %v11319_v28, %s7278_s15  ;;  %5544 = vrot.lane.b32.xlu0 %v11303_v46, %s7279_s16 }
 0x64f   : > { %v11313_v19 = vpop.f32.mrf.mxu3  ;;  %5313 = vrot.lane.b32.xlu1 %v11321_v53, %s7278_s15 }
 0x651   : > { %v4069_v4 = vpop.f32.mrf.mxu1 }
 0x652   : > { %v4098_v18 = vpop.f32.mrf.mxu2  ;;  %v4070_v24 = vadd.f32 %v4069_v4, %v3745_v44  ;;  %v11317_v14 = vpop.f32.mrf.mxu0 }
 0x654   : > { %v11323_v6 = vadd.f32 %v4098_v18, %v4070_v24  ;;  %v3750_v18 = vadd.f32 %v11121_v16, %v11147_v63 }
 0x656   : > { %5504 = vrot.lane.b32.xlu2 %v11262_v34, %s7279_s16  ;;  %5536 = vrot.lane.b32.xlu0 %v11252_v30, %s7279_s16 }
 0x657   : > { %v11331_v56 = vpop.f32.mrf.mxu3  ;;  %5496 = vrot.lane.b32.xlu1 %v11266_v43, %s7279_s16 }
 0x659   : > { %v4072_v27 = vpop.f32.mrf.mxu1 }
 0x65a   : > { %v4101_v44 = vpop.f32.mrf.mxu2  ;;  %v4073_v4 = vadd.f32 %v4072_v27, %v11133_v55  ;;  %v11334_v1 = vpop.f32.mrf.mxu0 }
 0x65c   : > { %v11336_v5 = vadd.f32 %v4101_v44, %v4073_v4 }
 0x65e   : > { %5552 = vrot.lane.b32.xlu2 %v11301_v31, %s7279_s16  ;;  %5528 = vrot.lane.b32.xlu0 %v11284_v21, %s7279_s16 }
 0x65f   : > { %v4319_v11 = vpop.f32.mrf.mxu3  ;;  %5520 = vrot.lane.b32.xlu1 %v11288_v2, %s7279_s16  ;;  %v4339_v2 = vadd.f32 %v11282_v42, %v11276_v50 }
 0x661   : > { %v4074_v60 = vpop.f32.mrf.mxu1 }
 0x662   : > { %v4103_v24 = vpop.f32.mrf.mxu2  ;;  %v4075_v55 = vadd.f32 %v4074_v60, %v3750_v18  ;;  %v4348_v27 = vpop.f32.mrf.mxu0 }
 0x663   : > { %v4349_v53 = vadd.f32 %v4348_v27, %v4319_v11 }
 0x664   : > { %v11346_v44 = vadd.f32 %v4103_v24, %v4075_v55 }
 0x665   : > { %v11351_v4 = vadd.f32 %v4349_v53, %v11218_v37  ;;  %v3755_v37 = vadd.f32 %v11153_v59, %v11173_v10 }
 0x667   : > { %v4321_v16 = vpop.f32.mrf.mxu3 }
 0x669   : > { %v4077_v63 = vpop.f32.mrf.mxu1 }
 0x66a   : > { %v4106_v34 = vpop.f32.mrf.mxu2  ;;  %v4078_v18 = vadd.f32 %v4077_v63, %v11165_v39  ;;  %v4350_v11 = vpop.f32.mrf.mxu0  ;;  %v4474_v63 = vadd.f32 %v4339_v2, %v11180_v35 }
 0x66b   : > { %v11358_v60 = vadd.f32 %v4350_v11, %v4321_v16 }
 0x66c   : > { %v11360_v24 = vadd.f32 %v4106_v34, %v4078_v18  ;;  %v3624_v34 = vadd.f32 %v10838_v52, %v10833_v15  ;;  %v4007_v15 = vadd.f32 %v11193_v13, %v11059_v40 }
 0x66e   : > { %v3949_v18 = vadd.f32 %v11189_v9, %v3624_v34 }
 0x66f   : > { %v4324_v55 = vpop.f32.mrf.mxu3 }
 0x670   : > { %v3978_v50 = vadd.f32 %v11185_v57, %v3949_v18 }
 0x671   : > { %v4079_v53 = vpop.f32.mrf.mxu1 }
 0x672   : > { %v4108_v27 = vpop.f32.mrf.mxu2  ;;  %v4080_v43 = vadd.f32 %v4079_v53, %v3755_v37  ;;  %v4353_v21 = vpop.f32.mrf.mxu0 }
 0x673   : > { %v4354_v30 = vadd.f32 %v4353_v21, %v4324_v55  ;;  %v4509_v55 = vpop.permute.xlu2 %4508 }
 0x674   : > { %v11366_v46 = vadd.f32 %v4108_v27, %v4080_v43  ;;  %v4546_v43 = vadd.f32 %v4509_v55, %v4474_v63 }
 0x675   : > { %v11369_v39 = vadd.f32 %v4354_v30, %v11239_v41  ;;  %v4341_v41 = vadd.f32 %v11299_v7, %v11296_v29  ;;  %v4514_v29 = vpop.permute.xlu0 %4513 }
 0x676   : > { %v4570_v42 = vmax.f32 %v4546_v43, 0.0 }
 0x677   : > { %v4326_v16 = vpop.f32.mrf.mxu3  ;;  %v4477_v9 = vadd.f32 %v4341_v41, %v3978_v50  ;;  %v13080_v41 = vld [vmem:[#allocation59_spill] sm:$0xff]  ;;  %v3740_v50 = vadd.f32 %v11029_v25, %v11072_v26  ;;  %v4346_v26 = vadd.f32 %v11334_v1, %v11331_v56 }
 0x679   : > { %v4367_v59 = vpop.f32.mrf.mxu1  ;;  %v4549_v7 = vadd.f32 %v4514_v29, %v4477_v9  ;;  %v4065_v9 = vadd.f32 %v11278_v32, %v3740_v50 }
 0x67a   : > { %v4396_v10 = vpop.f32.mrf.mxu2  ;;  %v4355_v11 = vpop.f32.mrf.mxu0 }
 0x67b   : > { %v4397_v21 = vadd.f32 %v4396_v10, %v4367_v59  ;;  %v11375_v37 = vadd.f32 %v4355_v11, %v4326_v16  ;;  %v4036_v16 = vadd.f32 %v11178_v20, %v4007_v15  ;;  %v3629_v20 = vadd.f32 %v10885_v58, %v10881_v8 }
 0x67c   : > { %v4573_v15 = vmax.f32 %v4549_v7, 0.0 }
 0x67d   : > { %v4475_v30 = vadd.f32 %v4397_v21, %v11187_v61  ;;  %v4344_v61 = vadd.f32 %v11317_v14, %v11313_v19  ;;  %v13079_v21 = vld [vmem:[#allocation58_spill] sm:$0xff] }
 0x67f   : > { %v4547_v52 = vadd.f32 %v4509_v55, %v4475_v30  ;;  %v4425_v35 = vpop.f32.mrf.mxu3  ;;  %v4480_v19 = vadd.f32 %v4344_v61, %v11198_v23  ;;  %v4094_v61 = vadd.f32 %v11280_v0, %v4065_v9 }
 0x681   : > { %v4571_v2 = vmax.f32 %v4547_v52, 0.0  ;;  %v4369_v53 = vpop.f32.mrf.mxu1 }
 0x682   : > { %v4398_v27 = vpop.f32.mrf.mxu2  ;;  %v4454_v59 = vpop.f32.mrf.mxu0 }
 0x683   : > { %v4594_v34 = vpack.c.bf16 %v4571_v2, %v4570_v42  ;;  %v4399_v63 = vadd.f32 %v4398_v27, %v4369_v53  ;;  %v4455_v57 = vadd.f32 %v4454_v59, %v4425_v35 }
 0x685   : > { %v4610_v10 = vunpack.c.l.bf16 %v4594_v34  ;;  %v4611_v40 = vunpack.c.h.bf16 %v4594_v34  ;;  %v4478_v13 = vadd.f32 %v4399_v63, %v4036_v16  ;;  %v4476_v18 = vadd.f32 %v4455_v57, %v11268_v12  ;;  %v11396_v16 = vpop.permute.xlu1 %4518 }
 0x686   : > { %v3954_v12 = vadd.f32 %v11209_v54, %v3629_v20  ;;  %v4552_v25 = vadd.f32 %v11396_v16, %v4480_v19  ;;  %v4012_v57 = vadd.f32 %v11213_v17, %v11103_v51 }
 0x687   : > { %v4550_v11 = vadd.f32 %v4514_v29, %v4478_v13  ;;  %v4634_v43 = vmul.f32 %v4610_v10, %v13079_v21  ;;  %v4635_v30 = vmul.f32 %v4611_v40, %v13080_v41  ;;  %v4548_v14 = vadd.f32 %v4509_v55, %v4476_v18  ;;  %v4427_v35 = vpop.f32.mrf.mxu3 }
 0x688   : > { %v3983_v59 = vadd.f32 %v11205_v22, %v3954_v12  ;;  %v4576_v13 = vmax.f32 %v4552_v25, 0.0  ;;  %v11412_v22 = vpop.permute.xlu2 %4523  ;;  %v4041_v0 = vadd.f32 %v11202_v49, %v4012_v57  ;;  %v11424_v25 = vpop.permute.xlu0 %4528 }
 0x689   : > { %v4574_v52 = vmax.f32 %v4550_v11, 0.0  ;;  %v4658_v42 = vpack.c.bf16 %v4635_v30, %v4634_v43  ;;  %v4572_v2 = vmax.f32 %v4548_v14, 0.0  ;;  %v4372_v53 = vpop.f32.mrf.mxu1  ;;  %v13081_v14 = vld [vmem:[#allocation30_spill] sm:$0xff] }
 0x68a   : > { %v4401_v27 = vpop.f32.mrf.mxu2  ;;  %v4456_v34 = vpop.f32.mrf.mxu0  ;;  %v4483_v1 = vadd.f32 %v4346_v26, %v3983_v59 }
 0x68b   : > { %v4596_v8 = vpack.c.bf16 %v4574_v52, %v4573_v15  ;;  %v4402_v58 = vadd.f32 %v4401_v27, %v4372_v53  ;;  %4890 = vrot.lane.b32.xlu0 %v4658_v42, %s7282_s17  ;;  %4794 = vrot.lane.b32.xlu2 %v4658_v42, %s7283_s18  ;;  %v4457_v23 = vadd.f32 %v4456_v34, %v4427_v35 }
 0x68c   : > { %4698 = vrot.lane.b32.xlu1 %v4658_v42, %s7284_s19  ;;  %v4595_v55 = vpack.c.bf16 %v4572_v2, %v4572_v2  ;;  %v4555_v17 = vadd.f32 %v11412_v22, %v4483_v1  ;;  %v3634_v35 = vadd.f32 %v10921_v48, %v10919_v62  ;;  %v4558_v62 = vadd.f32 %v11424_v25, %v11351_v4 }
 0x68d   : > { %v4613_v54 = vunpack.c.l.bf16 %v4596_v8  ;;  %v4614_v32 = vunpack.c.h.bf16 %v4596_v8  ;;  %v4481_v63 = vadd.f32 %v4402_v58, %v11207_v33  ;;  %v4479_v40 = vadd.f32 %v4457_v23, %v4094_v61 }
 0x68e   : > { %v4612_v18 = vunpack.c.l.bf16 %v4595_v55  ;;  %v4579_v49 = vmax.f32 %v4555_v17, 0.0 }
 0x68f   : > { %v4553_v7 = vadd.f32 %v11396_v16, %v4481_v63  ;;  %v4637_v10 = vmul.f32 %v4613_v54, %v13079_v21  ;;  %v4638_v56 = vmul.f32 %v4614_v32, %v13080_v41  ;;  %v4551_v50 = vadd.f32 %v4514_v29, %v4479_v40  ;;  %v4430_v53 = vpop.f32.mrf.mxu3 }
 0x690   : > { %v4636_v15 = vmul.f32 %v4612_v18, %v13081_v14  ;;  %v3959_v29 = vadd.f32 %v11227_v45, %v3634_v35  ;;  %v11436_v61 = vpop.permute.xlu2 %4538 }
 0x691   : > { %v4577_v11 = vmax.f32 %v4553_v7, 0.0  ;;  %v4660_v43 = vpack.c.bf16 %v4638_v56, %v4637_v10  ;;  %v4374_v33 = vpop.f32.mrf.mxu1  ;;  %v4575_v42 = vmax.f32 %v4551_v50, 0.0  ;;  %v4582_v7 = vmax.f32 %v4558_v62, 0.0 }
 0x692   : > { %v4403_v30 = vpop.f32.mrf.mxu2  ;;  %v4459_v27 = vpop.f32.mrf.mxu0  ;;  %v4659_v8 = vpack.c.bf16 %v4636_v15, %v4636_v15  ;;  %v3988_v63 = vadd.f32 %v11223_v36, %v3959_v29 }
 0x693   : > { %v4598_v20 = vpack.c.bf16 %v4577_v11, %v4576_v13  ;;  %v4404_v51 = vadd.f32 %v4403_v30, %v4374_v33  ;;  %4894 = vrot.lane.b32.xlu2 %v4660_v43, %s7282_s17  ;;  %4702 = vrot.lane.b32.xlu0 %v4660_v43, %s7284_s19  ;;  %v4460_v48 = vadd.f32 %v4459_v27, %v4430_v53  ;;  %v11440_v13 = vpop.permute.xlu1 %4533 }
 0x694   : > { %4798 = vrot.lane.b32.xlu1 %v4660_v43, %s7283_s18  ;;  %v4597_v54 = vpack.c.bf16 %v4575_v42, %v4575_v42  ;;  %v4489_v57 = vadd.f32 %v11358_v60, %v3988_v63 }
 0x695   : > { %v4484_v19 = vadd.f32 %v4404_v51, %v4041_v0  ;;  %v4616_v12 = vunpack.c.l.bf16 %v4598_v20  ;;  %v4617_v9 = vunpack.c.h.bf16 %v4598_v20  ;;  %v4482_v4 = vadd.f32 %v4460_v48, %v11305_v47  ;;  %v11449_v47 = vpop.permute.xlu0 %4543  ;;  %v13082_v0 = vld [vmem:[#allocation31_spill] sm:$0xff]  ;;  %v13083_v20 = vld [vmem:[#allocation61_spill] sm:$0xff] }
 0x696   : > { %v4615_v10 = vunpack.c.l.bf16 %v4597_v54  ;;  %v4561_v36 = vadd.f32 %v11440_v13, %v4489_v57  ;;  %v3639_v51 = vadd.f32 %v13083_v20, %v13082_v0  ;;  %v13086_v54 = vld [vmem:[#allocation40_spill] sm:$0xff] }
 0x697   : > { %v4556_v52 = vadd.f32 %v11412_v22, %v4484_v19  ;;  %v4640_v45 = vmul.f32 %v4616_v12, %v13079_v21  ;;  %v4641_v55 = vmul.f32 %v4617_v9, %v13080_v41  ;;  %v4554_v60 = vadd.f32 %v11396_v16, %v4482_v4  ;;  %v4432_v16 = vpop.f32.mrf.mxu3  ;;  %v13084_v12 = vld [vmem:[#allocation34_spill] sm:$0xff] }
 0x698   : > { %v4639_v33 = vmul.f32 %v4615_v10, %v13081_v14  ;;  %v4585_v17 = vmax.f32 %v4561_v36, 0.0  ;;  %v11456_v19 = vpop.permute.xlu2 %5249  ;;  %v3964_v9 = vadd.f32 %v13084_v12, %v3639_v51 }
 0x699   : > { %v4580_v2 = vmax.f32 %v4556_v52, 0.0  ;;  %v4377_v58 = vpop.f32.mrf.mxu1  ;;  %v4662_v1 = vpack.c.bf16 %v4641_v55, %v4640_v45  ;;  %v4578_v50 = vmax.f32 %v4554_v60, 0.0 }
 0x69a   : > { %v4406_v34 = vpop.f32.mrf.mxu2  ;;  %v4461_v35 = vpop.f32.mrf.mxu0  ;;  %v4661_v42 = vpack.c.bf16 %v4639_v33, %v4639_v33 }
 0x69b   : > { %v4600_v26 = vpack.c.bf16 %v4580_v2, %v4579_v49  ;;  %v4407_v23 = vadd.f32 %v4406_v34, %v4377_v58  ;;  %4700 = vrot.lane.b32.xlu2 %v4659_v8, %s7284_s19  ;;  %4796 = vrot.lane.b32.xlu0 %v4659_v8, %s7283_s18  ;;  %v4462_v29 = vadd.f32 %v4461_v35, %v4432_v16  ;;  %v13085_v34 = vld [vmem:[#allocation19_spill] sm:$0xff] }
 0x69c   : > { %4892 = vrot.lane.b32.xlu1 %v4659_v8, %s7282_s17  ;;  %v4564_v8 = vadd.f32 %v11436_v61, %v11369_v39  ;;  %v4599_v58 = vpack.c.bf16 %v4578_v50, %v4578_v50 }
 0x69d   : > { %v4487_v32 = vadd.f32 %v4407_v23, %v11225_v3  ;;  %v4619_v15 = vunpack.c.l.bf16 %v4600_v26  ;;  %v4620_v52 = vunpack.c.h.bf16 %v4600_v26  ;;  %v11469_v48 = vpop.permute.xlu0 %5257  ;;  %v4485_v39 = vadd.f32 %v4462_v29, %v11323_v6  ;;  %v13087_v6 = vld [vmem:[#allocation54_spill] sm:$0xff] }
 0x69e   : > { %v4588_v63 = vmax.f32 %v4564_v8, 0.0 }
 0x69f   : > { %v4559_v59 = vadd.f32 %v11424_v25, %v4487_v32  ;;  %v4643_v23 = vmul.f32 %v4619_v15, %v13079_v21  ;;  %v4644_v62 = vmul.f32 %v4620_v52, %v13080_v41  ;;  %v3993_v32 = vadd.f32 %v13086_v54, %v3964_v9  ;;  %v4435_v50 = vpop.f32.mrf.mxu3 }
 0x6a1   : > { %v4583_v56 = vmax.f32 %v4559_v59, 0.0  ;;  %v4379_v40 = vpop.f32.mrf.mxu1  ;;  %v4495_v55 = vadd.f32 %v11375_v37, %v3993_v32  ;;  %v4618_v59 = vunpack.c.l.bf16 %v4599_v58  ;;  %v4664_v4 = vpack.c.bf16 %v4644_v62, %v4643_v23 }
 0x6a2   : > { %v4408_v3 = vpop.f32.mrf.mxu2  ;;  %v4557_v37 = vadd.f32 %v11412_v22, %v4485_v39  ;;  %v4464_v22 = vpop.f32.mrf.mxu0 }
 0x6a3   : > { %v11442_v18 = vpack.c.bf16 %v4583_v56, %v4582_v7  ;;  %v4409_v11 = vadd.f32 %v4408_v3, %v4379_v40  ;;  %4706 = vrot.lane.b32.xlu2 %v4662_v1, %s7284_s19  ;;  %4802 = vrot.lane.b32.xlu0 %v4662_v1, %s7283_s18  ;;  %v11479_v40 = vpop.permute.xlu2 %5273  ;;  %v4567_v3 = vadd.f32 %v11449_v47, %v4495_v55 }
 0x6a4   : > { %4898 = vrot.lane.b32.xlu1 %v4662_v1, %s7282_s17  ;;  %v4642_v36 = vmul.f32 %v4618_v59, %v13081_v14  ;;  %v4465_v16 = vadd.f32 %v4464_v22, %v4435_v50 }
 0x6a5   : > { %v4490_v43 = vadd.f32 %v4409_v11, %v11234_v38  ;;  %v4591_v33 = vmax.f32 %v4567_v3, 0.0  ;;  %v4622_v0 = vunpack.c.l.bf16 %v11442_v18  ;;  %v4623_v20 = vunpack.c.h.bf16 %v11442_v18 }
 0x6a6   : > { %v4488_v12 = vadd.f32 %v4465_v16, %v11336_v5 }
 0x6a7   : > { %v4562_v30 = vadd.f32 %v11440_v13, %v4490_v43  ;;  %v11487_v43 = vpop.permute.xlu0 %5281  ;;  %v4646_v35 = vmul.f32 %v4622_v0, %v13079_v21  ;;  %v4437_v23 = vpop.f32.mrf.mxu3 }
 0x6a9   : > { %v4586_v49 = vmax.f32 %v4562_v30, 0.0  ;;  %v4382_v38 = vpop.f32.mrf.mxu1  ;;  %v4581_v30 = vmax.f32 %v4557_v37, 0.0 }
 0x6aa   : > { %v4411_v2 = vpop.f32.mrf.mxu2  ;;  %v4466_v62 = vpop.f32.mrf.mxu0 }
 0x6ab   : > { %v11459_v53 = vpack.c.bf16 %v4586_v49, %v4585_v17  ;;  %v4412_v27 = vadd.f32 %v4411_v2, %v4382_v38  ;;  %4800 = vrot.lane.b32.xlu2 %v4661_v42, %s7283_s18  ;;  %4896 = vrot.lane.b32.xlu0 %v4661_v42, %s7282_s17  ;;  %v4663_v17 = vpack.c.bf16 %v4642_v36, %v4642_v36  ;;  %v11503_v2 = vpop.permute.xlu1 %5241 }
 0x6ac   : > { %4704 = vrot.lane.b32.xlu1 %v4661_v42, %s7284_s19  ;;  %v4601_v52 = vpack.c.bf16 %v4581_v30, %v4581_v30  ;;  %v4647_v49 = vmul.f32 %v4623_v20, %v13080_v41  ;;  %v11498_v42 = vpop.permute.xlu2 %5297 }
 0x6ad   : > { %v4493_v26 = vadd.f32 %v4412_v27, %v13085_v34  ;;  %v4560_v27 = vadd.f32 %v11424_v25, %v4488_v12  ;;  %v4625_v58 = vunpack.c.l.bf16 %v11459_v53  ;;  %v4626_v5 = vunpack.c.h.bf16 %v11459_v53 }
 0x6ae   : > { %v4621_v18 = vunpack.c.l.bf16 %v4601_v52  ;;  %v4666_v9 = vpack.c.bf16 %v4647_v49, %v4646_v35 }
 0x6af   : > { %v4565_v45 = vadd.f32 %v11436_v61, %v4493_v26  ;;  %v11501_v38 = vpop.permute.xlu0 %5305  ;;  %v4584_v34 = vmax.f32 %v4560_v27, 0.0  ;;  %v4649_v55 = vmul.f32 %v4625_v58, %v13079_v21  ;;  %v4650_v53 = vmul.f32 %v4626_v5, %v13080_v41  ;;  %v4440_v3 = vpop.f32.mrf.mxu3 }
 0x6b0   : > { %13088 = vst [vmem:[#allocation25_spill] sm:$0xff] %v11501_v38  ;;  %v4645_v8 = vmul.f32 %v4621_v18, %v13081_v14 }
 0x6b1   : > { %v4589_v57 = vmax.f32 %v4565_v45, 0.0  ;;  %v4384_v7 = vpop.f32.mrf.mxu1  ;;  %v4603_v32 = vpack.c.bf16 %v4584_v34, %v4584_v34  ;;  %v4467_v45 = vadd.f32 %v4466_v62, %v4437_v23  ;;  %v4668_v59 = vpack.c.bf16 %v4650_v53, %v4649_v55 }
 0x6b2   : > { %v4413_v10 = vpop.f32.mrf.mxu2  ;;  %v4665_v26 = vpack.c.bf16 %v4645_v8, %v4645_v8  ;;  %v4469_v37 = vpop.f32.mrf.mxu0 }
 0x6b3   : > { %v11475_v56 = vpack.c.bf16 %v4589_v57, %v4588_v63  ;;  %v4414_v1 = vadd.f32 %v4413_v10, %v4384_v7  ;;  %4806 = vrot.lane.b32.xlu2 %v4664_v4, %s7283_s18  ;;  %4902 = vrot.lane.b32.xlu0 %v4664_v4, %s7282_s17  ;;  %v11519_v25 = vpop.permute.xlu1 %5265  ;;  %v4624_v39 = vunpack.c.l.bf16 %v4603_v32  ;;  %v4491_v63 = vadd.f32 %v4467_v45, %v11346_v44 }
 0x6b4   : > { %4710 = vrot.lane.b32.xlu1 %v4664_v4, %s7284_s19  ;;  %v11510_v29 = vpop.permute.xlu2 %5321 }
 0x6b5   : > { %v4496_v11 = vadd.f32 %v4414_v1, %v13087_v6  ;;  %13089 = vst [vmem:[#allocation38_spill] sm:$0xff] %v11510_v29  ;;  %v4563_v4 = vadd.f32 %v11440_v13, %v4491_v63  ;;  %v4648_v7 = vmul.f32 %v4624_v39, %v13081_v14  ;;  %v4628_v44 = vunpack.c.l.bf16 %v11475_v56 }
 0x6b6   : > { %v4629_v6 = vunpack.c.h.bf16 %v11475_v56  ;;  %v4470_v13 = vadd.f32 %v4469_v37, %v4440_v3 }
 0x6b7   : > { %v4568_v60 = vadd.f32 %v11449_v47, %v4496_v11  ;;  %v11516_v54 = vpop.permute.xlu0 %5329  ;;  %v4587_v11 = vmax.f32 %v4563_v4, 0.0  ;;  %v4667_v36 = vpack.c.bf16 %v4648_v7, %v4648_v7  ;;  %v4652_v30 = vmul.f32 %v4628_v44, %v13079_v21  ;;  %v4442_v22 = vpop.f32.mrf.mxu3 }
 0x6b8   : > { %v4653_v0 = vmul.f32 %v4629_v6, %v13080_v41  ;;  %v4494_v56 = vadd.f32 %v4470_v13, %v11360_v24 }
 0x6b9   : > { %v4592_v51 = vmax.f32 %v4568_v60, 0.0 }
 0x6ba   : > { %v4670_v50 = vpack.c.bf16 %v4653_v0, %v4652_v30  ;;  %v4471_v52 = vpop.f32.mrf.mxu0  ;;  %v4566_v16 = vadd.f32 %v11436_v61, %v4494_v56 }
 0x6bb   : > { %v11491_v15 = vpack.c.bf16 %v4592_v51, %v4591_v33  ;;  %4900 = vrot.lane.b32.xlu2 %v4663_v17, %s7282_s17  ;;  %4708 = vrot.lane.b32.xlu0 %v4663_v17, %s7284_s19  ;;  %v11533_v1 = vpop.permute.xlu1 %5289  ;;  %v4605_v33 = vpack.c.bf16 %v4587_v11, %v4587_v11  ;;  %v4472_v35 = vadd.f32 %v4471_v52, %v4442_v22 }
 0x6bc   : > { %4804 = vrot.lane.b32.xlu1 %v4663_v17, %s7283_s18  ;;  %v11524_v57 = vpop.permute.xlu2 %5504  ;;  %v4590_v12 = vmax.f32 %v4566_v16, 0.0 }
 0x6bd   : > { %13090 = vst [vmem:[#allocation21_spill] sm:$0xff] %v11524_v57  ;;  %v4627_v17 = vunpack.c.l.bf16 %v4605_v33  ;;  %v4631_v27 = vunpack.c.l.bf16 %v11491_v15  ;;  %v4632_v8 = vunpack.c.h.bf16 %v11491_v15  ;;  %v4497_v61 = vadd.f32 %v4472_v35, %v11366_v46 }
 0x6be   : > { %v4607_v23 = vpack.c.bf16 %v4590_v12, %v4590_v12 }
 0x6bf   : > { %v11531_v10 = vpop.permute.xlu0 %5512  ;;  %v4651_v18 = vmul.f32 %v4627_v17, %v13081_v14  ;;  %v4569_v62 = vadd.f32 %v11449_v47, %v4497_v61  ;;  %v4655_v46 = vmul.f32 %v4631_v27, %v13079_v21  ;;  %v4656_v32 = vmul.f32 %v4632_v8, %v13080_v41 }
 0x6c0   : > { %13091 = vst [vmem:[#allocation4_spill] sm:$0xff] %v11531_v10  ;;  %v4630_v53 = vunpack.c.l.bf16 %v4607_v23  ;;  %v13102_v61 = vmov 0  }
 0x6c1   : > { %v4669_v5 = vpack.c.bf16 %v4651_v18, %v4651_v18  ;;  %v4593_v39 = vmax.f32 %v4569_v62, 0.0 }
 0x6c2   : > { %v4654_v7 = vmul.f32 %v4630_v53, %v13081_v14 }
 0x6c3   : > { %4906 = vrot.lane.b32.xlu2 %v4666_v9, %s7282_s17  ;;  %4714 = vrot.lane.b32.xlu0 %v4666_v9, %s7284_s19  ;;  %v11547_v51 = vpop.permute.xlu1 %5313  ;;  %v4609_v47 = vpack.c.bf16 %v4593_v39, %v4593_v39 }
 0x6c4   : > { %4810 = vrot.lane.b32.xlu1 %v4666_v9, %s7283_s18  ;;  %v11539_v60 = vpop.permute.xlu2 %5552  ;;  %13094 = vst [vmem:[#allocation24_spill] sm:$0xff] %v11547_v51  ;;  %v4671_v37 = vpack.c.bf16 %v4654_v7, %v4654_v7 }
 0x6c5   : > { %13092 = vst [vmem:[#allocation16_spill] sm:$0xff] %v11539_v60  ;;  %v4633_v3 = vunpack.c.l.bf16 %v4609_v47 }
 0x6c7   : > { %v11544_v20 = vpop.permute.xlu0 %5544  ;;  %v4657_v11 = vmul.f32 %v4633_v3, %v13081_v14 }
 0x6c8   : > { %13093 = vst [vmem:[#allocation20_spill] sm:$0xff] %v11544_v20 }
 0x6c9   : > { %v4673_v14 = vpack.c.bf16 %v4657_v11, %v4657_v11 }
 0x6cb   : > { %4712 = vrot.lane.b32.xlu2 %v4665_v26, %s7284_s19  ;;  %4808 = vrot.lane.b32.xlu0 %v4665_v26, %s7283_s18 }
 0x6cc   : > { %4904 = vrot.lane.b32.xlu1 %v4665_v26, %s7282_s17  ;;  %v11568_v26 = vpop.permute.xlu1 %5496 }
 0x6cd   : > { %13097 = vst [vmem:[#allocation57_spill] sm:$0xff] %v11568_v26 }
 0x6cf   : > { %v11566_v34 = vpop.permute.xlu0 %5536 }
 0x6d0   : > { %13096 = vst [vmem:[#allocation60_spill] sm:$0xff] %v11566_v34 }
 0x6d3   : > { %4718 = vrot.lane.b32.xlu2 %v4668_v59, %s7284_s19  ;;  %4814 = vrot.lane.b32.xlu0 %v4668_v59, %s7283_s18 }
 0x6d4   : > { %4910 = vrot.lane.b32.xlu1 %v4668_v59, %s7282_s17  ;;  %v4672_v59 = vpack.c.bf16 %v4656_v32, %v4655_v46  ;;  %v11590_v41 = vpop.permute.xlu1 %5520 }
 0x6d5   : > { %13100 = vst [vmem:[#allocation23_spill] sm:$0xff] %v11590_v41 }
 0x6d7   : > { %v11587_v21 = vpop.permute.xlu0 %5528 }
 0x6d8   : > { %13099 = vst [vmem:[#allocation42_spill] sm:$0xff] %v11587_v21 }
 0x6db   : > { %4812 = vrot.lane.b32.xlu2 %v4667_v36, %s7283_s18  ;;  %4908 = vrot.lane.b32.xlu0 %v4667_v36, %s7282_s17 }
 0x6dc   : > { %4716 = vrot.lane.b32.xlu1 %v4667_v36, %s7284_s19 }
 0x6e3   : > { %4818 = vrot.lane.b32.xlu2 %v4670_v50, %s7283_s18  ;;  %4914 = vrot.lane.b32.xlu0 %v4670_v50, %s7282_s17 }
 0x6e4   : > { %4722 = vrot.lane.b32.xlu1 %v4670_v50, %s7284_s19 }
 0x6e5   : > { %v11553_v49 = vpop.permute.xlu2 %4794 }
 0x6e6   : > { %v4826_v24 = vrot.slane %v11553_v49, 4 }
 0x6e8   : > { %v4834_v9 = vsel %vm3019_vm10, %v4826_v24, %v11553_v49 }
 0x6e9   : > { %4866 = vst.msk [vmem:[#allocation3 + $0x80] sm:$0xff] %vm9797_vm11, %v4834_v9 }
 0x6eb   : > { %4912 = vrot.lane.b32.xlu2 %v4669_v5, %s7282_s17  ;;  %4720 = vrot.lane.b32.xlu0 %v4669_v5, %s7284_s19 }
 0x6ec   : > { %4816 = vrot.lane.b32.xlu1 %v4669_v5, %s7283_s18 }
 0x6ed   : > { %v11574_v15 = vpop.permute.xlu2 %4894 }
 0x6ee   : > { %v4923_v45 = vrot.slane %v11574_v15, 4 }
 0x6f0   : > { %v4932_v55 = vsel %vm3120_vm13, %v4923_v45, %v11574_v15  ;;  %v7218_v49 = vld [vmem:[#allocation3 + $0x84] sm:$0xf] }
 0x6f1   : > { %4964 = vst.msk [vmem:[#allocation3 + $0x110] sm:$0xff] %vm9817_vm14, %v4932_v55 }
 0x6f3   : > { %4918 = vrot.lane.b32.xlu2 %v4672_v59, %s7282_s17  ;;  %4726 = vrot.lane.b32.xlu0 %v4672_v59, %s7284_s19 }
 0x6f4   : > { %4822 = vrot.lane.b32.xlu1 %v4672_v59, %s7283_s18 }
 0x6f5   : > { %v4701_v4 = vpop.permute.xlu2 %4700 }
 0x6fb   : > { %4724 = vrot.lane.b32.xlu2 %v4671_v37, %s7284_s19  ;;  %4820 = vrot.lane.b32.xlu0 %v4671_v37, %s7283_s18 }
 0x6fc   : > { %4916 = vrot.lane.b32.xlu1 %v4671_v37, %s7282_s17 }
 0x6fd   : > { %v11596_v44 = vpop.permute.xlu2 %4706  ;;  %v4891_v6 = vpop.permute.xlu0 %4890 }
 0x6fe   : > { %v4699_v36 = vpop.permute.xlu1 %4698  ;;  %v4732_v13 = vrot.slane %v11596_v44, 4  ;;  %v4922_v33 = vrot.slane %v4891_v6, 4 }
 0x6ff   : > { %v4730_v30 = vrot.slane %v4699_v36, 4 }
 0x700   : > { %v4742_v0 = vsel %vm2917_vm7, %v4732_v13, %v11596_v44  ;;  %v4930_v22 = vsel %vm3120_vm13, %v4922_v33, %v4891_v6 }
 0x701   : > { %v4738_v56 = vsel %vm2917_vm7, %v4730_v30, %v4699_v36  ;;  %v4739_v17 = vsel %vm2917_vm7, %v4730_v30, %v4701_v4  ;;  %4774 = vst.msk [vmem:[#allocation3 + $0x20] sm:$0xff] %vm9771_vm8, %v4742_v0 }
 0x702   : > { %4770 = vst.msk [vmem:[#allocation3] sm:$0xff] %vm9771_vm8, %v4738_v56 }
 0x703   : > { %4771 = vst.msk [vmem:[#allocation3 + $0x8] sm:$0xf] %vm2954_vm4, %v4739_v17  ;;  %4824 = vrot.lane.b32.xlu2 %v4673_v14, %s7283_s18  ;;  %4920 = vrot.lane.b32.xlu0 %v4673_v14, %s7282_s17 }
 0x704   : > { %4962 = vst.msk [vmem:[#allocation3 + $0x100] sm:$0xff] %vm9817_vm14, %v4930_v22  ;;  %4728 = vrot.lane.b32.xlu1 %v4673_v14, %s7284_s19  ;;  %v6962_v14 = vld [vmem:[#allocation3 + $0x110] sm:$0xf0] }
 0x705   : > { %v4801_v52 = vpop.permute.xlu2 %4800  ;;  %v11617_v16 = vpop.permute.xlu0 %4702 }
 0x706   : > { %v4799_v35 = vpop.permute.xlu1 %4798  ;;  %v4731_v18 = vrot.slane %v11617_v16, 4 }
 0x707   : > { %v4827_v12 = vrot.slane %v4799_v35, 4 }
 0x708   : > { %v4740_v9 = vsel %vm2917_vm7, %v4731_v18, %v11617_v16 }
 0x709   : > { %v4836_v27 = vsel %vm3019_vm10, %v4827_v12, %v4799_v35  ;;  %v4837_v8 = vsel %vm3019_vm10, %v4827_v12, %v4801_v52  ;;  %4772 = vst.msk [vmem:[#allocation3 + $0x10] sm:$0xff] %vm9771_vm8, %v4740_v9  ;;  %v6832_v53 = vld [vmem:[#allocation3] sm:$0xf]  ;;  %v7202_v39 = vld [vmem:[#allocation3 + $0x4] sm:$0xf] }
 0x70a   : > { %4868 = vst.msk [vmem:[#allocation3 + $0x90] sm:$0xff] %vm9797_vm11, %v4836_v27  ;;  %v6896_v52 = vld [vmem:[#allocation3 + $0x80] sm:$0xf]  ;;  %v7236_v9 = vld [vmem:[#allocation3 + $0x10c] sm:$0xf0] }
 0x70b   : > { %4869 = vst.msk [vmem:[#allocation3 + $0x98] sm:$0xf] %vm3055_vm5, %v4837_v8  ;;  %v7234_v30 = vld [vmem:[#allocation3 + $0x104] sm:$0xf]  ;;  %v6960_v17 = vld [vmem:[#allocation3 + $0x100] sm:$0xf] }
 0x70c   : > { %4883 = vst.msk [vmem:[#allocation3 + $0x98] sm:$0xf] %vm3071_vm6, %v13102_v61  ;;  %v11669_v27 = vor.u32 %v7234_v30, %v6962_v14 }
 0x70d   : > { %v11633_v5 = vpop.permute.xlu2 %4806  ;;  %v4797_v23 = vpop.permute.xlu0 %4796 }
 0x70e   : > { %v4829_v62 = vrot.slane %v11633_v5, 4  ;;  %v4893_v46 = vpop.permute.xlu1 %4892  ;;  %v4835_v32 = vsel %vm3019_vm10, %v4826_v24, %v4797_v23  ;;  %v11673_v23 = vor.u32 %v7236_v9, %v6960_v17 }
 0x70f   : > { %v4931_v55 = vsel %vm3120_vm13, %v4922_v33, %v4893_v46  ;;  %4867 = vst.msk [vmem:[#allocation3 + $0x88] sm:$0xf] %vm3055_vm5, %v4835_v32 }
 0x710   : > { %v4840_v59 = vsel %vm3019_vm10, %v4829_v62, %v11633_v5  ;;  %4963 = vst.msk [vmem:[#allocation3 + $0x108] sm:$0xf] %vm3156_vm15, %v4931_v55  ;;  %v7204_v47 = vld [vmem:[#allocation3 + $0xc] sm:$0xf0]  ;;  %v6834_v4 = vld [vmem:[#allocation3 + $0x10] sm:$0xf0] }
 0x711   : > { %4872 = vst.msk [vmem:[#allocation3 + $0xb0] sm:$0xff] %vm9797_vm11, %v4840_v59  ;;  %v6898_v24 = vld [vmem:[#allocation3 + $0x90] sm:$0xf0]  ;;  %v11648_v7 = vor.u32 %v7204_v47, %v6832_v53  ;;  %v11650_v3 = vor.u32 %v7202_v39, %v6834_v4  ;;  %v7220_v0 = vld [vmem:[#allocation3 + $0x8c] sm:$0xf0] }
 0x712   : > { %4978 = vst.msk [vmem:[#allocation3 + $0x108] sm:$0xf] %vm3172_vm3, %v13102_v61  ;;  %v11654_v37 = vor.u32 %v7218_v49, %v6898_v24  ;;  %v6897_v8 = vor.u32 %v7220_v0, %v6896_v52  ;;  %v6840_v52 = vld [vmem:[#allocation3 + $0x8] sm:$0xf]  ;;  %v7206_v5 = vld [vmem:[#allocation3 + $0x24] sm:$0xf] }
 0x713   : > { %4882 = vst.msk [vmem:[#allocation3 + $0x88] sm:$0xf] %vm3071_vm6, %v13102_v61  ;;  %5235 = vrot.lane.b32.xlu1 %v11648_v7, %s7278_s15  ;;  %5237 = vrot.lane.b32.xlu2 %v11650_v3, %s7278_s15 }
 0x714   : > { %5269 = vrot.lane.b32.xlu0 %v11654_v37, %s7278_s15 }
 0x715   : > { %v4901_v6 = vpop.permute.xlu2 %4900  ;;  %v4803_v11 = vpop.permute.xlu0 %4802 }
 0x716   : > { %v4899_v36 = vpop.permute.xlu1 %4898  ;;  %v4828_v33 = vrot.slane %v4803_v11, 4 }
 0x717   : > { %v4924_v56 = vrot.slane %v4899_v36, 4 }
 0x718   : > { %v4838_v22 = vsel %vm3019_vm10, %v4828_v33, %v4803_v11 }
 0x719   : > { %v4934_v35 = vsel %vm3120_vm13, %v4924_v56, %v4899_v36  ;;  %v4935_v12 = vsel %vm3120_vm13, %v4924_v56, %v4901_v6  ;;  %4870 = vst.msk [vmem:[#allocation3 + $0xa0] sm:$0xff] %vm9797_vm11, %v4838_v22 }
 0x71a   : > { %4966 = vst.msk [vmem:[#allocation3 + $0x120] sm:$0xff] %vm9817_vm14, %v4934_v35  ;;  %v6968_v35 = vld [vmem:[#allocation3 + $0x108] sm:$0xf] }
 0x71b   : > { %4967 = vst.msk [vmem:[#allocation3 + $0x128] sm:$0xf] %vm3156_vm15, %v4935_v12  ;;  %5301 = vrot.lane.b32.xlu1 %v11669_v27, %s7278_s15  ;;  %5267 = vrot.lane.b32.xlu2 %v6897_v8, %s7278_s15 }
 0x71c   : > { %4980 = vst.msk [vmem:[#allocation3 + $0x128] sm:$0xf] %vm3172_vm3, %v13102_v61  ;;  %5299 = vrot.lane.b32.xlu0 %v11673_v23, %s7278_s15 }
 0x71d   : > { %v11683_v46 = vpop.permute.xlu2 %4906  ;;  %v4897_v32 = vpop.permute.xlu0 %4896 }
 0x71e   : > { %v4705_v55 = vpop.permute.xlu1 %4704  ;;  %v4926_v53 = vrot.slane %v11683_v46, 4  ;;  %v4933_v39 = vsel %vm3120_vm13, %v4923_v45, %v4897_v32 }
 0x71f   : > { %v4741_v59 = vsel %vm2917_vm7, %v4731_v18, %v4705_v55  ;;  %4965 = vst.msk [vmem:[#allocation3 + $0x118] sm:$0xf] %vm3156_vm15, %v4933_v39 }
 0x720   : > { %4773 = vst.msk [vmem:[#allocation3 + $0x18] sm:$0xf] %vm2954_vm4, %v4741_v59  ;;  %v4938_v47 = vsel %vm3120_vm13, %v4926_v53, %v11683_v46 }
 0x721   : > { %4970 = vst.msk [vmem:[#allocation3 + $0x140] sm:$0xff] %vm9817_vm14, %v4938_v47 }
 0x722   : > { %4979 = vst.msk [vmem:[#allocation3 + $0x118] sm:$0xf] %vm3172_vm3, %v13102_v61 }
 0x723   : > { %5490 = vrot.lane.b32.xlu1 %v11648_v7, %s7279_s16  ;;  %5492 = vrot.lane.b32.xlu2 %v11650_v3, %s7279_s16 }
 0x724   : > { %5524 = vrot.lane.b32.xlu0 %v11654_v37, %s7279_s16 }
 0x725   : > { %v4713_v15 = vpop.permute.xlu2 %4712  ;;  %v4903_v45 = vpop.permute.xlu0 %4902 }
 0x726   : > { %v4711_v16 = vpop.permute.xlu1 %4710  ;;  %v4925_v18 = vrot.slane %v4903_v45, 4 }
 0x727   : > { %v4733_v4 = vrot.slane %v4711_v16, 4  ;;  %v7205_v22 = vld [vmem:[#allocation3 + $0x14] sm:$0xf0] }
 0x728   : > { %v4936_v49 = vsel %vm3120_vm13, %v4925_v18, %v4903_v45  ;;  %v11737_v44 = vor.u32 %v7205_v22, %v6840_v52  ;;  %v6914_v22 = vld [vmem:[#allocation3 + $0xb0] sm:$0xf0] }
 0x729   : > { %v4744_v24 = vsel %vm2917_vm7, %v4733_v4, %v4711_v16  ;;  %v4745_v6 = vsel %vm2917_vm7, %v4733_v4, %v4713_v15  ;;  %4968 = vst.msk [vmem:[#allocation3 + $0x130] sm:$0xff] %vm9817_vm14, %v4936_v49  ;;  %v7237_v12 = vld [vmem:[#allocation3 + $0x114] sm:$0xf0] }
 0x72a   : > { %4776 = vst.msk [vmem:[#allocation3 + $0x30] sm:$0xff] %vm9771_vm8, %v4744_v24 }
 0x72b   : > { %4777 = vst.msk [vmem:[#allocation3 + $0x38] sm:$0xf] %vm2954_vm4, %v4745_v6  ;;  %5554 = vrot.lane.b32.xlu1 %v11673_v23, %s7279_s16  ;;  %5522 = vrot.lane.b32.xlu2 %v6897_v8, %s7279_s16 }
 0x72c   : > { %5779 = vrot.lane.b32.xlu0 %v6897_v8, %s7280_s12 }
 0x72d   : > { %v11720_v11 = vpop.permute.xlu2 %4718  ;;  %v4709_v36 = vpop.permute.xlu0 %4708 }
 0x72e   : > { %v4805_v30 = vpop.permute.xlu1 %4804  ;;  %v4735_v0 = vrot.slane %v11720_v11, 4  ;;  %v4743_v56 = vsel %vm2917_vm7, %v4732_v13, %v4709_v36  ;;  %v6904_v13 = vld [vmem:[#allocation3 + $0x88] sm:$0xf]  ;;  %v7222_v36 = vld [vmem:[#allocation3 + $0xa4] sm:$0xf] }
 0x72f   : > { %v4839_v17 = vsel %vm3019_vm10, %v4828_v33, %v4805_v30  ;;  %4775 = vst.msk [vmem:[#allocation3 + $0x28] sm:$0xf] %vm2954_vm4, %v4743_v56  ;;  %v7221_v33 = vld [vmem:[#allocation3 + $0x94] sm:$0xf0] }
 0x730   : > { %4871 = vst.msk [vmem:[#allocation3 + $0xa8] sm:$0xf] %vm3055_vm5, %v4839_v17  ;;  %v4748_v14 = vsel %vm2917_vm7, %v4735_v0, %v11720_v11  ;;  %v11748_v59 = vor.u32 %v7221_v33, %v6904_v13 }
 0x731   : > { %4884 = vst.msk [vmem:[#allocation3 + $0xa8] sm:$0xf] %vm3071_vm6, %v13102_v61  ;;  %v6850_v56 = vld [vmem:[#allocation3 + $0x30] sm:$0xf0] }
 0x732   : > { %4780 = vst.msk [vmem:[#allocation3 + $0x50] sm:$0xff] %vm9771_vm8, %v4748_v14  ;;  %v11786_v14 = vor.u32 %v7222_v36, %v6914_v22  ;;  %v7208_v22 = vld [vmem:[#allocation3 + $0x2c] sm:$0xf0] }
 0x733   : > { %5781 = vrot.lane.b32.xlu1 %v11654_v37, %s7280_s12  ;;  %5556 = vrot.lane.b32.xlu2 %v11669_v27, %s7279_s16  ;;  %v11750_v37 = vor.u32 %v7237_v12, %v6968_v35  ;;  %v7240_v35 = vld [vmem:[#allocation3 + $0x12c] sm:$0xf0] }
 0x734   : > { %5239 = vrot.lane.b32.xlu0 %v11737_v44, %s7278_s15 }
 0x735   : > { %v4813_v9 = vpop.permute.xlu2 %4812  ;;  %v11745_v8 = vpop.permute.xlu0 %4714 }
 0x736   : > { %v4811_v32 = vpop.permute.xlu1 %4810  ;;  %v4734_v55 = vrot.slane %v11745_v8, 4 }
 0x737   : > { %v4830_v39 = vrot.slane %v4811_v32, 4 }
 0x738   : > { %v4746_v47 = vsel %vm2917_vm7, %v4734_v55, %v11745_v8  ;;  %v6920_v50 = vld [vmem:[#allocation3 + $0xa8] sm:$0xf] }
 0x739   : > { %v4842_v15 = vsel %vm3019_vm10, %v4830_v39, %v4811_v32  ;;  %v4843_v45 = vsel %vm3019_vm10, %v4830_v39, %v4813_v9  ;;  %4778 = vst.msk [vmem:[#allocation3 + $0x40] sm:$0xff] %vm9771_vm8, %v4746_v47  ;;  %v6912_v9 = vld [vmem:[#allocation3 + $0xa0] sm:$0xf] }
 0x73a   : > { %4874 = vst.msk [vmem:[#allocation3 + $0xc0] sm:$0xff] %vm9797_vm11, %v4842_v15  ;;  %v6976_v39 = vld [vmem:[#allocation3 + $0x120] sm:$0xf] }
 0x73b   : > { %4875 = vst.msk [vmem:[#allocation3 + $0xc8] sm:$0xf] %vm3055_vm5, %v4843_v45  ;;  %5271 = vrot.lane.b32.xlu1 %v11748_v59, %s7278_s15  ;;  %5303 = vrot.lane.b32.xlu2 %v11750_v37, %s7278_s15  ;;  %v7224_v45 = vld [vmem:[#allocation3 + $0xac] sm:$0xf0] }
 0x73c   : > { %4886 = vst.msk [vmem:[#allocation3 + $0xc8] sm:$0xf] %vm3071_vm6, %v13102_v61  ;;  %5494 = vrot.lane.b32.xlu0 %v11737_v44, %s7279_s16 }
 0x73d   : > { %v11771_v16 = vpop.permute.xlu2 %4818  ;;  %v4809_v4 = vpop.permute.xlu0 %4808 }
 0x73e   : > { %v4832_v49 = vrot.slane %v11771_v16, 4  ;;  %v4905_v24 = vpop.permute.xlu1 %4904  ;;  %v4841_v6 = vsel %vm3019_vm10, %v4829_v62, %v4809_v4  ;;  %v11790_v62 = vor.u32 %v7206_v5, %v6850_v56  ;;  %v11805_v4 = vor.u32 %v7240_v35, %v6976_v39 }
 0x73f   : > { %v4937_v30 = vsel %vm3120_vm13, %v4925_v18, %v4905_v24  ;;  %4873 = vst.msk [vmem:[#allocation3 + $0xb8] sm:$0xf] %vm3055_vm5, %v4841_v6  ;;  %v6913_v24 = vor.u32 %v7224_v45, %v6912_v9 }
 0x740   : > { %v4846_v17 = vsel %vm3019_vm10, %v4832_v49, %v11771_v16  ;;  %4969 = vst.msk [vmem:[#allocation3 + $0x138] sm:$0xf] %vm3156_vm15, %v4937_v30 }
 0x741   : > { %4878 = vst.msk [vmem:[#allocation3 + $0xe0] sm:$0xff] %vm9797_vm11, %v4846_v17 }
 0x742   : > { %4981 = vst.msk [vmem:[#allocation3 + $0x138] sm:$0xf] %vm3172_vm3, %v13102_v61 }
 0x743   : > { %4885 = vst.msk [vmem:[#allocation3 + $0xb8] sm:$0xf] %vm3071_vm6, %v13102_v61  ;;  %5277 = vrot.lane.b32.xlu1 %v11786_v14, %s7278_s15  ;;  %5526 = vrot.lane.b32.xlu2 %v11748_v59, %s7279_s16 }
 0x744   : > { %5245 = vrot.lane.b32.xlu0 %v11790_v62, %s7278_s15 }
 0x745   : > { %v4913_v18 = vpop.permute.xlu2 %4912  ;;  %v4815_v52 = vpop.permute.xlu0 %4814 }
 0x746   : > { %v4911_v13 = vpop.permute.xlu1 %4910  ;;  %v4831_v33 = vrot.slane %v4815_v52, 4 }
 0x747   : > { %v4927_v12 = vrot.slane %v4911_v13, 4 }
 0x748   : > { %v4844_v32 = vsel %vm3019_vm10, %v4831_v33, %v4815_v52  ;;  %v6848_v52 = vld [vmem:[#allocation3 + $0x20] sm:$0xf] }
 0x749   : > { %v4940_v47 = vsel %vm3120_vm13, %v4927_v12, %v4911_v13  ;;  %v4941_v15 = vsel %vm3120_vm13, %v4927_v12, %v4913_v18  ;;  %4876 = vst.msk [vmem:[#allocation3 + $0xd0] sm:$0xff] %vm9797_vm11, %v4844_v32  ;;  %v11834_v46 = vor.u32 %v7208_v22, %v6848_v52  ;;  %v6978_v13 = vld [vmem:[#allocation3 + $0x130] sm:$0xf0]  ;;  %v7238_v32 = vld [vmem:[#allocation3 + $0x124] sm:$0xf] }
 0x74a   : > { %4972 = vst.msk [vmem:[#allocation3 + $0x150] sm:$0xff] %vm9817_vm14, %v4940_v47  ;;  %v7241_v22 = vld [vmem:[#allocation3 + $0x134] sm:$0xf0] }
 0x74b   : > { %4973 = vst.msk [vmem:[#allocation3 + $0x158] sm:$0xf] %vm3156_vm15, %v4941_v15  ;;  %5558 = vrot.lane.b32.xlu2 %v11750_v37, %s7279_s16  ;;  %5307 = vrot.lane.b32.xlu1 %v11805_v4, %s7278_s15  ;;  %v11849_v15 = vor.u32 %v7238_v32, %v6978_v13  ;;  %v7209_v13 = vld [vmem:[#allocation3 + $0x34] sm:$0xf0] }
 0x74c   : > { %4983 = vst.msk [vmem:[#allocation3 + $0x158] sm:$0xf] %vm3172_vm3, %v13102_v61  ;;  %5275 = vrot.lane.b32.xlu0 %v6913_v24, %s7278_s15 }
 0x74d   : > { %v11817_v6 = vpop.permute.xlu2 %4918  ;;  %v4909_v36 = vpop.permute.xlu0 %4908 }
 0x74e   : > { %v4717_v30 = vpop.permute.xlu1 %4716  ;;  %v4929_v56 = vrot.slane %v11817_v6, 4  ;;  %v4939_v17 = vsel %vm3120_vm13, %v4926_v53, %v4909_v36 }
 0x74f   : > { %v4747_v5 = vsel %vm2917_vm7, %v4734_v55, %v4717_v30  ;;  %4971 = vst.msk [vmem:[#allocation3 + $0x148] sm:$0xf] %vm3156_vm15, %v4939_v17 }
 0x750   : > { %4779 = vst.msk [vmem:[#allocation3 + $0x48] sm:$0xf] %vm2954_vm4, %v4747_v5  ;;  %v4944_v18 = vsel %vm3120_vm13, %v4929_v56, %v11817_v6 }
 0x751   : > { %4976 = vst.msk [vmem:[#allocation3 + $0x170] sm:$0xff] %vm9817_vm14, %v4944_v18  ;;  %v6856_v18 = vld [vmem:[#allocation3 + $0x28] sm:$0xf] }
 0x752   : > { %4982 = vst.msk [vmem:[#allocation3 + $0x148] sm:$0xf] %vm3172_vm3, %v13102_v61 }
 0x753   : > { %5243 = vrot.lane.b32.xlu2 %v11834_v46, %s7278_s15  ;;  %5562 = vrot.lane.b32.xlu1 %v11805_v4, %s7279_s16 }
 0x754   : > { %5500 = vrot.lane.b32.xlu0 %v11790_v62, %s7279_s16 }
 0x755   : > { %v4915_v53 = vpop.permute.xlu0 %4914  ;;  %v4725_v12 = vpop.permute.xlu2 %4724 }
 0x756   : > { %v4723_v8 = vpop.permute.xlu1 %4722  ;;  %v4928_v55 = vrot.slane %v4915_v53, 4 }
 0x757   : > { %v4736_v35 = vrot.slane %v4723_v8, 4 }
 0x758   : > { %v4942_v9 = vsel %vm3120_vm13, %v4928_v55, %v4915_v53  ;;  %v7248_v21 = vld [vmem:[#allocation3 + $0x16c] sm:$0xf0] }
 0x759   : > { %v4750_v39 = vsel %vm2917_vm7, %v4736_v35, %v4723_v8  ;;  %v4751_v47 = vsel %vm2917_vm7, %v4736_v35, %v4725_v12  ;;  %4974 = vst.msk [vmem:[#allocation3 + $0x160] sm:$0xff] %vm9817_vm14, %v4942_v9  ;;  %v7225_v12 = vld [vmem:[#allocation3 + $0xb4] sm:$0xf0] }
 0x75a   : > { %4782 = vst.msk [vmem:[#allocation3 + $0x60] sm:$0xff] %vm9771_vm8, %v4750_v39 }
 0x75b   : > { %4783 = vst.msk [vmem:[#allocation3 + $0x68] sm:$0xf] %vm2954_vm4, %v4751_v47  ;;  %5532 = vrot.lane.b32.xlu1 %v11786_v14, %s7279_s16  ;;  %5309 = vrot.lane.b32.xlu2 %v11849_v15, %s7278_s15 }
 0x75c   : > { %5530 = vrot.lane.b32.xlu0 %v6913_v24, %s7279_s16 }
 0x75d   : > { %v4721_v45 = vpop.permute.xlu0 %4720  ;;  %v4825_v11 = vpop.permute.xlu2 %4824 }
 0x75e   : > { %v4817_v36 = vpop.permute.xlu1 %4816  ;;  %v4749_v63 = vsel %vm2917_vm7, %v4735_v0, %v4721_v45  ;;  %v6984_v0 = vld [vmem:[#allocation3 + $0x128] sm:$0xf]  ;;  %v6864_v45 = vld [vmem:[#allocation3 + $0x40] sm:$0xf] }
 0x75f   : > { %v4845_v30 = vsel %vm3019_vm10, %v4831_v33, %v4817_v36  ;;  %4781 = vst.msk [vmem:[#allocation3 + $0x58] sm:$0xf] %vm2954_vm4, %v4749_v63  ;;  %v11873_v8 = vor.u32 %v7241_v22, %v6984_v0  ;;  %v11899_v36 = vor.u32 %v7225_v12, %v6920_v50  ;;  %v7212_v63 = vld [vmem:[#allocation3 + $0x4c] sm:$0xf0]  ;;  %v6994_v22 = vld [vmem:[#allocation3 + $0x150] sm:$0xf0] }
 0x760   : > { %4877 = vst.msk [vmem:[#allocation3 + $0xd8] sm:$0xf] %vm3055_vm5, %v4845_v30  ;;  %v6865_v30 = vor.u32 %v7212_v63, %v6864_v45  ;;  %v6930_v50 = vld [vmem:[#allocation3 + $0xd0] sm:$0xf0] }
 0x761   : > { %4887 = vst.msk [vmem:[#allocation3 + $0xd8] sm:$0xf] %vm3071_vm6, %v13102_v61 }
 0x763   : > { %5789 = vrot.lane.b32.xlu1 %v11786_v14, %s7280_s12  ;;  %5498 = vrot.lane.b32.xlu2 %v11834_v46, %s7279_s16 }
 0x764   : > { %5787 = vrot.lane.b32.xlu0 %v6913_v24, %s7280_s12  ;;  %v11879_v24 = vor.u32 %v7209_v13, %v6856_v18  ;;  %v7242_v18 = vld [vmem:[#allocation3 + $0x144] sm:$0xf] }
 0x765   : > { %v4727_v17 = vpop.permute.xlu0 %4726 }
 0x766   : > { %v4823_v33 = vpop.permute.xlu1 %4822  ;;  %v4737_v5 = vrot.slane %v4727_v17, 4 }
 0x767   : > { %v4833_v52 = vrot.slane %v4823_v33, 4 }
 0x768   : > { %v4752_v53 = vsel %vm2917_vm7, %v4737_v5, %v4727_v17  ;;  %v7210_v17 = vld [vmem:[#allocation3 + $0x44] sm:$0xf] }
 0x769   : > { %v4848_v14 = vsel %vm3019_vm10, %v4833_v52, %v4823_v33  ;;  %v4849_v35 = vsel %vm3019_vm10, %v4833_v52, %v4825_v11  ;;  %4784 = vst.msk [vmem:[#allocation3 + $0x70] sm:$0xff] %vm9771_vm8, %v4752_v53  ;;  %v6866_v33 = vld [vmem:[#allocation3 + $0x50] sm:$0xf0]  ;;  %v11921_v53 = vor.u32 %v7242_v18, %v6994_v22 }
 0x76a   : > { %4880 = vst.msk [vmem:[#allocation3 + $0xf0] sm:$0xff] %vm9797_vm11, %v4848_v14  ;;  %v11919_v52 = vor.u32 %v7210_v17, %v6866_v33 }
 0x76b   : > { %4881 = vst.msk [vmem:[#allocation3 + $0xf8] sm:$0xf] %vm3055_vm5, %v4849_v35  ;;  %5564 = vrot.lane.b32.xlu2 %v11849_v15, %s7279_s16  ;;  %5247 = vrot.lane.b32.xlu1 %v11879_v24, %s7278_s15 }
 0x76c   : > { %4889 = vst.msk [vmem:[#allocation3 + $0xf8] sm:$0xf] %vm3071_vm6, %v13102_v61  ;;  %5311 = vrot.lane.b32.xlu0 %v11873_v8, %s7278_s15 }
 0x76d   : > { %v11892_v9 = vpop.permute.xlu2 %5237  ;;  %v4821_v58 = vpop.permute.xlu0 %4820 }
 0x76e   : > { %v4917_v32 = vpop.permute.xlu1 %4916  ;;  %v4847_v39 = vsel %vm3019_vm10, %v4832_v49, %v4821_v58 }
 0x76f   : > { %v4943_v47 = vsel %vm3120_vm13, %v4928_v55, %v4917_v32  ;;  %4879 = vst.msk [vmem:[#allocation3 + $0xe8] sm:$0xf] %vm3055_vm5, %v4847_v39  ;;  %v7226_v32 = vld [vmem:[#allocation3 + $0xc4] sm:$0xf] }
 0x770   : > { %4975 = vst.msk [vmem:[#allocation3 + $0x168] sm:$0xf] %vm3156_vm15, %v4943_v47  ;;  %v6933_v39 = vor.u32 %v7226_v32, %v6930_v50  ;;  %v7229_v50 = vld [vmem:[#allocation3 + $0xd4] sm:$0xf0]  ;;  %v7216_v41 = vld [vmem:[#allocation3 + $0x6c] sm:$0xf0] }
 0x771   : > { %4984 = vst.msk [vmem:[#allocation3 + $0x168] sm:$0xf] %vm3172_vm3, %v13102_v61  ;;  %v7232_v60 = vld [vmem:[#allocation3 + $0xec] sm:$0xf0] }
 0x772   : > { %4888 = vst.msk [vmem:[#allocation3 + $0xe8] sm:$0xf] %vm3071_vm6, %v13102_v61 }
 0x773   : > { %5502 = vrot.lane.b32.xlu1 %v11879_v24, %s7279_s16  ;;  %5279 = vrot.lane.b32.xlu2 %v11899_v36, %s7278_s15 }
 0x774   : > { %5251 = vrot.lane.b32.xlu0 %v6865_v30, %s7278_s15 }
 0x775   : > { %v5268_v16 = vpop.permute.xlu2 %5267  ;;  %v4921_v49 = vpop.permute.xlu0 %4920 }
 0x776   : > { %v4729_v55 = vpop.permute.xlu1 %4728  ;;  %v4945_v11 = vsel %vm3120_vm13, %v4929_v56, %v4921_v49  ;;  %v7228_v56 = vld [vmem:[#allocation3 + $0xcc] sm:$0xf0] }
 0x777   : > { %v4753_v0 = vsel %vm2917_vm7, %v4737_v5, %v4729_v55  ;;  %4977 = vst.msk [vmem:[#allocation3 + $0x178] sm:$0xf] %vm3156_vm15, %v4945_v11  ;;  %v6928_v5 = vld [vmem:[#allocation3 + $0xc0] sm:$0xf]  ;;  %v7244_v49 = vld [vmem:[#allocation3 + $0x14c] sm:$0xf0] }
 0x778   : > { %4785 = vst.msk [vmem:[#allocation3 + $0x78] sm:$0xf] %vm2954_vm4, %v4753_v0  ;;  %v6929_v13 = vor.u32 %v7228_v56, %v6928_v5  ;;  %v6992_v11 = vld [vmem:[#allocation3 + $0x140] sm:$0xf] }
 0x779   : > { %4985 = vst.msk [vmem:[#allocation3 + $0x178] sm:$0xf] %vm3172_vm3, %v13102_v61 }
 0x77b   : > { %5253 = vrot.lane.b32.xlu1 %v11919_v52, %s7278_s15  ;;  %5534 = vrot.lane.b32.xlu2 %v11899_v36, %s7279_s16 }
 0x77c   : > { %5317 = vrot.lane.b32.xlu0 %v11921_v53, %s7278_s15 }
 0x77d   : > { %v11929_v6 = vpop.permute.xlu2 %5492 }
 0x783   : > { %5566 = vrot.lane.b32.xlu2 %v11873_v8, %s7279_s16  ;;  %5283 = vrot.lane.b32.xlu1 %v6929_v13, %s7278_s15 }
 0x784   : > { %5506 = vrot.lane.b32.xlu0 %v6865_v30, %s7279_s16 }
 0x785   : > { %v5236_v61 = vpop.permute.xlu1 %5235  ;;  %v5523_v14 = vpop.permute.xlu2 %5522 }
 0x786   : > { %v5270_v35 = vpop.permute.xlu0 %5269  ;;  %v11937_v12 = vsel %vm984_vm0, %v5236_v61, %v11892_v9  ;;  %v6936_v61 = vld [vmem:[#allocation3 + $0xc8] sm:$0xf] }
 0x787   : > { %v11940_v58 = vsel %vm984_vm0, %v5268_v16, %v5270_v35  ;;  %v11951_v16 = vor.u32 %v7244_v49, %v6992_v11  ;;  %v11987_v49 = vor.u32 %v7229_v50, %v6936_v61  ;;  %v6872_v11 = vld [vmem:[#allocation3 + $0x48] sm:$0xf]  ;;  %v6946_v61 = vld [vmem:[#allocation3 + $0xf0] sm:$0xf0] }
 0x78b   : > { %5508 = vrot.lane.b32.xlu1 %v11919_v52, %s7279_s16  ;;  %5285 = vrot.lane.b32.xlu2 %v6933_v39, %s7278_s15 }
 0x78c   : > { %5538 = vrot.lane.b32.xlu0 %v6929_v13, %s7279_s16 }
 0x78d   : > { %v5302_v47 = vpop.permute.xlu1 %5301  ;;  %v11946_v45 = vpop.permute.xlu2 %5556 }
 0x78e   : > { %13103 = vst [vmem:[#allocation28_spill] sm:$0xff] %v11946_v45  ;;  %v5300_v63 = vpop.permute.xlu0 %5299 }
 0x78f   : > { %v11949_v55 = vsel %vm984_vm0, %v5300_v63, %v5302_v47 }
 0x793   : > { %5570 = vrot.lane.b32.xlu1 %v11951_v16, %s7279_s16  ;;  %5315 = vrot.lane.b32.xlu2 %v11951_v16, %s7278_s15 }
 0x794   : > { %5795 = vrot.lane.b32.xlu0 %v6929_v13, %s7280_s12 }
 0x795   : > { %v5491_v17 = vpop.permute.xlu1 %5490  ;;  %v11958_v0 = vpop.permute.xlu2 %5303 }
 0x796   : > { %13104 = vst [vmem:[#allocation10_spill] sm:$0xff] %v11958_v0  ;;  %v5525_v22 = vpop.permute.xlu0 %5524  ;;  %v11962_v33 = vsel %vm984_vm0, %v5302_v47, %v11958_v0  ;;  %v11966_v18 = vsel %vm1574_vm1, %v5491_v17, %v11929_v6  ;;  %v7213_v47 = vld [vmem:[#allocation3 + $0x54] sm:$0xf0]  ;;  %v7000_v17 = vld [vmem:[#allocation3 + $0x148] sm:$0xf] }
 0x797   : > { %13105 = vst [vmem:[#allocation46_spill] sm:$0xff] %v11966_v18  ;;  %v11969_v56 = vsel %vm1574_vm1, %v5523_v14, %v5525_v22 }
 0x79b   : > { %5540 = vrot.lane.b32.xlu1 %v6933_v39, %s7279_s16  ;;  %5572 = vrot.lane.b32.xlu2 %v11921_v53, %s7279_s16 }
 0x79c   : > { %5763 = vrot.lane.b32.xlu0 %v6865_v30, %s7280_s12  ;;  %v11989_v30 = vor.u32 %v7213_v47, %v6872_v11  ;;  %v7230_v47 = vld [vmem:[#allocation3 + $0xe4] sm:$0xf] }
 0x79d   : > { %v5555_v5 = vpop.permute.xlu1 %5554  ;;  %v11975_v13 = vpop.permute.xlu2 %5526  ;;  %v12009_v11 = vor.u32 %v7230_v47, %v6946_v61  ;;  %v7008_v61 = vld [vmem:[#allocation3 + $0x160] sm:$0xf] }
 0x79e   : > { %13106 = vst [vmem:[#allocation45_spill] sm:$0xff] %v11975_v13  ;;  %v11977_v32 = vpop.permute.xlu0 %5779  ;;  %v11981_v63 = vsel %vm1574_vm1, %v5555_v5, %v11946_v45  ;;  %v11985_v14 = vsel %vm1574_vm1, %v5525_v22, %v11975_v13  ;;  %v7245_v5 = vld [vmem:[#allocation3 + $0x154] sm:$0xf0]  ;;  %v6880_v13 = vld [vmem:[#allocation3 + $0x60] sm:$0xf] }
 0x79f   : > { %13107 = vst [vmem:[#allocation43_spill] sm:$0xff] %v11977_v32  ;;  %v12002_v50 = vor.u32 %v7245_v5, %v7000_v17  ;;  %v6881_v34 = vor.u32 %v7216_v41, %v6880_v13  ;;  %v7214_v45 = vld [vmem:[#allocation3 + $0x64] sm:$0xf] }
 0x7a0   : > { %13108 = vst [vmem:[#allocation44_spill] sm:$0xff] %v11981_v63 }
 0x7a1   : > { %13109 = vst [vmem:[#allocation26_spill] sm:$0xff] %v11985_v14  ;;  %v7009_v14 = vor.u32 %v7248_v21, %v7008_v61  ;;  %v6882_v61 = vld [vmem:[#allocation3 + $0x70] sm:$0xf0] }
 0x7a3   : > { %5797 = vrot.lane.b32.xlu1 %v6933_v39, %s7280_s12  ;;  %5255 = vrot.lane.b32.xlu2 %v11989_v30, %s7278_s15 }
 0x7a4   : > { %5287 = vrot.lane.b32.xlu0 %v11987_v49, %s7278_s15 }
 0x7a5   : > { %v11996_v26 = vpop.permute.xlu1 %5781  ;;  %v11998_v57 = vpop.permute.xlu2 %5558 }
 0x7a6   : > { %13110 = vst [vmem:[#allocation33_spill] sm:$0xff] %v11996_v26  ;;  %v12000_v22 = vpop.permute.xlu0 %5239  ;;  %v7246_v26 = vld [vmem:[#allocation3 + $0x164] sm:$0xf] }
 0x7a7   : > { %13111 = vst [vmem:[#allocation13_spill] sm:$0xff] %v11998_v57  ;;  %v12007_v39 = vsel %vm984_vm0, %v11892_v9, %v12000_v22 }
 0x7a8   : > { %13112 = vst [vmem:[#allocation49_spill] sm:$0xff] %v12000_v22 }
 0x7ab   : > { %5319 = vrot.lane.b32.xlu1 %v12002_v50, %s7278_s15  ;;  %5510 = vrot.lane.b32.xlu2 %v11989_v30, %s7279_s16 }
 0x7ac   : > { %5293 = vrot.lane.b32.xlu0 %v12009_v11, %s7278_s15 }
 0x7ad   : > { %v12017_v10 = vpop.permute.xlu1 %5271  ;;  %v5244_v17 = vpop.permute.xlu2 %5243 }
 0x7ae   : > { %v12019_v5 = vpop.permute.xlu0 %5494  ;;  %v12023_v9 = vsel %vm984_vm0, %v5270_v35, %v12017_v10 }
 0x7af   : > { %13113 = vst [vmem:[#allocation47_spill] sm:$0xff] %v12019_v5  ;;  %v12028_v47 = vsel %vm1574_vm1, %v11929_v6, %v12019_v5  ;;  %v7010_v6 = vld [vmem:[#allocation3 + $0x170] sm:$0xf0] }
 0x7b0   : > { %13114 = vst [vmem:[#allocation48_spill] sm:$0xff] %v12028_v47  ;;  %v7013_v5 = vor.u32 %v7246_v26, %v7010_v6  ;;  %v6944_v26 = vld [vmem:[#allocation3 + $0xe0] sm:$0xf]  ;;  %v6885_v6 = vor.u32 %v7214_v45, %v6882_v61 }
 0x7b1   : > { %v6945_v57 = vor.u32 %v7232_v60, %v6944_v26 }
 0x7b3   : > { %5542 = vrot.lane.b32.xlu2 %v11987_v49, %s7279_s16  ;;  %5259 = vrot.lane.b32.xlu1 %v6881_v34, %s7278_s15 }
 0x7b4   : > { %5323 = vrot.lane.b32.xlu0 %v7009_v14, %s7278_s15 }
 0x7b5   : > { %v5278_v20 = vpop.permute.xlu1 %5277  ;;  %v5310_v35 = vpop.permute.xlu2 %5309 }
 0x7b6   : > { %v5246_v32 = vpop.permute.xlu0 %5245 }
 0x7b7   : > { %v12035_v63 = vsel %vm984_vm0, %v5244_v17, %v5246_v32 }
 0x7bb   : > { %5574 = vrot.lane.b32.xlu2 %v12002_v50, %s7279_s16  ;;  %5325 = vrot.lane.b32.xlu1 %v7013_v5, %s7278_s15 }
 0x7bc   : > { %5578 = vrot.lane.b32.xlu0 %v7009_v14, %s7279_s16 }
 0x7bd   : > { %v5308_v21 = vpop.permute.xlu1 %5307  ;;  %v5499_v41 = vpop.permute.xlu2 %5498 }
 0x7be   : > { %v5276_v13 = vpop.permute.xlu0 %5275  ;;  %v12042_v47 = vsel %vm984_vm0, %v5308_v21, %v5310_v35 }
 0x7bf   : > { %v12045_v17 = vsel %vm984_vm0, %v5276_v13, %v5278_v20 }
 0x7c3   : > { %5514 = vrot.lane.b32.xlu1 %v6881_v34, %s7279_s16  ;;  %5261 = vrot.lane.b32.xlu2 %v6885_v6, %s7278_s15 }
 0x7c4   : > { %5546 = vrot.lane.b32.xlu0 %v6945_v57, %s7279_s16 }
 0x7c5   : > { %v5563_v18 = vpop.permute.xlu1 %5562  ;;  %v12050_v0 = vpop.permute.xlu2 %5564 }
 0x7c6   : > { %13115 = vst [vmem:[#allocation50_spill] sm:$0xff] %v12050_v0  ;;  %v5501_v38 = vpop.permute.xlu0 %5500  ;;  %v12054_v21 = vsel %vm1574_vm1, %v5563_v18, %v12050_v0  ;;  %v7217_v0 = vld [vmem:[#allocation3 + $0x74] sm:$0xf0] }
 0x7c7   : > { %13116 = vst [vmem:[#allocation29_spill] sm:$0xff] %v12054_v21  ;;  %v12057_v13 = vsel %vm1574_vm1, %v5499_v41, %v5501_v38 }
 0x7c8   : > { %13117 = vst [vmem:[#allocation39_spill] sm:$0xff] %v12057_v13 }
 0x7cb   : > { %5580 = vrot.lane.b32.xlu1 %v7013_v5, %s7279_s16  ;;  %5291 = vrot.lane.b32.xlu2 %v6945_v57, %s7278_s15 }
 0x7cc   : > { %5803 = vrot.lane.b32.xlu0 %v6945_v57, %s7280_s12 }
 0x7cd   : > { %v5533_v60 = vpop.permute.xlu1 %5532  ;;  %v12062_v45 = vpop.permute.xlu2 %5279 }
 0x7ce   : > { %v5531_v61 = vpop.permute.xlu0 %5530  ;;  %v12066_v26 = vsel %vm984_vm0, %v5278_v20, %v12062_v45 }
 0x7cf   : > { %v12069_v18 = vsel %vm1574_vm1, %v5531_v61, %v5533_v60  ;;  %v6888_v61 = vld [vmem:[#allocation3 + $0x68] sm:$0xf] }
 0x7d0   : > { %v12085_v13 = vor.u32 %v7217_v0, %v6888_v61 }
 0x7d3   : > { %5548 = vrot.lane.b32.xlu1 %v12009_v11, %s7279_s16  ;;  %5516 = vrot.lane.b32.xlu2 %v6885_v6, %s7279_s16 }
 0x7d4   : > { %5773 = vrot.lane.b32.xlu0 %v6885_v6, %s7280_s12 }
 0x7d5   : > { %v12075_v41 = vpop.permute.xlu1 %5789  ;;  %v12077_v57 = vpop.permute.xlu2 %5534 }
 0x7d6   : > { %13118 = vst [vmem:[#allocation17_spill] sm:$0xff] %v12075_v41  ;;  %v12079_v21 = vpop.permute.xlu0 %5787  ;;  %v12083_v20 = vsel %vm1574_vm1, %v5533_v60, %v12077_v57 }
 0x7d7   : > { %13119 = vst [vmem:[#allocation52_spill] sm:$0xff] %v12077_v57 }
 0x7d8   : > { %13120 = vst [vmem:[#allocation51_spill] sm:$0xff] %v12079_v21 }
 0x7d9   : > { %13121 = vst [vmem:[#allocation55_spill] sm:$0xff] %v12083_v20 }
 0x7db   : > { %5805 = vrot.lane.b32.xlu1 %v12009_v11, %s7280_s12  ;;  %5771 = vrot.lane.b32.xlu2 %v6881_v34, %s7280_s12  ;;  %v6952_v34 = vld [vmem:[#allocation3 + $0xe8] sm:$0xf]  ;;  %v7233_v11 = vld [vmem:[#allocation3 + $0xf4] sm:$0xf0] }
 0x7dc   : > { %5263 = vrot.lane.b32.xlu0 %v12085_v13, %s7278_s15 }
 0x7dd   : > { %v12092_v6 = vpop.permute.xlu1 %5247  ;;  %v12094_v41 = vpop.permute.xlu2 %5566 }
 0x7de   : > { %13122 = vst [vmem:[#allocation53_spill] sm:$0xff] %v12094_v41  ;;  %v12096_v21 = vpop.permute.xlu0 %5311  ;;  %v12100_v60 = vsel %vm984_vm0, %v5246_v32, %v12092_v6 }
 0x7df   : > { %13123 = vst [vmem:[#allocation35_spill] sm:$0xff] %v12096_v21  ;;  %v12104_v0 = vsel %vm984_vm0, %v5310_v35, %v12096_v21  ;;  %v12118_v35 = vor.u32 %v7233_v11, %v6952_v34  ;;  %v7016_v11 = vld [vmem:[#allocation3 + $0x168] sm:$0xf] }
 0x7e3   : > { %5835 = vrot.lane.b32.xlu1 %v7009_v14, %s7280_s12  ;;  %5837 = vrot.lane.b32.xlu2 %v7013_v5, %s7280_s12 }
 0x7e4   : > { %5518 = vrot.lane.b32.xlu0 %v12085_v13, %s7279_s16 }
 0x7e5   : > { %v12110_v61 = vpop.permute.xlu1 %5502  ;;  %v12112_v57 = vpop.permute.xlu2 %5285 }
 0x7e6   : > { %13124 = vst [vmem:[#allocation14_spill] sm:$0xff] %v12110_v61  ;;  %v5252_v20 = vpop.permute.xlu0 %5251  ;;  %v12116_v32 = vsel %vm1574_vm1, %v5501_v38, %v12110_v61 }
 0x7e7   : > { %13125 = vst [vmem:[#allocation11_spill] sm:$0xff] %v12116_v32 }
 0x7eb   : > { %5827 = vrot.lane.b32.xlu2 %v11951_v16, %s7280_s12  ;;  %5295 = vrot.lane.b32.xlu1 %v12118_v35, %s7278_s15 }
 0x7ec   : > { %5829 = vrot.lane.b32.xlu0 %v11921_v53, %s7280_s12 }
 0x7ed   : > { %v5254_v14 = vpop.permute.xlu1 %5253  ;;  %v5316_v5 = vpop.permute.xlu2 %5315 }
 0x7ee   : > { %v5318_v41 = vpop.permute.xlu0 %5317  ;;  %v12127_v21 = vsel %vm984_vm0, %v5252_v20, %v5254_v14  ;;  %v13126_v20 = vld [vmem:[#allocation37_spill] sm:$0xff] }
 0x7ef   : > { %v12130_v38 = vsel %vm984_vm0, %v5316_v5, %v5318_v41 }
 0x7f3   : > { %5757 = vrot.lane.b32.xlu2 %v11790_v62, %s7280_s12  ;;  %5765 = vrot.lane.b32.xlu1 %v11919_v52, %s7280_s12  ;;  %v7249_v62 = vld [vmem:[#allocation3 + $0x174] sm:$0xf0] }
 0x7f4   : > { %5809 = vrot.lane.b32.xlu0 %v11301_v31, %s7280_s12  ;;  %v7017_v51 = vor.u32 %v7249_v62, %v7016_v11 }
 0x7f5   : > { %v5284_v16 = vpop.permute.xlu1 %5283  ;;  %v5573_v53 = vpop.permute.xlu2 %5572 }
 0x7f6   : > { %v5507_v34 = vpop.permute.xlu0 %5506 }
 0x7fb   : > { %5576 = vrot.lane.b32.xlu2 %v11319_v28, %s7279_s16  ;;  %5584 = vrot.lane.b32.xlu1 %v13126_v20, %s7279_s16 }
 0x7fc   : > { %5819 = vrot.lane.b32.xlu0 %v11805_v4, %s7280_s12 }
 0x7fd   : > { %v5509_v5 = vpop.permute.xlu1 %5508  ;;  %v12144_v61 = vpop.permute.xlu2 %5255 }
 0x7fe   : > { %v5539_v52 = vpop.permute.xlu0 %5538  ;;  %v12148_v31 = vsel %vm984_vm0, %v5254_v14, %v12144_v61  ;;  %v12151_v32 = vsel %vm1574_vm1, %v5507_v34, %v5509_v5 }
 0x803   : > { %5755 = vrot.lane.b32.xlu1 %v11834_v46, %s7280_s12  ;;  %5327 = vrot.lane.b32.xlu2 %v7017_v51, %s7278_s15 }
 0x804   : > { %5799 = vrot.lane.b32.xlu0 %v11987_v49, %s7280_s12 }
 0x805   : > { %v5571_v4 = vpop.permute.xlu1 %5570  ;;  %v12158_v29 = vpop.permute.xlu2 %5510 }
 0x806   : > { %13127 = vst [vmem:[#allocation8_spill] sm:$0xff] %v12158_v29  ;;  %v12160_v22 = vpop.permute.xlu0 %5795  ;;  %v12163_v14 = vsel %vm1574_vm1, %v5571_v4, %v5573_v53  ;;  %v12167_v34 = vsel %vm1574_vm1, %v5509_v5, %v12158_v29 }
 0x807   : > { %13128 = vst [vmem:[#allocation36_spill] sm:$0xff] %v12160_v22 }
 0x808   : > { %13129 = vst [vmem:[#allocation58_spill] sm:$0xff] %v12167_v34 }
 0x80b   : > { %5821 = vrot.lane.b32.xlu1 %v11849_v15, %s7280_s12  ;;  %5747 = vrot.lane.b32.xlu2 %v11648_v7, %s7280_s12  ;;  %v13133_v15 = vld [vmem:[#allocation56_spill] sm:$0xff] }
 0x80c   : > { %5749 = vrot.lane.b32.xlu0 %v11650_v3, %s7280_s12  ;;  %v13134_v7 = vld [vmem:[#allocation12_spill] sm:$0xff] }
 0x80d   : > { %v5541_v46 = vpop.permute.xlu1 %5540  ;;  %v12175_v49 = vpop.permute.xlu2 %5542 }
 0x80e   : > { %13130 = vst [vmem:[#allocation59_spill] sm:$0xff] %v12175_v49  ;;  %v12177_v11 = vpop.permute.xlu0 %5763  ;;  %v12180_v62 = vsel %vm1574_vm1, %v5539_v52, %v5541_v46  ;;  %v12184_v5 = vsel %vm1574_vm1, %v5541_v46, %v12175_v49 }
 0x80f   : > { %13131 = vst [vmem:[#allocation30_spill] sm:$0xff] %v12177_v11 }
 0x810   : > { %13132 = vst [vmem:[#allocation31_spill] sm:$0xff] %v12184_v5 }
 0x813   : > { %5801 = vrot.lane.b32.xlu1 %v13133_v15, %s7280_s12  ;;  %5813 = vrot.lane.b32.xlu2 %v11669_v27, %s7280_s12  ;;  %v13136_v27 = vld [vmem:[#allocation15_spill] sm:$0xff] }
 0x814   : > { %5568 = vrot.lane.b32.xlu0 %v13134_v7, %s7279_s16 }
 0x815   : > { %v12192_v3 = vpop.permute.xlu1 %5797  ;;  %v12194_v4 = vpop.permute.xlu2 %5574 }
 0x816   : > { %13135 = vst [vmem:[#allocation61_spill] sm:$0xff] %v12192_v3  ;;  %v12196_v29 = vpop.permute.xlu0 %5287  ;;  %v12200_v52 = vsel %vm1574_vm1, %v5573_v53, %v12194_v4 }
 0x817   : > { %v12205_v46 = vsel %vm984_vm0, %v12112_v57, %v12196_v29 }
 0x81b   : > { %5550 = vrot.lane.b32.xlu1 %v12118_v35, %s7279_s16  ;;  %5793 = vrot.lane.b32.xlu2 %v13136_v27, %s7280_s12 }
 0x81c   : > { %5783 = vrot.lane.b32.xlu0 %v11748_v59, %s7280_s12 }
 0x81d   : > { %v12213_v15 = vpop.permute.xlu1 %5319  ;;  %v12215_v34 = vpop.permute.xlu2 %5261 }
 0x81e   : > { %v12217_v53 = vpop.permute.xlu0 %5293  ;;  %v12221_v11 = vsel %vm984_vm0, %v5318_v41, %v12213_v15  ;;  %v13137_v41 = vld [vmem:[#allocation9_spill] sm:$0xff] }
 0x823   : > { %5811 = vrot.lane.b32.xlu1 %v11673_v23, %s7280_s12  ;;  %5582 = vrot.lane.b32.xlu2 %v7017_v51, %s7279_s16  ;;  %v5349_v23 = vsel %vm984_vm0, %v5284_v16, %v12112_v57 }
 0x824   : > { %5833 = vrot.lane.b32.xlu0 %v11319_v28, %s7280_s12 }
 0x825   : > { %v5260_v27 = vpop.permute.xlu1 %5259  ;;  %v5292_v59 = vpop.permute.xlu2 %5291 }
 0x826   : > { %v5352_v49 = vsel %vm984_vm0, %v5292_v59, %v12217_v53  ;;  %v5324_v5 = vpop.permute.xlu0 %5323 }
 0x827   : > { %5406 = vmatpush.bf16.msrb.mxu1 %v5352_v49 }
 0x82b   : > { %5791 = vrot.lane.b32.xlu1 %v11899_v36, %s7280_s12  ;;  %5560 = vrot.lane.b32.xlu2 %v13137_v41, %s7279_s16 }
 0x82c   : > { %5823 = vrot.lane.b32.xlu0 %v11873_v8, %s7280_s12  ;;  %5407 = vmatpush.bf16.msrb.mxu1 %v5349_v23 }
 0x82d   : > { %v5326_v28 = vpop.permute.xlu1 %5325  ;;  %v5517_v22 = vpop.permute.xlu2 %5516 }
 0x82e   : > { %v5364_v3 = vsel %vm984_vm0, %v5324_v5, %v5326_v28  ;;  %v5579_v59 = vpop.permute.xlu0 %5578 }
 0x82f   : > { %5423 = vmatpush.bf16.msrb.mxu2 %v5364_v3 }
 0x830   : > { %5408 = vmatpush.bf16.msrb.mxu1 %v12045_v17  ;;  %v5340_v17 = vsel %vm984_vm0, %v5260_v27, %v12215_v34 }
 0x833   : > { %5841 = vrot.lane.b32.xlu1 %v13126_v20, %s7280_s12  ;;  %5831 = vrot.lane.b32.xlu2 %v12002_v50, %s7280_s12 }
 0x834   : > { %5839 = vrot.lane.b32.xlu0 %v7017_v51, %s7280_s12  ;;  %5409 = vmatpush.bf16.msrb.mxu1 %v11940_v58  ;;  %v13138_v51 = vld [vmem:[#allocation22_spill] sm:$0xff] }
 0x835   : > { %5424 = vmatpush.bf16.msrb.mxu2 %v12130_v38  ;;  %v5515_v8 = vpop.permute.xlu1 %5514  ;;  %v12247_v36 = vpop.permute.xlu2 %5771  ;;  %v13139_v58 = vld [vmem:[#allocation6_spill] sm:$0xff] }
 0x836   : > { %v12249_v57 = vpop.permute.xlu0 %5546  ;;  %v12252_v16 = vsel %vm1574_vm1, %v5515_v8, %v5517_v22 }
 0x838   : > { %5410 = vmatpush.bf16.msrb.mxu1 %v5340_v17 }
 0x839   : > { %5425 = vmatpush.bf16.msrb.mxu2 %v12042_v47 }
 0x83b   : > { %5785 = vrot.lane.b32.xlu1 %v13138_v51, %s7280_s12  ;;  %5807 = vrot.lane.b32.xlu2 %v12118_v35, %s7280_s12  ;;  %v13140_v35 = vld [vmem:[#allocation18_spill] sm:$0xff]  ;;  %v13142_v51 = vld [vmem:[#allocation41_spill] sm:$0xff] }
 0x83c   : > { %5769 = vrot.lane.b32.xlu0 %v13139_v58, %s7280_s12  ;;  %5411 = vmatpush.bf16.msrb.mxu1 %v12127_v21 }
 0x83d   : > { %5426 = vmatpush.bf16.msrb.mxu2 %v11949_v55  ;;  %v12265_v50 = vpop.permute.xlu1 %5580  ;;  %v12267_v38 = vpop.permute.xlu2 %5837 }
 0x83e   : > { %v12271_v47 = vsel %vm1574_vm1, %v5579_v59, %v12265_v50  ;;  %v12273_v20 = vpop.permute.xlu0 %5803 }
 0x840   : > { %5412 = vmatpush.bf16.msrb.mxu1 %v12035_v63  ;;  %v6829_v63 = vld [vmem:[%s12600_s6 + $0x8] sm:$0xff] }
 0x843   : > { %5775 = vrot.lane.b32.xlu1 %v12085_v13, %s7280_s12  ;;  %5777 = vrot.lane.b32.xlu2 %v13140_v35, %s7280_s12  ;;  %v5038_v13 = vunpack.c.l.b16 %v6829_v63 }
 0x844   : > { %5759 = vrot.lane.b32.xlu0 %v11879_v24, %s7280_s12  ;;  %5413 = vmatpush.bf16.msrb.mxu1 %v11937_v12  ;;  %v13141_v24 = vld [vmem:[#allocation27_spill] sm:$0xff]  ;;  %v5039_v12 = vunpack.c.h.b16 %v6829_v63 }
 0x845   : > { %v12283_v55 = vpop.permute.xlu1 %5548  ;;  %v5828_v21 = vpop.permute.xlu2 %5827  ;;  %v12300_v27 = vpack.c.b16 %v5038_v13, %v5038_v13 }
 0x846   : > { %v12285_v49 = vpop.permute.xlu0 %5773  ;;  %v12302_v59 = vpack.c.b16 %v5039_v12, %v5039_v12  ;;  %v13148_v12 = vld [vmem:[#allocation53_spill] sm:$0xff] }
 0x847   : > { %5414 = vmatmul.bf16.vlgmr.msrb.gmra.mxu1 %v12300_v27 }
 0x848   : > { %7022 = vmatmul.msk.bf16.vlgmr.msrb.gmra.mxu2 %vm3570_vm9, %v12302_v59 }
 0x84b   : > { %5825 = vrot.lane.b32.xlu1 %v13134_v7, %s7280_s12  ;;  %5767 = vrot.lane.b32.xlu2 %v11989_v30, %s7280_s12 }
 0x84c   : > { %5753 = vrot.lane.b32.xlu0 %v13141_v24, %s7280_s12  ;;  %v5348_v24 = vsel %vm984_vm0, %v12062_v45, %v11487_v43 }
 0x84d   : > { %v12296_v5 = vpop.permute.xlu1 %5805  ;;  %v12298_v3 = vpop.permute.xlu2 %5757 }
 0x84e   : > { %v5264_v23 = vpop.permute.xlu0 %5263 }
 0x853   : > { %5815 = vrot.lane.b32.xlu1 %v11750_v37, %s7280_s12  ;;  %5817 = vrot.lane.b32.xlu2 %v13137_v41, %s7280_s12 }
 0x855   : > { %v12311_v30 = vpop.permute.xlu1 %5835  ;;  %v12313_v7 = vpop.permute.xlu2 %5576 }
 0x856   : > { %v12315_v8 = vpop.permute.xlu0 %5518 }
 0x857   : > { %v12319_v17 = vsel %vm1574_vm1, %v5517_v22, %v12315_v8 }
 0x85b   : > { %5761 = vrot.lane.b32.xlu1 %v13142_v51, %s7280_s12  ;;  %5751 = vrot.lane.b32.xlu2 %v11737_v44, %s7280_s12  ;;  %v5999_v44 = vld [vmem:[%s12601_s7] sm:$0xff]  ;;  %v13151_v51 = vld [vmem:[#allocation10_spill] sm:$0xff] }
 0x85d   : > { %v5296_v37 = vpop.permute.xlu1 %5295  ;;  %v5328_v58 = vpop.permute.xlu2 %5327 }
 0x85e   : > { %v5353_v41 = vsel %vm984_vm0, %v12217_v53, %v5296_v37  ;;  %v5354_v35 = vsel %vm984_vm0, %v5296_v37, %v11498_v42  ;;  %v5365_v63 = vsel %vm984_vm0, %v5326_v28, %v5328_v58  ;;  %v12330_v13 = vpop.permute.xlu0 %5829  ;;  %v5351_v42 = vsel %vm984_vm0, %v12196_v29, %v11533_v1 }
 0x85f   : > { %5432 = vmatpush.bf16.msrb.mxu3 %v5353_v41  ;;  %5449 = vmatpush.bf16.msra.mxu1 %v5365_v63  ;;  %v12334_v22 = vsel %vm2181_vm2, %v5828_v21, %v12330_v13  ;;  %v5345_v29 = vsel %vm984_vm0, %v12017_v10, %v11479_v40  ;;  %v5607_v1 = vsel %vm1574_vm1, %v12249_v57, %v12283_v55  ;;  %v13147_v57 = vld [vmem:[#allocation39_spill] sm:$0xff]  ;;  %v13152_v41 = vld [vmem:[#allocation46_spill] sm:$0xff]  ;;  %v13154_v63 = vld [vmem:[#allocation28_spill] sm:$0xff] }
 0x860   : > { %5458 = vmatpush.bf16.msra.mxu2 %v5354_v35  ;;  %v5342_v40 = vsel %vm984_vm0, %v5264_v23, %v11519_v25  ;;  %v5339_v10 = vsel %vm984_vm0, %v12144_v61, %v11469_v48  ;;  %v5366_v48 = vsel %vm984_vm0, %v5328_v58, %v11516_v54  ;;  %v13144_v54 = vld [vmem:[#allocation38_spill] sm:$0xff]  ;;  %v13153_v35 = vld [vmem:[#allocation13_spill] sm:$0xff] }
 0x863   : > { %6002 = vperm.xlu1 %7268, %v5999_v44   ;;  %5433 = vmatpush.bf16.msrb.mxu3 %v12205_v46  ;;  %v5611_v44 = vsel %vm1574_vm1, %v13154_v63, %v13153_v35  ;;  %v13171_v63 = vld [vmem:[#allocation30_spill] sm:$0xff] }
 0x864   : > { %5450 = vmatpush.bf16.msra.mxu1 %v12221_v11  ;;  %5459 = vmatpush.bf16.msra.mxu2 %v5351_v42  ;;  %v5864_v42 = vsel %vm2181_vm2, %v12273_v20, %v12296_v5  ;;  %v13155_v20 = vld [vmem:[#allocation61_spill] sm:$0xff] }
 0x865   : > { %v12344_v53 = vpop.permute.xlu1 %5765  ;;  %v12346_v28 = vpop.permute.xlu2 %5747 }
 0x866   : > { %v12348_v21 = vpop.permute.xlu0 %5809 }
 0x867   : > { %5434 = vmatpush.bf16.msrb.mxu3 %v12066_v26 }
 0x868   : > { %5451 = vmatpush.bf16.msra.mxu1 %v12104_v0  ;;  %5460 = vmatpush.bf16.msra.mxu2 %v5348_v24  ;;  %v5336_v0 = vsel %vm984_vm0, %v12092_v6, %v11456_v19  ;;  %v13145_v6 = vld [vmem:[#allocation24_spill] sm:$0xff] }
 0x86b   : > { %5435 = vmatpush.bf16.msrb.mxu3 %v12023_v9  ;;  %v5341_v9 = vsel %vm984_vm0, %v12215_v34, %v5264_v23  ;;  %v13146_v34 = vld [vmem:[#allocation35_spill] sm:$0xff]  ;;  %v13150_v23 = vld [vmem:[#allocation25_spill] sm:$0xff] }
 0x86c   : > { %5452 = vmatpush.bf16.msra.mxu1 %v11962_v33  ;;  %5461 = vmatpush.bf16.msra.mxu2 %v5345_v29 }
 0x86d   : > { %v5585_v26 = vpop.permute.xlu1 %5584  ;;  %v12363_v11 = vpop.permute.xlu2 %5813 }
 0x86e   : > { %v12365_v43 = vpop.permute.xlu0 %5819 }
 0x86f   : > { %5436 = vmatpush.bf16.msrb.mxu3 %v5341_v9  ;;  %7023 = vmatmul.msk.bf16.vlgmr.msra.gmra.mxu1 %vm3570_vm9, %v12302_v59 }
 0x870   : > { %5661 = vmatpush.bf16.msrb.mxu1 %v5607_v1  ;;  %5462 = vmatpush.bf16.msra.mxu2 %v5342_v40  ;;  %v13156_v40 = vld [vmem:[#allocation36_spill] sm:$0xff] }
 0x873   : > { %5437 = vmatpush.bf16.msrb.mxu3 %v12148_v31 }
 0x874   : > { %5662 = vmatpush.bf16.msrb.mxu1 %v12180_v62  ;;  %5463 = vmatpush.bf16.msra.mxu2 %v5339_v10  ;;  %v5360_v62 = vsel %vm984_vm0, %v13146_v34, %v13145_v6  ;;  %v5861_v10 = vsel %vm2181_vm2, %v13156_v40, %v13155_v20  ;;  %v13163_v34 = vld [vmem:[#allocation55_spill] sm:$0xff] }
 0x875   : > { %v12379_v33 = vpop.permute.xlu1 %5755  ;;  %v12381_v45 = vpop.permute.xlu2 %5793 }
 0x876   : > { %v12383_v25 = vpop.permute.xlu0 %5799 }
 0x877   : > { %5438 = vmatpush.bf16.msrb.mxu3 %v12100_v60 }
 0x878   : > { %5663 = vmatpush.bf16.msrb.mxu1 %v12069_v18  ;;  %5464 = vmatpush.bf16.msra.mxu2 %v5336_v0  ;;  %v13143_v18 = vld [vmem:[#allocation49_spill] sm:$0xff] }
 0x879   : > { %v5333_v61 = vsel %vm984_vm0, %v13143_v18, %v11503_v2  ;;  %v4986_v2 = vld [vmem:[%s12600_s6] sm:$0xff]  ;;  %v13161_v18 = vld [vmem:[#allocation16_spill] sm:$0xff] }
 0x87a   : > { %v5485_v46 = vunpack.c.l.b16 %v4986_v2  ;;  %v5486_v24 = vunpack.c.h.b16 %v4986_v2 }
 0x87b   : > { %5439 = vmatpush.bf16.msrb.mxu3 %v12007_v39  ;;  %v5363_v39 = vsel %vm984_vm0, %v12213_v15, %v13144_v54  ;;  %v13162_v54 = vld [vmem:[#allocation44_spill] sm:$0xff] }
 0x87c   : > { %5664 = vmatpush.bf16.msrb.mxu1 %v11969_v56  ;;  %5465 = vmatpush.bf16.msra.mxu2 %v5333_v61  ;;  %v12425_v37 = vpack.c.b16 %v5485_v46, %v5485_v46  ;;  %v5488_v0 = vpack.c.b16 %v5486_v24, %v5486_v24  ;;  %v13165_v46 = vld [vmem:[#allocation43_spill] sm:$0xff]  ;;  %v13172_v24 = vld [vmem:[#allocation42_spill] sm:$0xff] }
 0x87d   : > { %v12397_v60 = vpop.permute.xlu1 %5821  ;;  %v5583_v31 = vpop.permute.xlu2 %5582 }
 0x87e   : > { %v5620_v19 = vsel %vm1574_vm1, %v12265_v50, %v5583_v31  ;;  %v12401_v56 = vpop.permute.xlu0 %5749  ;;  %5440 = vmatmul.bf16.vlgmr.msrb.gmra.mxu3 %v12300_v27  ;;  %v5621_v58 = vsel %vm1574_vm1, %v5583_v31, %v5585_v26 }
 0x87f   : > { %5475 = vmatpush.bf16.msra.mxu3 %v5366_v48  ;;  %5466 = vmatmul.bf16.vlgmr.msra.gmra.mxu2 %v12300_v27  ;;  %v13160_v48 = vld [vmem:[#allocation51_spill] sm:$0xff] }
 0x880   : > { %5665 = vmatpush.bf16.msrb.mxu1 %v12252_v16  ;;  %5704 = vmatpush.bf16.msrb.mxu2 %v5620_v19 }
 0x883   : > { %5476 = vmatpush.bf16.msra.mxu3 %v5363_v39 }
 0x884   : > { %5666 = vmatpush.bf16.msrb.mxu1 %v12151_v32  ;;  %5705 = vmatpush.bf16.msrb.mxu2 %v12200_v52  ;;  %v13149_v32 = vld [vmem:[#allocation50_spill] sm:$0xff]  ;;  %v5357_v52 = vsel %vm984_vm0, %v13151_v51, %v13150_v23  ;;  %v13169_v51 = vld [vmem:[#allocation60_spill] sm:$0xff] }
 0x885   : > { %v12417_v15 = vpop.permute.xlu1 %5801  ;;  %v5561_v16 = vpop.permute.xlu2 %5560  ;;  %v5614_v27 = vsel %vm1574_vm1, %v13149_v32, %v13148_v12 }
 0x886   : > { %v5569_v50 = vpop.permute.xlu0 %5568  ;;  %v5612_v39 = vsel %vm1574_vm1, %v13153_v35, %v5561_v16  ;;  %v13168_v16 = vld [vmem:[#allocation26_spill] sm:$0xff] }
 0x887   : > { %5477 = vmatpush.bf16.msra.mxu3 %v5360_v62  ;;  %v13164_v62 = vld [vmem:[#allocation33_spill] sm:$0xff] }
 0x888   : > { %5667 = vmatpush.bf16.msrb.mxu1 %v13147_v57  ;;  %5706 = vmatpush.bf16.msrb.mxu2 %v5614_v27  ;;  %v5855_v57 = vsel %vm2181_vm2, %v13165_v46, %v13164_v62  ;;  %v5852_v27 = vsel %vm2181_vm2, %v12247_v36, %v12285_v49  ;;  %v5849_v36 = vsel %vm2181_vm2, %v13171_v63, %v12344_v53 }
 0x88b   : > { %5478 = vmatpush.bf16.msra.mxu3 %v5357_v52  ;;  %v13170_v52 = vld [vmem:[#allocation52_spill] sm:$0xff] }
 0x88c   : > { %5668 = vmatpush.bf16.msrb.mxu1 %v13152_v41  ;;  %5707 = vmatpush.bf16.msrb.mxu2 %v5611_v44  ;;  %v12499_v44 = vld [vmem:[%s12600_s6 + $0x10] sm:$0xff] }
 0x88d   : > { %v5551_v29 = vpop.permute.xlu1 %5550  ;;  %v12437_v1 = vpop.permute.xlu2 %5831  ;;  %v5742_v40 = vunpack.c.l.b16 %v12499_v44 }
 0x88e   : > { %v5608_v26 = vsel %vm1574_vm1, %v12283_v55, %v5551_v29  ;;  %v12445_v9 = vpop.permute.xlu0 %5783  ;;  %7024 = vmatmul.msk.bf16.vlgmr.msra.gmra.mxu3 %vm3570_vm9, %v12302_v59  ;;  %v13158_v55 = vld [vmem:[#allocation31_spill] sm:$0xff]  ;;  %v5609_v61 = vsel %vm1574_vm1, %v5551_v29, %v13161_v18  ;;  %v13173_v29 = vld [vmem:[#allocation45_spill] sm:$0xff]  ;;  %v13178_v18 = vld [vmem:[#allocation8_spill] sm:$0xff] }
 0x88f   : > { %5678 = vmatpush.bf16.msrb.mxu3 %v12271_v47  ;;  %5669 = vmatmul.bf16.vlgmr.msrb.gmra.mxu1 %v12425_v37  ;;  %v5618_v47 = vsel %vm1574_vm1, %v12194_v4, %v12313_v7  ;;  %v5615_v4 = vsel %vm1574_vm1, %v13148_v12, %v5569_v50  ;;  %v13159_v7 = vld [vmem:[#allocation17_spill] sm:$0xff]  ;;  %v13166_v50 = vld [vmem:[#allocation20_spill] sm:$0xff]  ;;  %v13167_v12 = vld [vmem:[#allocation59_spill] sm:$0xff] }
 0x890   : > { %5730 = vmatpush.bf16.msra.mxu1 %v5621_v58  ;;  %5918 = vmatpush.bf16.msra.mxu2 %v5864_v42  ;;  %v5858_v59 = vsel %vm2181_vm2, %v13160_v48, %v13159_v7  ;;  %v5606_v32 = vsel %vm1574_vm1, %v13167_v12, %v13166_v50  ;;  %v5603_v58 = vsel %vm1574_vm1, %v13170_v52, %v13169_v51 }
 0x891   : > { %5687 = vmatpush.bf16.msra.mxu0 %v5608_v26  ;;  %7026 = vmatmul.msk.bf16.vlgmr.msrb.gmra.mxu2 %vm3570_vm9, %v5488_v0  ;;  %v13174_v26 = vld [vmem:[#allocation58_spill] sm:$0xff]  ;;  %v5843_v48 = vsel %vm2181_vm2, %v12346_v28, %v12401_v56  ;;  %v5876_v12 = vsel %vm2181_vm2, %v12311_v30, %v12267_v38  ;;  %v5870_v30 = vsel %vm2181_vm2, %v12365_v43, %v12397_v60 }
 0x893   : > { %5679 = vmatpush.bf16.msrb.mxu3 %v12163_v14  ;;  %v13157_v14 = vld [vmem:[#allocation29_spill] sm:$0xff] }
 0x894   : > { %5731 = vmatpush.bf16.msra.mxu1 %v5618_v47  ;;  %5919 = vmatpush.bf16.msra.mxu2 %v5861_v10  ;;  %v5600_v47 = vsel %vm1574_vm1, %v13173_v29, %v13172_v24 }
 0x895   : > { %5688 = vmatpush.bf16.msra.mxu0 %v13158_v55  ;;  %v12462_v31 = vpop.permute.xlu1 %5811  ;;  %v5808_v19 = vpop.permute.xlu2 %5807 }
 0x896   : > { %v5865_v2 = vsel %vm2181_vm2, %v12296_v5, %v5808_v19  ;;  %v5834_v6 = vpop.permute.xlu0 %5833  ;;  %v5862_v5 = vsel %vm2181_vm2, %v13155_v20, %v12383_v25  ;;  %v5846_v20 = vsel %vm2181_vm2, %v12379_v33, %v12298_v3  ;;  %v13177_v33 = vld [vmem:[#allocation4_spill] sm:$0xff] }
 0x897   : > { %5680 = vmatpush.bf16.msrb.mxu3 %v13157_v14 }
 0x898   : > { %5732 = vmatpush.bf16.msra.mxu1 %v5615_v4  ;;  %5920 = vmatpush.bf16.msra.mxu2 %v5858_v59  ;;  %v12520_v59 = vpack.c.b16 %v5742_v40, %v5742_v40 }
 0x899   : > { %5689 = vmatpush.bf16.msra.mxu0 %v13163_v34  ;;  %v13180_v34 = vld [vmem:[#allocation21_spill] sm:$0xff] }
 0x89b   : > { %5681 = vmatpush.bf16.msrb.mxu3 %v13162_v54  ;;  %v5866_v54 = vsel %vm2181_vm2, %v5808_v19, %v12348_v21  ;;  %v13182_v19 = vld [vmem:[#allocation57_spill] sm:$0xff] }
 0x89c   : > { %5733 = vmatpush.bf16.msra.mxu1 %v5612_v39  ;;  %5921 = vmatpush.bf16.msra.mxu2 %v5855_v57  ;;  %v13183_v57 = vld [vmem:[#allocation47_spill] sm:$0xff] }
 0x89d   : > { %5690 = vmatpush.bf16.msra.mxu0 %v13168_v16  ;;  %v5792_v23 = vpop.permute.xlu1 %5791  ;;  %v5778_v42 = vpop.permute.xlu2 %5777  ;;  %v5588_v50 = vsel %vm1574_vm1, %v13183_v57, %v13182_v19 }
 0x89e   : > { %v12487_v41 = vpop.permute.xlu0 %5823  ;;  %v5859_v35 = vsel %vm2181_vm2, %v13159_v7, %v5792_v23  ;;  %7025 = vmatmul.msk.bf16.vlgmr.msrb.gmra.mxu3 %vm3570_vm9, %v5488_v0  ;;  %v13176_v7 = vld [vmem:[#allocation11_spill] sm:$0xff] }
 0x89f   : > { %5713 = vmatpush.bf16.msra.mxu3 %v5609_v61  ;;  %7027 = vmatmul.msk.bf16.vlgmr.msra.gmra.mxu1 %vm3570_vm9, %v5488_v0  ;;  %v13175_v0 = vld [vmem:[#allocation23_spill] sm:$0xff]  ;;  %v5594_v61 = vsel %vm1574_vm1, %v13178_v18, %v13177_v33  ;;  %v5871_v63 = vsel %vm2181_vm2, %v12397_v60, %v12487_v41 }
 0x8a0   : > { %5944 = vmatpush.bf16.msrb.mxu1 %v5865_v2  ;;  %5922 = vmatpush.bf16.msra.mxu2 %v5852_v27  ;;  %v5597_v14 = vsel %vm1574_vm1, %v12315_v8, %v13175_v0  ;;  %v5875_v8 = vsel %vm2181_vm2, %v12437_v1, %v5834_v6  ;;  %v13179_v2 = vld [vmem:[#allocation48_spill] sm:$0xff]  ;;  %v5863_v6 = vsel %vm2181_vm2, %v12383_v25, %v12417_v15 }
 0x8a1   : > { %5691 = vmatpush.bf16.msra.mxu0 %v12319_v17  ;;  %v5856_v17 = vsel %vm2181_vm2, %v13164_v62, %v12445_v9  ;;  %v13181_v62 = vld [vmem:[#allocation14_spill] sm:$0xff] }
 0x8a2   : > { %v5591_v46 = vsel %vm1574_vm1, %v13181_v62, %v13180_v34 }
 0x8a3   : > { %5714 = vmatpush.bf16.msra.mxu3 %v5606_v32  ;;  %v5860_v32 = vsel %vm2181_vm2, %v5792_v23, %v12381_v45 }
 0x8a4   : > { %5945 = vmatpush.bf16.msrb.mxu1 %v5862_v5  ;;  %5923 = vmatpush.bf16.msra.mxu2 %v5849_v36 }
 0x8a5   : > { %5692 = vmatpush.bf16.msra.mxu0 %v13174_v26  ;;  %v5842_v10 = vpop.permute.xlu1 %5841  ;;  %v5768_v39 = vpop.permute.xlu2 %5767 }
 0x8a6   : > { %v5840_v4 = vpop.permute.xlu0 %5839  ;;  %v5850_v45 = vsel %vm2181_vm2, %v12344_v53, %v5768_v39 }
 0x8a7   : > { %5715 = vmatpush.bf16.msra.mxu3 %v5603_v58  ;;  %v5878_v55 = vsel %vm2181_vm2, %v5840_v4, %v5842_v10  ;;  %v5877_v53 = vsel %vm2181_vm2, %v12267_v38, %v5840_v4 }
 0x8a8   : > { %5946 = vmatpush.bf16.msrb.mxu1 %v5859_v35  ;;  %5924 = vmatpush.bf16.msra.mxu2 %v5846_v20 }
 0x8a9   : > { %5693 = vmatpush.bf16.msra.mxu0 %v13176_v7 }
 0x8ab   : > { %5716 = vmatpush.bf16.msra.mxu3 %v5600_v47 }
 0x8ac   : > { %5947 = vmatpush.bf16.msrb.mxu1 %v5856_v17  ;;  %5925 = vmatpush.bf16.msra.mxu2 %v5843_v48 }
 0x8ad   : > { %5694 = vmatpush.bf16.msra.mxu0 %v13179_v2  ;;  %v5786_v28 = vpop.permute.xlu1 %5785  ;;  %v5818_v5 = vpop.permute.xlu2 %5817 }
 0x8ae   : > { %v5770_v21 = vpop.permute.xlu0 %5769  ;;  %v5857_v15 = vsel %vm2181_vm2, %v12445_v9, %v5786_v28  ;;  %v5867_v9 = vsel %vm2181_vm2, %v12462_v31, %v12363_v11 }
 0x8af   : > { %5717 = vmatpush.bf16.msra.mxu3 %v5597_v14  ;;  %5926 = vmatmul.bf16.vlgmr.msra.gmra.mxu2 %v12520_v59  ;;  %v5851_v52 = vsel %vm2181_vm2, %v5768_v39, %v5770_v21 }
 0x8b0   : > { %5987 = vmatpush.bf16.msrb.mxu2 %v5878_v55  ;;  %5695 = vmatmul.bf16.vlgmr.msra.gmra.mxu0 %v12425_v37 }
 0x8b1   : > { %5970 = vmatpush.bf16.msrb.mxu0 %v5866_v54 }
 0x8b3   : > { %5718 = vmatpush.bf16.msra.mxu3 %v5594_v61 }
 0x8b4   : > { %5988 = vmatpush.bf16.msrb.mxu2 %v5875_v8 }
 0x8b5   : > { %5971 = vmatpush.bf16.msrb.mxu0 %v5863_v6  ;;  %v5776_v16 = vpop.permute.xlu1 %5775  ;;  %v5752_v51 = vpop.permute.xlu2 %5751 }
 0x8b6   : > { %v5853_v25 = vsel %vm2181_vm2, %v12285_v49, %v5776_v16  ;;  %v5760_v27 = vpop.permute.xlu0 %5759  ;;  %v5844_v31 = vsel %vm2181_vm2, %v12401_v56, %v5752_v51 }
 0x8b7   : > { %5719 = vmatpush.bf16.msra.mxu3 %v5591_v46  ;;  %5948 = vmatpush.bf16.msrb.mxu1 %v5853_v25  ;;  %v5847_v23 = vsel %vm2181_vm2, %v12298_v3, %v5760_v27  ;;  %v5874_v3 = vsel %vm2181_vm2, %v12330_v13, %v12437_v1 }
 0x8b9   : > { %5972 = vmatpush.bf16.msrb.mxu0 %v5860_v32 }
 0x8bb   : > { %5720 = vmatpush.bf16.msra.mxu3 %v5588_v50  ;;  %5949 = vmatpush.bf16.msrb.mxu1 %v5850_v45 }
 0x8bd   : > { %5973 = vmatpush.bf16.msrb.mxu0 %v5857_v15  ;;  %v5826_v49 = vpop.permute.xlu1 %5825 }
 0x8be   : > { %5721 = vmatmul.bf16.vlgmr.msra.gmra.mxu3 %v12425_v37  ;;  %v5854_v37 = vsel %vm2181_vm2, %v5776_v16, %v5778_v42  ;;  %v5872_v43 = vsel %vm2181_vm2, %v12487_v41, %v5826_v49  ;;  %v5754_v36 = vpop.permute.xlu0 %5753 }
 0x8bf   : > { %5935 = vmatpush.bf16.msrb.mxu3 %v5876_v12  ;;  %5950 = vmatpush.bf16.msrb.mxu1 %v5847_v23 }
 0x8c0   : > { %5989 = vmatpush.bf16.msrb.mxu2 %v5872_v43 }
 0x8c1   : > { %5974 = vmatpush.bf16.msrb.mxu0 %v5854_v37 }
 0x8c3   : > { %5936 = vmatpush.bf16.msrb.mxu3 %v12334_v22  ;;  %v5743_v22 = vunpack.c.h.b16 %v12499_v44  ;;  %5951 = vmatpush.bf16.msrb.mxu1 %v5844_v31  ;;  %v5845_v44 = vsel %vm2181_vm2, %v5752_v51, %v5754_v36 }
 0x8c4   : > { %v5415_v42 = vpop.f32.mrf.mxu1 }
 0x8c5   : > { %5975 = vmatpush.bf16.msrb.mxu0 %v5851_v52  ;;  %v5745_v58 = vpack.c.b16 %v5743_v22, %v5743_v22  ;;  %v5816_v35 = vpop.permute.xlu1 %5815 }
 0x8c6   : > { %v5869_v38 = vsel %vm2181_vm2, %v5816_v35, %v5818_v5  ;;  %5952 = vmatmul.bf16.vlgmr.msrb.gmra.mxu1 %v12520_v59  ;;  %v5868_v56 = vsel %vm2181_vm2, %v12363_v11, %v5816_v35 }
 0x8c7   : > { %5937 = vmatpush.bf16.msrb.mxu3 %v5870_v30  ;;  %5990 = vmatpush.bf16.msrb.mxu2 %v5869_v38 }
 0x8ca   : > { %7031 = vmatmul.msk.bf16.vlgmr.msrb.gmra.mxu2 %vm3570_vm9, %v5745_v58 }
 0x8cb   : > { %5938 = vmatpush.bf16.msrb.mxu3 %v5867_v9  ;;  %v5428_v41 = vpop.f32.mrf.mxu2 }
 0x8cc   : > { %v5417_v60 = vpop.f32.mrf.mxu1  ;;  %v5429_v24 = vadd.f32 %v5428_v41, %v5415_v42 }
 0x8cd   : > { %v5762_v13 = vpop.permute.xlu1 %5761 }
 0x8ce   : > { %7029 = vmatmul.msk.bf16.vlgmr.msrb.gmra.mxu3 %vm3570_vm9, %v5745_v58  ;;  %v5848_v1 = vsel %vm2181_vm2, %v5760_v27, %v5762_v13 }
 0x8cf   : > { %5961 = vmatpush.bf16.msra.mxu3 %v5877_v53  ;;  %5976 = vmatpush.bf16.msrb.mxu0 %v5848_v1 }
 0x8d3   : > { %5962 = vmatpush.bf16.msra.mxu3 %v5874_v3  ;;  %5977 = vmatpush.bf16.msrb.mxu0 %v5845_v44  ;;  %v5430_v47 = vpop.f32.mrf.mxu2 }
 0x8d5   : > { %v6003_v5 = vpop.permute.xlu1 %6002 }
 0x8d6   : > { %5978 = vmatmul.bf16.vlgmr.msrb.gmra.mxu0 %v12520_v59 }
 0x8d7   : > { %5963 = vmatpush.bf16.msra.mxu3 %v5871_v63 }
 0x8db   : > { %5964 = vmatpush.bf16.msra.mxu3 %v5868_v56 }
 0x8de   : > { %7030 = vmatmul.msk.bf16.vlgmr.msra.gmra.mxu3 %vm3570_vm9, %v5745_v58 }
 0x8ec   : > { %v5454_v29 = vpop.f32.mrf.mxu1 }
 0x8f4   : > { %v5456_v11 = vpop.f32.mrf.mxu1 }
 0x901   : > { %v5441_v17 = vpop.f32.mrf.mxu3 }
 0x902   : > { %v5455_v26 = vadd.f32 %v5454_v29, %v5441_v17  ;;  %v5467_v20 = vpop.f32.mrf.mxu2 }
 0x909   : > { %v5443_v40 = vpop.f32.mrf.mxu3 }
 0x90a   : > { %v5469_v0 = vpop.f32.mrf.mxu2 }
 0x90c   : > { %v5670_v10 = vpop.f32.mrf.mxu1 }
 0x90d   : > { %v5671_v21 = vadd.f32 %v5670_v10, %v5429_v24 }
 0x911   : > { %v5480_v14 = vpop.f32.mrf.mxu3 }
 0x912   : > { %v5481_v15 = vadd.f32 %v5480_v14, %v5467_v20 }
 0x914   : > { %v5672_v4 = vpop.f32.mrf.mxu1  ;;  %v5709_v55 = vpop.f32.mrf.mxu2 }
 0x919   : > { %v5482_v7 = vpop.f32.mrf.mxu3 }
 0x91c   : > { %v5711_v48 = vpop.f32.mrf.mxu2  ;;  %v5735_v33 = vpop.f32.mrf.mxu1 }
 0x921   : > { %v5683_v59 = vpop.f32.mrf.mxu3 }
 0x922   : > { %v5684_v57 = vadd.f32 %v5683_v59, %v5671_v21 }
 0x924   : > { %v5737_v18 = vpop.f32.mrf.mxu1 }
 0x929   : > { %v5685_v61 = vpop.f32.mrf.mxu3 }
 0x92d   : > { %v5696_v8 = vpop.f32.mrf.mxu0 }
 0x92e   : > { %v5697_v54 = vadd.f32 %v5696_v8, %v5455_v26 }
 0x930   : > { %v5710_v39 = vadd.f32 %v5709_v55, %v5697_v54 }
 0x932   : > { %v5927_v2 = vpop.f32.mrf.mxu2 }
 0x935   : > { %v5698_v28 = vpop.f32.mrf.mxu0 }
 0x93a   : > { %v5929_v34 = vpop.f32.mrf.mxu2 }
 0x941   : > { %v5722_v62 = vpop.f32.mrf.mxu3 }
 0x942   : > { %v5723_v30 = vadd.f32 %v5722_v62, %v5481_v15 }
 0x943   : > { %v5953_v6 = vpop.f32.mrf.mxu1 }
 0x944   : > { %v5736_v37 = vadd.f32 %v5735_v33, %v5723_v30 }
 0x949   : > { %v5724_v46 = vpop.f32.mrf.mxu3 }
 0x94b   : > { %v5955_v32 = vpop.f32.mrf.mxu1 }
 0x94d   : > { %v5992_v25 = vpop.f32.mrf.mxu2 }
 0x951   : > { %v5940_v19 = vpop.f32.mrf.mxu3 }
 0x952   : > { %v5941_v50 = vadd.f32 %v5940_v19, %v5927_v2 }
 0x953   : > { %v5979_v27 = vpop.f32.mrf.mxu0 }
 0x954   : > { %v5996_v12 = vadd.f32 %v5941_v50, %v5684_v57  ;;  %v5993_v49 = vadd.f32 %v5992_v25, %v5979_v27 }
 0x955   : > { %v5994_v22 = vpop.f32.mrf.mxu2 }
 0x956   : > { %v6005_v16 = vadd.f32 %v6003_v5, %v5996_v12  ;;  %v5998_v9 = vadd.f32 %v5993_v49, %v5736_v37 }
 0x958   : > { %6008 = vst [vmem:[%s332_s20] sm:$0xff] %v6005_v16  ;;  %v6007_v23 = vadd.f32 %v6003_v5, %v5998_v9 }
 0x959   : > { %v5942_v45 = vpop.f32.mrf.mxu3 }
 0x95a   : > { %6010 = vst [vmem:[%s332_s20 + $0x10] sm:$0xff] %v6007_v23 }
 0x95b   : > { %v5981_v52 = vpop.f32.mrf.mxu0 }
 0x961   : > { %v5966_v43 = vpop.f32.mrf.mxu3 }
 0x962   : > { %v5967_v53 = vadd.f32 %v5966_v43, %v5953_v6 }
 0x964   : > { %v5997_v51 = vadd.f32 %v5967_v53, %v5710_v39 }
 0x966   : > { %v6006_v58 = vadd.f32 %v6003_v5, %v5997_v51 }
 0x968   : > { %6009 = vst [vmem:[%s332_s20 + $0x8] sm:$0xff] %v6006_v58 }
 0x969   : > { %v5968_v31 = vpop.f32.mrf.mxu3 }
 0x96a PF: > { %s19_s30 = sadd.s32 1, %s7276_s30  }
 0x96b   : > { %p16_p4 = scmp.ge.s32.totalorder %s19_s30, 4  }
 0x96d   :  { %18 = sbr.rel (!%p16_p4) target bundleno = 1 (0x1), region = 92 }

</bundles_post_ra>
